<compile_context>
chip_gen: v7x
topology: tpu7x:2x2x1
jax: 0.10.0
libtpu: 0.0.40
codegen_flags: <defaults>
</compile_context>

<pallas_src>
import jax
import jax.numpy as jnp
from jax.experimental import pallas as pl
from jax.experimental.pallas import tpu as pltpu

LANE = 128
# Below ~4 MiB of f32 data the fused-XLA path (already near HBM roofline) wins
# over the pallas_call launch + reshape boundary cost.
_MIN_PALLAS_ELEMS = 1 << 20   # 1M elements
_MAX_TILE_ROWS = 4096         # 2 MiB f32 block -> 8 MiB pipeline VMEM (v5e-safe)
_MIN_GRID_STEPS = 8           # >= 4 steps per TensorCore on v7x


def _round_up(v: int, m: int) -> int:
    return ((v + m - 1) // m) * m


def _sublane_pack(dtype) -> int:
    # Rows packed per sublane: 8 for 4-byte, 16 for 2-byte, 32 for 1-byte dtypes.
    return {4: 8, 2: 16, 1: 32}.get(jnp.dtype(dtype).itemsize, 8)


def _pick_tile_rows(rows: int, pack: int) -> int:
    """Pick a block row count giving an even, >=_MIN_GRID_STEPS-step grid."""
    steps = max(_MIN_GRID_STEPS, pl.cdiv(rows, _MAX_TILE_ROWS))
    if steps % 2:
        steps += 1                      # even split across v7x's two TensorCores
    tr = _round_up(pl.cdiv(rows, steps), pack)
    # Guard: if sublane rounding shrank the step count to an odd number, grow it.
    for _ in range(2):
        actual = pl.cdiv(rows, tr)
        if actual <= 1 or actual % 2 == 0:
            break
        tr = _round_up(pl.cdiv(rows, actual + 1), pack)
    return max(min(tr, _round_up(_MAX_TILE_ROWS, pack)), pack)


def _symlog_kernel(x_ref, o_ref):
    # Upcast to f32: the kernel is HBM-bound, so the cast is free and keeps the
    # log1p correction accurate for bf16/f16 inputs.
    x = x_ref[...].astype(jnp.float32)
    a = jnp.abs(x)
    # Accurate log1p(a) with only guaranteed-lowerable ops (Goldberg correction):
    #   u = 1 + a ;  log1p(a) = a                      if u == 1 (a below eps)
    #                         = log(u) * a / (u - 1)   otherwise
    u = a + 1.0
    d = u - 1.0
    tiny = d == 0.0
    log1p_a = jnp.where(tiny, a, jnp.log(u) * (a / jnp.where(tiny, 1.0, d)))
    log1p_a = jnp.where(a == jnp.inf, a, log1p_a)  # avoid inf/inf NaN for |x| = inf
    # sign(x) * log1p_a without the sign/mul VALU ops (x == 0 -> log1p_a == 0).
    o_ref[...] = jnp.where(x < 0.0, -log1p_a, log1p_a).astype(o_ref.dtype)


def _symlog_xla(x: jax.Array) -> jax.Array:
    return (jnp.sign(x) * jnp.log1p(jnp.abs(x))).astype(x.dtype)


def symlog(x: jax.Array) -> jax.Array:
    """Element-wise symlog; layout-agnostic (any shape / float dtype)."""
    n = x.size
    if n < _MIN_PALLAS_ELEMS or n % LANE != 0:
        # Small-input fast path / non-lane-aligned fallback: no pad, no copies.
        return _symlog_xla(x)

    rows = n // LANE
    x2d = x.reshape(rows, LANE)  # zero-copy reshape into a lane-dense slab

    pack = _sublane_pack(x.dtype)
    tr = _pick_tile_rows(rows, pack)
    grid = (pl.cdiv(rows, tr),)  # partial last block handled by Pallas masking

    itemsize = jnp.dtype(x.dtype).itemsize
    out2d = pl.pallas_call(
        _symlog_kernel,
        out_shape=jax.ShapeDtypeStruct((rows, LANE), x.dtype),
        grid_spec=pltpu.PrefetchScalarGridSpec(
            num_scalar_prefetch=0,
            grid=grid,
            in_specs=[pl.BlockSpec((tr, LANE), lambda i: (i, 0))],
            out_specs=pl.BlockSpec((tr, LANE), lambda i: (i, 0)),
        ),
        compiler_params=pltpu.CompilerParams(
            dimension_semantics=("parallel",),
        ),
        cost_estimate=pl.CostEstimate(
            flops=8 * n, transcendentals=n, bytes_accessed=2 * n * itemsize
        ),
    )(x2d)
    return out2d.reshape(x.shape)


if __name__ == "__main__":
    k_small, k_big, k_bf16 = jax.random.split(jax.random.PRNGKey(0), 3)

    def ref_fn(x):
        xf = x.astype(jnp.float32)
        return jnp.sign(xf) * jnp.log(jnp.abs(xf) + 1.0)

    # 1) Small NCHW input (module-scale demo) -> fused-XLA fast path.
    x_small = jax.random.normal(k_small, (2, 4, 16, 16), dtype=jnp.float32) * 5.0
    out_small = jax.block_until_ready(symlog(x_small))
    assert out_small.shape == x_small.shape and out_small.dtype == x_small.dtype
    assert jnp.max(jnp.abs(out_small - ref_fn(x_small))) < 1e-5

    # 2) Larger NCHW input -> exercises the Pallas kernel (8-step parallel grid).
    x_big = jax.random.normal(k_big, (8, 4, 256, 256), dtype=jnp.float32) * 5.0
    out_big = jax.block_until_ready(symlog(x_big))
    assert out_big.shape == x_big.shape and out_big.dtype == x_big.dtype
    assert jnp.max(jnp.abs(out_big - ref_fn(x_big))) < 1e-5

    # 3) bf16 input through the Pallas path (computed internally in f32).
    x_bf = (jax.random.normal(k_bf16, (8, 4, 256, 256), dtype=jnp.float32) * 5.0
            ).astype(jnp.bfloat16)
    out_bf = jax.block_until_ready(symlog(x_bf))
    assert out_bf.shape == x_bf.shape and out_bf.dtype == x_bf.dtype
    assert jnp.max(jnp.abs(out_bf.astype(jnp.float32) - ref_fn(x_bf))) < 3e-2

    print("KERNEL_OK")
</pallas_src>

<mosaic_0001>
module attributes {stable_mosaic.version = 11 : i64} {
  func.func @_symlog_kernel(%arg0: i32, %arg1: memref<2048x128xf32, #tpu.memory_space<vmem>>, %arg2: memref<2048x128xf32, #tpu.memory_space<vmem>>) attributes {dimension_semantics = [#tpu.dimension_semantics<parallel>], iteration_bounds = array<i64: 8>, scalar_prefetch = 0 : i64, scratch_operands = 0 : i64, tpu.core_type = #tpu.core_type<tc>, window_params = [{transform_indices = @transform_0, window_bounds = array<i64: 2048, 128>}, {transform_indices = @transform_1, window_bounds = array<i64: 2048, 128>}]} {
    %c0 = arith.constant 0 : index
    %c0_0 = arith.constant 0 : index
    %0 = vector.load %arg1[%c0, %c0_0] : memref<2048x128xf32, #tpu.memory_space<vmem>>, vector<2048x128xf32>
    %1 = math.absf %0 : vector<2048x128xf32>
    %cst = arith.constant 1.000000e+00 : f32
    %2 = vector.broadcast %cst : f32 to vector<2048x128xf32>
    %3 = arith.addf %1, %2 : vector<2048x128xf32>
    %cst_1 = arith.constant 1.000000e+00 : f32
    %4 = vector.broadcast %cst_1 : f32 to vector<2048x128xf32>
    %5 = arith.subf %3, %4 : vector<2048x128xf32>
    %cst_2 = arith.constant 0.000000e+00 : f32
    %6 = vector.broadcast %cst_2 : f32 to vector<2048x128xf32>
    %7 = arith.cmpf oeq, %5, %6 : vector<2048x128xf32>
    %8 = math.log %3 : vector<2048x128xf32>
    %cst_3 = arith.constant 1.000000e+00 : f32
    %9 = vector.broadcast %cst_3 : f32 to vector<2048x128xf32>
    %10 = arith.select %7, %9, %5 : vector<2048x128xi1>, vector<2048x128xf32>
    %11 = arith.divf %1, %10 : vector<2048x128xf32>
    %12 = arith.mulf %8, %11 : vector<2048x128xf32>
    %13 = arith.select %7, %1, %12 : vector<2048x128xi1>, vector<2048x128xf32>
    %cst_4 = arith.constant 0x7F800000 : f32
    %14 = vector.broadcast %cst_4 : f32 to vector<2048x128xf32>
    %15 = arith.cmpf oeq, %1, %14 : vector<2048x128xf32>
    %16 = arith.select %15, %1, %13 : vector<2048x128xi1>, vector<2048x128xf32>
    %cst_5 = arith.constant 0.000000e+00 : f32
    %17 = vector.broadcast %cst_5 : f32 to vector<2048x128xf32>
    %18 = arith.cmpf olt, %0, %17 : vector<2048x128xf32>
    %cst_6 = arith.constant 0.000000e+00 : f32
    %19 = vector.broadcast %cst_6 : f32 to vector<2048x128xf32>
    %20 = arith.subf %19, %16 : vector<2048x128xf32>
    %21 = arith.select %18, %20, %16 : vector<2048x128xi1>, vector<2048x128xf32>
    %c0_7 = arith.constant 0 : index
    %c0_8 = arith.constant 0 : index
    %22 = vector.load %arg2[%c0_7, %c0_8] : memref<2048x128xf32, #tpu.memory_space<vmem>>, vector<2048x128xf32>
    tpu.vector_store %arg2[%c0_7, %c0_8], %21 {strides = array<i32>} : memref<2048x128xf32, #tpu.memory_space<vmem>>, vector<2048x128xf32>,
    return
  }
  func.func @transform_0(%arg0: i32) -> (i32, i32) {
    %c0_i32 = arith.constant 0 : i32
    %c0_i32_0 = arith.constant 0 : i32
    return %arg0, %c0_i32 : i32, i32
  }
  func.func @transform_1(%arg0: i32) -> (i32, i32) {
    %c0_i32 = arith.constant 0 : i32
    %c0_i32_0 = arith.constant 0 : i32
    return %arg0, %c0_i32 : i32, i32
  }
}

</mosaic_0001>

<bundles_post_ra>
// kernel: tpu_custom_call.1
= control target key start
LH: loop header
LB: loop body
LE: loop exit
PB: predicated region body
PF: predicated region fallthrough
CT: control target
= control target key end

     0   :  { %6 = vsyncpa [#allocation3], 0  ;;  %s12685_s0 = inlined_call_operand.hbm [shape: f32[16384,128], index: 0, kind: input, shape index: {}]   ;;  %s12686_s1 = inlined_call_operand.hbm [shape: f32[16384,128], index: 1, kind: output, shape index: {}]  }
   0x1   :  { %8 = vsyncpa [#allocation3 + $0x1], 0 }
   0x2   :  { %9 = vsyncpa [#allocation4], 0 }
   0x3   :  { %11 = vsyncpa [#allocation4 + $0x1], 0  ;;  %s6292_s6 = smov 0   ;;  %s6294_s7 = smov 0  }
   0x4   :  { %s6296_s8 = smov 0   ;;  %s6298_s9 = smov 0  }
   0x5 LB: > { %s6313_s10 = sadd.s32 4294967295, %s6274_s9   ;;  %s4832_s11 = sadd.s32 4294967294, %s6274_s9   ;;  %s6274_s9 = sphi %s6298_s9, %s12705_s9   ;;  %s6270_s8 = sphi %s6296_s8, %s12704_s8   ;;  %s6266_s7 = sphi %s6294_s7, %s12703_s7   ;;  %s6262_s6 = sphi %s6292_s6, %s12702_s6  }
   0x6   : > { %s6317_s12 = sadd.s32 1, %s6274_s9   ;;  %s24_s13 = sadd.s32 1, %s6270_s8 }
   0x7   : > { %s21_s14 = ssub.s32 %s6274_s9, %s6317_s12  ;;  %p31_p0 = scmp.ne.s32.totalorder %s6270_s8, %s6266_s7 }
   0x8   : > { %p22_p1 = scmp.eq.s32.totalorder %s21_s14, 0  ;;  %p32_p2 = scmp.eq.s32.totalorder %s6274_s9, 0 }
   0x9   : > { %p37_p3 = scmp.ne.s32.totalorder %s6266_s7, %s6262_s6  ;;  %p38_p4 = scmp.eq.s32.totalorder %s6313_s10, 0 }
   0xa   : > { %s6329_s15 = scalar_select %p22_p1, %s6270_s8, %s24_s13  }
   0xb   : > { %p6331_p5 = por %p32_p2, %p31_p0  ;;  %p6335_p6 = por %p38_p4, %p37_p3 }
   0xc   : > { %p61_p7 = scmp.eq.s32.totalorder %s6313_s10, 7  ;;  %p67_p8 = scmp.eq.s32.totalorder %s4832_s11, 7 }
   0xd   : > { %p5116_p9 = scmp.lt.s32.totalorder %s6274_s9, 8  ;;  %s87_s20 = sand.u32 1, %s6270_s8  }
   0xe   : > { %p6341_p10 = por %p61_p7, %p31_p0  ;;  %p6345_p11 = por %p67_p8, %p37_p3 }
   0xf   : > { %s5102_s21 = sshll.u32 %s6274_s9, 15  ;;  %s4835_s22 = sshll.u32 %s87_s20, 11 }
  0x10   : > { %s12693_s18 = scalar_select %p6341_p10, 1, 0 }
  0x11   : > { %s12694_s19 = scalar_select %p6345_p11, 1, 0 }
  0x12   : > { %s6354_s25 = scalar_lea.hbm %s12685_s0, %s5102_s21  ;;  %s91_s26 = scalar_lea.vmem [#allocation2], %s4835_s22 }
  0x13   : > { %s98_s27 = sshll.u32 %s91_s26, 4  ;;  %p6358_p12 = pnand %p5116_p9, %p6331_p5  ;;  %s6362_s27 = int_to_ptr.vmem [resolvable:$true] %s98_s27 }
  0x14   : > { %s6364_s29 = scalar_lea.sflag [#allocation3], %s87_s20  ;;  %s6178_s30 = scalar_lea.hbm %s6354_s25, 32768 }
  0x15   : > { %p6179_p13 = scmp.ne.s32.totalorder %s6354_s25, %s6178_s30  ;;  %p6180_p0 = pneg %p6358_p12 }
  0x16   : > { %s6183_s4 = scalar_lea.hbm %s12685_s0, 262144  ;;  %p6184_p3 = scmp.lt.u32.totalorder %s6354_s25, %s12685_s0 }
  0x17   : > { %p6181_p1 = pnand %p6180_p0, %p6179_p13  ;;  %p6185_p4 = scmp.lt.u32.totalorder %s6183_s4, %s6178_s30 }
  0x18   : > { %p6187_p7 = scmp.lt.u32.totalorder %s6178_s30, %s6354_s25 }
  0x19   : > { %p6182_p2 = pneg %p6181_p1  ;;  %p6186_p5 = por %p6185_p4, %p6184_p3 }
  0x1b   : > { %p6188_p8 = por %p6187_p7, %p6186_p5 }
  0x1d   : > { %p6189_p9 = pnand %p6188_p8, %p6182_p2 }
  0x1f   : > { %6192 = shalt.err (!%p6189_p9)
}
  0x20   : > { %s6193_s13 = scalar_lea.vmem %s6362_s27, 32768  ;;  %s6276_s14 = smov [#allocation2]  }
  0x21   : > { %p6194_p13 = scmp.ne.s32.totalorder %s6362_s27, %s6193_s13  ;;  %s6198_s16 = sshll.u32 %s6276_s14, 4  ;;  %s6199_s16 = int_to_ptr.vmem [resolvable:$false] %s6198_s16 }
  0x22   : > { %s6200_s20 = scalar_lea.vmem %s6199_s16, 65536  ;;  %p6201_p10 = scmp.lt.s32.totalorder %s6362_s27, %s6199_s16 }
  0x23   : > { %p6196_p1 = pnand %p6194_p13, %p6180_p0  ;;  %p6202_p3 = scmp.lt.s32.totalorder %s6200_s20, %s6193_s13 }
  0x25   : > { %p6197_p11 = pneg %p6196_p1  ;;  %p6203_p4 = por %p6202_p3, %p6201_p10 }
  0x27   : > { %p6204_p5 = pnand %p6203_p4, %p6197_p11 }
  0x29   : > { %6207 = shalt.err (!%p6204_p5)
}
  0x2a   : > { %s6277_s21 = smov 128   ;;  %s6278_s22 = smov 8  }
  0x2b   : > { %5111 = dma.hbm_to_vmem [thread:$0]  (!%p6358_p12), %s6354_s25, 32768, %s6362_s27, %s6364_s29, %s6277_s21, %s6277_s21, %s6278_s22  }
  0x2c   : > { %p4838_p0 = scmp.ge.s32.totalorder %s6274_s9, 1  ;;  %p106_p2 = scmp.lt.s32.totalorder %s6274_s9, 9 }
  0x2e   : > { %p107_p7 = pnand %p4838_p0, %p106_p2 }
  0x2f   : > { %s6395_s23 = sand.u32 (!%p107_p7), 1, %s6266_s7  }
  0x30   : > { %110 = sbr.rel (%p107_p7) target bundleno = 1108 (0x454), region = 24  ;;  %s4839_s24 = sshll.u32 (!%p107_p7), %s6395_s23, 11 }
  0x31   : > { %s113_s26 = scalar_lea.sflag (!%p107_p7), [#allocation3], %s6395_s23  ;;  %s6401_s30 = scalar_lea.vmem (!%p107_p7), [#allocation2], %s4839_s24 }
  0x37   : > { %6253 = dma.done.wait (%p6335_p6), %s113_s26, 32768  }
  0x38   : > { %6255 = vsyncadd (%p6335_p6), %s113_s26, 4294934528  ;;  %v6408_v0 = vld [vmem:[%s6401_s30] sm:$0xff]  ;;  %v6411_v1 = vld [vmem:[%s6401_s30 + $0x8] sm:$0xff]  ;;  %s6575_s17 = scalar_lea.vmem [#allocation5], %s4839_s24  ;;  %s5103_s25 = sshll.u32 %s6313_s10, 15 }
  0x39   : > { %v6414_v2 = vld [vmem:[%s6401_s30 + $0x10] sm:$0xff]  ;;  %v6417_v3 = vand.u32 2147483647, %v6408_v0  ;;  %v6420_v4 = vand.u32 2147483647, %v6411_v1  ;;  %v6426_v6 = vld [vmem:[%s6401_s30 + $0x18] sm:$0xff]  ;;  %s12638_s2 = scalar_lea.hbm %s12686_s1, %s5103_s25 }
  0x3a   : > { %v6423_v5 = vand.u32 2147483647, %v6414_v2  ;;  %v6429_v7 = vld [vmem:[%s6401_s30 + $0x20] sm:$0xff]  ;;  %v6435_v11 = vand.u32 2147483647, %v6426_v6  ;;  %v6451_v18 = vld [vmem:[%s6401_s30 + $0x28] sm:$0xff] }
  0x3b   : > { %v649_v8 = vadd.f32 1.0, %v6417_v3  ;;  %v650_v9 = vadd.f32 1.0, %v6420_v4  ;;  %v6442_v14 = vand.u32 2147483647, %v6429_v7  ;;  %v6469_v24 = vand.u32 2147483647, %v6451_v18 }
  0x3c   : > { %v651_v10 = vadd.f32 1.0, %v6423_v5  ;;  %v652_v16 = vadd.f32 1.0, %v6435_v11  ;;  %v6472_v25 = vld [vmem:[%s6401_s30 + $0x30] sm:$0xff]  ;;  %v6475_v26 = vld [vmem:[%s6401_s30 + $0x38] sm:$0xff]  ;;  %v6482_v28 = vld [vmem:[%s6401_s30 + $0x40] sm:$0xff]  ;;  %vm3209_vm5 = vcmp.eq.f32.partialorder %v6417_v3, inf }
  0x3d   : > { %v6437_v12 = vadd.f32 -1.0, %v649_v8  ;;  %5154 = vlog2.f32 %v649_v8  ;;  %v6439_v13 = vadd.f32 -1.0, %v650_v9  ;;  %v653_v17 = vadd.f32 1.0, %v6442_v14  ;;  %v6517_v45 = vld [vmem:[%s6401_s30 + $0x48] sm:$0xff]  ;;  %s4759_s27 = sshll.u32 %s6575_s17, 4  ;;  %s4746_s10 = scalar_lea.sflag [#allocation4], %s6395_s23  ;;  %s12640_s27 = int_to_ptr.vmem [resolvable:$true] %s4759_s27 }
  0x3e   : > { %5156 = vlog2.f32 %v650_v9  ;;  %v6444_v15 = vadd.f32 -1.0, %v651_v10  ;;  %v6460_v21 = vadd.f32 -1.0, %v652_v16  ;;  %v654_v30 = vadd.f32 1.0, %v6469_v24  ;;  %s6208_s3 = scalar_lea.vmem %s12640_s27, 32768  ;;  %p12700_p10 = scmp.ne.s32.totalorder %s12693_s18, 0 }
  0x3f   : > { %vm1161_vm0 = vcmp.eq.f32.partialorder %v6437_v12, 0.0  ;;  %vm1162_vm1 = vcmp.eq.f32.partialorder %v6439_v13, 0.0  ;;  %5158 = vlog2.f32 %v651_v10  ;;  %v6465_v23 = vadd.f32 -1.0, %v653_v17  ;;  %p6209_p6 = scmp.ne.s32.totalorder %s12640_s27, %s6208_s3  ;;  %s6279_s4 = smov [#allocation5]  }
  0x40   : > { %v1929_v19 = vsel %vm1161_vm0, 1.0, %v6437_v12  ;;  %v1930_v20 = vsel %vm1162_vm1, 1.0, %v6439_v13  ;;  %vm1163_vm2 = vcmp.eq.f32.partialorder %v6444_v15, 0.0  ;;  %vm1164_vm3 = vcmp.eq.f32.partialorder %v6460_v21, 0.0  ;;  %s6212_s5 = sshll.u32 %s6279_s4, 4  ;;  %s6213_s5 = int_to_ptr.vmem [resolvable:$false] %s6212_s5 }
  0x41   : > { %5160 = vrcp.f32 %v1929_v19  ;;  %v1931_v22 = vsel %vm1163_vm2, 1.0, %v6444_v15  ;;  %v1932_v27 = vsel %vm1164_vm3, 1.0, %v6460_v21  ;;  %vm1165_vm4 = vcmp.eq.f32.partialorder %v6465_v23, 0.0  ;;  %p6210_p11 = pnand %p6209_p6, %p12700_p10  ;;  %s6214_s11 = scalar_lea.vmem %s6213_s5, 65536 }
  0x42   : > { %5162 = vrcp.f32 %v1930_v20  ;;  %v1933_v29 = vsel %vm1165_vm4, 1.0, %v6465_v23  ;;  %v6489_v31 = vand.u32 2147483647, %v6472_v25  ;;  %v6492_v32 = vand.u32 2147483647, %v6475_v26  ;;  %p6215_p8 = scmp.lt.s32.totalorder %s12640_s27, %s6213_s5  ;;  %p6216_p9 = scmp.lt.s32.totalorder %s6214_s11, %s6208_s3 }
  0x43   : > { %5164 = vrcp.f32 %v1931_v22  ;;  %v6494_v33 = vadd.f32 -1.0, %v654_v30  ;;  %v6497_v34 = vand.u32 2147483647, %v6482_v28  ;;  %vm3210_vm6 = vcmp.eq.f32.partialorder %v6420_v4, inf  ;;  %p6211_p12 = pneg %p6210_p11 }
  0x44   : > { %5166 = vlog2.f32 %v652_v16  ;;  %v655_v36 = vadd.f32 1.0, %v6489_v31  ;;  %v656_v37 = vadd.f32 1.0, %v6492_v32  ;;  %vm3721_vm8 = vcmp.lt.f32.partialorder %v6408_v0, 0.0  ;;  %p6217_p13 = por %p6216_p9, %p6215_p8 }
  0x45   : > { %5168 = vrcp.f32 %v1932_v27  ;;  %vm12688_vm7 = vcmp.eq.f32.partialorder %v6494_v33, 0.0  ;;  %vm3211_vm9 = vcmp.eq.f32.partialorder %v6423_v5, inf  ;;  %vm3722_vm10 = vcmp.lt.f32.partialorder %v6411_v1, 0.0 }
  0x46   : > { %5170 = vlog2.f32 %v653_v17  ;;  %v1934_v40 = vsel %vm12688_vm7, 1.0, %v6494_v33  ;;  %v6509_v41 = vadd.f32 -1.0, %v655_v36  ;;  %vm3212_vm11 = vcmp.eq.f32.partialorder %v6435_v11, inf  ;;  %p6218_p1 = pnand %p6217_p13, %p6211_p12 }
  0x47   : > { %v5155_v35 = vpop.eup %5154  ;;  %5172 = vrcp.f32 %v1933_v29  ;;  %v6513_v43 = vadd.f32 -1.0, %v656_v37  ;;  %v657_v44 = vadd.f32 1.0, %v6497_v34  ;;  %vm3723_vm12 = vcmp.lt.f32.partialorder %v6414_v2, 0.0 }
  0x48   : > { %v5157_v38 = vpop.eup %5156  ;;  %5174 = vlog2.f32 %v654_v30  ;;  %v1418_v42 = vmul.f32 0.6931472, %v5155_v35  ;;  %vm12689_vm13 = vcmp.eq.f32.partialorder %v6509_v41, 0.0  ;;  %vm3724_vm15 = vcmp.lt.f32.partialorder %v6426_v6, 0.0 }
  0x49   : > { %v5159_v39 = vpop.eup %5158  ;;  %5176 = vlog2.f32 %v655_v36  ;;  %v1420_v47 = vmul.f32 0.6931472, %v5157_v38  ;;  %v1935_v51 = vsel %vm12689_vm13, 1.0, %v6509_v41  ;;  %vm12690_vm14 = vcmp.eq.f32.partialorder %v6513_v43, 0.0 }
  0x4a   : > { %5178 = vrcp.f32 %v1934_v40  ;;  %v1422_v48 = vmul.f32 0.6931472, %v5159_v39  ;;  %v6526_v52 = vadd.f32 -1.0, %v657_v44  ;;  %v1936_v55 = vsel %vm12690_vm14, 1.0, %v6513_v43 }
  0x4b   : > { %v5161_v46 = vpop.eup %5160  ;;  %5180 = vlog2.f32 %v656_v37  ;;  %v6535_v56 = vand.u32 2147483647, %v6517_v45  ;;  %vm3214_vm7 = vcmp.eq.f32.partialorder %v6469_v24, inf  ;;  %vm3725_vm14 = vcmp.lt.f32.partialorder %v6429_v7, 0.0 }
  0x4c   : > { %v5163_v49 = vpop.eup %5162  ;;  %v2186_v50 = vmul.f32 %v5161_v46, %v6417_v3  ;;  %5182 = vrcp.f32 %v1935_v51  ;;  %vm1169_vm13 = vcmp.eq.f32.partialorder %v6526_v52, 0.0 }
  0x4d   : > { %v5165_v53 = vpop.eup %5164  ;;  %v2188_v54 = vmul.f32 %v5163_v49, %v6420_v4  ;;  %5184 = vrcp.f32 %v1936_v55  ;;  %v1937_v63 = vsel %vm1169_vm13, 1.0, %v6526_v52  ;;  %v658_v27 = vadd.f32 1.0, %v6535_v56 }
  0x4e   : > { %v5167_v57 = vpop.eup %5166  ;;  %v2697_v58 = vmul.f32 %v2186_v50, %v1418_v42  ;;  %v2190_v59 = vmul.f32 %v5165_v53, %v6423_v5  ;;  %5186 = vlog2.f32 %v657_v44 }
  0x4f   : > { %v5169_v60 = vpop.eup %5168  ;;  %v2698_v61 = vmul.f32 %v2188_v54, %v1420_v47  ;;  %v1424_v62 = vmul.f32 0.6931472, %v5167_v57  ;;  %5188 = vrcp.f32 %v1937_v63  ;;  %v6587_v50 = vadd.f32 -1.0, %v658_v27 }
  0x50   : > { %v5171_v8 = vpop.eup %5170  ;;  %v2953_v9 = vsel %vm1161_vm0, %v6417_v3, %v2697_v58  ;;  %v2699_v10 = vmul.f32 %v2190_v59, %v1422_v48  ;;  %v2192_v16 = vmul.f32 %v5169_v60, %v6435_v11  ;;  %vm3726_vm0 = vcmp.lt.f32.partialorder %v6451_v18, 0.0 }
  0x51   : > { %v5173_v17 = vpop.eup %5172  ;;  %v3465_v19 = vsel %vm3209_vm5, %v6417_v3, %v2953_v9  ;;  %v2954_v20 = vsel %vm1162_vm1, %v6420_v4, %v2698_v61  ;;  %v1426_v22 = vmul.f32 0.6931472, %v5171_v8  ;;  %vm3215_vm5 = vcmp.eq.f32.partialorder %v6489_v31, inf }
  0x52   : > { %v5175_v12 = vpop.eup %5174  ;;  %v3977_v29 = vsub.f32 0.0, %v3465_v19  ;;  %v3466_v30 = vsel %vm3210_vm6, %v6420_v4, %v2954_v20  ;;  %v2955_v35 = vsel %vm1163_vm2, %v6423_v5, %v2699_v10  ;;  %v2700_v36 = vmul.f32 %v2192_v16, %v1424_v62 }
  0x53   : > { %v5177_v3 = vpop.eup %5176  ;;  %v3978_v13 = vsub.f32 0.0, %v3466_v30  ;;  %v3467_v37 = vsel %vm3211_vm9, %v6423_v5, %v2955_v35  ;;  %v2194_v38 = vmul.f32 %v5173_v17, %v6442_v14  ;;  %v1428_v39 = vmul.f32 0.6931472, %v5175_v12 }
  0x54   : > { %v5179_v4 = vpop.eup %5178  ;;  %v4233_v15 = vsel %vm3721_vm8, %v3977_v29, %v3465_v19  ;;  %v3979_v40 = vsub.f32 0.0, %v3467_v37  ;;  %v2956_v42 = vsel %vm1164_vm3, %v6435_v11, %v2700_v36  ;;  %vm3216_vm1 = vcmp.eq.f32.partialorder %v6492_v32, inf  ;;  %v6627_v19 = vld [vmem:[%s6401_s30 + $0x58] sm:$0xff] }
  0x55   : > { %v5181_v44 = vpop.eup %5180  ;;  %4489 = vst [vmem:[%s6575_s17] sm:$0xff] %v4233_v15  ;;  %v4234_v5 = vsel %vm3722_vm10, %v3978_v13, %v3466_v30  ;;  %v3468_v0 = vsel %vm3212_vm11, %v6435_v11, %v2956_v42  ;;  %v2701_v46 = vmul.f32 %v2194_v38, %v1426_v22  ;;  %v2196_v21 = vmul.f32 %v5179_v4, %v6469_v24  ;;  %v6651_v30 = vld [vmem:[%s6401_s30 + $0x60] sm:$0xff] }
  0x56   : > { %4490 = vst [vmem:[%s6575_s17 + $0x8] sm:$0xff] %v4234_v5  ;;  %v4235_v47 = vsel %vm3723_vm12, %v3979_v40, %v3467_v37  ;;  %v3980_v48 = vsub.f32 0.0, %v3468_v0  ;;  %v1430_v49 = vmul.f32 0.6931472, %v5177_v3  ;;  %v5183_v51 = vpop.eup %5182  ;;  %v1432_v53 = vmul.f32 0.6931472, %v5181_v44 }
  0x57   : > { %4491 = vst [vmem:[%s6575_s17 + $0x10] sm:$0xff] %v4235_v47  ;;  %v2957_v1 = vsel %vm1165_vm4, %v6442_v14, %v2701_v46  ;;  %v2702_v11 = vmul.f32 %v2196_v21, %v1428_v39  ;;  %5190 = vlog2.f32 %v658_v27  ;;  %v5185_v54 = vpop.eup %5184  ;;  %vm12696_vm2 = vcmp.eq.f32.partialorder %v6442_v14, inf  ;;  %v6663_v37 = vld [vmem:[%s6401_s30 + $0x68] sm:$0xff] }
  0x58   : > { %v4236_v2 = vsel %vm3724_vm15, %v3980_v48, %v3468_v0  ;;  %v3469_v55 = vsel %vm12696_vm2, %v6442_v14, %v2957_v1  ;;  %v2198_v57 = vmul.f32 %v5183_v51, %v6489_v31  ;;  %vm1170_vm3 = vcmp.eq.f32.partialorder %v6587_v50, 0.0  ;;  %v5187_v58 = vpop.eup %5186  ;;  %v6609_v14 = vld [vmem:[%s6401_s30 + $0x50] sm:$0xff] }
  0x59   : > { %4492 = vst [vmem:[%s6575_s17 + $0x18] sm:$0xff] %v4236_v2  ;;  %v3981_v23 = vsub.f32 0.0, %v3469_v55  ;;  %vm12697_vm4 = vcmp.eq.f32.partialorder %v6494_v33, 0.0  ;;  %v2200_v60 = vmul.f32 %v5185_v54, %v6492_v32  ;;  %v1938_v6 = vsel %vm1170_vm3, 1.0, %v6587_v50  ;;  %v5189_v61 = vpop.eup %5188  ;;  %v6716_v50 = vld [vmem:[%s6401_s30 + $0x80] sm:$0xff] }
  0x5a   : > { %v2958_v59 = vsel %vm12697_vm4, %v6469_v24, %v2702_v11  ;;  %v2703_v63 = vmul.f32 %v2198_v57, %v1430_v49  ;;  %v1434_v8 = vmul.f32 0.6931472, %v5187_v58  ;;  %5192 = vrcp.f32 %v1938_v6  ;;  %v6723_v58 = vld [vmem:[%s6401_s30 + $0x88] sm:$0xff] }
  0x5b   : > { %v3470_v62 = vsel %vm3214_vm7, %v6469_v24, %v2958_v59  ;;  %v4237_v33 = vsel %vm3725_vm14, %v3981_v23, %v3469_v55  ;;  %v2704_v10 = vmul.f32 %v2200_v60, %v1432_v53  ;;  %v2202_v16 = vmul.f32 %v5189_v61, %v6497_v34  ;;  %v6710_v53 = vld [vmem:[%s6401_s30 + $0x78] sm:$0xff] }
  0x5c   : > { %v3982_v9 = vsub.f32 0.0, %v3470_v62  ;;  %4493 = vst [vmem:[%s6575_s17 + $0x20] sm:$0xff] %v4237_v33  ;;  %vm12698_vm6 = vcmp.eq.f32.partialorder %v6509_v41, 0.0  ;;  %vm3727_vm8 = vcmp.lt.f32.partialorder %v6472_v25, 0.0  ;;  %vm3217_vm7 = vcmp.eq.f32.partialorder %v6497_v34, inf }
  0x5d   : > { %v2959_v17 = vsel %vm12698_vm6, %v6489_v31, %v2703_v63  ;;  %v6624_v24 = vand.u32 2147483647, %v6609_v14  ;;  %vm12699_vm9 = vcmp.eq.f32.partialorder %v6513_v43, 0.0  ;;  %v2705_v22 = vmul.f32 %v2202_v16, %v1434_v8 }
  0x5e   : > { %v4238_v7 = vsel %vm3726_vm0, %v3982_v9, %v3470_v62  ;;  %v3471_v20 = vsel %vm3215_vm5, %v6489_v31, %v2959_v17  ;;  %v2960_v41 = vsel %vm12699_vm9, %v6492_v32, %v2704_v10  ;;  %vm3728_vm10 = vcmp.lt.f32.partialorder %v6475_v26, 0.0 }
  0x5f   : > { %4494 = vst [vmem:[%s6575_s17 + $0x28] sm:$0xff] %v4238_v7  ;;  %v3983_v27 = vsub.f32 0.0, %v3471_v20  ;;  %v3472_v12 = vsel %vm3216_vm1, %v6492_v32, %v2960_v41  ;;  %v659_v18 = vadd.f32 1.0, %v6624_v24  ;;  %v2961_v31 = vsel %vm1169_vm13, %v6497_v34, %v2705_v22 }
  0x60   : > { %v3984_v29 = vsub.f32 0.0, %v3472_v12  ;;  %vm3729_vm11 = vcmp.lt.f32.partialorder %v6482_v28, 0.0  ;;  %v6648_v43 = vand.u32 2147483647, %v6627_v19  ;;  %v3473_v32 = vsel %vm3217_vm7, %v6497_v34, %v2961_v31  ;;  %v6671_v34 = vld [vmem:[%s6401_s30 + $0x70] sm:$0xff] }
  0x61   : > { %v4239_v26 = vsel %vm3727_vm8, %v3983_v27, %v3471_v20  ;;  %v6658_v35 = vadd.f32 -1.0, %v659_v18  ;;  %5194 = vlog2.f32 %v659_v18  ;;  %v5191_v52 = vpop.eup %5190  ;;  %v3985_v3 = vsub.f32 0.0, %v3473_v32 }
  0x62   : > { %4495 = vst [vmem:[%s6575_s17 + $0x30] sm:$0xff] %v4239_v26  ;;  %v4240_v36 = vsel %vm3728_vm10, %v3984_v29, %v3472_v12  ;;  %v660_v13 = vadd.f32 1.0, %v6648_v43  ;;  %v1436_v38 = vmul.f32 0.6931472, %v5191_v52  ;;  %v6668_v25 = vand.u32 2147483647, %v6651_v30 }
  0x63   : > { %4496 = vst [vmem:[%s6575_s17 + $0x38] sm:$0xff] %v4240_v36  ;;  %vm1171_vm12 = vcmp.eq.f32.partialorder %v6658_v35, 0.0  ;;  %v4241_v39 = vsel %vm3729_vm11, %v3985_v3, %v3473_v32  ;;  %v6683_v44 = vand.u32 2147483647, %v6663_v37  ;;  %v6688_v28 = vand.u32 2147483647, %v6671_v34 }
  0x64   : > { %v1939_v4 = vsel %vm1171_vm12, 1.0, %v6658_v35  ;;  %v6678_v15 = vadd.f32 -1.0, %v660_v13  ;;  %5196 = vlog2.f32 %v660_v13  ;;  %v5193_v40 = vpop.eup %5192  ;;  %4497 = vst [vmem:[%s6575_s17 + $0x40] sm:$0xff] %v4241_v39  ;;  %v661_v42 = vadd.f32 1.0, %v6668_v25  ;;  %v6764_v52 = vld [vmem:[%s6401_s30 + $0x90] sm:$0xff] }
  0x65   : > { %5198 = vrcp.f32 %v1939_v4  ;;  %v2204_v5 = vmul.f32 %v5193_v40, %v6535_v56  ;;  %v662_v21 = vadd.f32 1.0, %v6683_v44  ;;  %vm3218_vm14 = vcmp.eq.f32.partialorder %v6535_v56, inf }
  0x66   : > { %vm1172_vm13 = vcmp.eq.f32.partialorder %v6678_v15, 0.0  ;;  %v6693_v46 = vadd.f32 -1.0, %v661_v42  ;;  %5200 = vlog2.f32 %v661_v42  ;;  %v663_v48 = vadd.f32 1.0, %v6688_v28 }
  0x67   : > { %v1940_v0 = vsel %vm1172_vm13, 1.0, %v6678_v15  ;;  %v2706_v47 = vmul.f32 %v2204_v5, %v1436_v38  ;;  %v6699_v49 = vadd.f32 -1.0, %v662_v21  ;;  %vm3730_vm0 = vcmp.lt.f32.partialorder %v6517_v45, 0.0 }
  0x68   : > { %5202 = vrcp.f32 %v1940_v0  ;;  %vm1173_vm15 = vcmp.eq.f32.partialorder %v6693_v46, 0.0  ;;  %v6707_v11 = vadd.f32 -1.0, %v663_v48  ;;  %v6732_v6 = vand.u32 2147483647, %v6716_v50 }
  0x69   : > { %5204 = vlog2.f32 %v662_v21  ;;  %v2962_v51 = vsel %vm1170_vm3, %v6535_v56, %v2706_v47  ;;  %v1941_v1 = vsel %vm1173_vm15, 1.0, %v6693_v46  ;;  %vm1174_vm5 = vcmp.eq.f32.partialorder %v6699_v49, 0.0 }
  0x6a   : > { %5206 = vlog2.f32 %v663_v48  ;;  %v3474_v2 = vsel %vm3218_vm14, %v6535_v56, %v2962_v51  ;;  %v1942_v57 = vsel %vm1174_vm5, 1.0, %v6699_v49  ;;  %vm1175_vm1 = vcmp.eq.f32.partialorder %v6707_v11, 0.0 }
  0x6b   : > { %v5195_v54 = vpop.eup %5194  ;;  %5208 = vrcp.f32 %v1941_v1  ;;  %v3986_v55 = vsub.f32 0.0, %v3474_v2  ;;  %v1943_v45 = vsel %vm1175_vm1, 1.0, %v6707_v11  ;;  %v6729_v56 = vand.u32 2147483647, %v6710_v53 }
  0x6c   : > { %5210 = vrcp.f32 %v1942_v57  ;;  %v1438_v60 = vmul.f32 0.6931472, %v5195_v54  ;;  %vm3219_vm2 = vcmp.eq.f32.partialorder %v6624_v24, inf  ;;  %vm3731_vm3 = vcmp.lt.f32.partialorder %v6609_v14, 0.0 }
  0x6d   : > { %v4242_v59 = vsel %vm3730_vm0, %v3986_v55, %v3474_v2  ;;  %5212 = vrcp.f32 %v1943_v45  ;;  %v664_v62 = vadd.f32 1.0, %v6729_v56  ;;  %v6739_v63 = vand.u32 2147483647, %v6723_v58 }
  0x6e   : > { %v5197_v23 = vpop.eup %5196  ;;  %4498 = vst [vmem:[%s6575_s17 + $0x48] sm:$0xff] %v4242_v59  ;;  %vm3220_vm4 = vcmp.eq.f32.partialorder %v6648_v43, inf  ;;  %vm3732_vm6 = vcmp.lt.f32.partialorder %v6627_v19, 0.0  ;;  %vm3221_vm8 = vcmp.eq.f32.partialorder %v6668_v25, inf  ;;  %v665_v33 = vadd.f32 1.0, %v6732_v6  ;;  %v6811_v19 = vld [vmem:[%s6401_s30 + $0x98] sm:$0xff] }
  0x6f   : > { %v5199_v61 = vpop.eup %5198  ;;  %v1440_v10 = vmul.f32 0.6931472, %v5197_v23  ;;  %v6746_v16 = vadd.f32 -1.0, %v664_v62  ;;  %5214 = vlog2.f32 %v664_v62  ;;  %v666_v17 = vadd.f32 1.0, %v6739_v63 }
  0x70   : > { %v2206_v8 = vmul.f32 %v5199_v61, %v6624_v24  ;;  %v5201_v9 = vpop.eup %5200  ;;  %v6749_v22 = vadd.f32 -1.0, %v665_v33  ;;  %5216 = vlog2.f32 %v665_v33  ;;  %vm3733_vm7 = vcmp.lt.f32.partialorder %v6651_v30, 0.0 }
  0x71   : > { %v1442_v41 = vmul.f32 0.6931472, %v5201_v9  ;;  %vm1176_vm9 = vcmp.eq.f32.partialorder %v6746_v16, 0.0  ;;  %v6754_v18 = vadd.f32 -1.0, %v666_v17  ;;  %5218 = vlog2.f32 %v666_v17 }
  0x72   : > { %v5203_v7 = vpop.eup %5202  ;;  %v2707_v20 = vmul.f32 %v2206_v8, %v1438_v60  ;;  %v1944_v32 = vsel %vm1176_vm9, 1.0, %v6746_v16  ;;  %vm1177_vm10 = vcmp.eq.f32.partialorder %v6749_v22, 0.0  ;;  %vm3734_vm11 = vcmp.lt.f32.partialorder %v6663_v37, 0.0  ;;  %v6820_v8 = vld [vmem:[%s6401_s30 + $0xa0] sm:$0xff] }
  0x73   : > { %v5205_v27 = vpop.eup %5204  ;;  %v2208_v12 = vmul.f32 %v5203_v7, %v6648_v43  ;;  %5220 = vrcp.f32 %v1944_v32  ;;  %v1945_v4 = vsel %vm1177_vm10, 1.0, %v6749_v22  ;;  %v6782_v5 = vand.u32 2147483647, %v6764_v52 }
  0x74   : > { %v5207_v29 = vpop.eup %5206  ;;  %v2963_v31 = vsel %vm1171_vm12, %v6624_v24, %v2707_v20  ;;  %v1444_v26 = vmul.f32 0.6931472, %v5205_v27  ;;  %vm1178_vm12 = vcmp.eq.f32.partialorder %v6754_v18, 0.0  ;;  %5222 = vrcp.f32 %v1945_v4  ;;  %v6842_v27 = vld [vmem:[%s6401_s30 + $0xa8] sm:$0xff] }
  0x75   : > { %v5209_v36 = vpop.eup %5208  ;;  %v3475_v3 = vsel %vm3219_vm2, %v6624_v24, %v2963_v31  ;;  %v2708_v13 = vmul.f32 %v2208_v12, %v1440_v10  ;;  %v1446_v38 = vmul.f32 0.6931472, %v5207_v29  ;;  %v1946_v42 = vsel %vm1178_vm12, 1.0, %v6754_v18 }
  0x76   : > { %v3987_v35 = vsub.f32 0.0, %v3475_v3  ;;  %v2210_v39 = vmul.f32 %v5209_v36, %v6668_v25  ;;  %v5211_v40 = vpop.eup %5210  ;;  %5224 = vrcp.f32 %v1946_v42  ;;  %v667_v54 = vadd.f32 1.0, %v6782_v5 }
  0x77   : > { %v2964_v24 = vsel %vm1172_vm13, %v6648_v43, %v2708_v13  ;;  %v5213_v0 = vpop.eup %5212  ;;  %v2212_v15 = vmul.f32 %v5211_v40, %v6683_v44  ;;  %vm3222_vm13 = vcmp.eq.f32.partialorder %v6683_v44, inf  ;;  %vm3223_vm14 = vcmp.eq.f32.partialorder %v6688_v28, inf }
  0x78   : > { %v4243_v21 = vsel %vm3731_vm3, %v3987_v35, %v3475_v3  ;;  %v3476_v47 = vsel %vm3220_vm4, %v6648_v43, %v2964_v24  ;;  %v2709_v48 = vmul.f32 %v2210_v39, %v1442_v41  ;;  %v2214_v1 = vmul.f32 %v5213_v0, %v6688_v28 }
  0x79   : > { %4499 = vst [vmem:[%s6575_s17 + $0x50] sm:$0xff] %v4243_v21  ;;  %v3988_v51 = vsub.f32 0.0, %v3476_v47  ;;  %v2710_v2 = vmul.f32 %v2212_v15, %v1444_v26  ;;  %v5215_v43 = vpop.eup %5214  ;;  %v6803_v23 = vadd.f32 -1.0, %v667_v54  ;;  %5226 = vlog2.f32 %v667_v54 }
  0x7a   : > { %v2965_v14 = vsel %vm1173_vm15, %v6668_v25, %v2709_v48  ;;  %v2711_v45 = vmul.f32 %v2214_v1, %v1446_v38  ;;  %v5217_v46 = vpop.eup %5216  ;;  %vm3735_vm15 = vcmp.lt.f32.partialorder %v6671_v34, 0.0  ;;  %vm3736_vm0 = vcmp.lt.f32.partialorder %v6710_v53, 0.0  ;;  %v6882_v48 = vld [vmem:[%s6401_s30 + $0xb0] sm:$0xff]  ;;  %v6893_v1 = vld [vmem:[%s6401_s30 + $0xb8] sm:$0xff] }
  0x7b   : > { %v4244_v55 = vsel %vm3732_vm6, %v3988_v51, %v3476_v47  ;;  %v3477_v57 = vsel %vm3221_vm8, %v6668_v25, %v2965_v14  ;;  %v2966_v60 = vsel %vm1174_vm5, %v6683_v44, %v2710_v2  ;;  %v5219_v61 = vpop.eup %5218  ;;  %vm1179_vm2 = vcmp.eq.f32.partialorder %v6803_v23, 0.0 }
  0x7c   : > { %4500 = vst [vmem:[%s6575_s17 + $0x58] sm:$0xff] %v4244_v55  ;;  %v3989_v59 = vsub.f32 0.0, %v3477_v57  ;;  %v3478_v62 = vsel %vm3222_vm13, %v6683_v44, %v2966_v60  ;;  %v2967_v25 = vsel %vm1175_vm1, %v6688_v28, %v2711_v45  ;;  %v1448_v9 = vmul.f32 0.6931472, %v5215_v43 }
  0x7d   : > { %v3990_v33 = vsub.f32 0.0, %v3478_v62  ;;  %v3479_v44 = vsel %vm3223_vm14, %v6688_v28, %v2967_v25  ;;  %v5221_v10 = vpop.eup %5220  ;;  %v1450_v17 = vmul.f32 0.6931472, %v5217_v46  ;;  %vm3737_vm5 = vcmp.lt.f32.partialorder %v6716_v50, 0.0 }
  0x7e   : > { %v4245_v49 = vsel %vm3733_vm7, %v3989_v59, %v3477_v57  ;;  %v3991_v11 = vsub.f32 0.0, %v3479_v44  ;;  %v1947_v30 = vsel %vm1179_vm2, 1.0, %v6803_v23  ;;  %v6833_v7 = vand.u32 2147483647, %v6811_v19  ;;  %v5223_v12 = vpop.eup %5222  ;;  %v6919_v59 = vld [vmem:[%s6401_s30 + $0xc0] sm:$0xff] }
  0x7f   : > { %4501 = vst [vmem:[%s6575_s17 + $0x60] sm:$0xff] %v4245_v49  ;;  %v4246_v20 = vsel %vm3734_vm11, %v3990_v33, %v3478_v62  ;;  %v2216_v28 = vmul.f32 %v5221_v10, %v6729_v56  ;;  %5228 = vrcp.f32 %v1947_v30  ;;  %v6839_v41 = vand.u32 2147483647, %v6820_v8 }
  0x80   : > { %4502 = vst [vmem:[%s6575_s17 + $0x68] sm:$0xff] %v4246_v20  ;;  %v4247_v29 = vsel %vm3735_vm15, %v3991_v11, %v3479_v44  ;;  %vm3224_vm1 = vcmp.eq.f32.partialorder %v6729_v56, inf  ;;  %vm3225_vm3 = vcmp.eq.f32.partialorder %v6732_v6, inf  ;;  %v668_v37 = vadd.f32 1.0, %v6833_v7  ;;  %v5225_v3 = vpop.eup %5224  ;;  %v6940_v11 = vld [vmem:[%s6401_s30 + $0xc8] sm:$0xff] }
  0x81   : > { %4503 = vst [vmem:[%s6575_s17 + $0x70] sm:$0xff] %v4247_v29  ;;  %v2712_v31 = vmul.f32 %v2216_v28, %v1448_v9  ;;  %v2218_v26 = vmul.f32 %v5223_v12, %v6732_v6  ;;  %v1452_v32 = vmul.f32 0.6931472, %v5219_v61  ;;  %v669_v36 = vadd.f32 1.0, %v6839_v41 }
  0x82   : > { %vm3226_vm4 = vcmp.eq.f32.partialorder %v6739_v63, inf  ;;  %v6854_v13 = vadd.f32 -1.0, %v668_v37  ;;  %5230 = vlog2.f32 %v668_v37  ;;  %v6857_v34 = vand.u32 2147483647, %v6842_v27 }
  0x83   : > { %v2968_v38 = vsel %vm1176_vm9, %v6729_v56, %v2712_v31  ;;  %v2713_v35 = vmul.f32 %v2218_v26, %v1450_v17  ;;  %v2220_v39 = vmul.f32 %v5225_v3, %v6739_v63  ;;  %v6863_v4 = vadd.f32 -1.0, %v669_v36  ;;  %v5227_v42 = vpop.eup %5226 }
  0x84   : > { %v3480_v40 = vsel %vm3224_vm1, %v6729_v56, %v2968_v38  ;;  %vm1180_vm6 = vcmp.eq.f32.partialorder %v6854_v13, 0.0  ;;  %5232 = vlog2.f32 %v669_v36  ;;  %v670_v24 = vadd.f32 1.0, %v6857_v34 }
  0x85   : > { %v3992_v16 = vsub.f32 0.0, %v3480_v40  ;;  %v2969_v0 = vsel %vm1177_vm10, %v6732_v6, %v2713_v35  ;;  %v2714_v21 = vmul.f32 %v2220_v39, %v1452_v32  ;;  %v1948_v47 = vsel %vm1180_vm6, 1.0, %v6854_v13  ;;  %v6959_v32 = vld [vmem:[%s6401_s30 + $0xd0] sm:$0xff] }
  0x86   : > { %v3481_v56 = vsel %vm3225_vm3, %v6732_v6, %v2969_v0  ;;  %vm3738_vm8 = vcmp.lt.f32.partialorder %v6723_v58, 0.0  ;;  %5234 = vrcp.f32 %v1948_v47  ;;  %vm1181_vm7 = vcmp.eq.f32.partialorder %v6863_v4, 0.0 }
  0x87   : > { %v4248_v22 = vsel %vm3736_vm0, %v3992_v16, %v3480_v40  ;;  %v3993_v15 = vsub.f32 0.0, %v3481_v56  ;;  %v2970_v51 = vsel %vm1178_vm12, %v6739_v63, %v2714_v21  ;;  %v1949_v6 = vsel %vm1181_vm7, 1.0, %v6863_v4 }
  0x88   : > { %4504 = vst [vmem:[%s6575_s17 + $0x78] sm:$0xff] %v4248_v22  ;;  %v3482_v54 = vsel %vm3226_vm4, %v6739_v63, %v2970_v51  ;;  %v1454_v53 = vmul.f32 0.6931472, %v5227_v42  ;;  %5236 = vrcp.f32 %v1949_v6  ;;  %v6899_v14 = vadd.f32 -1.0, %v670_v24  ;;  %v6993_v6 = vld [vmem:[%s6401_s30 + $0xd8] sm:$0xff] }
  0x89   : > { %v5229_v2 = vpop.eup %5228  ;;  %v4249_v18 = vsel %vm3737_vm5, %v3993_v15, %v3481_v56  ;;  %v3994_v43 = vsub.f32 0.0, %v3482_v54  ;;  %5238 = vlog2.f32 %v670_v24  ;;  %v6904_v55 = vand.u32 2147483647, %v6882_v48 }
  0x8a   : > { %4505 = vst [vmem:[%s6575_s17 + $0x80] sm:$0xff] %v4249_v18  ;;  %v2222_v57 = vmul.f32 %v5229_v2, %v6782_v5  ;;  %vm1182_vm9 = vcmp.eq.f32.partialorder %v6899_v14, 0.0  ;;  %v6910_v63 = vand.u32 2147483647, %v6893_v1  ;;  %vm3227_vm10 = vcmp.eq.f32.partialorder %v6782_v5, inf }
  0x8b   : > { %v4250_v45 = vsel %vm3738_vm8, %v3994_v43, %v3482_v54  ;;  %v1950_v50 = vsel %vm1182_vm9, 1.0, %v6899_v14  ;;  %v671_v46 = vadd.f32 1.0, %v6904_v55  ;;  %vm3739_vm11 = vcmp.lt.f32.partialorder %v6764_v52, 0.0 }
  0x8c   : > { %v5231_v60 = vpop.eup %5230  ;;  %4506 = vst [vmem:[%s6575_s17 + $0x88] sm:$0xff] %v4250_v45  ;;  %v2715_v61 = vmul.f32 %v2222_v57, %v1454_v53  ;;  %5240 = vrcp.f32 %v1950_v50  ;;  %v672_v62 = vadd.f32 1.0, %v6910_v63  ;;  %vm3740_vm12 = vcmp.lt.f32.partialorder %v6811_v19, 0.0 }
  0x8d   : > { %v6925_v58 = vadd.f32 -1.0, %v671_v46  ;;  %5242 = vlog2.f32 %v671_v46  ;;  %v6934_v44 = vand.u32 2147483647, %v6919_v59  ;;  %v1456_v10 = vmul.f32 0.6931472, %v5231_v60 }
  0x8e   : > { %v5233_v25 = vpop.eup %5232  ;;  %v2971_v49 = vsel %vm1179_vm2, %v6782_v5, %v2715_v61  ;;  %v6931_v33 = vadd.f32 -1.0, %v672_v62  ;;  %5244 = vlog2.f32 %v672_v62  ;;  %vm3228_vm13 = vcmp.eq.f32.partialorder %v6833_v7, inf }
  0x8f   : > { %v3483_v9 = vsel %vm3227_vm10, %v6782_v5, %v2971_v49  ;;  %vm1183_vm14 = vcmp.eq.f32.partialorder %v6925_v58, 0.0  ;;  %v673_v20 = vadd.f32 1.0, %v6934_v44  ;;  %v1458_v28 = vmul.f32 0.6931472, %v5233_v25 }
  0x90   : > { %v5235_v23 = vpop.eup %5234  ;;  %v3995_v17 = vsub.f32 0.0, %v3483_v9  ;;  %v1951_v30 = vsel %vm1183_vm14, 1.0, %v6925_v58  ;;  %vm1184_vm15 = vcmp.eq.f32.partialorder %v6931_v33, 0.0  ;;  %v6956_v26 = vand.u32 2147483647, %v6940_v11 }
  0x91   : > { %v2224_v5 = vmul.f32 %v5235_v23, %v6833_v7  ;;  %5246 = vrcp.f32 %v1951_v30  ;;  %v1952_v12 = vsel %vm1184_vm15, 1.0, %v6931_v33  ;;  %v6953_v31 = vadd.f32 -1.0, %v673_v20 }
  0x92   : > { %v5237_v29 = vpop.eup %5236  ;;  %v4251_v37 = vsel %vm3739_vm11, %v3995_v17, %v3483_v9  ;;  %5248 = vrcp.f32 %v1952_v12  ;;  %vm3741_vm0 = vcmp.lt.f32.partialorder %v6820_v8, 0.0  ;;  %vm3229_vm2 = vcmp.eq.f32.partialorder %v6839_v41, inf  ;;  %v7025_v9 = vld [vmem:[%s6401_s30 + $0xe0] sm:$0xff] }
  0x93   : > { %v5239_v36 = vpop.eup %5238  ;;  %4507 = vst [vmem:[%s6575_s17 + $0x90] sm:$0xff] %v4251_v37  ;;  %v2716_v3 = vmul.f32 %v2224_v5, %v1456_v10  ;;  %v2226_v38 = vmul.f32 %v5237_v29, %v6839_v41  ;;  %5250 = vlog2.f32 %v673_v20  ;;  %vm1185_vm5 = vcmp.eq.f32.partialorder %v6953_v31, 0.0 }
  0x94   : > { %v1460_v52 = vmul.f32 0.6931472, %v5239_v36  ;;  %v674_v35 = vadd.f32 1.0, %v6956_v26  ;;  %v1953_v24 = vsel %vm1185_vm5, 1.0, %v6953_v31  ;;  %v6974_v42 = vand.u32 2147483647, %v6959_v32 }
  0x95   : > { %v2972_v39 = vsel %vm1180_vm6, %v6833_v7, %v2716_v3  ;;  %v2717_v40 = vmul.f32 %v2226_v38, %v1458_v28  ;;  %vm3742_vm1 = vcmp.lt.f32.partialorder %v6842_v27, 0.0  ;;  %5252 = vrcp.f32 %v1953_v24 }
  0x96   : > { %v5241_v16 = vpop.eup %5240  ;;  %v3484_v0 = vsel %vm3228_vm13, %v6833_v7, %v2972_v39  ;;  %v6980_v21 = vadd.f32 -1.0, %v674_v35  ;;  %5254 = vlog2.f32 %v674_v35  ;;  %vm3230_vm3 = vcmp.eq.f32.partialorder %v6857_v34, inf }
  0x97   : > { %v5243_v13 = vpop.eup %5242  ;;  %v3996_v47 = vsub.f32 0.0, %v3484_v0  ;;  %v2973_v56 = vsel %vm1181_vm7, %v6839_v41, %v2717_v40  ;;  %v2228_v22 = vmul.f32 %v5241_v16, %v6857_v34  ;;  %v675_v51 = vadd.f32 1.0, %v6974_v42 }
  0x98   : > { %v5245_v15 = vpop.eup %5244  ;;  %v3485_v7 = vsel %vm3229_vm2, %v6839_v41, %v2973_v56  ;;  %vm1186_vm4 = vcmp.eq.f32.partialorder %v6980_v21, 0.0  ;;  %v1462_v2 = vmul.f32 0.6931472, %v5243_v13  ;;  %vm3743_vm6 = vcmp.lt.f32.partialorder %v6882_v48, 0.0  ;;  %v7076_v48 = vld [vmem:[%s6401_s30 + $0xf0] sm:$0xff] }
  0x99   : > { %v4252_v4 = vsel %vm3740_vm12, %v3996_v47, %v3484_v0  ;;  %v3997_v54 = vsub.f32 0.0, %v3485_v7  ;;  %v2718_v53 = vmul.f32 %v2228_v22, %v1460_v52  ;;  %v1464_v18 = vmul.f32 0.6931472, %v5245_v15 }
  0x9a   : > { %4508 = vst [vmem:[%s6575_s17 + $0x98] sm:$0xff] %v4252_v4  ;;  %v1954_v41 = vsel %vm1186_vm4, 1.0, %v6980_v21  ;;  %v7002_v43 = vadd.f32 -1.0, %v675_v51  ;;  %5256 = vlog2.f32 %v675_v51  ;;  %v7010_v50 = vand.u32 2147483647, %v6993_v6 }
  0x9b   : > { %v5247_v57 = vpop.eup %5246  ;;  %v4253_v19 = vsel %vm3741_vm0, %v3997_v54, %v3485_v7  ;;  %v2974_v45 = vsel %vm1182_vm9, %v6857_v34, %v2718_v53  ;;  %5258 = vrcp.f32 %v1954_v41  ;;  %vm3231_vm8 = vcmp.eq.f32.partialorder %v6904_v55, inf  ;;  %v7100_v41 = vld [vmem:[%s6401_s30 + $0xf8] sm:$0xff] }
  0x9c   : > { %v5249_v46 = vpop.eup %5248  ;;  %4509 = vst [vmem:[%s6575_s17 + $0xa0] sm:$0xff] %v4253_v19  ;;  %v3486_v60 = vsel %vm3230_vm3, %v6857_v34, %v2974_v45  ;;  %v2230_v61 = vmul.f32 %v5247_v57, %v6904_v55  ;;  %vm1187_vm7 = vcmp.eq.f32.partialorder %v7002_v43, 0.0  ;;  %v676_v49 = vadd.f32 1.0, %v7010_v50  ;;  %v7028_v34 = vld [vmem:[%s6401_s30 + $0xe8] sm:$0xff]  ;;  %v7109_v19 = vld [vmem:[%s6401_s30 + $0x100] sm:$0xff] }
  0x9d   : > { %v5251_v8 = vpop.eup %5250  ;;  %v3998_v14 = vsub.f32 0.0, %v3486_v60  ;;  %v2232_v62 = vmul.f32 %v5249_v46, %v6910_v63  ;;  %v1955_v25 = vsel %vm1187_vm7, 1.0, %v7002_v43  ;;  %vm3232_vm9 = vcmp.eq.f32.partialorder %v6910_v63, inf }
  0x9e   : > { %v2719_v10 = vmul.f32 %v2230_v61, %v1462_v2  ;;  %v1466_v23 = vmul.f32 0.6931472, %v5251_v8  ;;  %5260 = vrcp.f32 %v1955_v25  ;;  %v7033_v20 = vadd.f32 -1.0, %v676_v49 }
  0x9f   : > { %v4254_v17 = vsel %vm3742_vm1, %v3998_v14, %v3486_v60  ;;  %v2720_v30 = vmul.f32 %v2232_v62, %v1464_v18  ;;  %5262 = vlog2.f32 %v676_v49  ;;  %v5253_v5 = vpop.eup %5252  ;;  %vm3744_vm10 = vcmp.lt.f32.partialorder %v6893_v1, 0.0 }
  0xa0   : > { %4510 = vst [vmem:[%s6575_s17 + $0xa8] sm:$0xff] %v4254_v17  ;;  %v2975_v28 = vsel %vm1183_vm14, %v6904_v55, %v2719_v10  ;;  %v7041_v12 = vand.u32 2147483647, %v7025_v9  ;;  %v7044_v29 = vand.u32 2147483647, %v7028_v34  ;;  %v5255_v27 = vpop.eup %5254  ;;  %v2234_v58 = vmul.f32 %v5253_v5, %v6934_v44  ;;  %v7141_v5 = vld [vmem:[%s6401_s30 + $0x108] sm:$0xff] }
  0xa1   : > { %v3487_v37 = vsel %vm3231_vm8, %v6904_v55, %v2975_v28  ;;  %v2976_v36 = vsel %vm1184_vm15, %v6910_v63, %v2720_v30  ;;  %vm1188_vm11 = vcmp.eq.f32.partialorder %v7033_v20, 0.0  ;;  %vm3233_vm12 = vcmp.eq.f32.partialorder %v6934_v44, inf }
  0xa2   : > { %v3999_v3 = vsub.f32 0.0, %v3487_v37  ;;  %v3488_v38 = vsel %vm3232_vm9, %v6910_v63, %v2976_v36  ;;  %v1956_v55 = vsel %vm1188_vm11, 1.0, %v7033_v20  ;;  %v2721_v33 = vmul.f32 %v2234_v58, %v1466_v23 }
  0xa3   : > { %v4000_v52 = vsub.f32 0.0, %v3488_v38  ;;  %5264 = vrcp.f32 %v1956_v55  ;;  %v677_v35 = vadd.f32 1.0, %v7041_v12  ;;  %vm3745_vm13 = vcmp.lt.f32.partialorder %v6919_v59, 0.0 }
  0xa4   : > { %v5257_v39 = vpop.eup %5256  ;;  %v4255_v40 = vsel %vm3743_vm6, %v3999_v3, %v3487_v37  ;;  %v1468_v63 = vmul.f32 0.6931472, %v5255_v27  ;;  %v678_v24 = vadd.f32 1.0, %v7044_v29  ;;  %v2977_v13 = vsel %vm1185_vm5, %v6934_v44, %v2721_v33 }
  0xa5   : > { %v5259_v16 = vpop.eup %5258  ;;  %4511 = vst [vmem:[%s6575_s17 + $0xb0] sm:$0xff] %v4255_v40  ;;  %v4256_v0 = vsel %vm3744_vm10, %v4000_v52, %v3488_v38  ;;  %vm3234_vm14 = vcmp.eq.f32.partialorder %v6956_v26, inf  ;;  %v7073_v47 = vadd.f32 -1.0, %v677_v35  ;;  %v3489_v56 = vsel %vm3233_vm12, %v6934_v44, %v2977_v13 }
  0xa6   : > { %4512 = vst [vmem:[%s6575_s17 + $0xb8] sm:$0xff] %v4256_v0  ;;  %v2236_v22 = vmul.f32 %v5259_v16, %v6956_v26  ;;  %5266 = vlog2.f32 %v677_v35  ;;  %v7083_v1 = vadd.f32 -1.0, %v678_v24  ;;  %v4001_v31 = vsub.f32 0.0, %v3489_v56 }
  0xa7   : > { %v1470_v15 = vmul.f32 0.6931472, %v5257_v39  ;;  %vm1189_vm15 = vcmp.eq.f32.partialorder %v7073_v47, 0.0  ;;  %5268 = vlog2.f32 %v678_v24  ;;  %v7091_v44 = vand.u32 2147483647, %v7076_v48  ;;  %v7170_v24 = vld [vmem:[%s6401_s30 + $0x110] sm:$0xff] }
  0xa8   : > { %v5261_v7 = vpop.eup %5260  ;;  %v2722_v51 = vmul.f32 %v2236_v22, %v1468_v63  ;;  %v1957_v4 = vsel %vm1189_vm15, 1.0, %v7073_v47  ;;  %vm1190_vm0 = vcmp.eq.f32.partialorder %v7083_v1, 0.0  ;;  %v4257_v53 = vsel %vm3745_vm13, %v4001_v31, %v3489_v56  ;;  %v7176_v56 = vld [vmem:[%s6401_s30 + $0x118] sm:$0xff] }
  0xa9   : > { %v5263_v54 = vpop.eup %5262  ;;  %v2238_v2 = vmul.f32 %v5261_v7, %v6974_v42  ;;  %5270 = vrcp.f32 %v1957_v4  ;;  %v1958_v18 = vsel %vm1190_vm0, 1.0, %v7083_v1  ;;  %4513 = vst [vmem:[%s6575_s17 + $0xc0] sm:$0xff] %v4257_v53  ;;  %vm3746_vm2 = vcmp.lt.f32.partialorder %v6940_v11, 0.0 }
  0xaa   : > { %v2978_v57 = vsel %vm1186_vm4, %v6956_v26, %v2722_v51  ;;  %5272 = vrcp.f32 %v1958_v18  ;;  %v679_v59 = vadd.f32 1.0, %v7091_v44  ;;  %vm3235_vm5 = vcmp.eq.f32.partialorder %v6974_v42, inf }
  0xab   : > { %v3490_v45 = vsel %vm3234_vm14, %v6956_v26, %v2978_v57  ;;  %v2723_v46 = vmul.f32 %v2238_v2, %v1470_v15  ;;  %v1472_v60 = vmul.f32 0.6931472, %v5263_v54  ;;  %v7118_v21 = vand.u32 2147483647, %v7100_v41 }
  0xac   : > { %v4002_v61 = vsub.f32 0.0, %v3490_v45  ;;  %v7115_v8 = vadd.f32 -1.0, %v679_v59  ;;  %5274 = vlog2.f32 %v679_v59  ;;  %vm3747_vm1 = vcmp.lt.f32.partialorder %v6959_v32, 0.0 }
  0xad   : > { %v5265_v14 = vpop.eup %5264  ;;  %v2979_v62 = vsel %vm1187_vm7, %v6974_v42, %v2723_v46  ;;  %v7125_v26 = vand.u32 2147483647, %v7109_v19  ;;  %vm3748_vm4 = vcmp.lt.f32.partialorder %v6993_v6, 0.0  ;;  %v680_v17 = vadd.f32 1.0, %v7118_v21 }
  0xae   : > { %v4258_v25 = vsel %vm3746_vm2, %v4002_v61, %v3490_v45  ;;  %v3491_v49 = vsel %vm3235_vm5, %v6974_v42, %v2979_v62  ;;  %v2240_v10 = vmul.f32 %v5265_v14, %v7010_v50  ;;  %vm1191_vm3 = vcmp.eq.f32.partialorder %v7115_v8, 0.0  ;;  %v7205_v45 = vld [vmem:[%s6401_s30 + $0x120] sm:$0xff] }
  0xaf   : > { %4514 = vst [vmem:[%s6575_s17 + $0xc8] sm:$0xff] %v4258_v25  ;;  %v4003_v23 = vsub.f32 0.0, %v3491_v49  ;;  %v1959_v43 = vsel %vm1191_vm3, 1.0, %v7115_v8  ;;  %vm3236_vm6 = vcmp.eq.f32.partialorder %v7010_v50, inf  ;;  %v681_v42 = vadd.f32 1.0, %v7125_v26  ;;  %v7237_v8 = vld [vmem:[%s6401_s30 + $0x128] sm:$0xff] }
  0xb0   : > { %v5267_v30 = vpop.eup %5266  ;;  %v2724_v11 = vmul.f32 %v2240_v10, %v1472_v60  ;;  %5276 = vrcp.f32 %v1959_v43  ;;  %vm3749_vm8 = vcmp.lt.f32.partialorder %v7025_v9, 0.0  ;;  %v7146_v37 = vadd.f32 -1.0, %v680_v17 }
  0xb1   : > { %v5269_v28 = vpop.eup %5268  ;;  %v4259_v27 = vsel %vm3747_vm1, %v4003_v23, %v3491_v49  ;;  %5278 = vlog2.f32 %v680_v17  ;;  %v1474_v58 = vmul.f32 0.6931472, %v5267_v30  ;;  %v7152_v3 = vadd.f32 -1.0, %v681_v42 }
  0xb2   : > { %4515 = vst [vmem:[%s6575_s17 + $0xd0] sm:$0xff] %v4259_v27  ;;  %v2980_v36 = vsel %vm1188_vm11, %v7010_v50, %v2724_v11  ;;  %5280 = vlog2.f32 %v681_v42  ;;  %v1476_v32 = vmul.f32 0.6931472, %v5269_v28  ;;  %vm1192_vm7 = vcmp.eq.f32.partialorder %v7146_v37, 0.0 }
  0xb3   : > { %v5271_v38 = vpop.eup %5270  ;;  %v3492_v55 = vsel %vm3236_vm6, %v7010_v50, %v2980_v36  ;;  %v7157_v52 = vand.u32 2147483647, %v7141_v5  ;;  %v1960_v39 = vsel %vm1192_vm7, 1.0, %v7146_v37  ;;  %vm1193_vm9 = vcmp.eq.f32.partialorder %v7152_v3, 0.0 }
  0xb4   : > { %v5273_v33 = vpop.eup %5272  ;;  %v4004_v35 = vsub.f32 0.0, %v3492_v55  ;;  %v2242_v20 = vmul.f32 %v5271_v38, %v7041_v12  ;;  %5282 = vrcp.f32 %v1960_v39  ;;  %v1961_v40 = vsel %vm1193_vm9, 1.0, %v7152_v3  ;;  %v7276_v3 = vld [vmem:[%s6401_s30 + $0x138] sm:$0xff] }
  0xb5   : > { %v2244_v50 = vmul.f32 %v5273_v33, %v7044_v29  ;;  %v682_v63 = vadd.f32 1.0, %v7157_v52  ;;  %vm3237_vm10 = vcmp.eq.f32.partialorder %v7041_v12, inf  ;;  %5284 = vrcp.f32 %v1961_v40 }
  0xb6   : > { %v5275_v16 = vpop.eup %5274  ;;  %v4260_v0 = vsel %vm3748_vm4, %v4004_v35, %v3492_v55  ;;  %v2725_v13 = vmul.f32 %v2242_v20, %v1474_v58  ;;  %vm3238_vm11 = vcmp.eq.f32.partialorder %v7044_v29, inf  ;;  %vm3750_vm12 = vcmp.lt.f32.partialorder %v7028_v34, 0.0 }
  0xb7   : > { %4516 = vst [vmem:[%s6575_s17 + $0xd8] sm:$0xff] %v4260_v0  ;;  %v2726_v22 = vmul.f32 %v2244_v50, %v1476_v32  ;;  %v7180_v31 = vadd.f32 -1.0, %v682_v63  ;;  %5286 = vlog2.f32 %v682_v63  ;;  %v1478_v6 = vmul.f32 0.6931472, %v5275_v16  ;;  %v7269_v63 = vld [vmem:[%s6401_s30 + $0x130] sm:$0xff] }
  0xb8   : > { %v2981_v15 = vsel %vm1189_vm15, %v7041_v12, %v2725_v13  ;;  %v7187_v7 = vand.u32 2147483647, %v7170_v24  ;;  %v7195_v54 = vand.u32 2147483647, %v7176_v56  ;;  %vm3239_vm14 = vcmp.eq.f32.partialorder %v7091_v44, inf }
  0xb9   : > { %v3493_v51 = vsel %vm3237_vm10, %v7041_v12, %v2981_v15  ;;  %v2982_v4 = vsel %vm1190_vm0, %v7044_v29, %v2726_v22  ;;  %vm1194_vm13 = vcmp.eq.f32.partialorder %v7180_v31, 0.0  ;;  %vm3751_vm15 = vcmp.lt.f32.partialorder %v7076_v48, 0.0 }
  0xba   : > { %v5277_v47 = vpop.eup %5276  ;;  %v4005_v53 = vsub.f32 0.0, %v3493_v51  ;;  %v3494_v2 = vsel %vm3238_vm11, %v7044_v29, %v2982_v4  ;;  %v1962_v18 = vsel %vm1194_vm13, 1.0, %v7180_v31  ;;  %v683_v12 = vadd.f32 1.0, %v7187_v7 }
  0xbb   : > { %v5279_v57 = vpop.eup %5278  ;;  %v4006_v59 = vsub.f32 0.0, %v3494_v2  ;;  %v2246_v1 = vmul.f32 %v5277_v47, %v7091_v44  ;;  %5288 = vrcp.f32 %v1962_v18  ;;  %vm3752_vm0 = vcmp.lt.f32.partialorder %v7100_v41, 0.0 }
  0xbc   : > { %v5281_v46 = vpop.eup %5280  ;;  %v4261_v29 = vsel %vm3749_vm8, %v4005_v53, %v3493_v51  ;;  %v7210_v60 = vadd.f32 -1.0, %v683_v12  ;;  %5290 = vlog2.f32 %v683_v12  ;;  %v1480_v62 = vmul.f32 0.6931472, %v5279_v57  ;;  %v7304_v57 = vld [vmem:[%s6401_s30 + $0x140] sm:$0xff] }
  0xbd   : > { %4517 = vst [vmem:[%s6575_s17 + $0xe0] sm:$0xff] %v4261_v29  ;;  %v4262_v61 = vsel %vm3750_vm12, %v4006_v59, %v3494_v2  ;;  %v2727_v14 = vmul.f32 %v2246_v1, %v1478_v6  ;;  %v684_v25 = vadd.f32 1.0, %v7195_v54  ;;  %v1482_v49 = vmul.f32 0.6931472, %v5281_v46 }
  0xbe   : > { %4518 = vst [vmem:[%s6575_s17 + $0xe8] sm:$0xff] %v4262_v61  ;;  %vm3753_vm2 = vcmp.lt.f32.partialorder %v7109_v19, 0.0  ;;  %vm1195_vm5 = vcmp.eq.f32.partialorder %v7210_v60, 0.0  ;;  %v7221_v9 = vand.u32 2147483647, %v7205_v45  ;;  %v5283_v10 = vpop.eup %5282  ;;  %vm3240_vm1 = vcmp.eq.f32.partialorder %v7118_v21, inf }
  0xbf   : > { %v2983_v34 = vsel %vm1191_vm3, %v7091_v44, %v2727_v14  ;;  %v1963_v23 = vsel %vm1195_vm5, 1.0, %v7210_v60  ;;  %v7229_v43 = vadd.f32 -1.0, %v684_v25  ;;  %5292 = vlog2.f32 %v684_v25  ;;  %v5285_v17 = vpop.eup %5284 }
  0xc0   : > { %v3495_v30 = vsel %vm3239_vm14, %v7091_v44, %v2983_v34  ;;  %v2248_v11 = vmul.f32 %v5283_v10, %v7118_v21  ;;  %5294 = vrcp.f32 %v1963_v23  ;;  %v685_v42 = vadd.f32 1.0, %v7221_v9 }
  0xc1   : > { %v5287_v28 = vpop.eup %5286  ;;  %v4007_v27 = vsub.f32 0.0, %v3495_v30  ;;  %v2250_v36 = vmul.f32 %v5285_v17, %v7125_v26  ;;  %vm1196_vm3 = vcmp.eq.f32.partialorder %v7229_v43, 0.0  ;;  %vm3241_vm4 = vcmp.eq.f32.partialorder %v7125_v26, inf }
  0xc2   : > { %v2728_v58 = vmul.f32 %v2248_v11, %v1480_v62  ;;  %v1964_v44 = vsel %vm1196_vm3, 1.0, %v7229_v43  ;;  %v7246_v38 = vadd.f32 -1.0, %v685_v42  ;;  %v7251_v33 = vand.u32 2147483647, %v7237_v8 }
  0xc3   : > { %v4263_v55 = vsel %vm3751_vm15, %v4007_v27, %v3495_v30  ;;  %v2729_v32 = vmul.f32 %v2250_v36, %v1482_v49  ;;  %5296 = vrcp.f32 %v1964_v44  ;;  %v1484_v20 = vmul.f32 0.6931472, %v5287_v28  ;;  %v7337_v44 = vld [vmem:[%s6401_s30 + $0x148] sm:$0xff] }
  0xc4   : > { %4519 = vst [vmem:[%s6575_s17 + $0xf0] sm:$0xff] %v4263_v55  ;;  %v2984_v35 = vsel %vm1192_vm7, %v7118_v21, %v2728_v58  ;;  %vm1197_vm6 = vcmp.eq.f32.partialorder %v7246_v38, 0.0  ;;  %5298 = vlog2.f32 %v685_v42  ;;  %v686_v37 = vadd.f32 1.0, %v7251_v33  ;;  %v7345_v55 = vld [vmem:[%s6401_s30 + $0x150] sm:$0xff] }
  0xc5   : > { %v5289_v39 = vpop.eup %5288  ;;  %v3496_v48 = vsel %vm3240_vm1, %v7118_v21, %v2984_v35  ;;  %v2985_v50 = vsel %vm1193_vm9, %v7125_v26, %v2729_v32  ;;  %v1965_v40 = vsel %vm1197_vm6, 1.0, %v7246_v38  ;;  %vm3754_vm8 = vcmp.lt.f32.partialorder %v7141_v5, 0.0 }
  0xc6   : > { %v5291_v16 = vpop.eup %5290  ;;  %v4008_v0 = vsub.f32 0.0, %v3496_v48  ;;  %v3497_v13 = vsel %vm3241_vm4, %v7125_v26, %v2985_v50  ;;  %v2252_v21 = vmul.f32 %v5289_v39, %v7157_v52  ;;  %5300 = vrcp.f32 %v1965_v40 }
  0xc7   : > { %v4009_v22 = vsub.f32 0.0, %v3497_v13  ;;  %v7279_v15 = vadd.f32 -1.0, %v686_v37  ;;  %5302 = vlog2.f32 %v686_v37  ;;  %vm3242_vm7 = vcmp.eq.f32.partialorder %v7157_v52, inf }
  0xc8   : > { %v4264_v6 = vsel %vm3752_vm0, %v4008_v0, %v3496_v48  ;;  %v2730_v51 = vmul.f32 %v2252_v21, %v1484_v20  ;;  %v7285_v26 = vand.u32 2147483647, %v7269_v63  ;;  %v1486_v53 = vmul.f32 0.6931472, %v5291_v16 }
  0xc9   : > { %v5293_v4 = vpop.eup %5292  ;;  %4520 = vst [vmem:[%s6575_s17 + $0xf8] sm:$0xff] %v4264_v6  ;;  %v4265_v47 = vsel %vm3753_vm2, %v4009_v22, %v3497_v13  ;;  %vm1198_vm9 = vcmp.eq.f32.partialorder %v7279_v15, 0.0  ;;  %v7292_v2 = vand.u32 2147483647, %v7276_v3  ;;  %vm3755_vm10 = vcmp.lt.f32.partialorder %v7170_v24, 0.0  ;;  %v7382_v6 = vld [vmem:[%s6401_s30 + $0x158] sm:$0xff] }
  0xca   : > { %v5295_v41 = vpop.eup %5294  ;;  %4521 = vst [vmem:[%s6575_s17 + $0x100] sm:$0xff] %v4265_v47  ;;  %v2986_v18 = vsel %vm1194_vm13, %v7157_v52, %v2730_v51  ;;  %v1966_v12 = vsel %vm1198_vm9, 1.0, %v7279_v15  ;;  %v687_v19 = vadd.f32 1.0, %v7285_v26  ;;  %v1488_v46 = vmul.f32 0.6931472, %v5293_v4 }
  0xcb   : > { %v3498_v59 = vsel %vm3242_vm7, %v7157_v52, %v2986_v18  ;;  %v2254_v1 = vmul.f32 %v5295_v41, %v7187_v7  ;;  %5304 = vrcp.f32 %v1966_v12  ;;  %v688_v61 = vadd.f32 1.0, %v7292_v2 }
  0xcc   : > { %v4010_v29 = vsub.f32 0.0, %v3498_v59  ;;  %v7308_v31 = vadd.f32 -1.0, %v687_v19  ;;  %5306 = vlog2.f32 %v687_v19  ;;  %vm3243_vm11 = vcmp.eq.f32.partialorder %v7187_v7, inf }
  0xcd   : > { %v5297_v14 = vpop.eup %5296  ;;  %v2731_v62 = vmul.f32 %v2254_v1, %v1486_v53  ;;  %vm3244_vm12 = vcmp.eq.f32.partialorder %v7195_v54, inf  ;;  %v7314_v25 = vand.u32 2147483647, %v7304_v57  ;;  %v7320_v34 = vadd.f32 -1.0, %v688_v61 }
  0xce   : > { %v5299_v52 = vpop.eup %5298  ;;  %v4266_v49 = vsel %vm3754_vm8, %v4010_v29, %v3498_v59  ;;  %v2256_v10 = vmul.f32 %v5297_v14, %v7195_v54  ;;  %vm1199_vm13 = vcmp.eq.f32.partialorder %v7308_v31, 0.0  ;;  %5308 = vlog2.f32 %v688_v61 }
  0xcf   : > { %4522 = vst [vmem:[%s6575_s17 + $0x108] sm:$0xff] %v4266_v49  ;;  %v2987_v23 = vsel %vm1195_vm5, %v7187_v7, %v2731_v62  ;;  %v1490_v17 = vmul.f32 0.6931472, %v5299_v52  ;;  %v1967_v30 = vsel %vm1199_vm13, 1.0, %v7308_v31  ;;  %vm1200_vm14 = vcmp.eq.f32.partialorder %v7320_v34, 0.0 }
  0xd0   : > { %v5301_v5 = vpop.eup %5300  ;;  %v3499_v11 = vsel %vm3243_vm11, %v7187_v7, %v2987_v23  ;;  %v2732_v42 = vmul.f32 %v2256_v10, %v1488_v46  ;;  %5310 = vrcp.f32 %v1967_v30  ;;  %v1968_v36 = vsel %vm1200_vm14, 1.0, %v7320_v34 }
  0xd1   : > { %v5303_v28 = vpop.eup %5302  ;;  %v4011_v27 = vsub.f32 0.0, %v3499_v11  ;;  %v2258_v60 = vmul.f32 %v5301_v5, %v7221_v9  ;;  %v689_v58 = vadd.f32 1.0, %v7314_v25  ;;  %vm3756_vm15 = vcmp.lt.f32.partialorder %v7176_v56, 0.0  ;;  %v7425_v5 = vld [vmem:[%s6401_s30 + $0x168] sm:$0xff] }
  0xd2   : > { %v2988_v7 = vsel %vm1196_vm3, %v7195_v54, %v2732_v42  ;;  %vm3245_vm0 = vcmp.eq.f32.partialorder %v7221_v9, inf  ;;  %5312 = vrcp.f32 %v1968_v36  ;;  %v1492_v48 = vmul.f32 0.6931472, %v5303_v28 }
  0xd3   : > { %v4267_v32 = vsel %vm3755_vm10, %v4011_v27, %v3499_v11  ;;  %v3500_v35 = vsel %vm3244_vm12, %v7195_v54, %v2988_v7  ;;  %v2733_v20 = vmul.f32 %v2258_v60, %v1490_v17  ;;  %v7352_v39 = vadd.f32 -1.0, %v689_v58 }
  0xd4   : > { %4523 = vst [vmem:[%s6575_s17 + $0x110] sm:$0xff] %v4267_v32  ;;  %v4012_v43 = vsub.f32 0.0, %v3500_v35  ;;  %5314 = vlog2.f32 %v689_v58  ;;  %v7356_v50 = vand.u32 2147483647, %v7337_v44  ;;  %vm3757_vm2 = vcmp.lt.f32.partialorder %v7205_v45, 0.0 }
  0xd5   : > { %v5305_v40 = vpop.eup %5304  ;;  %v2989_v24 = vsel %vm1197_vm6, %v7221_v9, %v2733_v20  ;;  %vm1201_vm5 = vcmp.eq.f32.partialorder %v7352_v39, 0.0  ;;  %v7364_v54 = vand.u32 2147483647, %v7345_v55  ;;  %vm3758_vm1 = vcmp.lt.f32.partialorder %v7237_v8, 0.0 }
  0xd6   : > { %v5307_v37 = vpop.eup %5306  ;;  %v4268_v16 = vsel %vm3756_vm15, %v4012_v43, %v3500_v35  ;;  %v3501_v0 = vsel %vm3245_vm0, %v7221_v9, %v2989_v24  ;;  %v2260_v13 = vmul.f32 %v5305_v40, %v7251_v33  ;;  %v1969_v38 = vsel %vm1201_vm5, 1.0, %v7352_v39  ;;  %v7459_v24 = vld [vmem:[%s6401_s30 + $0x170] sm:$0xff] }
  0xd7   : > { %4524 = vst [vmem:[%s6575_s17 + $0x118] sm:$0xff] %v4268_v16  ;;  %v4013_v21 = vsub.f32 0.0, %v3501_v0  ;;  %5316 = vrcp.f32 %v1969_v38  ;;  %v690_v22 = vadd.f32 1.0, %v7356_v50  ;;  %vm3246_vm3 = vcmp.eq.f32.partialorder %v7251_v33, inf }
  0xd8   : > { %v2734_v56 = vmul.f32 %v2260_v13, %v1492_v48  ;;  %vm3759_vm4 = vcmp.lt.f32.partialorder %v7269_v63, 0.0  ;;  %v691_v9 = vadd.f32 1.0, %v7364_v54  ;;  %v5309_v51 = vpop.eup %5308  ;;  %v1494_v47 = vmul.f32 0.6931472, %v5307_v37 }
  0xd9   : > { %v4269_v4 = vsel %vm3757_vm2, %v4013_v21, %v3501_v0  ;;  %v7386_v53 = vadd.f32 -1.0, %v690_v22  ;;  %5318 = vlog2.f32 %v690_v22  ;;  %v1496_v12 = vmul.f32 0.6931472, %v5309_v51 }
  0xda   : > { %v5311_v41 = vpop.eup %5310  ;;  %4525 = vst [vmem:[%s6575_s17 + $0x120] sm:$0xff] %v4269_v4  ;;  %v2990_v18 = vsel %vm1198_vm9, %v7251_v33, %v2734_v56  ;;  %v7392_v19 = vadd.f32 -1.0, %v691_v9  ;;  %5320 = vlog2.f32 %v691_v9  ;;  %v7398_v1 = vand.u32 2147483647, %v7382_v6 }
  0xdb   : > { %v3502_v59 = vsel %vm3246_vm3, %v7251_v33, %v2990_v18  ;;  %v2262_v45 = vmul.f32 %v5311_v41, %v7285_v26  ;;  %vm1202_vm6 = vcmp.eq.f32.partialorder %v7386_v53, 0.0  ;;  %vm3247_vm8 = vcmp.eq.f32.partialorder %v7285_v26, inf  ;;  %v7406_v33 = vld [vmem:[%s6401_s30 + $0x160] sm:$0xff] }
  0xdc   : > { %v5313_v46 = vpop.eup %5312  ;;  %v4014_v29 = vsub.f32 0.0, %v3502_v59  ;;  %v1970_v15 = vsel %vm1202_vm6, 1.0, %v7386_v53  ;;  %vm1203_vm7 = vcmp.eq.f32.partialorder %v7392_v19, 0.0  ;;  %vm3248_vm9 = vcmp.eq.f32.partialorder %v7292_v2, inf }
  0xdd   : > { %v2735_v61 = vmul.f32 %v2262_v45, %v1494_v47  ;;  %v2264_v14 = vmul.f32 %v5313_v46, %v7292_v2  ;;  %5322 = vrcp.f32 %v1970_v15  ;;  %v1971_v62 = vsel %vm1203_vm7, 1.0, %v7392_v19 }
  0xde   : > { %v5315_v52 = vpop.eup %5314  ;;  %v4270_v49 = vsel %vm3758_vm1, %v4014_v29, %v3502_v59  ;;  %5324 = vrcp.f32 %v1971_v62  ;;  %v692_v10 = vadd.f32 1.0, %v7398_v1  ;;  %vm3760_vm10 = vcmp.lt.f32.partialorder %v7276_v3, 0.0  ;;  %v7471_v3 = vld [vmem:[%s6401_s30 + $0x178] sm:$0xff] }
  0xdf   : > { %4526 = vst [vmem:[%s6575_s17 + $0x128] sm:$0xff] %v4270_v49  ;;  %v2991_v23 = vsel %vm1199_vm13, %v7285_v26, %v2735_v61  ;;  %v2736_v17 = vmul.f32 %v2264_v14, %v1496_v12  ;;  %v7422_v30 = vand.u32 2147483647, %v7406_v33  ;;  %v1498_v11 = vmul.f32 0.6931472, %v5315_v52 }
  0xe0   : > { %v3503_v8 = vsel %vm3247_vm8, %v7285_v26, %v2991_v23  ;;  %v7430_v42 = vadd.f32 -1.0, %v692_v10  ;;  %5326 = vlog2.f32 %v692_v10  ;;  %vm3249_vm11 = vcmp.eq.f32.partialorder %v7314_v25, inf  ;;  %v7519_v23 = vld [vmem:[%s6401_s30 + $0x180] sm:$0xff] }
  0xe1   : > { %v5317_v28 = vpop.eup %5316  ;;  %v4015_v31 = vsub.f32 0.0, %v3503_v8  ;;  %v2992_v27 = vsel %vm1200_vm14, %v7292_v2, %v2736_v17  ;;  %v693_v60 = vadd.f32 1.0, %v7422_v30  ;;  %v7443_v58 = vand.u32 2147483647, %v7425_v5  ;;  %v7522_v17 = vld [vmem:[%s6401_s30 + $0x188] sm:$0xff] }
  0xe2   : > { %v3504_v36 = vsel %vm3248_vm9, %v7292_v2, %v2992_v27  ;;  %v2266_v26 = vmul.f32 %v5317_v28, %v7314_v25  ;;  %vm1204_vm12 = vcmp.eq.f32.partialorder %v7430_v42, 0.0  ;;  %vm3761_vm13 = vcmp.lt.f32.partialorder %v7304_v57, 0.0 }
  0xe3   : > { %v5319_v7 = vpop.eup %5318  ;;  %v4271_v34 = vsel %vm3759_vm4, %v4015_v31, %v3503_v8  ;;  %v4016_v32 = vsub.f32 0.0, %v3504_v36  ;;  %v1972_v35 = vsel %vm1204_vm12, 1.0, %v7430_v42  ;;  %v7450_v20 = vadd.f32 -1.0, %v693_v60  ;;  %v7530_v31 = vld [vmem:[%s6401_s30 + $0x190] sm:$0xff] }
  0xe4   : > { %v5321_v2 = vpop.eup %5320  ;;  %4527 = vst [vmem:[%s6575_s17 + $0x130] sm:$0xff] %v4271_v34  ;;  %v2737_v43 = vmul.f32 %v2266_v26, %v1498_v11  ;;  %5328 = vrcp.f32 %v1972_v35  ;;  %v694_v48 = vadd.f32 1.0, %v7443_v58  ;;  %v1500_v40 = vmul.f32 0.6931472, %v5319_v7 }
  0xe5   : > { %v4272_v63 = vsel %vm3760_vm10, %v4016_v32, %v3504_v36  ;;  %vm1205_vm14 = vcmp.eq.f32.partialorder %v7450_v20, 0.0  ;;  %5330 = vlog2.f32 %v693_v60  ;;  %vm3762_vm15 = vcmp.lt.f32.partialorder %v7337_v44, 0.0 }
  0xe6   : > { %4528 = vst [vmem:[%s6575_s17 + $0x138] sm:$0xff] %v4272_v63  ;;  %v2993_v37 = vsel %vm1201_vm5, %v7314_v25, %v2737_v43  ;;  %v1973_v16 = vsel %vm1205_vm14, 1.0, %v7450_v20  ;;  %v7468_v0 = vadd.f32 -1.0, %v694_v48  ;;  %5332 = vlog2.f32 %v694_v48 }
  0xe7   : > { %v5323_v13 = vpop.eup %5322  ;;  %v3505_v38 = vsel %vm3249_vm11, %v7314_v25, %v2993_v37  ;;  %v1502_v21 = vmul.f32 0.6931472, %v5321_v2  ;;  %5334 = vrcp.f32 %v1973_v16  ;;  %v7480_v9 = vand.u32 2147483647, %v7459_v24 }
  0xe8   : > { %v5325_v39 = vpop.eup %5324  ;;  %v4017_v22 = vsub.f32 0.0, %v3505_v38  ;;  %v2268_v56 = vmul.f32 %v5323_v13, %v7356_v50  ;;  %vm1206_vm0 = vcmp.eq.f32.partialorder %v7468_v0, 0.0  ;;  %vm3250_vm2 = vcmp.eq.f32.partialorder %v7356_v50, inf }
  0xe9   : > { %v2270_v51 = vmul.f32 %v5325_v39, %v7364_v54  ;;  %v1974_v25 = vsel %vm1206_vm0, 1.0, %v7468_v0  ;;  %v7488_v4 = vand.u32 2147483647, %v7471_v3  ;;  %v695_v12 = vadd.f32 1.0, %v7480_v9  ;;  %v7588_v0 = vld [vmem:[%s6401_s30 + $0x198] sm:$0xff] }
  0xea   : > { %v5327_v47 = vpop.eup %5326  ;;  %v4273_v41 = vsel %vm3761_vm13, %v4017_v22, %v3505_v38  ;;  %v2738_v18 = vmul.f32 %v2268_v56, %v1500_v40  ;;  %5336 = vrcp.f32 %v1974_v25  ;;  %vm3251_vm5 = vcmp.eq.f32.partialorder %v7364_v54, inf }
  0xeb   : > { %4529 = vst [vmem:[%s6575_s17 + $0x140] sm:$0xff] %v4273_v41  ;;  %v2739_v59 = vmul.f32 %v2270_v51, %v1502_v21  ;;  %vm3763_vm1 = vcmp.lt.f32.partialorder %v7345_v55, 0.0  ;;  %v696_v45 = vadd.f32 1.0, %v7488_v4  ;;  %v1504_v29 = vmul.f32 0.6931472, %v5327_v47 }
  0xec   : > { %v2994_v46 = vsel %vm1202_vm6, %v7356_v50, %v2738_v18  ;;  %v7500_v15 = vadd.f32 -1.0, %v695_v12  ;;  %5338 = vlog2.f32 %v695_v12  ;;  %vm3764_vm3 = vcmp.lt.f32.partialorder %v7382_v6, 0.0 }
  0xed   : > { %v3506_v57 = vsel %vm3250_vm2, %v7356_v50, %v2994_v46  ;;  %v2995_v61 = vsel %vm1203_vm7, %v7364_v54, %v2739_v59  ;;  %v7508_v14 = vadd.f32 -1.0, %v696_v45  ;;  %5340 = vlog2.f32 %v696_v45 }
  0xee   : > { %v5329_v62 = vpop.eup %5328  ;;  %v4018_v53 = vsub.f32 0.0, %v3506_v57  ;;  %v3507_v52 = vsel %vm3251_vm5, %v7364_v54, %v2995_v61  ;;  %vm1207_vm4 = vcmp.eq.f32.partialorder %v7500_v15, 0.0  ;;  %vm3252_vm8 = vcmp.eq.f32.partialorder %v7398_v1, inf }
  0xef   : > { %v5331_v49 = vpop.eup %5330  ;;  %v4019_v10 = vsub.f32 0.0, %v3507_v52  ;;  %v2272_v50 = vmul.f32 %v5329_v62, %v7398_v1  ;;  %v1975_v19 = vsel %vm1207_vm4, 1.0, %v7500_v15  ;;  %vm1208_vm6 = vcmp.eq.f32.partialorder %v7508_v14, 0.0 }
  0xf0   : > { %v5333_v54 = vpop.eup %5332  ;;  %v4274_v8 = vsel %vm3762_vm15, %v4018_v53, %v3506_v57  ;;  %v1506_v11 = vmul.f32 0.6931472, %v5331_v49  ;;  %5342 = vrcp.f32 %v1975_v19  ;;  %v1976_v28 = vsel %vm1208_vm6, 1.0, %v7508_v14 }
  0xf1   : > { %v5335_v27 = vpop.eup %5334  ;;  %4530 = vst [vmem:[%s6575_s17 + $0x148] sm:$0xff] %v4274_v8  ;;  %v4275_v60 = vsel %vm3763_vm1, %v4019_v10, %v3507_v52  ;;  %v2740_v36 = vmul.f32 %v2272_v50, %v1504_v29  ;;  %5344 = vrcp.f32 %v1976_v28  ;;  %vm3765_vm7 = vcmp.lt.f32.partialorder %v7406_v33, 0.0  ;;  %v7597_v29 = vld [vmem:[%s6401_s30 + $0x1a0] sm:$0xff]  ;;  %v7619_v50 = vld [vmem:[%s6401_s30 + $0x1a8] sm:$0xff] }
  0xf2   : > { %4531 = vst [vmem:[%s6575_s17 + $0x150] sm:$0xff] %v4275_v60  ;;  %v2274_v44 = vmul.f32 %v5335_v27, %v7422_v30  ;;  %v7540_v26 = vand.u32 2147483647, %v7519_v23  ;;  %v7543_v7 = vand.u32 2147483647, %v7522_v17  ;;  %vm3253_vm9 = vcmp.eq.f32.partialorder %v7422_v30, inf }
  0xf3   : > { %v2996_v55 = vsel %vm1204_vm12, %v7398_v1, %v2740_v36  ;;  %v1508_v34 = vmul.f32 0.6931472, %v5333_v54  ;;  %v7550_v32 = vand.u32 2147483647, %v7530_v31  ;;  %vm3254_vm10 = vcmp.eq.f32.partialorder %v7443_v58, inf }
  0xf4   : > { %v5337_v35 = vpop.eup %5336  ;;  %v3508_v2 = vsel %vm3252_vm8, %v7398_v1, %v2996_v55  ;;  %v2741_v43 = vmul.f32 %v2274_v44, %v1506_v11  ;;  %v697_v48 = vadd.f32 1.0, %v7540_v26  ;;  %vm3766_vm11 = vcmp.lt.f32.partialorder %v7425_v5, 0.0 }
  0xf5   : > { %v4020_v63 = vsub.f32 0.0, %v3508_v2  ;;  %v2276_v40 = vmul.f32 %v5337_v35, %v7443_v58  ;;  %v698_v42 = vadd.f32 1.0, %v7543_v7  ;;  %v699_v1 = vadd.f32 1.0, %v7550_v32 }
  0xf6   : > { %v5339_v37 = vpop.eup %5338  ;;  %v2997_v16 = vsel %vm1205_vm14, %v7422_v30, %v2741_v43  ;;  %v7561_v13 = vadd.f32 -1.0, %v697_v48  ;;  %5346 = vlog2.f32 %v697_v48  ;;  %vm3255_vm15 = vcmp.eq.f32.partialorder %v7480_v9, inf }
  0xf7   : > { %v5341_v38 = vpop.eup %5340  ;;  %v4276_v21 = vsel %vm3764_vm3, %v4020_v63, %v3508_v2  ;;  %v3509_v39 = vsel %vm3253_vm9, %v7422_v30, %v2997_v16  ;;  %v2742_v22 = vmul.f32 %v2276_v40, %v1508_v34  ;;  %v1510_v56 = vmul.f32 0.6931472, %v5339_v37  ;;  %v7656_v63 = vld [vmem:[%s6401_s30 + $0x1b8] sm:$0xff] }
  0xf8   : > { %4532 = vst [vmem:[%s6575_s17 + $0x158] sm:$0xff] %v4276_v21  ;;  %v4021_v20 = vsub.f32 0.0, %v3509_v39  ;;  %v1512_v51 = vmul.f32 0.6931472, %v5341_v38  ;;  %vm1209_vm12 = vcmp.eq.f32.partialorder %v7561_v13, 0.0  ;;  %v7571_v25 = vadd.f32 -1.0, %v698_v42 }
  0xf9   : > { %v2998_v6 = vsel %vm1206_vm0, %v7443_v58, %v2742_v22  ;;  %v1977_v30 = vsel %vm1209_vm12, 1.0, %v7561_v13  ;;  %5348 = vlog2.f32 %v698_v42  ;;  %v7579_v47 = vadd.f32 -1.0, %v699_v1 }
  0xfa   : > { %v5343_v41 = vpop.eup %5342  ;;  %v4277_v18 = vsel %vm3765_vm7, %v4021_v20, %v3509_v39  ;;  %v3510_v12 = vsel %vm3254_vm10, %v7443_v58, %v2998_v6  ;;  %5350 = vrcp.f32 %v1977_v30  ;;  %vm1210_vm13 = vcmp.eq.f32.partialorder %v7571_v25, 0.0 }
  0xfb   : > { %v5345_v59 = vpop.eup %5344  ;;  %4533 = vst [vmem:[%s6575_s17 + $0x160] sm:$0xff] %v4277_v18  ;;  %v4022_v45 = vsub.f32 0.0, %v3510_v12  ;;  %v2278_v46 = vmul.f32 %v5343_v41, %v7480_v9  ;;  %v1978_v33 = vsel %vm1210_vm13, 1.0, %v7571_v25  ;;  %vm1211_vm14 = vcmp.eq.f32.partialorder %v7579_v47, 0.0 }
  0xfc   : > { %v2280_v58 = vmul.f32 %v5345_v59, %v7488_v4  ;;  %5352 = vrcp.f32 %v1978_v33  ;;  %v1979_v57 = vsel %vm1211_vm14, 1.0, %v7579_v47  ;;  %v7607_v53 = vand.u32 2147483647, %v7588_v0 }
  0xfd   : > { %v4278_v61 = vsel %vm3766_vm11, %v4022_v45, %v3510_v12  ;;  %v2743_v62 = vmul.f32 %v2278_v46, %v1510_v56  ;;  %5354 = vlog2.f32 %v699_v1  ;;  %vm3256_vm0 = vcmp.eq.f32.partialorder %v7488_v4, inf }
  0xfe   : > { %4534 = vst [vmem:[%s6575_s17 + $0x168] sm:$0xff] %v4278_v61  ;;  %v2744_v52 = vmul.f32 %v2280_v58, %v1512_v51  ;;  %5356 = vrcp.f32 %v1979_v57  ;;  %v7612_v49 = vand.u32 2147483647, %v7597_v29  ;;  %v700_v5 = vadd.f32 1.0, %v7607_v53  ;;  %v7700_v61 = vld [vmem:[%s6401_s30 + $0x1c0] sm:$0xff] }
  0xff   : > { %v2999_v10 = vsel %vm1207_vm4, %v7480_v9, %v2743_v62  ;;  %vm3767_vm2 = vcmp.lt.f32.partialorder %v7459_v24, 0.0  ;;  %vm3768_vm5 = vcmp.lt.f32.partialorder %v7471_v3, 0.0  ;;  %vm3769_vm1 = vcmp.lt.f32.partialorder %v7519_v23, 0.0  ;;  %v7641_v3 = vld [vmem:[%s6401_s30 + $0x1b0] sm:$0xff] }
 0x100   : > { %v5347_v19 = vpop.eup %5346  ;;  %v3511_v54 = vsel %vm3255_vm15, %v7480_v9, %v2999_v10  ;;  %v3000_v8 = vsel %vm1208_vm6, %v7488_v4, %v2744_v52  ;;  %v701_v11 = vadd.f32 1.0, %v7612_v49  ;;  %v7631_v27 = vadd.f32 -1.0, %v700_v5 }
 0x101   : > { %v4023_v15 = vsub.f32 0.0, %v3511_v54  ;;  %v3512_v28 = vsel %vm3256_vm0, %v7488_v4, %v3000_v8  ;;  %5358 = vlog2.f32 %v700_v5  ;;  %v7637_v9 = vand.u32 2147483647, %v7619_v50 }
 0x102   : > { %v4024_v60 = vsub.f32 0.0, %v3512_v28  ;;  %v7634_v24 = vadd.f32 -1.0, %v701_v11  ;;  %v1514_v44 = vmul.f32 0.6931472, %v5347_v19  ;;  %vm1212_vm3 = vcmp.eq.f32.partialorder %v7631_v27, 0.0 }
 0x103   : > { %v5349_v14 = vpop.eup %5348  ;;  %v4279_v36 = vsel %vm3767_vm2, %v4023_v15, %v3511_v54  ;;  %5360 = vlog2.f32 %v701_v11  ;;  %vm3770_vm4 = vcmp.lt.f32.partialorder %v7522_v17, 0.0  ;;  %v1980_v35 = vsel %vm1212_vm3, 1.0, %v7631_v27  ;;  %v7720_v11 = vld [vmem:[%s6401_s30 + $0x1c8] sm:$0xff] }
 0x104   : > { %v5351_v4 = vpop.eup %5350  ;;  %4535 = vst [vmem:[%s6575_s17 + $0x170] sm:$0xff] %v4279_v36  ;;  %v4280_v55 = vsel %vm3768_vm5, %v4024_v60, %v3512_v28  ;;  %v1516_v34 = vmul.f32 0.6931472, %v5349_v14  ;;  %vm1213_vm6 = vcmp.eq.f32.partialorder %v7634_v24, 0.0  ;;  %5362 = vrcp.f32 %v1980_v35 }
 0x105   : > { %4536 = vst [vmem:[%s6575_s17 + $0x178] sm:$0xff] %v4280_v55  ;;  %v2282_v2 = vmul.f32 %v5351_v4, %v7540_v26  ;;  %v1981_v43 = vsel %vm1213_vm6, 1.0, %v7634_v24  ;;  %v702_v48 = vadd.f32 1.0, %v7637_v9  ;;  %vm3257_vm8 = vcmp.eq.f32.partialorder %v7540_v26, inf }
 0x106   : > { %v5353_v40 = vpop.eup %5352  ;;  %vm3258_vm7 = vcmp.eq.f32.partialorder %v7543_v7, inf  ;;  %5364 = vrcp.f32 %v1981_v43  ;;  %v7661_v42 = vand.u32 2147483647, %v7641_v3  ;;  %vm3259_vm9 = vcmp.eq.f32.partialorder %v7550_v32, inf }
 0x107   : > { %v5355_v37 = vpop.eup %5354  ;;  %v2745_v16 = vmul.f32 %v2282_v2, %v1514_v44  ;;  %v2284_v1 = vmul.f32 %v5353_v40, %v7543_v7  ;;  %v7664_v38 = vadd.f32 -1.0, %v702_v48  ;;  %5366 = vlog2.f32 %v702_v48  ;;  %v7733_v44 = vld [vmem:[%s6401_s30 + $0x1d0] sm:$0xff] }
 0x108   : > { %v5357_v21 = vpop.eup %5356  ;;  %v1518_v39 = vmul.f32 0.6931472, %v5355_v37  ;;  %v703_v22 = vadd.f32 1.0, %v7661_v42  ;;  %v7669_v56 = vand.u32 2147483647, %v7656_v63  ;;  %vm3771_vm11 = vcmp.lt.f32.partialorder %v7530_v31, 0.0 }
 0x109   : > { %v3001_v20 = vsel %vm1209_vm12, %v7540_v26, %v2745_v16  ;;  %v2746_v51 = vmul.f32 %v2284_v1, %v1516_v34  ;;  %v2286_v6 = vmul.f32 %v5357_v21, %v7550_v32  ;;  %vm1214_vm10 = vcmp.eq.f32.partialorder %v7664_v38, 0.0 }
 0x10a   : > { %v3513_v30 = vsel %vm3257_vm8, %v7540_v26, %v3001_v20  ;;  %v1982_v41 = vsel %vm1214_vm10, 1.0, %v7664_v38  ;;  %v7682_v18 = vadd.f32 -1.0, %v703_v22  ;;  %5368 = vlog2.f32 %v703_v22 }
 0x10b   : > { %v4025_v13 = vsub.f32 0.0, %v3513_v30  ;;  %v3002_v12 = vsel %vm1210_vm13, %v7543_v7, %v2746_v51  ;;  %v2747_v59 = vmul.f32 %v2286_v6, %v1518_v39  ;;  %5370 = vrcp.f32 %v1982_v41  ;;  %v5359_v45 = vpop.eup %5358  ;;  %v7772_v41 = vld [vmem:[%s6401_s30 + $0x1d8] sm:$0xff] }
 0x10c   : > { %v3514_v26 = vsel %vm3258_vm7, %v7543_v7, %v3002_v12  ;;  %vm1215_vm12 = vcmp.eq.f32.partialorder %v7682_v18, 0.0  ;;  %v704_v46 = vadd.f32 1.0, %v7669_v56  ;;  %vm3772_vm13 = vcmp.lt.f32.partialorder %v7588_v0, 0.0 }
 0x10d   : > { %v5361_v33 = vpop.eup %5360  ;;  %v4281_v58 = vsel %vm3769_vm1, %v4025_v13, %v3513_v30  ;;  %v4026_v25 = vsub.f32 0.0, %v3514_v26  ;;  %v3003_v57 = vsel %vm1211_vm14, %v7550_v32, %v2747_v59  ;;  %v1520_v62 = vmul.f32 0.6931472, %v5359_v45  ;;  %v7784_v59 = vld [vmem:[%s6401_s30 + $0x1e0] sm:$0xff] }
 0x10e   : > { %4537 = vst [vmem:[%s6575_s17 + $0x180] sm:$0xff] %v4281_v58  ;;  %v3515_v7 = vsel %vm3259_vm9, %v7550_v32, %v3003_v57  ;;  %v1983_v23 = vsel %vm1215_vm12, 1.0, %v7682_v18  ;;  %v7709_v52 = vadd.f32 -1.0, %v704_v46  ;;  %v5363_v10 = vpop.eup %5362  ;;  %v1522_v19 = vmul.f32 0.6931472, %v5361_v33 }
 0x10f   : > { %v4282_v47 = vsel %vm3770_vm4, %v4026_v25, %v3514_v26  ;;  %v4027_v5 = vsub.f32 0.0, %v3515_v7  ;;  %5372 = vrcp.f32 %v1983_v23  ;;  %v2288_v32 = vmul.f32 %v5363_v10, %v7607_v53 }
 0x110   : > { %v5365_v54 = vpop.eup %5364  ;;  %4538 = vst [vmem:[%s6575_s17 + $0x188] sm:$0xff] %v4282_v47  ;;  %vm1216_vm14 = vcmp.eq.f32.partialorder %v7709_v52, 0.0  ;;  %5374 = vlog2.f32 %v704_v46  ;;  %v7717_v8 = vand.u32 2147483647, %v7700_v61  ;;  %vm3260_vm15 = vcmp.eq.f32.partialorder %v7607_v53, inf }
 0x111   : > { %v5367_v15 = vpop.eup %5366  ;;  %v4283_v17 = vsel %vm3771_vm11, %v4027_v5, %v3515_v7  ;;  %v2290_v28 = vmul.f32 %v5365_v54, %v7612_v49  ;;  %v1984_v60 = vsel %vm1216_vm14, 1.0, %v7709_v52  ;;  %v2748_v14 = vmul.f32 %v2288_v32, %v1520_v62 }
 0x112   : > { %4539 = vst [vmem:[%s6575_s17 + $0x190] sm:$0xff] %v4283_v17  ;;  %vm3773_vm0 = vcmp.lt.f32.partialorder %v7597_v29, 0.0  ;;  %5376 = vrcp.f32 %v1984_v60  ;;  %v705_v36 = vadd.f32 1.0, %v7717_v8  ;;  %vm3261_vm2 = vcmp.eq.f32.partialorder %v7612_v49, inf  ;;  %v7823_v17 = vld [vmem:[%s6401_s30 + $0x1e8] sm:$0xff] }
 0x113   : > { %v2749_v4 = vmul.f32 %v2290_v28, %v1522_v19  ;;  %vm3262_vm5 = vcmp.eq.f32.partialorder %v7637_v9, inf  ;;  %v7738_v31 = vand.u32 2147483647, %v7720_v11  ;;  %v3004_v34 = vsel %vm1212_vm3, %v7607_v53, %v2748_v14  ;;  %v7826_v28 = vld [vmem:[%s6401_s30 + $0x1f0] sm:$0xff] }
 0x114   : > { %v5369_v55 = vpop.eup %5368  ;;  %v1524_v35 = vmul.f32 0.6931472, %v5367_v15  ;;  %v7743_v2 = vadd.f32 -1.0, %v705_v36  ;;  %5378 = vlog2.f32 %v705_v36  ;;  %v3516_v48 = vsel %vm3260_vm15, %v7607_v53, %v3004_v34 }
 0x115   : > { %v5371_v43 = vpop.eup %5370  ;;  %v3005_v40 = vsel %vm1213_vm6, %v7612_v49, %v2749_v4  ;;  %v706_v37 = vadd.f32 1.0, %v7738_v31  ;;  %v7753_v16 = vand.u32 2147483647, %v7733_v44  ;;  %v4028_v27 = vsub.f32 0.0, %v3516_v48 }
 0x116   : > { %v3517_v1 = vsel %vm3261_vm2, %v7612_v49, %v3005_v40  ;;  %v2292_v21 = vmul.f32 %v5371_v43, %v7637_v9  ;;  %vm1217_vm1 = vcmp.eq.f32.partialorder %v7743_v2, 0.0  ;;  %v1526_v49 = vmul.f32 0.6931472, %v5369_v55 }
 0x117   : > { %v4029_v39 = vsub.f32 0.0, %v3517_v1  ;;  %v1985_v53 = vsel %vm1217_vm1, 1.0, %v7743_v2  ;;  %v7761_v24 = vadd.f32 -1.0, %v706_v37  ;;  %5380 = vlog2.f32 %v706_v37 }
 0x118   : > { %v4284_v22 = vsel %vm3772_vm13, %v4028_v27, %v3516_v48  ;;  %v2750_v20 = vmul.f32 %v2292_v21, %v1524_v35  ;;  %5382 = vrcp.f32 %v1985_v53  ;;  %vm3774_vm3 = vcmp.lt.f32.partialorder %v7619_v50, 0.0 }
 0x119   : > { %v5373_v51 = vpop.eup %5372  ;;  %4540 = vst [vmem:[%s6575_s17 + $0x198] sm:$0xff] %v4284_v22  ;;  %v4285_v6 = vsel %vm3773_vm0, %v4029_v39, %v3517_v1  ;;  %vm1218_vm4 = vcmp.eq.f32.partialorder %v7761_v24, 0.0  ;;  %v707_v30 = vadd.f32 1.0, %v7753_v16  ;;  %vm3263_vm6 = vcmp.eq.f32.partialorder %v7661_v42, inf }
 0x11a   : > { %v5375_v13 = vpop.eup %5374  ;;  %4541 = vst [vmem:[%s6575_s17 + $0x1a0] sm:$0xff] %v4285_v6  ;;  %v3006_v0 = vsel %vm1214_vm10, %v7637_v9, %v2750_v20  ;;  %v2294_v12 = vmul.f32 %v5373_v51, %v7661_v42  ;;  %v1986_v29 = vsel %vm1218_vm4, 1.0, %v7761_v24  ;;  %v7792_v25 = vand.u32 2147483647, %v7772_v41 }
 0x11b   : > { %v3518_v45 = vsel %vm3262_vm5, %v7637_v9, %v3006_v0  ;;  %v1528_v26 = vmul.f32 0.6931472, %v5375_v13  ;;  %5384 = vrcp.f32 %v1986_v29  ;;  %v7789_v46 = vadd.f32 -1.0, %v707_v30 }
 0x11c   : > { %v5377_v38 = vpop.eup %5376  ;;  %v4030_v33 = vsub.f32 0.0, %v3518_v45  ;;  %v2751_v58 = vmul.f32 %v2294_v12, %v1526_v49  ;;  %5386 = vlog2.f32 %v707_v30  ;;  %vm3775_vm8 = vcmp.lt.f32.partialorder %v7641_v3, 0.0  ;;  %v7878_v12 = vld [vmem:[%s6401_s30 + $0x200] sm:$0xff] }
 0x11d   : > { %v2296_v57 = vmul.f32 %v5377_v38, %v7669_v56  ;;  %vm1219_vm7 = vcmp.eq.f32.partialorder %v7789_v46, 0.0  ;;  %v7798_v9 = vand.u32 2147483647, %v7784_v59  ;;  %v708_v47 = vadd.f32 1.0, %v7792_v25 }
 0x11e   : > { %v5379_v7 = vpop.eup %5378  ;;  %v4286_v62 = vsel %vm3774_vm3, %v4030_v33, %v3518_v45  ;;  %v3007_v23 = vsel %vm1215_vm12, %v7661_v42, %v2751_v58  ;;  %v1987_v10 = vsel %vm1219_vm7, 1.0, %v7789_v46  ;;  %vm3264_vm9 = vcmp.eq.f32.partialorder %v7669_v56, inf }
 0x11f   : > { %4542 = vst [vmem:[%s6575_s17 + $0x1a8] sm:$0xff] %v4286_v62  ;;  %v3519_v5 = vsel %vm3263_vm6, %v7661_v42, %v3007_v23  ;;  %v2752_v19 = vmul.f32 %v2296_v57, %v1528_v26  ;;  %5388 = vrcp.f32 %v1987_v10  ;;  %vm3776_vm10 = vcmp.lt.f32.partialorder %v7656_v63, 0.0  ;;  %v7907_v23 = vld [vmem:[%s6401_s30 + $0x208] sm:$0xff] }
 0x120   : > { %v4031_v50 = vsub.f32 0.0, %v3519_v5  ;;  %v7815_v18 = vadd.f32 -1.0, %v708_v47  ;;  %5390 = vlog2.f32 %v708_v47  ;;  %v1530_v15 = vmul.f32 0.6931472, %v5379_v7 }
 0x121   : > { %v5381_v54 = vpop.eup %5380  ;;  %v3008_v32 = vsel %vm1216_vm14, %v7669_v56, %v2752_v19  ;;  %vm3777_vm11 = vcmp.lt.f32.partialorder %v7700_v61, 0.0  ;;  %v709_v42 = vadd.f32 1.0, %v7798_v9  ;;  %vm3265_vm12 = vcmp.eq.f32.partialorder %v7717_v8, inf }
 0x122   : > { %v5383_v60 = vpop.eup %5382  ;;  %v4287_v14 = vsel %vm3775_vm8, %v4031_v50, %v3519_v5  ;;  %v3520_v36 = vsel %vm3264_vm9, %v7669_v56, %v3008_v32  ;;  %vm1220_vm13 = vcmp.eq.f32.partialorder %v7815_v18, 0.0  ;;  %v1532_v35 = vmul.f32 0.6931472, %v5381_v54 }
 0x123   : > { %4543 = vst [vmem:[%s6575_s17 + $0x1b0] sm:$0xff] %v4287_v14  ;;  %v4032_v52 = vsub.f32 0.0, %v3520_v36  ;;  %v2298_v4 = vmul.f32 %v5383_v60, %v7717_v8  ;;  %v1988_v55 = vsel %vm1220_vm13, 1.0, %v7815_v18  ;;  %v7838_v34 = vadd.f32 -1.0, %v709_v42 }
 0x124   : > { %5392 = vrcp.f32 %v1988_v55  ;;  %v7841_v3 = vand.u32 2147483647, %v7823_v17  ;;  %v7844_v56 = vand.u32 2147483647, %v7826_v28  ;;  %vm3266_vm15 = vcmp.eq.f32.partialorder %v7738_v31, inf }
 0x125   : > { %v5385_v43 = vpop.eup %5384  ;;  %v4288_v48 = vsel %vm3776_vm10, %v4032_v52, %v3520_v36  ;;  %v2753_v40 = vmul.f32 %v2298_v4, %v1530_v15  ;;  %vm1221_vm14 = vcmp.eq.f32.partialorder %v7838_v34, 0.0  ;;  %5394 = vlog2.f32 %v709_v42 }
 0x126   : > { %v5387_v37 = vpop.eup %5386  ;;  %4544 = vst [vmem:[%s6575_s17 + $0x1b8] sm:$0xff] %v4288_v48  ;;  %v2300_v27 = vmul.f32 %v5385_v43, %v7738_v31  ;;  %v1989_v1 = vsel %vm1221_vm14, 1.0, %v7838_v34  ;;  %v710_v21 = vadd.f32 1.0, %v7841_v3  ;;  %v711_v53 = vadd.f32 1.0, %v7844_v56 }
 0x127   : > { %v3009_v63 = vsel %vm1217_vm1, %v7717_v8, %v2753_v40  ;;  %v1534_v39 = vmul.f32 0.6931472, %v5387_v37  ;;  %5396 = vrcp.f32 %v1989_v1  ;;  %vm3778_vm0 = vcmp.lt.f32.partialorder %v7720_v11, 0.0  ;;  %v7945_v37 = vld [vmem:[%s6401_s30 + $0x210] sm:$0xff] }
 0x128   : > { %v3521_v22 = vsel %vm3265_vm12, %v7717_v8, %v3009_v63  ;;  %v2754_v20 = vmul.f32 %v2300_v27, %v1532_v35  ;;  %v7863_v49 = vadd.f32 -1.0, %v710_v21  ;;  %5398 = vlog2.f32 %v710_v21  ;;  %v7875_v8 = vld [vmem:[%s6401_s30 + $0x1f8] sm:$0xff] }
 0x129   : > { %v5389_v51 = vpop.eup %5388  ;;  %v4033_v6 = vsub.f32 0.0, %v3521_v22  ;;  %v7866_v2 = vadd.f32 -1.0, %v711_v53  ;;  %5400 = vlog2.f32 %v711_v53  ;;  %vm3267_vm2 = vcmp.eq.f32.partialorder %v7753_v16, inf }
 0x12a   : > { %v5391_v30 = vpop.eup %5390  ;;  %v3010_v13 = vsel %vm1218_vm4, %v7738_v31, %v2754_v20  ;;  %v2302_v0 = vmul.f32 %v5389_v51, %v7753_v16  ;;  %vm1222_vm5 = vcmp.eq.f32.partialorder %v7863_v49, 0.0  ;;  %vm3779_vm3 = vcmp.lt.f32.partialorder %v7733_v44, 0.0  ;;  %v7965_v51 = vld [vmem:[%s6401_s30 + $0x218] sm:$0xff] }
 0x12b   : > { %v4289_v29 = vsel %vm3777_vm11, %v4033_v6, %v3521_v22  ;;  %v3522_v45 = vsel %vm3266_vm15, %v7738_v31, %v3010_v13  ;;  %v1536_v26 = vmul.f32 0.6931472, %v5391_v30  ;;  %v1990_v24 = vsel %vm1222_vm5, 1.0, %v7863_v49 }
 0x12c   : > { %4545 = vst [vmem:[%s6575_s17 + $0x1c0] sm:$0xff] %v4289_v29  ;;  %v4034_v38 = vsub.f32 0.0, %v3522_v45  ;;  %v2755_v33 = vmul.f32 %v2302_v0, %v1534_v39  ;;  %5402 = vrcp.f32 %v1990_v24  ;;  %vm1223_vm1 = vcmp.eq.f32.partialorder %v7866_v2, 0.0  ;;  %v7985_v24 = vld [vmem:[%s6401_s30 + $0x220] sm:$0xff] }
 0x12d   : > { %v1991_v61 = vsel %vm1223_vm1, 1.0, %v7866_v2  ;;  %v7895_v31 = vand.u32 2147483647, %v7875_v8  ;;  %v7898_v58 = vand.u32 2147483647, %v7878_v12  ;;  %vm3780_vm4 = vcmp.lt.f32.partialorder %v7772_v41, 0.0 }
 0x12e   : > { %v5393_v57 = vpop.eup %5392  ;;  %v4290_v7 = vsel %vm3778_vm0, %v4034_v38, %v3522_v45  ;;  %v3011_v62 = vsel %vm1219_vm7, %v7753_v16, %v2755_v33  ;;  %5404 = vrcp.f32 %v1991_v61  ;;  %vm3268_vm6 = vcmp.eq.f32.partialorder %v7792_v25, inf }
 0x12f   : > { %v5395_v10 = vpop.eup %5394  ;;  %4546 = vst [vmem:[%s6575_s17 + $0x1c8] sm:$0xff] %v4290_v7  ;;  %v3523_v47 = vsel %vm3267_vm2, %v7753_v16, %v3011_v62  ;;  %v2304_v5 = vmul.f32 %v5393_v57, %v7792_v25  ;;  %v712_v11 = vadd.f32 1.0, %v7895_v31  ;;  %vm3269_vm8 = vcmp.eq.f32.partialorder %v7798_v9, inf }
 0x130   : > { %v4035_v46 = vsub.f32 0.0, %v3523_v47  ;;  %v1538_v19 = vmul.f32 0.6931472, %v5395_v10  ;;  %v713_v50 = vadd.f32 1.0, %v7898_v58  ;;  %v7921_v16 = vand.u32 2147483647, %v7907_v23 }
 0x131   : > { %v5397_v54 = vpop.eup %5396  ;;  %v2756_v32 = vmul.f32 %v2304_v5, %v1536_v26  ;;  %v7918_v15 = vadd.f32 -1.0, %v712_v11  ;;  %5406 = vlog2.f32 %v712_v11  ;;  %vm3781_vm7 = vcmp.lt.f32.partialorder %v7784_v59, 0.0 }
 0x132   : > { %v5399_v42 = vpop.eup %5398  ;;  %v4291_v60 = vsel %vm3779_vm3, %v4035_v46, %v3523_v47  ;;  %v2306_v14 = vmul.f32 %v5397_v54, %v7798_v9  ;;  %v7927_v36 = vadd.f32 -1.0, %v713_v50  ;;  %5408 = vlog2.f32 %v713_v50 }
 0x133   : > { %v5401_v52 = vpop.eup %5400  ;;  %4547 = vst [vmem:[%s6575_s17 + $0x1d0] sm:$0xff] %v4291_v60  ;;  %v3012_v4 = vsel %vm1220_vm13, %v7792_v25, %v2756_v32  ;;  %vm1224_vm9 = vcmp.eq.f32.partialorder %v7918_v15, 0.0  ;;  %v714_v55 = vadd.f32 1.0, %v7921_v16  ;;  %v1540_v43 = vmul.f32 0.6931472, %v5399_v42 }
 0x134   : > { %v3524_v44 = vsel %vm3268_vm6, %v7792_v25, %v3012_v4  ;;  %v2757_v35 = vmul.f32 %v2306_v14, %v1538_v19  ;;  %v1992_v48 = vsel %vm1224_vm9, 1.0, %v7918_v15  ;;  %vm1225_vm10 = vcmp.eq.f32.partialorder %v7927_v36, 0.0 }
 0x135   : > { %v4036_v40 = vsub.f32 0.0, %v3524_v44  ;;  %5410 = vrcp.f32 %v1992_v48  ;;  %v7942_v18 = vadd.f32 -1.0, %v714_v55  ;;  %v1542_v1 = vmul.f32 0.6931472, %v5401_v52 }
 0x136   : > { %v5403_v27 = vpop.eup %5402  ;;  %v3013_v25 = vsel %vm1221_vm14, %v7798_v9, %v2757_v35  ;;  %v1993_v21 = vsel %vm1225_vm10, 1.0, %v7927_v36  ;;  %5412 = vlog2.f32 %v714_v55  ;;  %v7962_v20 = vand.u32 2147483647, %v7945_v37 }
 0x137   : > { %v4292_v63 = vsel %vm3780_vm4, %v4036_v40, %v3524_v44  ;;  %v3525_v39 = vsel %vm3269_vm8, %v7798_v9, %v3013_v25  ;;  %v2308_v53 = vmul.f32 %v5403_v27, %v7841_v3  ;;  %5414 = vrcp.f32 %v1993_v21  ;;  %v8043_v25 = vld [vmem:[%s6401_s30 + $0x230] sm:$0xff] }
 0x138   : > { %v5405_v22 = vpop.eup %5404  ;;  %4548 = vst [vmem:[%s6575_s17 + $0x1d8] sm:$0xff] %v4292_v63  ;;  %v4037_v34 = vsub.f32 0.0, %v3525_v39  ;;  %vm1226_vm11 = vcmp.eq.f32.partialorder %v7942_v18, 0.0  ;;  %vm3270_vm12 = vcmp.eq.f32.partialorder %v7841_v3, inf  ;;  %vm3782_vm13 = vcmp.lt.f32.partialorder %v7823_v17, 0.0  ;;  %v8013_v17 = vld [vmem:[%s6401_s30 + $0x228] sm:$0xff] }
 0x139   : > { %v2758_v41 = vmul.f32 %v2308_v53, %v1540_v43  ;;  %v2310_v9 = vmul.f32 %v5405_v22, %v7844_v56  ;;  %v1994_v6 = vsel %vm1226_vm11, 1.0, %v7942_v18  ;;  %v715_v13 = vadd.f32 1.0, %v7962_v20 }
 0x13a   : > { %v4293_v30 = vsel %vm3781_vm7, %v4037_v34, %v3525_v39  ;;  %5416 = vrcp.f32 %v1994_v6  ;;  %vm3271_vm14 = vcmp.eq.f32.partialorder %v7844_v56, inf  ;;  %v7982_v26 = vand.u32 2147483647, %v7965_v51 }
 0x13b   : > { %v5407_v0 = vpop.eup %5406  ;;  %4549 = vst [vmem:[%s6575_s17 + $0x1e0] sm:$0xff] %v4293_v30  ;;  %v3014_v29 = vsel %vm1222_vm5, %v7841_v3, %v2758_v41  ;;  %v2759_v45 = vmul.f32 %v2310_v9, %v1542_v1  ;;  %vm3783_vm15 = vcmp.lt.f32.partialorder %v7826_v28, 0.0  ;;  %v7989_v38 = vadd.f32 -1.0, %v715_v13 }
 0x13c   : > { %v3526_v59 = vsel %vm3270_vm12, %v7841_v3, %v3014_v29  ;;  %5418 = vlog2.f32 %v715_v13  ;;  %v5409_v33 = vpop.eup %5408  ;;  %vm3784_vm0 = vcmp.lt.f32.partialorder %v7875_v8, 0.0  ;;  %v716_v57 = vadd.f32 1.0, %v7982_v26 }
 0x13d   : > { %v4038_v61 = vsub.f32 0.0, %v3526_v59  ;;  %v3015_v49 = vsel %vm1223_vm1, %v7844_v56, %v2759_v45  ;;  %v1544_v3 = vmul.f32 0.6931472, %v5407_v0  ;;  %vm1227_vm2 = vcmp.eq.f32.partialorder %v7989_v38, 0.0 }
 0x13e   : > { %v3527_v7 = vsel %vm3271_vm14, %v7844_v56, %v3015_v49  ;;  %v7999_v62 = vand.u32 2147483647, %v7985_v24  ;;  %vm3785_vm5 = vcmp.lt.f32.partialorder %v7878_v12, 0.0  ;;  %v1995_v2 = vsel %vm1227_vm2, 1.0, %v7989_v38 }
 0x13f   : > { %v5411_v10 = vpop.eup %5410  ;;  %v4294_v47 = vsel %vm3782_vm13, %v4038_v61, %v3526_v59  ;;  %v4039_v5 = vsub.f32 0.0, %v3527_v7  ;;  %v8007_v56 = vadd.f32 -1.0, %v716_v57  ;;  %v1546_v19 = vmul.f32 0.6931472, %v5409_v33  ;;  %v8087_v33 = vld [vmem:[%s6401_s30 + $0x240] sm:$0xff] }
 0x140   : > { %v5413_v11 = vpop.eup %5412  ;;  %4550 = vst [vmem:[%s6575_s17 + $0x1e8] sm:$0xff] %v4294_v47  ;;  %v2312_v46 = vmul.f32 %v5411_v10, %v7895_v31  ;;  %5420 = vrcp.f32 %v1995_v2  ;;  %v717_v50 = vadd.f32 1.0, %v7999_v62  ;;  %vm3272_vm1 = vcmp.eq.f32.partialorder %v7895_v31, inf }
 0x141   : > { %v5415_v54 = vpop.eup %5414  ;;  %v4295_v32 = vsel %vm3783_vm15, %v4039_v5, %v3527_v7  ;;  %vm1228_vm3 = vcmp.eq.f32.partialorder %v8007_v56, 0.0  ;;  %5422 = vlog2.f32 %v716_v57  ;;  %vm3273_vm4 = vcmp.eq.f32.partialorder %v7898_v58, inf }
 0x142   : > { %4551 = vst [vmem:[%s6575_s17 + $0x1f0] sm:$0xff] %v4295_v32  ;;  %v2760_v42 = vmul.f32 %v2312_v46, %v1544_v3  ;;  %v2314_v60 = vmul.f32 %v5415_v54, %v7898_v58  ;;  %v1996_v14 = vsel %vm1228_vm3, 1.0, %v8007_v56  ;;  %v8024_v52 = vadd.f32 -1.0, %v717_v50 }
 0x143   : > { %v1548_v28 = vmul.f32 0.6931472, %v5413_v11  ;;  %5424 = vrcp.f32 %v1996_v14  ;;  %v8028_v4 = vand.u32 2147483647, %v8013_v17  ;;  %vm3274_vm8 = vcmp.eq.f32.partialorder %v7921_v16, inf  ;;  %v8123_v14 = vld [vmem:[%s6401_s30 + $0x250] sm:$0xff] }
 0x144   : > { %v5417_v55 = vpop.eup %5416  ;;  %v3016_v44 = vsel %vm1224_vm9, %v7895_v31, %v2760_v42  ;;  %v2761_v35 = vmul.f32 %v2314_v60, %v1546_v19  ;;  %vm1229_vm6 = vcmp.eq.f32.partialorder %v8024_v52, 0.0  ;;  %5426 = vlog2.f32 %v717_v50  ;;  %v8115_v42 = vld [vmem:[%s6401_s30 + $0x248] sm:$0xff] }
 0x145   : > { %v3528_v43 = vsel %vm3272_vm1, %v7895_v31, %v3016_v44  ;;  %v2316_v48 = vmul.f32 %v5417_v55, %v7921_v16  ;;  %v1997_v40 = vsel %vm1229_vm6, 1.0, %v8024_v52  ;;  %v718_v27 = vadd.f32 1.0, %v8028_v4  ;;  %v8050_v31 = vld [vmem:[%s6401_s30 + $0x238] sm:$0xff] }
 0x146   : > { %v5419_v15 = vpop.eup %5418  ;;  %v4040_v1 = vsub.f32 0.0, %v3528_v43  ;;  %v3017_v21 = vsel %vm1225_vm10, %v7898_v58, %v2761_v35  ;;  %5428 = vrcp.f32 %v1997_v40  ;;  %vm3786_vm7 = vcmp.lt.f32.partialorder %v7907_v23, 0.0 }
 0x147   : > { %v3529_v63 = vsel %vm3273_vm4, %v7898_v58, %v3017_v21  ;;  %v2762_v39 = vmul.f32 %v2316_v48, %v1548_v28  ;;  %v8056_v53 = vadd.f32 -1.0, %v718_v27  ;;  %5430 = vlog2.f32 %v718_v27 }
 0x148   : > { %v4296_v22 = vsel %vm3784_vm0, %v4040_v1, %v3528_v43  ;;  %v4041_v36 = vsub.f32 0.0, %v3529_v63  ;;  %v8061_v34 = vand.u32 2147483647, %v8043_v25  ;;  %v1550_v58 = vmul.f32 0.6931472, %v5419_v15 }
 0x149   : > { %4552 = vst [vmem:[%s6575_s17 + $0x1f8] sm:$0xff] %v4296_v22  ;;  %v3018_v41 = vsel %vm1226_vm11, %v7921_v16, %v2762_v39  ;;  %vm1230_vm9 = vcmp.eq.f32.partialorder %v8056_v53, 0.0  ;;  %v8069_v9 = vand.u32 2147483647, %v8050_v31  ;;  %vm3787_vm10 = vcmp.lt.f32.partialorder %v7945_v37, 0.0 }
 0x14a   : > { %v5421_v8 = vpop.eup %5420  ;;  %v4297_v6 = vsel %vm3785_vm5, %v4041_v36, %v3529_v63  ;;  %v3530_v30 = vsel %vm3274_vm8, %v7921_v16, %v3018_v41  ;;  %v1998_v18 = vsel %vm1230_vm9, 1.0, %v8056_v53  ;;  %v719_v13 = vadd.f32 1.0, %v8061_v34  ;;  %v8159_v36 = vld [vmem:[%s6401_s30 + $0x258] sm:$0xff] }
 0x14b   : > { %v5423_v0 = vpop.eup %5422  ;;  %4553 = vst [vmem:[%s6575_s17 + $0x200] sm:$0xff] %v4297_v6  ;;  %v4042_v29 = vsub.f32 0.0, %v3530_v30  ;;  %v2318_v45 = vmul.f32 %v5421_v8, %v7962_v20  ;;  %5432 = vrcp.f32 %v1998_v18  ;;  %v720_v16 = vadd.f32 1.0, %v8069_v9 }
 0x14c   : > { %v1552_v12 = vmul.f32 0.6931472, %v5423_v0  ;;  %v8083_v59 = vadd.f32 -1.0, %v719_v13  ;;  %5434 = vlog2.f32 %v719_v13  ;;  %vm3275_vm11 = vcmp.eq.f32.partialorder %v7962_v20, inf }
 0x14d   : > { %v5425_v61 = vpop.eup %5424  ;;  %v4298_v49 = vsel %vm3786_vm7, %v4042_v29, %v3530_v30  ;;  %v2763_v57 = vmul.f32 %v2318_v45, %v1550_v58  ;;  %vm3276_vm12 = vcmp.eq.f32.partialorder %v7982_v26, inf  ;;  %v8096_v10 = vadd.f32 -1.0, %v720_v16 }
 0x14e   : > { %v5427_v7 = vpop.eup %5426  ;;  %4554 = vst [vmem:[%s6575_s17 + $0x208] sm:$0xff] %v4298_v49  ;;  %v2320_v3 = vmul.f32 %v5425_v61, %v7982_v26  ;;  %vm1231_vm13 = vcmp.eq.f32.partialorder %v8083_v59, 0.0  ;;  %5436 = vlog2.f32 %v720_v16  ;;  %v8105_v2 = vand.u32 2147483647, %v8087_v33 }
 0x14f   : > { %v3019_v23 = vsel %vm1227_vm2, %v7962_v20, %v2763_v57  ;;  %v1554_v47 = vmul.f32 0.6931472, %v5427_v7  ;;  %v1999_v5 = vsel %vm1231_vm13, 1.0, %v8083_v59  ;;  %vm1232_vm14 = vcmp.eq.f32.partialorder %v8096_v10, 0.0 }
 0x150   : > { %v5429_v11 = vpop.eup %5428  ;;  %v3531_v46 = vsel %vm3275_vm11, %v7962_v20, %v3019_v23  ;;  %v2764_v19 = vmul.f32 %v2320_v3, %v1552_v12  ;;  %5438 = vrcp.f32 %v1999_v5  ;;  %v2000_v54 = vsel %vm1232_vm14, 1.0, %v8096_v10 }
 0x151   : > { %v4043_v50 = vsub.f32 0.0, %v3531_v46  ;;  %v2322_v38 = vmul.f32 %v5429_v11, %v7999_v62  ;;  %v721_v32 = vadd.f32 1.0, %v8105_v2  ;;  %v5431_v60 = vpop.eup %5430  ;;  %vm3788_vm15 = vcmp.lt.f32.partialorder %v7965_v51, 0.0  ;;  %v8202_v11 = vld [vmem:[%s6401_s30 + $0x268] sm:$0xff] }
 0x152   : > { %v3020_v20 = vsel %vm1228_vm3, %v7982_v26, %v2764_v19  ;;  %vm3277_vm0 = vcmp.eq.f32.partialorder %v7999_v62, inf  ;;  %5440 = vrcp.f32 %v2000_v54  ;;  %v1556_v35 = vmul.f32 0.6931472, %v5431_v60 }
 0x153   : > { %v4299_v28 = vsel %vm3787_vm10, %v4043_v50, %v3531_v46  ;;  %v3532_v55 = vsel %vm3276_vm12, %v7982_v26, %v3020_v20  ;;  %v2765_v44 = vmul.f32 %v2322_v38, %v1554_v47  ;;  %v8131_v43 = vadd.f32 -1.0, %v721_v32 }
 0x154   : > { %4555 = vst [vmem:[%s6575_s17 + $0x210] sm:$0xff] %v4299_v28  ;;  %v4044_v56 = vsub.f32 0.0, %v3532_v55  ;;  %5442 = vlog2.f32 %v721_v32  ;;  %v8134_v48 = vand.u32 2147483647, %v8115_v42  ;;  %vm3789_vm2 = vcmp.lt.f32.partialorder %v7985_v24, 0.0 }
 0x155   : > { %v5433_v40 = vpop.eup %5432  ;;  %v3021_v37 = vsel %vm1229_vm6, %v7999_v62, %v2765_v44  ;;  %v8141_v26 = vand.u32 2147483647, %v8123_v14  ;;  %vm1233_vm5 = vcmp.eq.f32.partialorder %v8131_v43, 0.0  ;;  %vm3790_vm1 = vcmp.lt.f32.partialorder %v8013_v17, 0.0 }
 0x156   : > { %v5435_v27 = vpop.eup %5434  ;;  %v4300_v15 = vsel %vm3788_vm15, %v4044_v56, %v3532_v55  ;;  %v3533_v1 = vsel %vm3277_vm0, %v7999_v62, %v3021_v37  ;;  %v2324_v21 = vmul.f32 %v5433_v40, %v8028_v4  ;;  %v2001_v63 = vsel %vm1233_vm5, 1.0, %v8131_v43  ;;  %v8232_v56 = vld [vmem:[%s6401_s30 + $0x270] sm:$0xff] }
 0x157   : > { %4556 = vst [vmem:[%s6575_s17 + $0x218] sm:$0xff] %v4300_v15  ;;  %v4045_v52 = vsub.f32 0.0, %v3533_v1  ;;  %v722_v51 = vadd.f32 1.0, %v8134_v48  ;;  %vm3278_vm3 = vcmp.eq.f32.partialorder %v8028_v4, inf  ;;  %5444 = vrcp.f32 %v2001_v63  ;;  %v8252_v63 = vld [vmem:[%s6401_s30 + $0x278] sm:$0xff] }
 0x158   : > { %v5437_v39 = vpop.eup %5436  ;;  %v2766_v22 = vmul.f32 %v2324_v21, %v1556_v35  ;;  %v723_v62 = vadd.f32 1.0, %v8141_v26  ;;  %v1558_v58 = vmul.f32 0.6931472, %v5435_v27  ;;  %v8175_v29 = vand.u32 2147483647, %v8159_v36 }
 0x159   : > { %v4301_v41 = vsel %vm3789_vm2, %v4045_v52, %v3533_v1  ;;  %v8163_v8 = vadd.f32 -1.0, %v722_v51  ;;  %5446 = vlog2.f32 %v722_v51  ;;  %v1560_v18 = vmul.f32 0.6931472, %v5437_v39 }
 0x15a   : > { %v5439_v6 = vpop.eup %5438  ;;  %4557 = vst [vmem:[%s6575_s17 + $0x220] sm:$0xff] %v4301_v41  ;;  %v3022_v30 = vsel %vm1230_vm9, %v8028_v4, %v2766_v22  ;;  %v8169_v13 = vadd.f32 -1.0, %v723_v62  ;;  %5448 = vlog2.f32 %v723_v62  ;;  %vm3279_vm6 = vcmp.eq.f32.partialorder %v8061_v34, inf }
 0x15b   : > { %v3534_v0 = vsel %vm3278_vm3, %v8028_v4, %v3022_v30  ;;  %v2326_v24 = vmul.f32 %v5439_v6, %v8061_v34  ;;  %vm1234_vm4 = vcmp.eq.f32.partialorder %v8163_v8, 0.0  ;;  %v8183_v4 = vld [vmem:[%s6401_s30 + $0x260] sm:$0xff]  ;;  %vm3791_vm7 = vcmp.lt.f32.partialorder %v8043_v25, 0.0 }
 0x15c   : > { %v5441_v45 = vpop.eup %5440  ;;  %v4046_v12 = vsub.f32 0.0, %v3534_v0  ;;  %v2002_v53 = vsel %vm1234_vm4, 1.0, %v8163_v8  ;;  %vm1235_vm8 = vcmp.eq.f32.partialorder %v8169_v13, 0.0  ;;  %v724_v3 = vadd.f32 1.0, %v8175_v29 }
 0x15d   : > { %v2767_v16 = vmul.f32 %v2326_v24, %v1558_v58  ;;  %v2328_v61 = vmul.f32 %v5441_v45, %v8069_v9  ;;  %5450 = vrcp.f32 %v2002_v53  ;;  %v2003_v49 = vsel %vm1235_vm8, 1.0, %v8169_v13  ;;  %v8280_v53 = vld [vmem:[%s6401_s30 + $0x280] sm:$0xff] }
 0x15e   : > { %v5443_v57 = vpop.eup %5442  ;;  %v4302_v7 = vsel %vm3790_vm1, %v4046_v12, %v3534_v0  ;;  %5452 = vrcp.f32 %v2003_v49  ;;  %vm3280_vm9 = vcmp.eq.f32.partialorder %v8069_v9, inf  ;;  %v8199_v5 = vand.u32 2147483647, %v8183_v4 }
 0x15f   : > { %4558 = vst [vmem:[%s6575_s17 + $0x228] sm:$0xff] %v4302_v7  ;;  %v3023_v23 = vsel %vm1231_vm13, %v8061_v34, %v2767_v16  ;;  %v2768_v47 = vmul.f32 %v2328_v61, %v1560_v18  ;;  %vm3792_vm10 = vcmp.lt.f32.partialorder %v8050_v31, 0.0  ;;  %v8208_v46 = vadd.f32 -1.0, %v724_v3 }
 0x160   : > { %v3535_v17 = vsel %vm3279_vm6, %v8061_v34, %v3023_v23  ;;  %5454 = vlog2.f32 %v724_v3  ;;  %v1562_v50 = vmul.f32 0.6931472, %v5443_v57  ;;  %v725_v38 = vadd.f32 1.0, %v8199_v5 }
 0x161   : > { %v4047_v59 = vsub.f32 0.0, %v3535_v17  ;;  %v3024_v19 = vsel %vm1232_vm14, %v8069_v9, %v2768_v47  ;;  %v5445_v54 = vpop.eup %5444  ;;  %vm3281_vm11 = vcmp.eq.f32.partialorder %v8105_v2, inf  ;;  %vm1236_vm12 = vcmp.eq.f32.partialorder %v8208_v46, 0.0 }
 0x162   : > { %v3536_v32 = vsel %vm3280_vm9, %v8069_v9, %v3024_v19  ;;  %v8218_v34 = vand.u32 2147483647, %v8202_v11  ;;  %v2330_v28 = vmul.f32 %v5445_v54, %v8105_v2  ;;  %v2004_v55 = vsel %vm1236_vm12, 1.0, %v8208_v46 }
 0x163   : > { %v5447_v60 = vpop.eup %5446  ;;  %v4303_v10 = vsel %vm3791_vm7, %v4047_v59, %v3535_v17  ;;  %v4048_v20 = vsub.f32 0.0, %v3536_v32  ;;  %vm3793_vm13 = vcmp.lt.f32.partialorder %v8087_v33, 0.0  ;;  %5456 = vrcp.f32 %v2004_v55  ;;  %v8302_v59 = vld [vmem:[%s6401_s30 + $0x288] sm:$0xff] }
 0x164   : > { %v5449_v9 = vpop.eup %5448  ;;  %4559 = vst [vmem:[%s6575_s17 + $0x230] sm:$0xff] %v4303_v10  ;;  %v8228_v44 = vadd.f32 -1.0, %v725_v38  ;;  %v726_v35 = vadd.f32 1.0, %v8218_v34  ;;  %v2769_v40 = vmul.f32 %v2330_v28, %v1562_v50  ;;  %vm3794_vm14 = vcmp.lt.f32.partialorder %v8115_v42, 0.0 }
 0x165   : > { %v4304_v25 = vsel %vm3792_vm10, %v4048_v20, %v3536_v32  ;;  %5458 = vlog2.f32 %v725_v38  ;;  %v1564_v37 = vmul.f32 0.6931472, %v5447_v60  ;;  %vm3795_vm15 = vcmp.lt.f32.partialorder %v8123_v14, 0.0  ;;  %v8311_v32 = vld [vmem:[%s6401_s30 + $0x290] sm:$0xff] }
 0x166   : > { %4560 = vst [vmem:[%s6575_s17 + $0x238] sm:$0xff] %v4304_v25  ;;  %vm1237_vm0 = vcmp.eq.f32.partialorder %v8228_v44, 0.0  ;;  %v8240_v27 = vadd.f32 -1.0, %v726_v35  ;;  %5460 = vlog2.f32 %v726_v35  ;;  %v3025_v31 = vsel %vm1233_vm5, %v8105_v2, %v2769_v40 }
 0x167   : > { %v5451_v15 = vpop.eup %5450  ;;  %v1566_v1 = vmul.f32 0.6931472, %v5449_v9  ;;  %v2005_v21 = vsel %vm1237_vm0, 1.0, %v8228_v44  ;;  %v8249_v52 = vand.u32 2147483647, %v8232_v56  ;;  %v3537_v39 = vsel %vm3281_vm11, %v8105_v2, %v3025_v31 }
 0x168   : > { %v5453_v51 = vpop.eup %5452  ;;  %v2332_v22 = vmul.f32 %v5451_v15, %v8134_v48  ;;  %5462 = vrcp.f32 %v2005_v21  ;;  %vm1238_vm2 = vcmp.eq.f32.partialorder %v8240_v27, 0.0  ;;  %v4049_v43 = vsub.f32 0.0, %v3537_v39 }
 0x169   : > { %v2334_v62 = vmul.f32 %v5453_v51, %v8141_v26  ;;  %v2006_v41 = vsel %vm1238_vm2, 1.0, %v8240_v27  ;;  %v727_v58 = vadd.f32 1.0, %v8249_v52  ;;  %vm3282_vm5 = vcmp.eq.f32.partialorder %v8134_v48, inf }
 0x16a   : > { %v5455_v6 = vpop.eup %5454  ;;  %v2770_v30 = vmul.f32 %v2332_v22, %v1564_v37  ;;  %5464 = vrcp.f32 %v2006_v41  ;;  %v8266_v2 = vand.u32 2147483647, %v8252_v63  ;;  %v4305_v18 = vsel %vm3793_vm13, %v4049_v43, %v3537_v39 }
 0x16b   : > { %v2771_v0 = vmul.f32 %v2334_v62, %v1566_v1  ;;  %vm3283_vm1 = vcmp.eq.f32.partialorder %v8141_v26, inf  ;;  %v8271_v24 = vadd.f32 -1.0, %v727_v58  ;;  %4561 = vst [vmem:[%s6575_s17 + $0x240] sm:$0xff] %v4305_v18  ;;  %vm3796_vm3 = vcmp.lt.f32.partialorder %v8159_v36, 0.0  ;;  %v8363_v18 = vld [vmem:[%s6401_s30 + $0x298] sm:$0xff] }
 0x16c   : > { %v3026_v45 = vsel %vm1234_vm4, %v8134_v48, %v2770_v30  ;;  %5466 = vlog2.f32 %v727_v58  ;;  %v728_v12 = vadd.f32 1.0, %v8266_v2  ;;  %v1568_v61 = vmul.f32 0.6931472, %v5455_v6 }
 0x16d   : > { %v3538_v33 = vsel %vm3282_vm5, %v8134_v48, %v3026_v45  ;;  %v3027_v16 = vsel %vm1235_vm8, %v8141_v26, %v2771_v0  ;;  %vm1239_vm6 = vcmp.eq.f32.partialorder %v8271_v24, 0.0  ;;  %v5457_v49 = vpop.eup %5456  ;;  %v8295_v47 = vand.u32 2147483647, %v8280_v53 }
 0x16e   : > { %v4050_v8 = vsub.f32 0.0, %v3538_v33  ;;  %v3539_v57 = vsel %vm3283_vm1, %v8141_v26, %v3027_v16  ;;  %v2007_v7 = vsel %vm1239_vm6, 1.0, %v8271_v24  ;;  %v8291_v3 = vadd.f32 -1.0, %v728_v12 }
 0x16f   : > { %v5459_v48 = vpop.eup %5458  ;;  %v4051_v23 = vsub.f32 0.0, %v3539_v57  ;;  %v2336_v13 = vmul.f32 %v5457_v49, %v8175_v29  ;;  %5468 = vrcp.f32 %v2007_v7  ;;  %vm3284_vm4 = vcmp.eq.f32.partialorder %v8175_v29, inf }
 0x170   : > { %v5461_v17 = vpop.eup %5460  ;;  %v4306_v26 = vsel %vm3794_vm14, %v4050_v8, %v3538_v33  ;;  %vm1240_vm8 = vcmp.eq.f32.partialorder %v8291_v3, 0.0  ;;  %5470 = vlog2.f32 %v728_v12  ;;  %v1570_v38 = vmul.f32 0.6931472, %v5459_v48  ;;  %v8371_v33 = vld [vmem:[%s6401_s30 + $0x2a0] sm:$0xff] }
 0x171   : > { %4562 = vst [vmem:[%s6575_s17 + $0x248] sm:$0xff] %v4306_v26  ;;  %v4307_v19 = vsel %vm3795_vm15, %v4051_v23, %v3539_v57  ;;  %v2772_v50 = vmul.f32 %v2336_v13, %v1568_v61  ;;  %v2008_v54 = vsel %vm1240_vm8, 1.0, %v8291_v3  ;;  %vm3285_vm7 = vcmp.eq.f32.partialorder %v8199_v5, inf  ;;  %v8399_v26 = vld [vmem:[%s6401_s30 + $0x2a8] sm:$0xff] }
 0x172   : > { %v5463_v42 = vpop.eup %5462  ;;  %4563 = vst [vmem:[%s6575_s17 + $0x250] sm:$0xff] %v4307_v19  ;;  %vm3797_vm9 = vcmp.lt.f32.partialorder %v8183_v4, 0.0  ;;  %5472 = vrcp.f32 %v2008_v54  ;;  %v729_v60 = vadd.f32 1.0, %v8295_v47  ;;  %v1572_v20 = vmul.f32 0.6931472, %v5461_v17 }
 0x173   : > { %v3028_v14 = vsel %vm1236_vm12, %v8175_v29, %v2772_v50  ;;  %v2338_v10 = vmul.f32 %v5463_v42, %v8199_v5  ;;  %v8322_v28 = vand.u32 2147483647, %v8302_v59  ;;  %v8330_v25 = vand.u32 2147483647, %v8311_v32 }
 0x174   : > { %v5465_v55 = vpop.eup %5464  ;;  %v3540_v9 = vsel %vm3284_vm4, %v8175_v29, %v3028_v14  ;;  %v8327_v35 = vadd.f32 -1.0, %v729_v60  ;;  %5474 = vlog2.f32 %v729_v60  ;;  %vm3286_vm10 = vcmp.eq.f32.partialorder %v8218_v34, inf }
 0x175   : > { %v4052_v46 = vsub.f32 0.0, %v3540_v9  ;;  %v2773_v40 = vmul.f32 %v2338_v10, %v1570_v38  ;;  %v2340_v37 = vmul.f32 %v5465_v55, %v8218_v34  ;;  %v730_v15 = vadd.f32 1.0, %v8322_v28  ;;  %v8424_v55 = vld [vmem:[%s6401_s30 + $0x2b0] sm:$0xff] }
 0x176   : > { %v5467_v31 = vpop.eup %5466  ;;  %vm3798_vm11 = vcmp.lt.f32.partialorder %v8202_v11, 0.0  ;;  %vm1241_vm12 = vcmp.eq.f32.partialorder %v8327_v35, 0.0  ;;  %v731_v29 = vadd.f32 1.0, %v8330_v25  ;;  %vm3287_vm14 = vcmp.eq.f32.partialorder %v8249_v52, inf }
 0x177   : > { %v4308_v1 = vsel %vm3796_vm3, %v4052_v46, %v3540_v9  ;;  %v3029_v21 = vsel %vm1237_vm0, %v8199_v5, %v2773_v40  ;;  %v2774_v51 = vmul.f32 %v2340_v37, %v1572_v20  ;;  %v1574_v39 = vmul.f32 0.6931472, %v5467_v31  ;;  %v8427_v9 = vld [vmem:[%s6401_s30 + $0x2b8] sm:$0xff] }
 0x178   : > { %4564 = vst [vmem:[%s6575_s17 + $0x258] sm:$0xff] %v4308_v1  ;;  %v3541_v22 = vsel %vm3285_vm7, %v8199_v5, %v3029_v21  ;;  %v2009_v43 = vsel %vm1241_vm12, 1.0, %v8327_v35  ;;  %v8350_v62 = vadd.f32 -1.0, %v730_v15  ;;  %5476 = vlog2.f32 %v730_v15 }
 0x179   : > { %v5469_v36 = vpop.eup %5468  ;;  %v4053_v41 = vsub.f32 0.0, %v3541_v22  ;;  %v3030_v44 = vsel %vm1238_vm2, %v8218_v34, %v2774_v51  ;;  %5478 = vrcp.f32 %v2009_v43  ;;  %v8355_v58 = vadd.f32 -1.0, %v731_v29 }
 0x17a   : > { %v5471_v6 = vpop.eup %5470  ;;  %v3542_v5 = vsel %vm3286_vm10, %v8218_v34, %v3030_v44  ;;  %v2342_v30 = vmul.f32 %v5469_v36, %v8249_v52  ;;  %vm1242_vm13 = vcmp.eq.f32.partialorder %v8350_v62, 0.0  ;;  %5480 = vlog2.f32 %v731_v29 }
 0x17b   : > { %v4309_v27 = vsel %vm3797_vm9, %v4053_v41, %v3541_v22  ;;  %v4054_v0 = vsub.f32 0.0, %v3542_v5  ;;  %v1576_v45 = vmul.f32 0.6931472, %v5471_v6  ;;  %v2010_v12 = vsel %vm1242_vm13, 1.0, %v8350_v62 }
 0x17c   : > { %v5473_v34 = vpop.eup %5472  ;;  %4565 = vst [vmem:[%s6575_s17 + $0x260] sm:$0xff] %v4309_v27  ;;  %v2775_v16 = vmul.f32 %v2342_v30, %v1574_v39  ;;  %5482 = vrcp.f32 %v2010_v12  ;;  %vm1243_vm15 = vcmp.eq.f32.partialorder %v8355_v58, 0.0  ;;  %v8383_v8 = vand.u32 2147483647, %v8363_v18 }
 0x17d   : > { %v4310_v4 = vsel %vm3798_vm11, %v4054_v0, %v3542_v5  ;;  %v2344_v61 = vmul.f32 %v5473_v34, %v8266_v2  ;;  %v2011_v49 = vsel %vm1243_vm15, 1.0, %v8355_v58  ;;  %vm3799_vm0 = vcmp.lt.f32.partialorder %v8232_v56, 0.0 }
 0x17e   : > { %v5475_v57 = vpop.eup %5474  ;;  %4566 = vst [vmem:[%s6575_s17 + $0x268] sm:$0xff] %v4310_v4  ;;  %v3031_v7 = vsel %vm1239_vm6, %v8249_v52, %v2775_v16  ;;  %5484 = vrcp.f32 %v2011_v49  ;;  %v8391_v11 = vand.u32 2147483647, %v8371_v33  ;;  %vm3288_vm2 = vcmp.eq.f32.partialorder %v8266_v2, inf  ;;  %v8478_v49 = vld [vmem:[%s6401_s30 + $0x2c0] sm:$0xff] }
 0x17f   : > { %v3543_v48 = vsel %vm3287_vm14, %v8249_v52, %v3031_v7  ;;  %v2776_v23 = vmul.f32 %v2344_v61, %v1576_v45  ;;  %v732_v13 = vadd.f32 1.0, %v8383_v8  ;;  %vm3800_vm5 = vcmp.lt.f32.partialorder %v8252_v63, 0.0 }
 0x180   : > { %v4055_v17 = vsub.f32 0.0, %v3543_v48  ;;  %v733_v24 = vadd.f32 1.0, %v8391_v11  ;;  %v1578_v50 = vmul.f32 0.6931472, %v5475_v57  ;;  %vm3289_vm1 = vcmp.eq.f32.partialorder %v8295_v47, inf }
 0x181   : > { %v3032_v19 = vsel %vm1240_vm8, %v8266_v2, %v2776_v23  ;;  %v8404_v38 = vadd.f32 -1.0, %v732_v13  ;;  %5486 = vlog2.f32 %v732_v13  ;;  %v8415_v3 = vand.u32 2147483647, %v8399_v26 }
 0x182   : > { %v5477_v52 = vpop.eup %5476  ;;  %v4311_v54 = vsel %vm3799_vm0, %v4055_v17, %v3543_v48  ;;  %v3544_v42 = vsel %vm3288_vm2, %v8266_v2, %v3032_v19  ;;  %v8409_v60 = vadd.f32 -1.0, %v733_v24  ;;  %5488 = vlog2.f32 %v733_v24  ;;  %v8497_v24 = vld [vmem:[%s6401_s30 + $0x2c8] sm:$0xff] }
 0x183   : > { %v5479_v14 = vpop.eup %5478  ;;  %4567 = vst [vmem:[%s6575_s17 + $0x270] sm:$0xff] %v4311_v54  ;;  %v4056_v10 = vsub.f32 0.0, %v3544_v42  ;;  %vm1244_vm3 = vcmp.eq.f32.partialorder %v8404_v38, 0.0  ;;  %vm3801_vm6 = vcmp.lt.f32.partialorder %v8280_v53, 0.0  ;;  %v1580_v40 = vmul.f32 0.6931472, %v5477_v52 }
 0x184   : > { %v5481_v56 = vpop.eup %5480  ;;  %v2346_v20 = vmul.f32 %v5479_v14, %v8295_v47  ;;  %v2012_v2 = vsel %vm1244_vm3, 1.0, %v8404_v38  ;;  %vm1245_vm4 = vcmp.eq.f32.partialorder %v8409_v60, 0.0  ;;  %vm3802_vm8 = vcmp.lt.f32.partialorder %v8302_v59, 0.0  ;;  %v8507_v52 = vld [vmem:[%s6401_s30 + $0x2d0] sm:$0xff] }
 0x185   : > { %v4312_v46 = vsel %vm3800_vm5, %v4056_v10, %v3544_v42  ;;  %5490 = vrcp.f32 %v2012_v2  ;;  %v2013_v37 = vsel %vm1245_vm4, 1.0, %v8409_v60  ;;  %v734_v29 = vadd.f32 1.0, %v8415_v3 }
 0x186   : > { %v5483_v15 = vpop.eup %5482  ;;  %4568 = vst [vmem:[%s6575_s17 + $0x278] sm:$0xff] %v4312_v46  ;;  %v2777_v31 = vmul.f32 %v2346_v20, %v1578_v50  ;;  %5492 = vrcp.f32 %v2013_v37  ;;  %v1582_v21 = vmul.f32 0.6931472, %v5481_v56  ;;  %v8439_v63 = vand.u32 2147483647, %v8424_v55 }
 0x187   : > { %v2348_v1 = vmul.f32 %v5483_v15, %v8322_v28  ;;  %v8442_v51 = vand.u32 2147483647, %v8427_v9  ;;  %vm3290_vm7 = vcmp.eq.f32.partialorder %v8322_v28, inf  ;;  %v8448_v43 = vadd.f32 -1.0, %v734_v29 }
 0x188   : > { %v5485_v39 = vpop.eup %5484  ;;  %v3033_v22 = vsel %vm1241_vm12, %v8295_v47, %v2777_v31  ;;  %5494 = vlog2.f32 %v734_v29  ;;  %v735_v6 = vadd.f32 1.0, %v8439_v63  ;;  %vm3291_vm9 = vcmp.eq.f32.partialorder %v8330_v25, inf }
 0x189   : > { %v3545_v36 = vsel %vm3289_vm1, %v8295_v47, %v3033_v22  ;;  %v2778_v41 = vmul.f32 %v2348_v1, %v1580_v40  ;;  %v2350_v44 = vmul.f32 %v5485_v39, %v8330_v25  ;;  %vm1246_vm10 = vcmp.eq.f32.partialorder %v8448_v43, 0.0 }
 0x18a   : > { %v4057_v5 = vsub.f32 0.0, %v3545_v36  ;;  %v736_v35 = vadd.f32 1.0, %v8442_v51  ;;  %v2014_v0 = vsel %vm1246_vm10, 1.0, %v8448_v43  ;;  %v8464_v45 = vadd.f32 -1.0, %v735_v6 }
 0x18b   : > { %v5487_v30 = vpop.eup %5486  ;;  %v3034_v27 = vsel %vm1242_vm13, %v8322_v28, %v2778_v41  ;;  %v2779_v47 = vmul.f32 %v2350_v44, %v1582_v21  ;;  %vm3803_vm11 = vcmp.lt.f32.partialorder %v8311_v32, 0.0  ;;  %5496 = vrcp.f32 %v2014_v0 }
 0x18c   : > { %v5489_v12 = vpop.eup %5488  ;;  %v4313_v34 = vsel %vm3801_vm6, %v4057_v5, %v3545_v36  ;;  %v3546_v16 = vsel %vm3290_vm7, %v8322_v28, %v3034_v27  ;;  %v1584_v61 = vmul.f32 0.6931472, %v5487_v30  ;;  %vm1247_vm12 = vcmp.eq.f32.partialorder %v8464_v45, 0.0  ;;  %v8556_v27 = vld [vmem:[%s6401_s30 + $0x2d8] sm:$0xff] }
 0x18d   : > { %4569 = vst [vmem:[%s6575_s17 + $0x280] sm:$0xff] %v4313_v34  ;;  %v4058_v62 = vsub.f32 0.0, %v3546_v16  ;;  %v3035_v4 = vsel %vm1243_vm15, %v8330_v25, %v2779_v47  ;;  %5498 = vlog2.f32 %v735_v6  ;;  %v2015_v28 = vsel %vm1247_vm12, 1.0, %v8464_v45 }
 0x18e   : > { %v3547_v53 = vsel %vm3291_vm9, %v8330_v25, %v3035_v4  ;;  %v8486_v57 = vadd.f32 -1.0, %v736_v35  ;;  %v1586_v23 = vmul.f32 0.6931472, %v5489_v12  ;;  %5500 = vrcp.f32 %v2015_v28  ;;  %v8565_v12 = vld [vmem:[%s6401_s30 + $0x2e0] sm:$0xff] }
 0x18f   : > { %v5491_v7 = vpop.eup %5490  ;;  %v4314_v58 = vsel %vm3802_vm8, %v4058_v62, %v3546_v16  ;;  %v4059_v48 = vsub.f32 0.0, %v3547_v53  ;;  %5502 = vlog2.f32 %v736_v35  ;;  %v8494_v17 = vand.u32 2147483647, %v8478_v49 }
 0x190   : > { %v5493_v13 = vpop.eup %5492  ;;  %4570 = vst [vmem:[%s6575_s17 + $0x288] sm:$0xff] %v4314_v58  ;;  %v2352_v25 = vmul.f32 %v5491_v7, %v8383_v8  ;;  %vm1248_vm13 = vcmp.eq.f32.partialorder %v8486_v57, 0.0  ;;  %vm3804_vm14 = vcmp.lt.f32.partialorder %v8363_v18, 0.0  ;;  %vm3292_vm15 = vcmp.eq.f32.partialorder %v8383_v8, inf  ;;  %v8584_v7 = vld [vmem:[%s6401_s30 + $0x2e8] sm:$0xff] }
 0x191   : > { %v4315_v59 = vsel %vm3803_vm11, %v4059_v48, %v3547_v53  ;;  %v2354_v19 = vmul.f32 %v5493_v13, %v8391_v11  ;;  %v2016_v50 = vsel %vm1248_vm13, 1.0, %v8486_v57  ;;  %v737_v14 = vadd.f32 1.0, %v8494_v17 }
 0x192   : > { %v5495_v54 = vpop.eup %5494  ;;  %4571 = vst [vmem:[%s6575_s17 + $0x290] sm:$0xff] %v4315_v59  ;;  %v2780_v42 = vmul.f32 %v2352_v25, %v1584_v61  ;;  %5504 = vrcp.f32 %v2016_v50  ;;  %vm3293_vm0 = vcmp.eq.f32.partialorder %v8391_v11, inf  ;;  %vm3805_vm2 = vcmp.lt.f32.partialorder %v8371_v33, 0.0 }
 0x193   : > { %v2781_v32 = vmul.f32 %v2354_v19, %v1586_v23  ;;  %v8515_v10 = vand.u32 2147483647, %v8497_v24  ;;  %vm3806_vm5 = vcmp.lt.f32.partialorder %v8399_v26, 0.0  ;;  %v8521_v20 = vadd.f32 -1.0, %v737_v14  ;;  %v8602_v19 = vld [vmem:[%s6401_s30 + $0x2f0] sm:$0xff] }
 0x194   : > { %v3036_v56 = vsel %vm1244_vm3, %v8383_v8, %v2780_v42  ;;  %5506 = vlog2.f32 %v737_v14  ;;  %v8524_v2 = vand.u32 2147483647, %v8507_v52  ;;  %v1588_v37 = vmul.f32 0.6931472, %v5495_v54 }
 0x195   : > { %v3548_v46 = vsel %vm3292_vm15, %v8383_v8, %v3036_v56  ;;  %v3037_v40 = vsel %vm1245_vm4, %v8391_v11, %v2781_v32  ;;  %v738_v15 = vadd.f32 1.0, %v8515_v10  ;;  %v5497_v38 = vpop.eup %5496  ;;  %vm1249_vm1 = vcmp.eq.f32.partialorder %v8521_v20, 0.0 }
 0x196   : > { %v4060_v31 = vsub.f32 0.0, %v3548_v46  ;;  %v3549_v29 = vsel %vm3293_vm0, %v8391_v11, %v3037_v40  ;;  %v739_v1 = vadd.f32 1.0, %v8524_v2  ;;  %v2356_v8 = vmul.f32 %v5497_v38, %v8415_v3 }
 0x197   : > { %v4061_v21 = vsub.f32 0.0, %v3549_v29  ;;  %v2017_v60 = vsel %vm1249_vm1, 1.0, %v8521_v20  ;;  %v8538_v39 = vadd.f32 -1.0, %v738_v15  ;;  %v5499_v22 = vpop.eup %5498  ;;  %vm3294_vm3 = vcmp.eq.f32.partialorder %v8415_v3, inf }
 0x198   : > { %v4316_v36 = vsel %vm3804_vm14, %v4060_v31, %v3548_v46  ;;  %5508 = vrcp.f32 %v2017_v60  ;;  %v8543_v11 = vadd.f32 -1.0, %v739_v1  ;;  %v5501_v41 = vpop.eup %5500  ;;  %v2782_v6 = vmul.f32 %v2356_v8, %v1588_v37 }
 0x199   : > { %4572 = vst [vmem:[%s6575_s17 + $0x298] sm:$0xff] %v4316_v36  ;;  %v4317_v44 = vsel %vm3805_vm2, %v4061_v21, %v3549_v29  ;;  %v1590_v5 = vmul.f32 0.6931472, %v5499_v22  ;;  %vm1250_vm6 = vcmp.eq.f32.partialorder %v8538_v39, 0.0  ;;  %v5503_v35 = vpop.eup %5502  ;;  %v2358_v18 = vmul.f32 %v5501_v41, %v8439_v63 }
 0x19a   : > { %4573 = vst [vmem:[%s6575_s17 + $0x2a0] sm:$0xff] %v4317_v44  ;;  %5510 = vlog2.f32 %v738_v15  ;;  %v2018_v30 = vsel %vm1250_vm6, 1.0, %v8538_v39  ;;  %vm1251_vm4 = vcmp.eq.f32.partialorder %v8543_v11, 0.0  ;;  %v3038_v33 = vsel %vm1246_vm10, %v8415_v3, %v2782_v6 }
 0x19b   : > { %v1592_v47 = vmul.f32 0.6931472, %v5503_v35  ;;  %5512 = vrcp.f32 %v2018_v30  ;;  %v2019_v0 = vsel %vm1251_vm4, 1.0, %v8543_v11  ;;  %v3550_v16 = vsel %vm3294_vm3, %v8415_v3, %v3038_v33 }
 0x19c   : > { %v5505_v34 = vpop.eup %5504  ;;  %v2783_v62 = vmul.f32 %v2358_v18, %v1590_v5  ;;  %vm3295_vm8 = vcmp.eq.f32.partialorder %v8439_v63, inf  ;;  %5514 = vlog2.f32 %v739_v1  ;;  %v4062_v43 = vsub.f32 0.0, %v3550_v16  ;;  %v8643_v5 = vld [vmem:[%s6401_s30 + $0x2f8] sm:$0xff] }
 0x19d   : > { %v2360_v4 = vmul.f32 %v5505_v34, %v8442_v51  ;;  %5516 = vrcp.f32 %v2019_v0  ;;  %v8573_v61 = vand.u32 2147483647, %v8556_v27  ;;  %vm3807_vm7 = vcmp.lt.f32.partialorder %v8424_v55, 0.0 }
 0x19e   : > { %v5507_v53 = vpop.eup %5506  ;;  %v3039_v28 = vsel %vm1247_vm12, %v8439_v63, %v2783_v62  ;;  %vm3808_vm9 = vcmp.lt.f32.partialorder %v8427_v9, 0.0  ;;  %v8581_v3 = vand.u32 2147483647, %v8565_v12  ;;  %v4318_v58 = vsel %vm3806_vm5, %v4062_v43, %v3550_v16  ;;  %v8667_v16 = vld [vmem:[%s6401_s30 + $0x300] sm:$0xff]  ;;  %v8673_v43 = vld [vmem:[%s6401_s30 + $0x308] sm:$0xff] }
 0x19f   : > { %v3551_v48 = vsel %vm3295_vm8, %v8439_v63, %v3039_v28  ;;  %v2784_v23 = vmul.f32 %v2360_v4, %v1592_v47  ;;  %vm3296_vm10 = vcmp.eq.f32.partialorder %v8442_v51, inf  ;;  %4574 = vst [vmem:[%s6575_s17 + $0x2a8] sm:$0xff] %v4318_v58  ;;  %vm3809_vm11 = vcmp.lt.f32.partialorder %v8478_v49, 0.0 }
 0x1a0   : > { %v4063_v45 = vsub.f32 0.0, %v3551_v48  ;;  %v740_v13 = vadd.f32 1.0, %v8573_v61  ;;  %v741_v25 = vadd.f32 1.0, %v8581_v3  ;;  %v1594_v26 = vmul.f32 0.6931472, %v5507_v53 }
 0x1a1   : > { %v3040_v59 = vsel %vm1248_vm13, %v8442_v51, %v2784_v23  ;;  %vm3297_vm12 = vcmp.eq.f32.partialorder %v8494_v17, inf  ;;  %v8599_v63 = vand.u32 2147483647, %v8584_v7  ;;  %vm3298_vm13 = vcmp.eq.f32.partialorder %v8515_v10, inf }
 0x1a2   : > { %v5509_v50 = vpop.eup %5508  ;;  %v4319_v54 = vsel %vm3807_vm7, %v4063_v45, %v3551_v48  ;;  %v3552_v42 = vsel %vm3296_vm10, %v8442_v51, %v3040_v59  ;;  %v8607_v14 = vadd.f32 -1.0, %v740_v13  ;;  %5518 = vlog2.f32 %v740_v13 }
 0x1a3   : > { %4575 = vst [vmem:[%s6575_s17 + $0x2b0] sm:$0xff] %v4319_v54  ;;  %v4064_v57 = vsub.f32 0.0, %v3552_v42  ;;  %v2362_v32 = vmul.f32 %v5509_v50, %v8494_v17  ;;  %v8611_v56 = vadd.f32 -1.0, %v741_v25  ;;  %5520 = vlog2.f32 %v741_v25 }
 0x1a4   : > { %v5511_v46 = vpop.eup %5510  ;;  %vm1252_vm14 = vcmp.eq.f32.partialorder %v8607_v14, 0.0  ;;  %v742_v55 = vadd.f32 1.0, %v8599_v63  ;;  %v8617_v51 = vand.u32 2147483647, %v8602_v19  ;;  %vm3810_vm0 = vcmp.lt.f32.partialorder %v8497_v24, 0.0 }
 0x1a5   : > { %v5513_v40 = vpop.eup %5512  ;;  %v4320_v37 = vsel %vm3808_vm9, %v4064_v57, %v3552_v42  ;;  %v2785_v15 = vmul.f32 %v2362_v32, %v1594_v26  ;;  %v1596_v38 = vmul.f32 0.6931472, %v5511_v46  ;;  %v2020_v31 = vsel %vm1252_vm14, 1.0, %v8607_v14  ;;  %v8697_v26 = vld [vmem:[%s6401_s30 + $0x310] sm:$0xff] }
 0x1a6   : > { %v5515_v29 = vpop.eup %5514  ;;  %4576 = vst [vmem:[%s6575_s17 + $0x2b8] sm:$0xff] %v4320_v37  ;;  %v2364_v1 = vmul.f32 %v5513_v40, %v8515_v10  ;;  %5522 = vrcp.f32 %v2020_v31  ;;  %vm1253_vm15 = vcmp.eq.f32.partialorder %v8611_v56, 0.0  ;;  %v8627_v21 = vadd.f32 -1.0, %v742_v55 }
 0x1a7   : > { %v5517_v8 = vpop.eup %5516  ;;  %v3041_v9 = vsel %vm1249_vm1, %v8494_v17, %v2785_v15  ;;  %v1598_v60 = vmul.f32 0.6931472, %v5515_v29  ;;  %v2021_v22 = vsel %vm1253_vm15, 1.0, %v8611_v56  ;;  %5524 = vlog2.f32 %v742_v55 }
 0x1a8   : > { %v3553_v36 = vsel %vm3297_vm12, %v8494_v17, %v3041_v9  ;;  %v2786_v41 = vmul.f32 %v2364_v1, %v1596_v38  ;;  %v2366_v44 = vmul.f32 %v5517_v8, %v8524_v2  ;;  %5526 = vrcp.f32 %v2021_v22 }
 0x1a9   : > { %v4065_v6 = vsub.f32 0.0, %v3553_v36  ;;  %vm1254_vm2 = vcmp.eq.f32.partialorder %v8627_v21, 0.0  ;;  %v743_v20 = vadd.f32 1.0, %v8617_v51  ;;  %vm3299_vm5 = vcmp.eq.f32.partialorder %v8524_v2, inf }
 0x1aa   : > { %v3042_v35 = vsel %vm1250_vm6, %v8515_v10, %v2786_v41  ;;  %v2787_v17 = vmul.f32 %v2366_v44, %v1598_v60  ;;  %v2022_v18 = vsel %vm1254_vm2, 1.0, %v8627_v21  ;;  %v8664_v49 = vand.u32 2147483647, %v8643_v5 }
 0x1ab   : > { %v4321_v30 = vsel %vm3809_vm11, %v4065_v6, %v3553_v36  ;;  %v3554_v33 = vsel %vm3298_vm13, %v8515_v10, %v3042_v35  ;;  %5528 = vrcp.f32 %v2022_v18  ;;  %v8657_v47 = vadd.f32 -1.0, %v743_v20  ;;  %v8739_v35 = vld [vmem:[%s6401_s30 + $0x318] sm:$0xff] }
 0x1ac   : > { %v5519_v39 = vpop.eup %5518  ;;  %4577 = vst [vmem:[%s6575_s17 + $0x2c0] sm:$0xff] %v4321_v30  ;;  %v4066_v0 = vsub.f32 0.0, %v3554_v33  ;;  %v3043_v34 = vsel %vm1251_vm4, %v8524_v2, %v2787_v17  ;;  %5530 = vlog2.f32 %v743_v20  ;;  %vm3811_vm1 = vcmp.lt.f32.partialorder %v8507_v52, 0.0 }
 0x1ad   : > { %v5521_v62 = vpop.eup %5520  ;;  %v3555_v10 = vsel %vm3299_vm5, %v8524_v2, %v3043_v34  ;;  %vm1255_vm3 = vcmp.eq.f32.partialorder %v8657_v47, 0.0  ;;  %vm3812_vm6 = vcmp.lt.f32.partialorder %v8556_v27, 0.0  ;;  %v1600_v28 = vmul.f32 0.6931472, %v5519_v39  ;;  %v8749_v27 = vld [vmem:[%s6401_s30 + $0x320] sm:$0xff] }
 0x1ae   : > { %v4322_v4 = vsel %vm3810_vm0, %v4066_v0, %v3554_v33  ;;  %v4067_v11 = vsub.f32 0.0, %v3555_v10  ;;  %v2023_v53 = vsel %vm1255_vm3, 1.0, %v8657_v47  ;;  %v744_v52 = vadd.f32 1.0, %v8664_v49 }
 0x1af   : > { %4578 = vst [vmem:[%s6575_s17 + $0x2c8] sm:$0xff] %v4322_v4  ;;  %5532 = vrcp.f32 %v2023_v53  ;;  %v8684_v2 = vand.u32 2147483647, %v8667_v16  ;;  %vm3300_vm4 = vcmp.eq.f32.partialorder %v8573_v61, inf  ;;  %v1602_v48 = vmul.f32 0.6931472, %v5521_v62 }
 0x1b0   : > { %v5523_v58 = vpop.eup %5522  ;;  %v4323_v24 = vsel %vm3811_vm1, %v4067_v11, %v3555_v10  ;;  %vm3813_vm8 = vcmp.lt.f32.partialorder %v8565_v12, 0.0  ;;  %v8689_v23 = vand.u32 2147483647, %v8673_v43  ;;  %v8693_v25 = vadd.f32 -1.0, %v744_v52 }
 0x1b1   : > { %v5525_v45 = vpop.eup %5524  ;;  %4579 = vst [vmem:[%s6575_s17 + $0x2d0] sm:$0xff] %v4323_v24  ;;  %v2368_v13 = vmul.f32 %v5523_v58, %v8573_v61  ;;  %5534 = vlog2.f32 %v744_v52  ;;  %v745_v59 = vadd.f32 1.0, %v8684_v2  ;;  %vm3301_vm7 = vcmp.eq.f32.partialorder %v8581_v3, inf }
 0x1b2   : > { %v5527_v50 = vpop.eup %5526  ;;  %v1604_v54 = vmul.f32 0.6931472, %v5525_v45  ;;  %vm3302_vm9 = vcmp.eq.f32.partialorder %v8599_v63, inf  ;;  %v746_v42 = vadd.f32 1.0, %v8689_v23  ;;  %vm1256_vm10 = vcmp.eq.f32.partialorder %v8693_v25, 0.0 }
 0x1b3   : > { %v2788_v57 = vmul.f32 %v2368_v13, %v1600_v28  ;;  %v2370_v32 = vmul.f32 %v5527_v50, %v8581_v3  ;;  %v8704_v46 = vadd.f32 -1.0, %v745_v59  ;;  %v2024_v55 = vsel %vm1256_vm10, 1.0, %v8693_v25  ;;  %v8778_v28 = vld [vmem:[%s6401_s30 + $0x328] sm:$0xff] }
 0x1b4   : > { %5536 = vlog2.f32 %v745_v59  ;;  %v8709_v40 = vadd.f32 -1.0, %v746_v42  ;;  %v8712_v37 = vand.u32 2147483647, %v8697_v26  ;;  %vm3814_vm13 = vcmp.lt.f32.partialorder %v8584_v7, 0.0 }
 0x1b5   : > { %v5529_v15 = vpop.eup %5528  ;;  %v3044_v38 = vsel %vm1252_vm14, %v8573_v61, %v2788_v57  ;;  %v2789_v31 = vmul.f32 %v2370_v32, %v1602_v48  ;;  %5538 = vrcp.f32 %v2024_v55  ;;  %vm1257_vm11 = vcmp.eq.f32.partialorder %v8704_v46, 0.0 }
 0x1b6   : > { %v5531_v29 = vpop.eup %5530  ;;  %v3556_v1 = vsel %vm3300_vm4, %v8573_v61, %v3044_v38  ;;  %v2372_v8 = vmul.f32 %v5529_v15, %v8599_v63  ;;  %v2025_v9 = vsel %vm1257_vm11, 1.0, %v8704_v46  ;;  %vm1258_vm12 = vcmp.eq.f32.partialorder %v8709_v40, 0.0 }
 0x1b7   : > { %v4068_v14 = vsub.f32 0.0, %v3556_v1  ;;  %v3045_v60 = vsel %vm1253_vm15, %v8581_v3, %v2789_v31  ;;  %v1606_v22 = vmul.f32 0.6931472, %v5531_v29  ;;  %5540 = vrcp.f32 %v2025_v9 }
 0x1b8   : > { %v3557_v61 = vsel %vm3301_vm7, %v8581_v3, %v3045_v60  ;;  %v2790_v36 = vmul.f32 %v2372_v8, %v1604_v54  ;;  %5542 = vlog2.f32 %v746_v42  ;;  %v2026_v41 = vsel %vm1258_vm12, 1.0, %v8709_v40 }
 0x1b9   : > { %v5533_v44 = vpop.eup %5532  ;;  %v4324_v6 = vsel %vm3812_vm6, %v4068_v14, %v3556_v1  ;;  %v4069_v56 = vsub.f32 0.0, %v3557_v61  ;;  %5544 = vrcp.f32 %v2026_v41  ;;  %v747_v20 = vadd.f32 1.0, %v8712_v37 }
 0x1ba   : > { %4580 = vst [vmem:[%s6575_s17 + $0x2d8] sm:$0xff] %v4324_v6  ;;  %v3046_v3 = vsel %vm1254_vm2, %v8599_v63, %v2790_v36  ;;  %v2374_v17 = vmul.f32 %v5533_v44, %v8617_v51  ;;  %vm3303_vm14 = vcmp.eq.f32.partialorder %v8617_v51, inf  ;;  %vm3815_vm15 = vcmp.lt.f32.partialorder %v8602_v19, 0.0 }
 0x1bb   : > { %v5535_v18 = vpop.eup %5534  ;;  %v4325_v30 = vsel %vm3813_vm8, %v4069_v56, %v3557_v61  ;;  %v3558_v33 = vsel %vm3302_vm9, %v8599_v63, %v3046_v3  ;;  %v8756_v39 = vadd.f32 -1.0, %v747_v20  ;;  %5546 = vlog2.f32 %v747_v20  ;;  %v8843_v56 = vld [vmem:[%s6401_s30 + $0x338] sm:$0xff] }
 0x1bc   : > { %4581 = vst [vmem:[%s6575_s17 + $0x2e0] sm:$0xff] %v4325_v30  ;;  %v4070_v21 = vsub.f32 0.0, %v3558_v33  ;;  %v2791_v0 = vmul.f32 %v2374_v17, %v1606_v22  ;;  %v8761_v34 = vand.u32 2147483647, %v8739_v35  ;;  %v1608_v62 = vmul.f32 0.6931472, %v5535_v18 }
 0x1bd   : > { %vm3816_vm0 = vcmp.lt.f32.partialorder %v8643_v5, 0.0  ;;  %vm1259_vm2 = vcmp.eq.f32.partialorder %v8756_v39, 0.0  ;;  %v8766_v12 = vand.u32 2147483647, %v8749_v27  ;;  %vm3304_vm5 = vcmp.eq.f32.partialorder %v8664_v49, inf  ;;  %v8818_v22 = vld [vmem:[%s6401_s30 + $0x330] sm:$0xff] }
 0x1be   : > { %v5537_v63 = vpop.eup %5536  ;;  %v4326_v10 = vsel %vm3814_vm13, %v4070_v21, %v3558_v33  ;;  %v3047_v4 = vsel %vm1255_vm3, %v8617_v51, %v2791_v0  ;;  %v2027_v11 = vsel %vm1259_vm2, 1.0, %v8756_v39  ;;  %v748_v53 = vadd.f32 1.0, %v8761_v34 }
 0x1bf   : > { %v5539_v52 = vpop.eup %5538  ;;  %4582 = vst [vmem:[%s6575_s17 + $0x2e8] sm:$0xff] %v4326_v10  ;;  %v3559_v58 = vsel %vm3303_vm14, %v8617_v51, %v3047_v4  ;;  %v1610_v7 = vmul.f32 0.6931472, %v5537_v63  ;;  %5548 = vrcp.f32 %v2027_v11  ;;  %vm3305_vm1 = vcmp.eq.f32.partialorder %v8684_v2, inf }
 0x1c0   : > { %v4071_v47 = vsub.f32 0.0, %v3559_v58  ;;  %v2376_v24 = vmul.f32 %v5539_v52, %v8664_v49  ;;  %v8786_v48 = vadd.f32 -1.0, %v748_v53  ;;  %5550 = vlog2.f32 %v748_v53 }
 0x1c1   : > { %v5541_v45 = vpop.eup %5540  ;;  %vm3817_vm3 = vcmp.lt.f32.partialorder %v8667_v16, 0.0  ;;  %v749_v13 = vadd.f32 1.0, %v8766_v12  ;;  %v8792_v51 = vand.u32 2147483647, %v8778_v28  ;;  %vm3306_vm4 = vcmp.eq.f32.partialorder %v8689_v23, inf }
 0x1c2   : > { %v5543_v59 = vpop.eup %5542  ;;  %v4327_v50 = vsel %vm3815_vm15, %v4071_v47, %v3559_v58  ;;  %v2792_v54 = vmul.f32 %v2376_v24, %v1608_v62  ;;  %v2378_v42 = vmul.f32 %v5541_v45, %v8684_v2  ;;  %vm1260_vm6 = vcmp.eq.f32.partialorder %v8786_v48, 0.0 }
 0x1c3   : > { %v5545_v57 = vpop.eup %5544  ;;  %4583 = vst [vmem:[%s6575_s17 + $0x2f0] sm:$0xff] %v4327_v50  ;;  %v1612_v32 = vmul.f32 0.6931472, %v5543_v59  ;;  %v2028_v55 = vsel %vm1260_vm6, 1.0, %v8786_v48  ;;  %v8802_v15 = vadd.f32 -1.0, %v749_v13  ;;  %5552 = vlog2.f32 %v749_v13  ;;  %v8887_v59 = vld [vmem:[%s6401_s30 + $0x348] sm:$0xff] }
 0x1c4   : > { %v3048_v19 = vsel %vm1256_vm10, %v8664_v49, %v2792_v54  ;;  %v2793_v38 = vmul.f32 %v2378_v42, %v1610_v7  ;;  %v2380_v31 = vmul.f32 %v5545_v57, %v8689_v23  ;;  %5554 = vrcp.f32 %v2028_v55 }
 0x1c5   : > { %v5547_v29 = vpop.eup %5546  ;;  %v3560_v1 = vsel %vm3304_vm5, %v8664_v49, %v3048_v19  ;;  %vm1261_vm8 = vcmp.eq.f32.partialorder %v8802_v15, 0.0  ;;  %v750_v8 = vadd.f32 1.0, %v8792_v51  ;;  %vm3818_vm7 = vcmp.lt.f32.partialorder %v8673_v43, 0.0  ;;  %v8852_v43 = vld [vmem:[%s6401_s30 + $0x340] sm:$0xff]  ;;  %v8902_v19 = vld [vmem:[%s6401_s30 + $0x350] sm:$0xff] }
 0x1c6   : > { %v4072_v9 = vsub.f32 0.0, %v3560_v1  ;;  %v3049_v25 = vsel %vm1257_vm11, %v8684_v2, %v2793_v38  ;;  %v2794_v14 = vmul.f32 %v2380_v31, %v1612_v32  ;;  %v1614_v60 = vmul.f32 0.6931472, %v5547_v29  ;;  %v8914_v31 = vld [vmem:[%s6401_s30 + $0x358] sm:$0xff] }
 0x1c7   : > { %v3561_v49 = vsel %vm3305_vm1, %v8684_v2, %v3049_v25  ;;  %v2029_v61 = vsel %vm1261_vm8, 1.0, %v8802_v15  ;;  %v8826_v36 = vadd.f32 -1.0, %v750_v8  ;;  %5556 = vlog2.f32 %v750_v8 }
 0x1c8   : > { %v4328_v46 = vsel %vm3816_vm0, %v4072_v9, %v3560_v1  ;;  %v4073_v41 = vsub.f32 0.0, %v3561_v49  ;;  %v3050_v44 = vsel %vm1258_vm12, %v8689_v23, %v2794_v14  ;;  %5558 = vrcp.f32 %v2029_v61 }
 0x1c9   : > { %v5549_v6 = vpop.eup %5548  ;;  %4584 = vst [vmem:[%s6575_s17 + $0x2f8] sm:$0xff] %v4328_v46  ;;  %v3562_v2 = vsel %vm3306_vm4, %v8689_v23, %v3050_v44  ;;  %vm1262_vm9 = vcmp.eq.f32.partialorder %v8826_v36, 0.0  ;;  %v8840_v5 = vand.u32 2147483647, %v8818_v22  ;;  %vm3307_vm10 = vcmp.eq.f32.partialorder %v8712_v37, inf }
 0x1ca   : > { %v5551_v40 = vpop.eup %5550  ;;  %v4329_v20 = vsel %vm3817_vm3, %v4073_v41, %v3561_v49  ;;  %v4074_v3 = vsub.f32 0.0, %v3562_v2  ;;  %v2382_v17 = vmul.f32 %v5549_v6, %v8712_v37  ;;  %v2030_v23 = vsel %vm1262_vm9, 1.0, %v8826_v36 }
 0x1cb   : > { %4585 = vst [vmem:[%s6575_s17 + $0x300] sm:$0xff] %v4329_v20  ;;  %5560 = vrcp.f32 %v2030_v23  ;;  %v751_v18 = vadd.f32 1.0, %v8840_v5  ;;  %vm3819_vm11 = vcmp.lt.f32.partialorder %v8697_v26, 0.0  ;;  %v8859_v16 = vand.u32 2147483647, %v8843_v56 }
 0x1cc   : > { %v4330_v30 = vsel %vm3818_vm7, %v4074_v3, %v3562_v2  ;;  %v2795_v33 = vmul.f32 %v2382_v17, %v1614_v60  ;;  %v1616_v0 = vmul.f32 0.6931472, %v5551_v40  ;;  %v8865_v63 = vand.u32 2147483647, %v8852_v43 }
 0x1cd   : > { %v5553_v21 = vpop.eup %5552  ;;  %4586 = vst [vmem:[%s6575_s17 + $0x308] sm:$0xff] %v4330_v30  ;;  %v8862_v62 = vadd.f32 -1.0, %v751_v18  ;;  %5562 = vlog2.f32 %v751_v18  ;;  %vm3308_vm12 = vcmp.eq.f32.partialorder %v8761_v34, inf  ;;  %vm3820_vm13 = vcmp.lt.f32.partialorder %v8739_v35, 0.0 }
 0x1ce   : > { %v5555_v10 = vpop.eup %5554  ;;  %v3051_v4 = vsel %vm1259_vm2, %v8712_v37, %v2795_v33  ;;  %v752_v11 = vadd.f32 1.0, %v8859_v16  ;;  %v753_v58 = vadd.f32 1.0, %v8865_v63  ;;  %v1618_v13 = vmul.f32 0.6931472, %v5553_v21 }
 0x1cf   : > { %v3563_v53 = vsel %vm3307_vm10, %v8712_v37, %v3051_v4  ;;  %v2384_v52 = vmul.f32 %v5555_v10, %v8761_v34  ;;  %vm1263_vm14 = vcmp.eq.f32.partialorder %v8862_v62, 0.0  ;;  %v8911_v38 = vand.u32 2147483647, %v8887_v59 }
 0x1d0   : > { %v4075_v39 = vsub.f32 0.0, %v3563_v53  ;;  %v2031_v7 = vsel %vm1263_vm14, 1.0, %v8862_v62  ;;  %v8882_v47 = vadd.f32 -1.0, %v752_v11  ;;  %5564 = vlog2.f32 %v752_v11 }
 0x1d1   : > { %v5557_v24 = vpop.eup %5556  ;;  %v2796_v45 = vmul.f32 %v2384_v52, %v1616_v0  ;;  %5566 = vrcp.f32 %v2031_v7  ;;  %v8884_v37 = vadd.f32 -1.0, %v753_v58  ;;  %vm3309_vm2 = vcmp.eq.f32.partialorder %v8766_v12, inf }
 0x1d2   : > { %v5559_v50 = vpop.eup %5558  ;;  %v4331_v54 = vsel %vm3819_vm11, %v4075_v39, %v3563_v53  ;;  %v1620_v42 = vmul.f32 0.6931472, %v5557_v24  ;;  %vm1264_vm15 = vcmp.eq.f32.partialorder %v8882_v47, 0.0  ;;  %5568 = vlog2.f32 %v753_v58 }
 0x1d3   : > { %4587 = vst [vmem:[%s6575_s17 + $0x310] sm:$0xff] %v4331_v54  ;;  %v3052_v57 = vsel %vm1260_vm6, %v8761_v34, %v2796_v45  ;;  %v2386_v32 = vmul.f32 %v5559_v50, %v8766_v12  ;;  %v2032_v55 = vsel %vm1264_vm15, 1.0, %v8882_v47  ;;  %vm1265_vm0 = vcmp.eq.f32.partialorder %v8884_v37, 0.0  ;;  %v8982_v45 = vld [vmem:[%s6401_s30 + $0x368] sm:$0xff] }
 0x1d4   : > { %v3564_v26 = vsel %vm3308_vm12, %v8761_v34, %v3052_v57  ;;  %5570 = vrcp.f32 %v2032_v55  ;;  %v2033_v48 = vsel %vm1265_vm0, 1.0, %v8884_v37  ;;  %vm3821_vm5 = vcmp.lt.f32.partialorder %v8749_v27, 0.0  ;;  %v8958_v27 = vld [vmem:[%s6401_s30 + $0x360] sm:$0xff] }
 0x1d5   : > { %v5561_v29 = vpop.eup %5560  ;;  %v4076_v1 = vsub.f32 0.0, %v3564_v26  ;;  %v2797_v8 = vmul.f32 %v2386_v32, %v1618_v13  ;;  %5572 = vrcp.f32 %v2033_v48  ;;  %v754_v9 = vadd.f32 1.0, %v8911_v38 }
 0x1d6   : > { %v2388_v34 = vmul.f32 %v5561_v29, %v8792_v51  ;;  %v8921_v25 = vand.u32 2147483647, %v8902_v19  ;;  %vm3822_vm1 = vcmp.lt.f32.partialorder %v8778_v28, 0.0  ;;  %v8930_v61 = vand.u32 2147483647, %v8914_v31 }
 0x1d7   : > { %v5563_v14 = vpop.eup %5562  ;;  %v4332_v60 = vsel %vm3820_vm13, %v4076_v1, %v3564_v26  ;;  %v3053_v49 = vsel %vm1261_vm8, %v8766_v12, %v2797_v8  ;;  %vm3310_vm3 = vcmp.eq.f32.partialorder %v8792_v51, inf  ;;  %v8935_v44 = vadd.f32 -1.0, %v754_v9 }
 0x1d8   : > { %4588 = vst [vmem:[%s6575_s17 + $0x318] sm:$0xff] %v4332_v60  ;;  %v3565_v46 = vsel %vm3309_vm2, %v8766_v12, %v3053_v49  ;;  %v2798_v41 = vmul.f32 %v2388_v34, %v1620_v42  ;;  %vm3311_vm6 = vcmp.eq.f32.partialorder %v8840_v5, inf  ;;  %vm3823_vm4 = vcmp.lt.f32.partialorder %v8818_v22, 0.0  ;;  %v9011_v34 = vld [vmem:[%s6401_s30 + $0x370] sm:$0xff] }
 0x1d9   : > { %v4077_v6 = vsub.f32 0.0, %v3565_v46  ;;  %5574 = vlog2.f32 %v754_v9  ;;  %v755_v35 = vadd.f32 1.0, %v8921_v25  ;;  %v1622_v12 = vmul.f32 0.6931472, %v5563_v14 }
 0x1da   : > { %v5565_v15 = vpop.eup %5564  ;;  %v3054_v2 = vsel %vm1262_vm9, %v8792_v51, %v2798_v41  ;;  %vm1266_vm8 = vcmp.eq.f32.partialorder %v8935_v44, 0.0  ;;  %v756_v40 = vadd.f32 1.0, %v8930_v61  ;;  %vm3312_vm7 = vcmp.eq.f32.partialorder %v8859_v16, inf }
 0x1db   : > { %v5567_v20 = vpop.eup %5566  ;;  %v4333_v3 = vsel %vm3821_vm5, %v4077_v6, %v3565_v46  ;;  %v3566_v17 = vsel %vm3310_vm3, %v8792_v51, %v3054_v2  ;;  %v2034_v23 = vsel %vm1266_vm8, 1.0, %v8935_v44  ;;  %vm3824_vm9 = vcmp.lt.f32.partialorder %v8843_v56, 0.0  ;;  %v9024_v46 = vld [vmem:[%s6401_s30 + $0x378] sm:$0xff] }
 0x1dc   : > { %v5569_v36 = vpop.eup %5568  ;;  %4589 = vst [vmem:[%s6575_s17 + $0x320] sm:$0xff] %v4333_v3  ;;  %v4078_v18 = vsub.f32 0.0, %v3566_v17  ;;  %v2390_v30 = vmul.f32 %v5567_v20, %v8840_v5  ;;  %5576 = vrcp.f32 %v2034_v23  ;;  %v8955_v33 = vadd.f32 -1.0, %v755_v35 }
 0x1dd   : > { %v1624_v51 = vmul.f32 0.6931472, %v5565_v15  ;;  %v1626_v21 = vmul.f32 0.6931472, %v5569_v36  ;;  %5578 = vlog2.f32 %v755_v35  ;;  %v8960_v0 = vadd.f32 -1.0, %v756_v40  ;;  %v9049_v36 = vld [vmem:[%s6401_s30 + $0x380] sm:$0xff] }
 0x1de   : > { %v5571_v10 = vpop.eup %5570  ;;  %v4334_v4 = vsel %vm3822_vm1, %v4078_v18, %v3566_v17  ;;  %v2799_v11 = vmul.f32 %v2390_v30, %v1622_v12  ;;  %vm1267_vm10 = vcmp.eq.f32.partialorder %v8955_v33, 0.0  ;;  %5580 = vlog2.f32 %v756_v40 }
 0x1df   : > { %v5573_v53 = vpop.eup %5572  ;;  %4590 = vst [vmem:[%s6575_s17 + $0x328] sm:$0xff] %v4334_v4  ;;  %v2392_v52 = vmul.f32 %v5571_v10, %v8859_v16  ;;  %v2035_v58 = vsel %vm1267_vm10, 1.0, %v8955_v33  ;;  %vm1268_vm11 = vcmp.eq.f32.partialorder %v8960_v0, 0.0  ;;  %v8972_v39 = vand.u32 2147483647, %v8958_v27 }
 0x1e0   : > { %v3055_v28 = vsel %vm1263_vm14, %v8840_v5, %v2799_v11  ;;  %v2394_v7 = vmul.f32 %v5573_v53, %v8865_v63  ;;  %5582 = vrcp.f32 %v2035_v58  ;;  %v2036_v24 = vsel %vm1268_vm11, 1.0, %v8960_v0 }
 0x1e1   : > { %v3567_v13 = vsel %vm3311_vm6, %v8840_v5, %v3055_v28  ;;  %v2800_v50 = vmul.f32 %v2392_v52, %v1624_v51  ;;  %5584 = vrcp.f32 %v2036_v24  ;;  %v757_v54 = vadd.f32 1.0, %v8972_v39 }
 0x1e2   : > { %v4079_v62 = vsub.f32 0.0, %v3567_v13  ;;  %v2801_v42 = vmul.f32 %v2394_v7, %v1626_v21  ;;  %vm3313_vm12 = vcmp.eq.f32.partialorder %v8865_v63, inf  ;;  %vm3825_vm13 = vcmp.lt.f32.partialorder %v8852_v43, 0.0 }
 0x1e3   : > { %v5575_v57 = vpop.eup %5574  ;;  %v3056_v32 = vsel %vm1264_vm15, %v8859_v16, %v2800_v50  ;;  %v8993_v55 = vadd.f32 -1.0, %v757_v54  ;;  %5586 = vlog2.f32 %v757_v54  ;;  %v8996_v5 = vand.u32 2147483647, %v8982_v45 }
 0x1e4   : > { %v4335_v26 = vsel %vm3823_vm4, %v4079_v62, %v3567_v13  ;;  %v3568_v48 = vsel %vm3312_vm7, %v8859_v16, %v3056_v32  ;;  %v3057_v29 = vsel %vm1265_vm0, %v8865_v63, %v2801_v42  ;;  %v1628_v1 = vmul.f32 0.6931472, %v5575_v57  ;;  %v9092_v32 = vld [vmem:[%s6401_s30 + $0x388] sm:$0xff] }
 0x1e5   : > { %4591 = vst [vmem:[%s6575_s17 + $0x330] sm:$0xff] %v4335_v26  ;;  %v4080_v47 = vsub.f32 0.0, %v3568_v48  ;;  %v3569_v8 = vsel %vm3313_vm12, %v8865_v63, %v3057_v29  ;;  %vm1269_vm14 = vcmp.eq.f32.partialorder %v8993_v55, 0.0  ;;  %v758_v22 = vadd.f32 1.0, %v8996_v5 }
 0x1e6   : > { %v5577_v9 = vpop.eup %5576  ;;  %v4081_v14 = vsub.f32 0.0, %v3569_v8  ;;  %vm3314_vm15 = vcmp.eq.f32.partialorder %v8911_v38, inf  ;;  %vm3826_vm0 = vcmp.lt.f32.partialorder %v8887_v59, 0.0  ;;  %v2037_v16 = vsel %vm1269_vm14, 1.0, %v8993_v55 }
 0x1e7   : > { %v5579_v37 = vpop.eup %5578  ;;  %v4336_v63 = vsel %vm3824_vm9, %v4080_v47, %v3568_v48  ;;  %v2396_v60 = vmul.f32 %v5577_v9, %v8911_v38  ;;  %5588 = vrcp.f32 %v2037_v16  ;;  %v9021_v49 = vadd.f32 -1.0, %v758_v22  ;;  %v9098_v48 = vld [vmem:[%s6401_s30 + $0x390] sm:$0xff]  ;;  %v9120_v16 = vld [vmem:[%s6401_s30 + $0x398] sm:$0xff] }
 0x1e8   : > { %v5581_v41 = vpop.eup %5580  ;;  %4592 = vst [vmem:[%s6575_s17 + $0x338] sm:$0xff] %v4336_v63  ;;  %v4337_v6 = vsel %vm3825_vm13, %v4081_v14, %v3569_v8  ;;  %vm3827_vm2 = vcmp.lt.f32.partialorder %v8902_v19, 0.0  ;;  %5590 = vlog2.f32 %v758_v22  ;;  %v9031_v35 = vand.u32 2147483647, %v9011_v34 }
 0x1e9   : > { %4593 = vst [vmem:[%s6575_s17 + $0x340] sm:$0xff] %v4337_v6  ;;  %v2802_v56 = vmul.f32 %v2396_v60, %v1628_v1  ;;  %v1630_v15 = vmul.f32 0.6931472, %v5579_v37  ;;  %vm3315_vm5 = vcmp.eq.f32.partialorder %v8921_v25, inf  ;;  %vm1270_vm1 = vcmp.eq.f32.partialorder %v9021_v49, 0.0 }
 0x1ea   : > { %v5583_v2 = vpop.eup %5582  ;;  %v1632_v12 = vmul.f32 0.6931472, %v5581_v41  ;;  %v2038_v43 = vsel %vm1270_vm1, 1.0, %v9021_v49  ;;  %v759_v40 = vadd.f32 1.0, %v9031_v35  ;;  %v9041_v20 = vand.u32 2147483647, %v9024_v46 }
 0x1eb   : > { %v5585_v3 = vpop.eup %5584  ;;  %v3058_v17 = vsel %vm1266_vm8, %v8911_v38, %v2802_v56  ;;  %v2398_v23 = vmul.f32 %v5583_v2, %v8921_v25  ;;  %vm3316_vm3 = vcmp.eq.f32.partialorder %v8930_v61, inf  ;;  %5592 = vrcp.f32 %v2038_v43 }
 0x1ec   : > { %v3570_v18 = vsel %vm3314_vm15, %v8911_v38, %v3058_v17  ;;  %v2400_v30 = vmul.f32 %v5585_v3, %v8930_v61  ;;  %v9055_v51 = vadd.f32 -1.0, %v759_v40  ;;  %5594 = vlog2.f32 %v759_v40 }
 0x1ed   : > { %v5587_v21 = vpop.eup %5586  ;;  %v4082_v44 = vsub.f32 0.0, %v3570_v18  ;;  %v2803_v10 = vmul.f32 %v2398_v23, %v1630_v15  ;;  %vm3828_vm6 = vcmp.lt.f32.partialorder %v8914_v31, 0.0  ;;  %v760_v4 = vadd.f32 1.0, %v9041_v20 }
 0x1ee   : > { %v2804_v11 = vmul.f32 %v2400_v30, %v1632_v12  ;;  %v1634_v53 = vmul.f32 0.6931472, %v5587_v21  ;;  %vm1271_vm4 = vcmp.eq.f32.partialorder %v9055_v51, 0.0  ;;  %v9061_v52 = vand.u32 2147483647, %v9049_v36 }
 0x1ef   : > { %v4338_v38 = vsel %vm3826_vm0, %v4082_v44, %v3570_v18  ;;  %v3059_v58 = vsel %vm1267_vm10, %v8921_v25, %v2803_v10  ;;  %v2039_v28 = vsel %vm1271_vm4, 1.0, %v9055_v51  ;;  %v9071_v7 = vadd.f32 -1.0, %v760_v4 }
 0x1f0   : > { %4594 = vst [vmem:[%s6575_s17 + $0x348] sm:$0xff] %v4338_v38  ;;  %v3571_v24 = vsel %vm3315_vm5, %v8921_v25, %v3059_v58  ;;  %v3060_v59 = vsel %vm1268_vm11, %v8930_v61, %v2804_v11  ;;  %5596 = vrcp.f32 %v2039_v28  ;;  %v761_v33 = vadd.f32 1.0, %v9061_v52  ;;  %v9171_v28 = vld [vmem:[%s6401_s30 + $0x3a8] sm:$0xff] }
 0x1f1   : > { %v5589_v13 = vpop.eup %5588  ;;  %v4083_v50 = vsub.f32 0.0, %v3571_v24  ;;  %v3572_v54 = vsel %vm3316_vm3, %v8930_v61, %v3060_v59  ;;  %vm1272_vm8 = vcmp.eq.f32.partialorder %v9071_v7, 0.0  ;;  %5598 = vlog2.f32 %v760_v4 }
 0x1f2   : > { %v5591_v62 = vpop.eup %5590  ;;  %v4084_v25 = vsub.f32 0.0, %v3572_v54  ;;  %v2402_v0 = vmul.f32 %v5589_v13, %v8972_v39  ;;  %v2040_v42 = vsel %vm1272_vm8, 1.0, %v9071_v7  ;;  %v9089_v57 = vadd.f32 -1.0, %v761_v33 }
 0x1f3   : > { %v4339_v26 = vsel %vm3827_vm2, %v4083_v50, %v3571_v24  ;;  %vm3317_vm7 = vcmp.eq.f32.partialorder %v8972_v39, inf  ;;  %v1636_v61 = vmul.f32 0.6931472, %v5591_v62  ;;  %5600 = vrcp.f32 %v2040_v42 }
 0x1f4   : > { %4595 = vst [vmem:[%s6575_s17 + $0x350] sm:$0xff] %v4339_v26  ;;  %v4340_v29 = vsel %vm3828_vm6, %v4084_v25, %v3572_v54  ;;  %v2805_v1 = vmul.f32 %v2402_v0, %v1634_v53  ;;  %vm1273_vm9 = vcmp.eq.f32.partialorder %v9089_v57, 0.0  ;;  %5602 = vlog2.f32 %v761_v33  ;;  %v9163_v53 = vld [vmem:[%s6401_s30 + $0x3a0] sm:$0xff] }
 0x1f5   : > { %v5593_v47 = vpop.eup %5592  ;;  %4596 = vst [vmem:[%s6575_s17 + $0x358] sm:$0xff] %v4340_v29  ;;  %vm3829_vm10 = vcmp.lt.f32.partialorder %v8958_v27, 0.0  ;;  %v2041_v19 = vsel %vm1273_vm9, 1.0, %v9089_v57  ;;  %v9110_v8 = vand.u32 2147483647, %v9092_v32  ;;  %vm3318_vm11 = vcmp.eq.f32.partialorder %v8996_v5, inf }
 0x1f6   : > { %v5595_v22 = vpop.eup %5594  ;;  %v3061_v31 = vsel %vm1269_vm14, %v8972_v39, %v2805_v1  ;;  %v2404_v9 = vmul.f32 %v5593_v47, %v8996_v5  ;;  %5604 = vrcp.f32 %v2041_v19  ;;  %v9117_v14 = vand.u32 2147483647, %v9098_v48  ;;  %v9200_v1 = vld [vmem:[%s6401_s30 + $0x3b0] sm:$0xff] }
 0x1f7   : > { %v3573_v37 = vsel %vm3317_vm7, %v8972_v39, %v3061_v31  ;;  %vm3830_vm12 = vcmp.lt.f32.partialorder %v8982_v45, 0.0  ;;  %v762_v55 = vadd.f32 1.0, %v9110_v8  ;;  %vm3319_vm13 = vcmp.eq.f32.partialorder %v9031_v35, inf }
 0x1f8   : > { %v4085_v63 = vsub.f32 0.0, %v3573_v37  ;;  %v2806_v60 = vmul.f32 %v2404_v9, %v1636_v61  ;;  %v763_v41 = vadd.f32 1.0, %v9117_v14  ;;  %v1638_v6 = vmul.f32 0.6931472, %v5595_v22 }
 0x1f9   : > { %v9130_v56 = vadd.f32 -1.0, %v762_v55  ;;  %5606 = vlog2.f32 %v762_v55  ;;  %v9133_v15 = vand.u32 2147483647, %v9120_v16  ;;  %vm3831_vm0 = vcmp.lt.f32.partialorder %v9011_v34, 0.0 }
 0x1fa   : > { %v5597_v39 = vpop.eup %5596  ;;  %v4341_v2 = vsel %vm3829_vm10, %v4085_v63, %v3573_v37  ;;  %v3062_v12 = vsel %vm1270_vm1, %v8996_v5, %v2806_v60  ;;  %v9140_v43 = vadd.f32 -1.0, %v763_v41  ;;  %5608 = vlog2.f32 %v763_v41  ;;  %v9227_v60 = vld [vmem:[%s6401_s30 + $0x3b8] sm:$0xff] }
 0x1fb   : > { %v5599_v40 = vpop.eup %5598  ;;  %4597 = vst [vmem:[%s6575_s17 + $0x360] sm:$0xff] %v4341_v2  ;;  %v3574_v3 = vsel %vm3318_vm11, %v8996_v5, %v3062_v12  ;;  %v2406_v17 = vmul.f32 %v5597_v39, %v9031_v35  ;;  %vm1274_vm14 = vcmp.eq.f32.partialorder %v9130_v56, 0.0  ;;  %v764_v27 = vadd.f32 1.0, %v9133_v15 }
 0x1fc   : > { %v4086_v23 = vsub.f32 0.0, %v3574_v3  ;;  %v1640_v49 = vmul.f32 0.6931472, %v5599_v40  ;;  %v2042_v18 = vsel %vm1274_vm14, 1.0, %v9130_v56  ;;  %vm1275_vm15 = vcmp.eq.f32.partialorder %v9140_v43, 0.0 }
 0x1fd   : > { %v5601_v30 = vpop.eup %5600  ;;  %v2807_v21 = vmul.f32 %v2406_v17, %v1638_v6  ;;  %5610 = vrcp.f32 %v2042_v18  ;;  %v2043_v5 = vsel %vm1275_vm15, 1.0, %v9140_v43  ;;  %v9156_v44 = vadd.f32 -1.0, %v764_v27 }
 0x1fe   : > { %v5603_v10 = vpop.eup %5602  ;;  %v4342_v4 = vsel %vm3830_vm12, %v4086_v23, %v3574_v3  ;;  %v2408_v11 = vmul.f32 %v5601_v30, %v9041_v20  ;;  %5612 = vrcp.f32 %v2043_v5  ;;  %vm3320_vm5 = vcmp.eq.f32.partialorder %v9041_v20, inf }
 0x1ff   : > { %4598 = vst [vmem:[%s6575_s17 + $0x368] sm:$0xff] %v4342_v4  ;;  %v3063_v38 = vsel %vm1271_vm4, %v9031_v35, %v2807_v21  ;;  %v1642_v58 = vmul.f32 0.6931472, %v5603_v10  ;;  %vm1276_vm2 = vcmp.eq.f32.partialorder %v9156_v44, 0.0  ;;  %5614 = vlog2.f32 %v764_v27 }
 0x200   : > { %v5605_v45 = vpop.eup %5604  ;;  %v3575_v24 = vsel %vm3319_vm13, %v9031_v35, %v3063_v38  ;;  %v2808_v59 = vmul.f32 %v2408_v11, %v1640_v49  ;;  %v2044_v51 = vsel %vm1276_vm2, 1.0, %v9156_v44  ;;  %v9182_v50 = vand.u32 2147483647, %v9163_v53 }
 0x201   : > { %v4087_v33 = vsub.f32 0.0, %v3575_v24  ;;  %v2410_v13 = vmul.f32 %v5605_v45, %v9061_v52  ;;  %5616 = vrcp.f32 %v2044_v51  ;;  %vm3832_vm1 = vcmp.lt.f32.partialorder %v9024_v46, 0.0  ;;  %v9276_v51 = vld [vmem:[%s6401_s30 + $0x3d0] sm:$0xff] }
 0x202   : > { %v3064_v35 = vsel %vm1272_vm8, %v9041_v20, %v2808_v59  ;;  %vm3321_vm3 = vcmp.eq.f32.partialorder %v9061_v52, inf  ;;  %v9190_v54 = vand.u32 2147483647, %v9171_v28  ;;  %v765_v26 = vadd.f32 1.0, %v9182_v50  ;;  %v9273_v59 = vld [vmem:[%s6401_s30 + $0x3c8] sm:$0xff] }
 0x203   : > { %v5607_v62 = vpop.eup %5606  ;;  %v4343_v25 = vsel %vm3831_vm0, %v4087_v33, %v3575_v24  ;;  %v3576_v0 = vsel %vm3320_vm5, %v9041_v20, %v3064_v35  ;;  %v2809_v42 = vmul.f32 %v2410_v13, %v1642_v58  ;;  %vm3833_vm6 = vcmp.lt.f32.partialorder %v9049_v36, 0.0  ;;  %v9264_v58 = vld [vmem:[%s6401_s30 + $0x3c0] sm:$0xff] }
 0x204   : > { %v5609_v61 = vpop.eup %5608  ;;  %4599 = vst [vmem:[%s6575_s17 + $0x370] sm:$0xff] %v4343_v25  ;;  %v4088_v7 = vsub.f32 0.0, %v3576_v0  ;;  %v766_v29 = vadd.f32 1.0, %v9190_v54  ;;  %v1644_v47 = vmul.f32 0.6931472, %v5607_v62  ;;  %vm3834_vm4 = vcmp.lt.f32.partialorder %v9092_v32, 0.0 }
 0x205   : > { %v3065_v34 = vsel %vm1273_vm9, %v9061_v52, %v2809_v42  ;;  %v9206_v20 = vadd.f32 -1.0, %v765_v26  ;;  %5618 = vlog2.f32 %v765_v26  ;;  %v1646_v37 = vmul.f32 0.6931472, %v5609_v61 }
 0x206   : > { %v4344_v19 = vsel %vm3832_vm1, %v4088_v7, %v3576_v0  ;;  %v3577_v22 = vsel %vm3321_vm3, %v9061_v52, %v3065_v34  ;;  %v9213_v31 = vadd.f32 -1.0, %v766_v29  ;;  %5620 = vlog2.f32 %v766_v29 }
 0x207   : > { %v5611_v9 = vpop.eup %5610  ;;  %4600 = vst [vmem:[%s6575_s17 + $0x378] sm:$0xff] %v4344_v19  ;;  %v4089_v57 = vsub.f32 0.0, %v3577_v22  ;;  %vm1277_vm8 = vcmp.eq.f32.partialorder %v9206_v20, 0.0  ;;  %v9218_v55 = vand.u32 2147483647, %v9200_v1  ;;  %vm3322_vm7 = vcmp.eq.f32.partialorder %v9110_v8, inf }
 0x208   : > { %v5613_v46 = vpop.eup %5612  ;;  %v2412_v63 = vmul.f32 %v5611_v9, %v9110_v8  ;;  %v2045_v52 = vsel %vm1277_vm8, 1.0, %v9206_v20  ;;  %vm1278_vm9 = vcmp.eq.f32.partialorder %v9213_v31, 0.0  ;;  %vm3323_vm10 = vcmp.eq.f32.partialorder %v9117_v14, inf }
 0x209   : > { %v5615_v41 = vpop.eup %5614  ;;  %v4345_v6 = vsel %vm3833_vm6, %v4089_v57, %v3577_v22  ;;  %v2414_v39 = vmul.f32 %v5613_v46, %v9117_v14  ;;  %5622 = vrcp.f32 %v2045_v52  ;;  %v2046_v2 = vsel %vm1278_vm9, 1.0, %v9213_v31 }
 0x20a   : > { %4601 = vst [vmem:[%s6575_s17 + $0x380] sm:$0xff] %v4345_v6  ;;  %v2810_v12 = vmul.f32 %v2412_v63, %v1644_v47  ;;  %v1648_v40 = vmul.f32 0.6931472, %v5615_v41  ;;  %5624 = vrcp.f32 %v2046_v2  ;;  %v767_v3 = vadd.f32 1.0, %v9218_v55 }
 0x20b   : > { %v5617_v17 = vpop.eup %5616  ;;  %v2811_v27 = vmul.f32 %v2414_v39, %v1646_v37  ;;  %vm3835_vm11 = vcmp.lt.f32.partialorder %v9098_v48, 0.0  ;;  %v9240_v36 = vand.u32 2147483647, %v9227_v60  ;;  %vm3324_vm12 = vcmp.eq.f32.partialorder %v9133_v15, inf }
 0x20c   : > { %v3066_v23 = vsel %vm1274_vm14, %v9110_v8, %v2810_v12  ;;  %v2416_v49 = vmul.f32 %v5617_v17, %v9133_v15  ;;  %v9246_v18 = vadd.f32 -1.0, %v767_v3  ;;  %5626 = vlog2.f32 %v767_v3  ;;  %v9343_v17 = vld [vmem:[%s6401_s30 + $0x3e0] sm:$0xff] }
 0x20d   : > { %v3578_v30 = vsel %vm3322_vm7, %v9110_v8, %v3066_v23  ;;  %v3067_v21 = vsel %vm1275_vm15, %v9117_v14, %v2811_v27  ;;  %v768_v5 = vadd.f32 1.0, %v9240_v36  ;;  %vm3836_vm14 = vcmp.lt.f32.partialorder %v9120_v16, 0.0 }
 0x20e   : > { %v4090_v56 = vsub.f32 0.0, %v3578_v30  ;;  %v3579_v10 = vsel %vm3323_vm10, %v9117_v14, %v3067_v21  ;;  %v2812_v4 = vmul.f32 %v2416_v49, %v1648_v40  ;;  %vm1279_vm13 = vcmp.eq.f32.partialorder %v9246_v18, 0.0 }
 0x20f   : > { %v5619_v11 = vpop.eup %5618  ;;  %v4091_v38 = vsub.f32 0.0, %v3579_v10  ;;  %v2047_v8 = vsel %vm1279_vm13, 1.0, %v9246_v18  ;;  %v9261_v43 = vadd.f32 -1.0, %v768_v5  ;;  %5628 = vlog2.f32 %v768_v5 }
 0x210   : > { %v5621_v45 = vpop.eup %5620  ;;  %v4346_v14 = vsel %vm3834_vm4, %v4090_v56, %v3578_v30  ;;  %v3068_v24 = vsel %vm1276_vm2, %v9133_v15, %v2812_v4  ;;  %5630 = vrcp.f32 %v2047_v8  ;;  %vm3837_vm15 = vcmp.lt.f32.partialorder %v9163_v53, 0.0  ;;  %v9357_v56 = vld [vmem:[%s6401_s30 + $0x3e8] sm:$0xff] }
 0x211   : > { %4602 = vst [vmem:[%s6575_s17 + $0x388] sm:$0xff] %v4346_v14  ;;  %v4347_v33 = vsel %vm3835_vm11, %v4091_v38, %v3579_v10  ;;  %v3580_v32 = vsel %vm3324_vm12, %v9133_v15, %v3068_v24  ;;  %vm1280_vm0 = vcmp.eq.f32.partialorder %v9261_v43, 0.0  ;;  %v1650_v13 = vmul.f32 0.6931472, %v5619_v11 }
 0x212   : > { %4603 = vst [vmem:[%s6575_s17 + $0x390] sm:$0xff] %v4347_v33  ;;  %v4092_v44 = vsub.f32 0.0, %v3580_v32  ;;  %v2048_v35 = vsel %vm1280_vm0, 1.0, %v9261_v43  ;;  %v9291_v62 = vand.u32 2147483647, %v9264_v58  ;;  %vm3838_vm2 = vcmp.lt.f32.partialorder %v9171_v28, 0.0 }
 0x213   : > { %v5623_v48 = vpop.eup %5622  ;;  %v1652_v25 = vmul.f32 0.6931472, %v5621_v45  ;;  %5632 = vrcp.f32 %v2048_v35  ;;  %v9294_v15 = vand.u32 2147483647, %v9273_v59  ;;  %v9297_v0 = vand.u32 2147483647, %v9276_v51 }
 0x214   : > { %v5625_v42 = vpop.eup %5624  ;;  %v4348_v26 = vsel %vm3836_vm14, %v4092_v44, %v3580_v32  ;;  %v2418_v61 = vmul.f32 %v5623_v48, %v9182_v50  ;;  %v769_v7 = vadd.f32 1.0, %v9291_v62  ;;  %vm3325_vm5 = vcmp.eq.f32.partialorder %v9182_v50, inf }
 0x215   : > { %4604 = vst [vmem:[%s6575_s17 + $0x398] sm:$0xff] %v4348_v26  ;;  %v2420_v29 = vmul.f32 %v5625_v42, %v9190_v54  ;;  %v770_v34 = vadd.f32 1.0, %v9294_v15  ;;  %v771_v47 = vadd.f32 1.0, %v9297_v0  ;;  %vm3326_vm1 = vcmp.eq.f32.partialorder %v9190_v54, inf  ;;  %v9401_v26 = vld [vmem:[%s6401_s30 + $0x3f0] sm:$0xff] }
 0x216   : > { %v5627_v19 = vpop.eup %5626  ;;  %v2813_v22 = vmul.f32 %v2418_v61, %v1650_v13  ;;  %v9310_v16 = vadd.f32 -1.0, %v769_v7  ;;  %5634 = vlog2.f32 %v769_v7  ;;  %vm3327_vm4 = vcmp.eq.f32.partialorder %v9218_v55, inf }
 0x217   : > { %v2814_v9 = vmul.f32 %v2420_v29, %v1652_v25  ;;  %v1654_v57 = vmul.f32 0.6931472, %v5627_v19  ;;  %v9312_v37 = vadd.f32 -1.0, %v770_v34  ;;  %5636 = vlog2.f32 %v770_v34  ;;  %v9408_v29 = vld [vmem:[%s6401_s30 + $0x3f8] sm:$0xff] }
 0x218   : > { %v3069_v46 = vsel %vm1277_vm8, %v9182_v50, %v2813_v22  ;;  %vm1281_vm3 = vcmp.eq.f32.partialorder %v9310_v16, 0.0  ;;  %v9318_v63 = vadd.f32 -1.0, %v771_v47  ;;  %5638 = vlog2.f32 %v771_v47 }
 0x219   : > { %v5629_v52 = vpop.eup %5628  ;;  %v3581_v41 = vsel %vm3325_vm5, %v9182_v50, %v3069_v46  ;;  %v3070_v6 = vsel %vm1278_vm9, %v9190_v54, %v2814_v9  ;;  %v2049_v20 = vsel %vm1281_vm3, 1.0, %v9310_v16  ;;  %vm1282_vm6 = vcmp.eq.f32.partialorder %v9312_v37, 0.0  ;;  %v9335_v50 = vld [vmem:[%s6401_s30 + $0x3d8] sm:$0xff] }
 0x21a   : > { %v5631_v39 = vpop.eup %5630  ;;  %v4093_v2 = vsub.f32 0.0, %v3581_v41  ;;  %v3582_v12 = vsel %vm3326_vm1, %v9190_v54, %v3070_v6  ;;  %5640 = vrcp.f32 %v2049_v20  ;;  %v2050_v3 = vsel %vm1282_vm6, 1.0, %v9312_v37 }
 0x21b   : > { %v4094_v31 = vsub.f32 0.0, %v3582_v12  ;;  %v2422_v40 = vmul.f32 %v5631_v39, %v9218_v55  ;;  %vm1283_vm8 = vcmp.eq.f32.partialorder %v9318_v63, 0.0  ;;  %v1656_v27 = vmul.f32 0.6931472, %v5629_v52 }
 0x21c   : > { %v4349_v54 = vsel %vm3837_vm15, %v4093_v2, %v3581_v41  ;;  %5642 = vrcp.f32 %v2050_v3  ;;  %v2051_v23 = vsel %vm1283_vm8, 1.0, %v9318_v63  ;;  %v9354_v5 = vand.u32 2147483647, %v9335_v50  ;;  %v9457_v63 = vld [vmem:[%s6401_s30 + $0x400] sm:$0xff] }
 0x21d   : > { %v5633_v49 = vpop.eup %5632  ;;  %4605 = vst [vmem:[%s6575_s17 + $0x3a0] sm:$0xff] %v4349_v54  ;;  %v4350_v30 = vsel %vm3838_vm2, %v4094_v31, %v3582_v12  ;;  %v2815_v21 = vmul.f32 %v2422_v40, %v1654_v57  ;;  %5644 = vrcp.f32 %v2051_v23  ;;  %v9362_v10 = vand.u32 2147483647, %v9343_v17 }
 0x21e   : > { %4606 = vst [vmem:[%s6575_s17 + $0x3a8] sm:$0xff] %v4350_v30  ;;  %v2424_v53 = vmul.f32 %v5633_v49, %v9240_v36  ;;  %vm3839_vm7 = vcmp.lt.f32.partialorder %v9200_v1, 0.0  ;;  %vm3328_vm9 = vcmp.eq.f32.partialorder %v9240_v36, inf  ;;  %v772_v28 = vadd.f32 1.0, %v9354_v5 }
 0x21f   : > { %v3071_v4 = vsel %vm1279_vm13, %v9218_v55, %v2815_v21  ;;  %v773_v45 = vadd.f32 1.0, %v9362_v10  ;;  %v9375_v14 = vand.u32 2147483647, %v9357_v56  ;;  %vm3840_vm10 = vcmp.lt.f32.partialorder %v9227_v60, 0.0 }
 0x220   : > { %v5635_v11 = vpop.eup %5634  ;;  %v3583_v38 = vsel %vm3327_vm4, %v9218_v55, %v3071_v4  ;;  %v2816_v8 = vmul.f32 %v2424_v53, %v1656_v27  ;;  %v9378_v33 = vadd.f32 -1.0, %v772_v28  ;;  %5646 = vlog2.f32 %v772_v28 }
 0x221   : > { %v5637_v24 = vpop.eup %5636  ;;  %v4095_v18 = vsub.f32 0.0, %v3583_v38  ;;  %vm3329_vm11 = vcmp.eq.f32.partialorder %v9291_v62, inf  ;;  %vm3841_vm12 = vcmp.lt.f32.partialorder %v9264_v58, 0.0  ;;  %v9385_v55 = vadd.f32 -1.0, %v773_v45 }
 0x222   : > { %v5639_v32 = vpop.eup %5638  ;;  %v3072_v44 = vsel %vm1280_vm0, %v9240_v36, %v2816_v8  ;;  %5648 = vlog2.f32 %v773_v45  ;;  %v1658_v48 = vmul.f32 0.6931472, %v5635_v11  ;;  %vm1284_vm13 = vcmp.eq.f32.partialorder %v9378_v33, 0.0 }
 0x223   : > { %v4351_v13 = vsel %vm3839_vm7, %v4095_v18, %v3583_v38  ;;  %v3584_v35 = vsel %vm3328_vm9, %v9240_v36, %v3072_v44  ;;  %vm3842_vm14 = vcmp.lt.f32.partialorder %v9273_v59, 0.0  ;;  %v2052_v42 = vsel %vm1284_vm13, 1.0, %v9378_v33  ;;  %v9466_v38 = vld [vmem:[%s6401_s30 + $0x408] sm:$0xff] }
 0x224   : > { %v5641_v43 = vpop.eup %5640  ;;  %4607 = vst [vmem:[%s6575_s17 + $0x3b0] sm:$0xff] %v4351_v13  ;;  %v4096_v25 = vsub.f32 0.0, %v3584_v35  ;;  %vm1285_vm15 = vcmp.eq.f32.partialorder %v9385_v55, 0.0  ;;  %v774_v1 = vadd.f32 1.0, %v9375_v14  ;;  %v1660_v61 = vmul.f32 0.6931472, %v5637_v24 }
 0x225   : > { %v2426_v36 = vmul.f32 %v5641_v43, %v9291_v62  ;;  %5650 = vrcp.f32 %v2052_v42  ;;  %v2053_v7 = vsel %vm1285_vm15, 1.0, %v9385_v55  ;;  %v1662_v19 = vmul.f32 0.6931472, %v5639_v32 }
 0x226   : > { %v5643_v34 = vpop.eup %5642  ;;  %v4352_v47 = vsel %vm3840_vm10, %v4096_v25, %v3584_v35  ;;  %5652 = vrcp.f32 %v2053_v7  ;;  %v9412_v22 = vadd.f32 -1.0, %v774_v1  ;;  %v9417_v52 = vand.u32 2147483647, %v9401_v26 }
 0x227   : > { %v5645_v9 = vpop.eup %5644  ;;  %4608 = vst [vmem:[%s6575_s17 + $0x3b8] sm:$0xff] %v4352_v47  ;;  %v2817_v57 = vmul.f32 %v2426_v36, %v1658_v48  ;;  %v2428_v46 = vmul.f32 %v5643_v34, %v9294_v15  ;;  %5654 = vlog2.f32 %v774_v1  ;;  %vm3330_vm0 = vcmp.eq.f32.partialorder %v9294_v15, inf }
 0x228   : > { %v2430_v41 = vmul.f32 %v5645_v9, %v9297_v0  ;;  %vm1286_vm2 = vcmp.eq.f32.partialorder %v9412_v22, 0.0  ;;  %v9423_v60 = vand.u32 2147483647, %v9408_v29  ;;  %v775_v2 = vadd.f32 1.0, %v9417_v52 }
 0x229   : > { %v3073_v6 = vsel %vm1281_vm3, %v9291_v62, %v2817_v57  ;;  %v2818_v20 = vmul.f32 %v2428_v46, %v1660_v61  ;;  %v2054_v39 = vsel %vm1286_vm2, 1.0, %v9412_v22  ;;  %vm3331_vm5 = vcmp.eq.f32.partialorder %v9297_v0, inf }
 0x22a   : > { %v3585_v12 = vsel %vm3329_vm11, %v9291_v62, %v3073_v6  ;;  %v2819_v31 = vmul.f32 %v2430_v41, %v1662_v19  ;;  %5656 = vrcp.f32 %v2054_v39  ;;  %v5647_v40 = vpop.eup %5646  ;;  %vm3843_vm1 = vcmp.lt.f32.partialorder %v9276_v51, 0.0  ;;  %v9483_v51 = vld [vmem:[%s6401_s30 + $0x410] sm:$0xff] }
 0x22b   : > { %v4097_v3 = vsub.f32 0.0, %v3585_v12  ;;  %v3074_v16 = vsel %vm1282_vm6, %v9294_v15, %v2818_v20  ;;  %v9440_v54 = vadd.f32 -1.0, %v775_v2  ;;  %5658 = vlog2.f32 %v775_v2 }
 0x22c   : > { %v5649_v27 = vpop.eup %5648  ;;  %v3586_v62 = vsel %vm3330_vm0, %v9294_v15, %v3074_v16  ;;  %v3075_v23 = vsel %vm1283_vm8, %v9297_v0, %v2819_v31  ;;  %v776_v49 = vadd.f32 1.0, %v9423_v60  ;;  %v1664_v53 = vmul.f32 0.6931472, %v5647_v40  ;;  %v9524_v31 = vld [vmem:[%s6401_s30 + $0x418] sm:$0xff] }
 0x22d   : > { %v4353_v37 = vsel %vm3841_vm12, %v4097_v3, %v3585_v12  ;;  %v4098_v30 = vsub.f32 0.0, %v3586_v62  ;;  %v3587_v21 = vsel %vm3331_vm5, %v9297_v0, %v3075_v23  ;;  %vm1287_vm3 = vcmp.eq.f32.partialorder %v9440_v54, 0.0  ;;  %v9543_v23 = vld [vmem:[%s6401_s30 + $0x420] sm:$0xff] }
 0x22e   : > { %4609 = vst [vmem:[%s6575_s17 + $0x3c0] sm:$0xff] %v4353_v37  ;;  %v4099_v4 = vsub.f32 0.0, %v3587_v21  ;;  %v9454_v15 = vadd.f32 -1.0, %v776_v49  ;;  %5660 = vlog2.f32 %v776_v49  ;;  %vm3844_vm6 = vcmp.lt.f32.partialorder %v9335_v50, 0.0 }
 0x22f   : > { %v5651_v28 = vpop.eup %5650  ;;  %v4354_v58 = vsel %vm3842_vm14, %v4098_v30, %v3586_v62  ;;  %v1666_v11 = vmul.f32 0.6931472, %v5649_v27  ;;  %v2055_v0 = vsel %vm1287_vm3, 1.0, %v9440_v54  ;;  %vm3845_vm8 = vcmp.lt.f32.partialorder %v9343_v17, 0.0 }
 0x230   : > { %v5653_v8 = vpop.eup %5652  ;;  %4610 = vst [vmem:[%s6575_s17 + $0x3c8] sm:$0xff] %v4354_v58  ;;  %v4355_v45 = vsel %vm3843_vm1, %v4099_v4, %v3587_v21  ;;  %v2432_v24 = vmul.f32 %v5651_v28, %v9354_v5  ;;  %5662 = vrcp.f32 %v2055_v0  ;;  %vm1288_vm4 = vcmp.eq.f32.partialorder %v9454_v15, 0.0 }
 0x231   : > { %v5655_v59 = vpop.eup %5654  ;;  %4611 = vst [vmem:[%s6575_s17 + $0x3d0] sm:$0xff] %v4355_v45  ;;  %v2434_v18 = vmul.f32 %v5653_v8, %v9362_v10  ;;  %v2056_v32 = vsel %vm1288_vm4, 1.0, %v9454_v15  ;;  %v9480_v44 = vand.u32 2147483647, %v9457_v63  ;;  %vm3332_vm7 = vcmp.eq.f32.partialorder %v9354_v5, inf }
 0x232   : > { %v2820_v13 = vmul.f32 %v2432_v24, %v1664_v53  ;;  %5664 = vrcp.f32 %v2056_v32  ;;  %v9487_v35 = vand.u32 2147483647, %v9466_v38  ;;  %vm3333_vm9 = vcmp.eq.f32.partialorder %v9362_v10, inf  ;;  %v9552_v53 = vld [vmem:[%s6401_s30 + $0x428] sm:$0xff] }
 0x233   : > { %v2821_v48 = vmul.f32 %v2434_v18, %v1666_v11  ;;  %v1668_v43 = vmul.f32 0.6931472, %v5655_v59  ;;  %v777_v25 = vadd.f32 1.0, %v9480_v44  ;;  %vm3334_vm10 = vcmp.eq.f32.partialorder %v9375_v14, inf }
 0x234   : > { %v5657_v42 = vpop.eup %5656  ;;  %v3076_v1 = vsel %vm1284_vm13, %v9354_v5, %v2820_v13  ;;  %v778_v36 = vadd.f32 1.0, %v9487_v35  ;;  %v9497_v61 = vand.u32 2147483647, %v9483_v51  ;;  %vm3846_vm11 = vcmp.lt.f32.partialorder %v9357_v56, 0.0 }
 0x235   : > { %v3588_v7 = vsel %vm3332_vm7, %v9354_v5, %v3076_v1  ;;  %v3077_v34 = vsel %vm1285_vm15, %v9362_v10, %v2821_v48  ;;  %v2436_v47 = vmul.f32 %v5657_v42, %v9375_v14  ;;  %v9504_v19 = vadd.f32 -1.0, %v777_v25  ;;  %v5659_v33 = vpop.eup %5658 }
 0x236   : > { %v4100_v9 = vsub.f32 0.0, %v3588_v7  ;;  %v3589_v57 = vsel %vm3333_vm9, %v9362_v10, %v3077_v34  ;;  %5666 = vlog2.f32 %v777_v25  ;;  %v9509_v55 = vadd.f32 -1.0, %v778_v36  ;;  %v9599_v34 = vld [vmem:[%s6401_s30 + $0x430] sm:$0xff] }
 0x237   : > { %v4101_v46 = vsub.f32 0.0, %v3589_v57  ;;  %v2822_v5 = vmul.f32 %v2436_v47, %v1668_v43  ;;  %vm1289_vm12 = vcmp.eq.f32.partialorder %v9504_v19, 0.0  ;;  %5668 = vlog2.f32 %v778_v36 }
 0x238   : > { %v5661_v41 = vpop.eup %5660  ;;  %v4356_v6 = vsel %vm3844_vm6, %v4100_v9, %v3588_v7  ;;  %v2057_v20 = vsel %vm1289_vm12, 1.0, %v9504_v19  ;;  %v779_v10 = vadd.f32 1.0, %v9497_v61  ;;  %v1670_v12 = vmul.f32 0.6931472, %v5659_v33 }
 0x239   : > { %4612 = vst [vmem:[%s6575_s17 + $0x3d8] sm:$0xff] %v4356_v6  ;;  %v4357_v39 = vsel %vm3845_vm8, %v4101_v46, %v3589_v57  ;;  %v3078_v2 = vsel %vm1286_vm2, %v9375_v14, %v2822_v5  ;;  %5670 = vrcp.f32 %v2057_v20  ;;  %vm1290_vm13 = vcmp.eq.f32.partialorder %v9509_v55, 0.0  ;;  %v9612_v5 = vld [vmem:[%s6401_s30 + $0x438] sm:$0xff] }
 0x23a   : > { %v5663_v50 = vpop.eup %5662  ;;  %4613 = vst [vmem:[%s6575_s17 + $0x3e0] sm:$0xff] %v4357_v39  ;;  %v3590_v40 = vsel %vm3334_vm10, %v9375_v14, %v3078_v2  ;;  %v9531_v3 = vadd.f32 -1.0, %v779_v10  ;;  %5672 = vlog2.f32 %v779_v10  ;;  %v1672_v16 = vmul.f32 0.6931472, %v5661_v41 }
 0x23b   : > { %v4102_v17 = vsub.f32 0.0, %v3590_v40  ;;  %v2438_v22 = vmul.f32 %v5663_v50, %v9417_v52  ;;  %v2058_v27 = vsel %vm1290_vm13, 1.0, %v9509_v55  ;;  %vm3335_vm14 = vcmp.eq.f32.partialorder %v9417_v52, inf }
 0x23c   : > { %v5665_v62 = vpop.eup %5664  ;;  %5674 = vrcp.f32 %v2058_v27  ;;  %vm1291_vm15 = vcmp.eq.f32.partialorder %v9531_v3, 0.0  ;;  %v9540_v14 = vand.u32 2147483647, %v9524_v31  ;;  %vm3847_vm0 = vcmp.lt.f32.partialorder %v9401_v26, 0.0 }
 0x23d   : > { %v4358_v49 = vsel %vm3846_vm11, %v4102_v17, %v3590_v40  ;;  %v2823_v37 = vmul.f32 %v2438_v22, %v1670_v12  ;;  %v2440_v30 = vmul.f32 %v5665_v62, %v9423_v60  ;;  %v2059_v21 = vsel %vm1291_vm15, 1.0, %v9531_v3 }
 0x23e   : > { %4614 = vst [vmem:[%s6575_s17 + $0x3e8] sm:$0xff] %v4358_v49  ;;  %vm3336_vm2 = vcmp.eq.f32.partialorder %v9423_v60, inf  ;;  %5676 = vrcp.f32 %v2059_v21  ;;  %v780_v4 = vadd.f32 1.0, %v9540_v14  ;;  %vm3848_vm5 = vcmp.lt.f32.partialorder %v9408_v29, 0.0 }
 0x23f   : > { %v3079_v56 = vsel %vm1287_vm3, %v9417_v52, %v2823_v37  ;;  %v2824_v28 = vmul.f32 %v2440_v30, %v1672_v16  ;;  %v9563_v58 = vand.u32 2147483647, %v9543_v23  ;;  %v9571_v45 = vand.u32 2147483647, %v9552_v53 }
 0x240   : > { %v5667_v11 = vpop.eup %5666  ;;  %v3591_v0 = vsel %vm3335_vm14, %v9417_v52, %v3079_v56  ;;  %v9568_v8 = vadd.f32 -1.0, %v780_v4  ;;  %5678 = vlog2.f32 %v780_v4  ;;  %vm3849_vm1 = vcmp.lt.f32.partialorder %v9457_v63, 0.0 }
 0x241   : > { %v4103_v54 = vsub.f32 0.0, %v3591_v0  ;;  %v3080_v24 = vsel %vm1288_vm4, %v9423_v60, %v2824_v28  ;;  %v781_v59 = vadd.f32 1.0, %v9563_v58  ;;  %v5669_v18 = vpop.eup %5668  ;;  %v1674_v32 = vmul.f32 0.6931472, %v5667_v11 }
 0x242   : > { %v3592_v52 = vsel %vm3336_vm2, %v9423_v60, %v3080_v24  ;;  %vm1292_vm3 = vcmp.eq.f32.partialorder %v9568_v8, 0.0  ;;  %v782_v13 = vadd.f32 1.0, %v9571_v45  ;;  %vm3337_vm6 = vcmp.eq.f32.partialorder %v9480_v44, inf  ;;  %v9670_v24 = vld [vmem:[%s6401_s30 + $0x448] sm:$0xff] }
 0x243   : > { %v5671_v48 = vpop.eup %5670  ;;  %v4359_v15 = vsel %vm3847_vm0, %v4103_v54, %v3591_v0  ;;  %v4104_v43 = vsub.f32 0.0, %v3592_v52  ;;  %v2060_v25 = vsel %vm1292_vm3, 1.0, %v9568_v8  ;;  %v9591_v1 = vadd.f32 -1.0, %v781_v59 }
 0x244   : > { %v5673_v42 = vpop.eup %5672  ;;  %4615 = vst [vmem:[%s6575_s17 + $0x3f0] sm:$0xff] %v4359_v15  ;;  %v2442_v60 = vmul.f32 %v5671_v48, %v9480_v44  ;;  %5680 = vrcp.f32 %v2060_v25  ;;  %v9593_v36 = vadd.f32 -1.0, %v782_v13  ;;  %v1676_v7 = vmul.f32 0.6931472, %v5669_v18 }
 0x245   : > { %v4360_v26 = vsel %vm3848_vm5, %v4104_v43, %v3592_v52  ;;  %vm3850_vm4 = vcmp.lt.f32.partialorder %v9466_v38, 0.0  ;;  %5682 = vlog2.f32 %v781_v59  ;;  %vm1293_vm8 = vcmp.eq.f32.partialorder %v9591_v1, 0.0 }
 0x246   : > { %v5675_v47 = vpop.eup %5674  ;;  %4616 = vst [vmem:[%s6575_s17 + $0x3f8] sm:$0xff] %v4360_v26  ;;  %v2825_v33 = vmul.f32 %v2442_v60, %v1674_v32  ;;  %vm1294_vm7 = vcmp.eq.f32.partialorder %v9593_v36, 0.0  ;;  %5684 = vlog2.f32 %v782_v13  ;;  %v1678_v57 = vmul.f32 0.6931472, %v5673_v42 }
 0x247   : > { %v2444_v9 = vmul.f32 %v5675_v47, %v9487_v35  ;;  %v2061_v29 = vsel %vm1293_vm8, 1.0, %v9591_v1  ;;  %v2062_v46 = vsel %vm1294_vm7, 1.0, %v9593_v36  ;;  %vm3338_vm9 = vcmp.eq.f32.partialorder %v9487_v35, inf  ;;  %v9722_v1 = vld [vmem:[%s6401_s30 + $0x458] sm:$0xff] }
 0x248   : > { %v5677_v41 = vpop.eup %5676  ;;  %v3081_v6 = vsel %vm1289_vm12, %v9480_v44, %v2825_v33  ;;  %5686 = vrcp.f32 %v2061_v29  ;;  %v9619_v20 = vand.u32 2147483647, %v9599_v34  ;;  %vm3339_vm10 = vcmp.eq.f32.partialorder %v9497_v61, inf  ;;  %v9698_v33 = vld [vmem:[%s6401_s30 + $0x450] sm:$0xff] }
 0x249   : > { %v3593_v10 = vsel %vm3337_vm6, %v9480_v44, %v3081_v6  ;;  %v2826_v39 = vmul.f32 %v2444_v9, %v1676_v7  ;;  %v2446_v2 = vmul.f32 %v5677_v41, %v9497_v61  ;;  %5688 = vrcp.f32 %v2062_v46  ;;  %v9636_v44 = vld [vmem:[%s6401_s30 + $0x440] sm:$0xff] }
 0x24a   : > { %v5679_v12 = vpop.eup %5678  ;;  %v4105_v50 = vsub.f32 0.0, %v3593_v10  ;;  %v783_v19 = vadd.f32 1.0, %v9619_v20  ;;  %v9628_v40 = vand.u32 2147483647, %v9612_v5  ;;  %vm3851_vm11 = vcmp.lt.f32.partialorder %v9483_v51, 0.0 }
 0x24b   : > { %v3082_v17 = vsel %vm1290_vm13, %v9487_v35, %v2826_v39  ;;  %v2827_v22 = vmul.f32 %v2446_v2, %v1678_v57  ;;  %vm3340_vm12 = vcmp.eq.f32.partialorder %v9540_v14, inf  ;;  %v1680_v37 = vmul.f32 0.6931472, %v5679_v12 }
 0x24c   : > { %v4361_v16 = vsel %vm3849_vm1, %v4105_v50, %v3593_v10  ;;  %v3594_v27 = vsel %vm3338_vm9, %v9487_v35, %v3082_v17  ;;  %v9643_v62 = vadd.f32 -1.0, %v783_v19  ;;  %5690 = vlog2.f32 %v783_v19 }
 0x24d   : > { %4617 = vst [vmem:[%s6575_s17 + $0x400] sm:$0xff] %v4361_v16  ;;  %v4106_v55 = vsub.f32 0.0, %v3594_v27  ;;  %v3083_v49 = vsel %vm1291_vm15, %v9497_v61, %v2827_v22  ;;  %v784_v30 = vadd.f32 1.0, %v9628_v40  ;;  %vm3852_vm13 = vcmp.lt.f32.partialorder %v9524_v31, 0.0  ;;  %v9738_v16 = vld [vmem:[%s6401_s30 + $0x460] sm:$0xff] }
 0x24e   : > { %v5681_v21 = vpop.eup %5680  ;;  %v3595_v63 = vsel %vm3339_vm10, %v9497_v61, %v3083_v49  ;;  %vm1295_vm14 = vcmp.eq.f32.partialorder %v9643_v62, 0.0  ;;  %v9656_v35 = vand.u32 2147483647, %v9636_v44  ;;  %vm3341_vm15 = vcmp.eq.f32.partialorder %v9563_v58, inf }
 0x24f   : > { %v5683_v4 = vpop.eup %5682  ;;  %v4362_v3 = vsel %vm3850_vm4, %v4106_v55, %v3594_v27  ;;  %v4107_v56 = vsub.f32 0.0, %v3595_v63  ;;  %v2448_v28 = vmul.f32 %v5681_v21, %v9540_v14  ;;  %v2063_v11 = vsel %vm1295_vm14, 1.0, %v9643_v62 }
 0x250   : > { %v5685_v61 = vpop.eup %5684  ;;  %4618 = vst [vmem:[%s6575_s17 + $0x408] sm:$0xff] %v4362_v3  ;;  %5692 = vrcp.f32 %v2063_v11  ;;  %v9666_v0 = vadd.f32 -1.0, %v784_v30  ;;  %v785_v54 = vadd.f32 1.0, %v9656_v35  ;;  %v1682_v18 = vmul.f32 0.6931472, %v5683_v4  ;;  %v9764_v11 = vld [vmem:[%s6401_s30 + $0x468] sm:$0xff] }
 0x251   : > { %v4363_v38 = vsel %vm3851_vm11, %v4107_v56, %v3595_v63  ;;  %v2828_v59 = vmul.f32 %v2448_v28, %v1680_v37  ;;  %5694 = vlog2.f32 %v784_v30  ;;  %v1684_v32 = vmul.f32 0.6931472, %v5685_v61 }
 0x252   : > { %v5687_v52 = vpop.eup %5686  ;;  %4619 = vst [vmem:[%s6575_s17 + $0x410] sm:$0xff] %v4363_v38  ;;  %vm1296_vm0 = vcmp.eq.f32.partialorder %v9666_v0, 0.0  ;;  %v9676_v13 = vadd.f32 -1.0, %v785_v54  ;;  %5696 = vlog2.f32 %v785_v54  ;;  %v9686_v25 = vand.u32 2147483647, %v9670_v24 }
 0x253   : > { %v5689_v48 = vpop.eup %5688  ;;  %v3084_v15 = vsel %vm1292_vm3, %v9540_v14, %v2828_v59  ;;  %v2450_v51 = vmul.f32 %v5687_v52, %v9563_v58  ;;  %v2064_v43 = vsel %vm1296_vm0, 1.0, %v9666_v0  ;;  %vm3853_vm5 = vcmp.lt.f32.partialorder %v9543_v23, 0.0 }
 0x254   : > { %v3596_v42 = vsel %vm3340_vm12, %v9540_v14, %v3084_v15  ;;  %v2452_v60 = vmul.f32 %v5689_v48, %v9571_v45  ;;  %5698 = vrcp.f32 %v2064_v43  ;;  %vm1297_vm2 = vcmp.eq.f32.partialorder %v9676_v13, 0.0 }
 0x255   : > { %v4108_v8 = vsub.f32 0.0, %v3596_v42  ;;  %v2829_v26 = vmul.f32 %v2450_v51, %v1682_v18  ;;  %v2065_v7 = vsel %vm1297_vm2, 1.0, %v9676_v13  ;;  %v786_v47 = vadd.f32 1.0, %v9686_v25 }
 0x256   : > { %v5691_v9 = vpop.eup %5690  ;;  %v2830_v14 = vmul.f32 %v2452_v60, %v1684_v32  ;;  %vm3342_vm1 = vcmp.eq.f32.partialorder %v9571_v45, inf  ;;  %5700 = vrcp.f32 %v2065_v7  ;;  %vm3854_vm3 = vcmp.lt.f32.partialorder %v9552_v53, 0.0 }
 0x257   : > { %v4364_v57 = vsel %vm3852_vm13, %v4108_v8, %v3596_v42  ;;  %v3085_v29 = vsel %vm1293_vm8, %v9563_v58, %v2829_v26  ;;  %v9708_v46 = vadd.f32 -1.0, %v786_v47  ;;  %vm3855_vm6 = vcmp.lt.f32.partialorder %v9599_v34, 0.0 }
 0x258   : > { %4620 = vst [vmem:[%s6575_s17 + $0x418] sm:$0xff] %v4364_v57  ;;  %v3597_v41 = vsel %vm3341_vm15, %v9563_v58, %v3085_v29  ;;  %v3086_v6 = vsel %vm1294_vm7, %v9571_v45, %v2830_v14  ;;  %5702 = vlog2.f32 %v786_v47  ;;  %v9719_v31 = vand.u32 2147483647, %v9698_v33  ;;  %v9805_v57 = vld [vmem:[%s6401_s30 + $0x470] sm:$0xff] }
 0x259   : > { %v4109_v10 = vsub.f32 0.0, %v3597_v41  ;;  %v3598_v39 = vsel %vm3342_vm1, %v9571_v45, %v3086_v6  ;;  %v1686_v2 = vmul.f32 0.6931472, %v5691_v9  ;;  %vm1298_vm4 = vcmp.eq.f32.partialorder %v9708_v46, 0.0 }
 0x25a   : > { %v5693_v58 = vpop.eup %5692  ;;  %v4110_v12 = vsub.f32 0.0, %v3598_v39  ;;  %vm3343_vm8 = vcmp.eq.f32.partialorder %v9619_v20, inf  ;;  %v2066_v36 = vsel %vm1298_vm4, 1.0, %v9708_v46  ;;  %v787_v50 = vadd.f32 1.0, %v9719_v31 }
 0x25b   : > { %v5695_v19 = vpop.eup %5694  ;;  %v4365_v17 = vsel %vm3853_vm5, %v4109_v10, %v3597_v41  ;;  %v2454_v45 = vmul.f32 %v5693_v58, %v9619_v20  ;;  %5704 = vrcp.f32 %v2066_v36  ;;  %v9735_v22 = vand.u32 2147483647, %v9722_v1  ;;  %v9810_v41 = vld [vmem:[%s6401_s30 + $0x478] sm:$0xff] }
 0x25c   : > { %v5697_v27 = vpop.eup %5696  ;;  %4621 = vst [vmem:[%s6575_s17 + $0x420] sm:$0xff] %v4365_v17  ;;  %v4366_v55 = vsel %vm3854_vm3, %v4110_v12, %v3598_v39  ;;  %vm3856_vm7 = vcmp.lt.f32.partialorder %v9612_v5, 0.0  ;;  %v9744_v49 = vadd.f32 -1.0, %v787_v50  ;;  %5706 = vlog2.f32 %v787_v50 }
 0x25d   : > { %4622 = vst [vmem:[%s6575_s17 + $0x428] sm:$0xff] %v4366_v55  ;;  %v2831_v23 = vmul.f32 %v2454_v45, %v1686_v2  ;;  %v1688_v37 = vmul.f32 0.6931472, %v5695_v19  ;;  %vm3344_vm9 = vcmp.eq.f32.partialorder %v9628_v40, inf  ;;  %v788_v30 = vadd.f32 1.0, %v9735_v22  ;;  %v9825_v2 = vld [vmem:[%s6401_s30 + $0x480] sm:$0xff] }
 0x25e   : > { %v5699_v21 = vpop.eup %5698  ;;  %v1690_v63 = vmul.f32 0.6931472, %v5697_v27  ;;  %vm3857_vm10 = vcmp.lt.f32.partialorder %v9636_v44, 0.0  ;;  %vm1299_vm11 = vcmp.eq.f32.partialorder %v9744_v49, 0.0  ;;  %v9752_v53 = vand.u32 2147483647, %v9738_v16 }
 0x25f   : > { %v3087_v4 = vsel %vm1295_vm14, %v9619_v20, %v2831_v23  ;;  %v2456_v3 = vmul.f32 %v5699_v21, %v9628_v40  ;;  %v2067_v56 = vsel %vm1299_vm11, 1.0, %v9744_v49  ;;  %v9761_v28 = vadd.f32 -1.0, %v788_v30 }
 0x260   : > { %v5701_v61 = vpop.eup %5700  ;;  %v3599_v54 = vsel %vm3343_vm8, %v9619_v20, %v3087_v4  ;;  %vm3345_vm12 = vcmp.eq.f32.partialorder %v9656_v35, inf  ;;  %5708 = vrcp.f32 %v2067_v56  ;;  %v789_v62 = vadd.f32 1.0, %v9752_v53 }
 0x261   : > { %v4111_v38 = vsub.f32 0.0, %v3599_v54  ;;  %v2832_v59 = vmul.f32 %v2456_v3, %v1688_v37  ;;  %v2458_v18 = vmul.f32 %v5701_v61, %v9656_v35  ;;  %vm1300_vm13 = vcmp.eq.f32.partialorder %v9761_v28, 0.0 }
 0x262   : > { %v5703_v52 = vpop.eup %5702  ;;  %5710 = vlog2.f32 %v788_v30  ;;  %v2068_v32 = vsel %vm1300_vm13, 1.0, %v9761_v28  ;;  %v9776_v48 = vadd.f32 -1.0, %v789_v62  ;;  %v9779_v20 = vand.u32 2147483647, %v9764_v11 }
 0x263   : > { %v4367_v15 = vsel %vm3855_vm6, %v4111_v38, %v3599_v54  ;;  %v3088_v51 = vsel %vm1296_vm0, %v9628_v40, %v2832_v59  ;;  %v2833_v43 = vmul.f32 %v2458_v18, %v1690_v63  ;;  %v1692_v42 = vmul.f32 0.6931472, %v5703_v52  ;;  %v9867_v52 = vld [vmem:[%s6401_s30 + $0x488] sm:$0xff] }
 0x264   : > { %4623 = vst [vmem:[%s6575_s17 + $0x430] sm:$0xff] %v4367_v15  ;;  %v3600_v60 = vsel %vm3344_vm9, %v9628_v40, %v3088_v51  ;;  %5712 = vrcp.f32 %v2068_v32  ;;  %vm1301_vm14 = vcmp.eq.f32.partialorder %v9776_v48, 0.0  ;;  %v790_v8 = vadd.f32 1.0, %v9779_v20 }
 0x265   : > { %v5705_v34 = vpop.eup %5704  ;;  %v4112_v26 = vsub.f32 0.0, %v3600_v60  ;;  %v3089_v0 = vsel %vm1297_vm2, %v9656_v35, %v2833_v43  ;;  %5714 = vlog2.f32 %v789_v62  ;;  %v2069_v7 = vsel %vm1301_vm14, 1.0, %v9776_v48 }
 0x266   : > { %v5707_v47 = vpop.eup %5706  ;;  %v3601_v40 = vsel %vm3345_vm12, %v9656_v35, %v3089_v0  ;;  %v2460_v9 = vmul.f32 %v5705_v34, %v9686_v25  ;;  %5716 = vrcp.f32 %v2069_v7  ;;  %v9802_v14 = vadd.f32 -1.0, %v790_v8 }
 0x267   : > { %v4368_v13 = vsel %vm3856_vm7, %v4112_v26, %v3600_v60  ;;  %v4113_v29 = vsub.f32 0.0, %v3601_v40  ;;  %5718 = vlog2.f32 %v790_v8  ;;  %vm3346_vm15 = vcmp.eq.f32.partialorder %v9686_v25, inf }
 0x268   : > { %4624 = vst [vmem:[%s6575_s17 + $0x438] sm:$0xff] %v4368_v13  ;;  %v2834_v6 = vmul.f32 %v2460_v9, %v1692_v42  ;;  %vm3858_vm0 = vcmp.lt.f32.partialorder %v9670_v24, 0.0  ;;  %vm1302_vm2 = vcmp.eq.f32.partialorder %v9802_v14, 0.0  ;;  %v1694_v10 = vmul.f32 0.6931472, %v5707_v47 }
 0x269   : > { %v4369_v35 = vsel %vm3857_vm10, %v4113_v29, %v3601_v40  ;;  %v2070_v5 = vsel %vm1302_vm2, 1.0, %v9802_v14  ;;  %v9822_v39 = vand.u32 2147483647, %v9805_v57  ;;  %vm3859_vm5 = vcmp.lt.f32.partialorder %v9698_v33, 0.0 }
 0x26a   : > { %v5709_v58 = vpop.eup %5708  ;;  %4625 = vst [vmem:[%s6575_s17 + $0x440] sm:$0xff] %v4369_v35  ;;  %v3090_v12 = vsel %vm1298_vm4, %v9686_v25, %v2834_v6  ;;  %5720 = vrcp.f32 %v2070_v5  ;;  %v9833_v44 = vand.u32 2147483647, %v9810_v41  ;;  %vm3347_vm1 = vcmp.eq.f32.partialorder %v9719_v31, inf }
 0x26b   : > { %v3602_v36 = vsel %vm3346_vm15, %v9686_v25, %v3090_v12  ;;  %v2462_v50 = vmul.f32 %v5709_v58, %v9719_v31  ;;  %v791_v19 = vadd.f32 1.0, %v9822_v39  ;;  %vm3348_vm3 = vcmp.eq.f32.partialorder %v9735_v22, inf }
 0x26c   : > { %v5711_v17 = vpop.eup %5710  ;;  %v4114_v45 = vsub.f32 0.0, %v3602_v36  ;;  %v792_v46 = vadd.f32 1.0, %v9833_v44  ;;  %v9842_v27 = vand.u32 2147483647, %v9825_v2  ;;  %vm3349_vm6 = vcmp.eq.f32.partialorder %v9752_v53, inf }
 0x26d   : > { %v2835_v55 = vmul.f32 %v2462_v50, %v1694_v10  ;;  %v1696_v23 = vmul.f32 0.6931472, %v5711_v17  ;;  %v9844_v37 = vadd.f32 -1.0, %v791_v19  ;;  %5722 = vlog2.f32 %v791_v19  ;;  %v9919_v10 = vld [vmem:[%s6401_s30 + $0x4a0] sm:$0xff] }
 0x26e   : > { %v5713_v25 = vpop.eup %5712  ;;  %v4370_v30 = vsel %vm3858_vm0, %v4114_v45, %v3602_v36  ;;  %v9848_v21 = vadd.f32 -1.0, %v792_v46  ;;  %5724 = vlog2.f32 %v792_v46  ;;  %v793_v63 = vadd.f32 1.0, %v9842_v27 }
 0x26f   : > { %v5715_v4 = vpop.eup %5714  ;;  %4626 = vst [vmem:[%s6575_s17 + $0x448] sm:$0xff] %v4370_v30  ;;  %v3091_v3 = vsel %vm1299_vm11, %v9719_v31, %v2835_v55  ;;  %v2464_v56 = vmul.f32 %v5713_v25, %v9735_v22  ;;  %vm1303_vm4 = vcmp.eq.f32.partialorder %v9844_v37, 0.0  ;;  %vm3860_vm7 = vcmp.lt.f32.partialorder %v9722_v1, 0.0 }
 0x270   : > { %v5717_v24 = vpop.eup %5716  ;;  %v3603_v61 = vsel %vm3347_vm1, %v9719_v31, %v3091_v3  ;;  %v1698_v54 = vmul.f32 0.6931472, %v5715_v4  ;;  %v2071_v62 = vsel %vm1303_vm4, 1.0, %v9844_v37  ;;  %vm1304_vm8 = vcmp.eq.f32.partialorder %v9848_v21, 0.0 }
 0x271   : > { %v5719_v49 = vpop.eup %5718  ;;  %v4115_v38 = vsub.f32 0.0, %v3603_v61  ;;  %v2836_v59 = vmul.f32 %v2464_v56, %v1696_v23  ;;  %v2466_v18 = vmul.f32 %v5717_v24, %v9752_v53  ;;  %5726 = vrcp.f32 %v2071_v62 }
 0x272   : > { %v1700_v32 = vmul.f32 0.6931472, %v5719_v49  ;;  %v2072_v31 = vsel %vm1304_vm8, 1.0, %v9848_v21  ;;  %v9872_v15 = vadd.f32 -1.0, %v793_v63  ;;  %5728 = vlog2.f32 %v793_v63 }
 0x273   : > { %v4371_v51 = vsel %vm3859_vm5, %v4115_v38, %v3603_v61  ;;  %v3092_v43 = vsel %vm1300_vm13, %v9735_v22, %v2836_v59  ;;  %v2837_v42 = vmul.f32 %v2466_v18, %v1698_v54  ;;  %5730 = vrcp.f32 %v2072_v31 }
 0x274   : > { %v5721_v60 = vpop.eup %5720  ;;  %4627 = vst [vmem:[%s6575_s17 + $0x450] sm:$0xff] %v4371_v51  ;;  %v3604_v8 = vsel %vm3348_vm3, %v9735_v22, %v3092_v43  ;;  %vm1305_vm9 = vcmp.eq.f32.partialorder %v9872_v15, 0.0  ;;  %v9886_v34 = vand.u32 2147483647, %v9867_v52  ;;  %v9896_v22 = vld [vmem:[%s6401_s30 + $0x490] sm:$0xff]  ;;  %vm3861_vm10 = vcmp.lt.f32.partialorder %v9738_v16, 0.0 }
 0x275   : > { %v4116_v33 = vsub.f32 0.0, %v3604_v8  ;;  %v3093_v28 = vsel %vm1301_vm14, %v9752_v53, %v2837_v42  ;;  %v2468_v26 = vmul.f32 %v5721_v60, %v9779_v20  ;;  %v2073_v0 = vsel %vm1305_vm9, 1.0, %v9872_v15  ;;  %v9911_v16 = vld [vmem:[%s6401_s30 + $0x498] sm:$0xff]  ;;  %v9969_v51 = vld [vmem:[%s6401_s30 + $0x4a8] sm:$0xff]  ;;  %v9974_v42 = vld [vmem:[%s6401_s30 + $0x4b0] sm:$0xff] }
 0x276   : > { %v3605_v1 = vsel %vm3349_vm6, %v9752_v53, %v3093_v28  ;;  %5732 = vrcp.f32 %v2073_v0  ;;  %v794_v7 = vadd.f32 1.0, %v9886_v34  ;;  %vm3350_vm11 = vcmp.eq.f32.partialorder %v9779_v20, inf }
 0x277   : > { %v5723_v48 = vpop.eup %5722  ;;  %v4372_v47 = vsel %vm3860_vm7, %v4116_v33, %v3604_v8  ;;  %v4117_v40 = vsub.f32 0.0, %v3605_v1  ;;  %v2838_v9 = vmul.f32 %v2468_v26, %v1700_v32  ;;  %v9908_v53 = vand.u32 2147483647, %v9896_v22 }
 0x278   : > { %v5725_v13 = vpop.eup %5724  ;;  %4628 = vst [vmem:[%s6575_s17 + $0x458] sm:$0xff] %v4372_v47  ;;  %v9905_v29 = vadd.f32 -1.0, %v794_v7  ;;  %5734 = vlog2.f32 %v794_v7  ;;  %vm3862_vm12 = vcmp.lt.f32.partialorder %v9764_v11, 0.0  ;;  %vm3863_vm13 = vcmp.lt.f32.partialorder %v9805_v57, 0.0 }
 0x279   : > { %v4373_v6 = vsel %vm3861_vm10, %v4117_v40, %v3605_v1  ;;  %v3094_v35 = vsel %vm1302_vm2, %v9779_v20, %v2838_v9  ;;  %v1702_v58 = vmul.f32 0.6931472, %v5723_v48  ;;  %v795_v12 = vadd.f32 1.0, %v9908_v53  ;;  %v10001_v40 = vld [vmem:[%s6401_s30 + $0x4b8] sm:$0xff] }
 0x27a   : > { %4629 = vst [vmem:[%s6575_s17 + $0x460] sm:$0xff] %v4373_v6  ;;  %v3606_v5 = vsel %vm3350_vm11, %v9779_v20, %v3094_v35  ;;  %vm1306_vm14 = vcmp.eq.f32.partialorder %v9905_v29, 0.0  ;;  %v1704_v19 = vmul.f32 0.6931472, %v5725_v13  ;;  %vm3864_vm15 = vcmp.lt.f32.partialorder %v9810_v41, 0.0 }
 0x27b   : > { %v5727_v36 = vpop.eup %5726  ;;  %v4118_v50 = vsub.f32 0.0, %v3606_v5  ;;  %v2074_v14 = vsel %vm1306_vm14, 1.0, %v9905_v29  ;;  %v9930_v17 = vand.u32 2147483647, %v9911_v16  ;;  %v9933_v46 = vadd.f32 -1.0, %v795_v12 }
 0x27c   : > { %v5729_v45 = vpop.eup %5728  ;;  %v2470_v20 = vmul.f32 %v5727_v36, %v9822_v39  ;;  %5736 = vrcp.f32 %v2074_v14  ;;  %v9936_v55 = vand.u32 2147483647, %v9919_v10  ;;  %vm3351_vm0 = vcmp.eq.f32.partialorder %v9822_v39, inf }
 0x27d   : > { %v5731_v23 = vpop.eup %5730  ;;  %v4374_v25 = vsel %vm3862_vm12, %v4118_v50, %v3606_v5  ;;  %5738 = vlog2.f32 %v795_v12  ;;  %v796_v30 = vadd.f32 1.0, %v9930_v17  ;;  %v1706_v3 = vmul.f32 0.6931472, %v5729_v45 }
 0x27e   : > { %4630 = vst [vmem:[%s6575_s17 + $0x468] sm:$0xff] %v4374_v25  ;;  %v2839_v63 = vmul.f32 %v2470_v20, %v1702_v58  ;;  %v2472_v4 = vmul.f32 %v5731_v23, %v9833_v44  ;;  %vm1307_vm2 = vcmp.eq.f32.partialorder %v9933_v46, 0.0  ;;  %v797_v11 = vadd.f32 1.0, %v9936_v55 }
 0x27f   : > { %v2075_v56 = vsel %vm1307_vm2, 1.0, %v9933_v46  ;;  %v9948_v24 = vadd.f32 -1.0, %v796_v30  ;;  %5740 = vlog2.f32 %v796_v30  ;;  %vm3352_vm5 = vcmp.eq.f32.partialorder %v9833_v44, inf  ;;  %v10032_v30 = vld [vmem:[%s6401_s30 + $0x4c0] sm:$0xff] }
 0x280   : > { %v5733_v61 = vpop.eup %5732  ;;  %v3095_v54 = vsel %vm1303_vm4, %v9822_v39, %v2839_v63  ;;  %v2840_v62 = vmul.f32 %v2472_v4, %v1704_v19  ;;  %5742 = vrcp.f32 %v2075_v56  ;;  %v9960_v59 = vadd.f32 -1.0, %v797_v11 }
 0x281   : > { %v3607_v49 = vsel %vm3351_vm0, %v9822_v39, %v3095_v54  ;;  %v2474_v38 = vmul.f32 %v5733_v61, %v9842_v27  ;;  %vm1308_vm1 = vcmp.eq.f32.partialorder %v9948_v24, 0.0  ;;  %5744 = vlog2.f32 %v797_v11 }
 0x282   : > { %v5735_v18 = vpop.eup %5734  ;;  %v4119_v32 = vsub.f32 0.0, %v3607_v49  ;;  %v3096_v37 = vsel %vm1304_vm8, %v9833_v44, %v2840_v62  ;;  %v2076_v31 = vsel %vm1308_vm1, 1.0, %v9948_v24  ;;  %vm3353_vm3 = vcmp.eq.f32.partialorder %v9842_v27, inf }
 0x283   : > { %v3608_v39 = vsel %vm3352_vm5, %v9833_v44, %v3096_v37  ;;  %v2841_v43 = vmul.f32 %v2474_v38, %v1706_v3  ;;  %5746 = vrcp.f32 %v2076_v31  ;;  %vm3865_vm6 = vcmp.lt.f32.partialorder %v9825_v2, 0.0 }
 0x284   : > { %v4375_v21 = vsel %vm3863_vm13, %v4119_v32, %v3607_v49  ;;  %v4120_v60 = vsub.f32 0.0, %v3608_v39  ;;  %vm1309_vm4 = vcmp.eq.f32.partialorder %v9960_v59, 0.0  ;;  %v1708_v8 = vmul.f32 0.6931472, %v5735_v18 }
 0x285   : > { %4631 = vst [vmem:[%s6575_s17 + $0x470] sm:$0xff] %v4375_v21  ;;  %v3097_v44 = vsel %vm1305_vm9, %v9842_v27, %v2841_v43  ;;  %v2077_v33 = vsel %vm1309_vm4, 1.0, %v9960_v59  ;;  %v9988_v57 = vand.u32 2147483647, %v9969_v51  ;;  %v9994_v1 = vand.u32 2147483647, %v9974_v42 }
 0x286   : > { %v5737_v28 = vpop.eup %5736  ;;  %v4376_v26 = vsel %vm3864_vm15, %v4120_v60, %v3608_v39  ;;  %v3609_v0 = vsel %vm3353_vm3, %v9842_v27, %v3097_v44  ;;  %5748 = vrcp.f32 %v2077_v33  ;;  %vm3354_vm8 = vcmp.eq.f32.partialorder %v9886_v34, inf  ;;  %v10094_v59 = vld [vmem:[%s6401_s30 + $0x4d8] sm:$0xff] }
 0x287   : > { %v5739_v15 = vpop.eup %5738  ;;  %4632 = vst [vmem:[%s6575_s17 + $0x478] sm:$0xff] %v4376_v26  ;;  %v4121_v7 = vsub.f32 0.0, %v3609_v0  ;;  %v2476_v48 = vmul.f32 %v5737_v28, %v9886_v34  ;;  %v798_v47 = vadd.f32 1.0, %v9988_v57  ;;  %vm3866_vm7 = vcmp.lt.f32.partialorder %v9867_v52, 0.0  ;;  %v10054_v52 = vld [vmem:[%s6401_s30 + $0x4c8] sm:$0xff] }
 0x288   : > { %v1710_v41 = vmul.f32 0.6931472, %v5739_v15  ;;  %vm3867_vm9 = vcmp.lt.f32.partialorder %v9896_v22, 0.0  ;;  %v799_v27 = vadd.f32 1.0, %v9994_v1  ;;  %vm3355_vm10 = vcmp.eq.f32.partialorder %v9908_v53, inf }
 0x289   : > { %v5741_v9 = vpop.eup %5740  ;;  %v4377_v13 = vsel %vm3865_vm6, %v4121_v7, %v3609_v0  ;;  %v2842_v6 = vmul.f32 %v2476_v48, %v1708_v8  ;;  %v10008_v35 = vadd.f32 -1.0, %v798_v47  ;;  %5750 = vlog2.f32 %v798_v47  ;;  %v10085_v8 = vld [vmem:[%s6401_s30 + $0x4d0] sm:$0xff] }
 0x28a   : > { %v5743_v5 = vpop.eup %5742  ;;  %4633 = vst [vmem:[%s6575_s17 + $0x480] sm:$0xff] %v4377_v13  ;;  %v1712_v58 = vmul.f32 0.6931472, %v5741_v9  ;;  %v10012_v12 = vadd.f32 -1.0, %v799_v27  ;;  %v10015_v36 = vand.u32 2147483647, %v10001_v40  ;;  %5752 = vlog2.f32 %v799_v27 }
 0x28b   : > { %v3098_v2 = vsel %vm1306_vm14, %v9886_v34, %v2842_v6  ;;  %v2478_v50 = vmul.f32 %v5743_v5, %v9908_v53  ;;  %vm1310_vm11 = vcmp.eq.f32.partialorder %v10008_v35, 0.0  ;;  %v5745_v19 = vpop.eup %5744  ;;  %vm3356_vm13 = vcmp.eq.f32.partialorder %v9930_v17, inf }
 0x28c   : > { %v3610_v14 = vsel %vm3354_vm8, %v9886_v34, %v3098_v2  ;;  %v2078_v45 = vsel %vm1310_vm11, 1.0, %v10008_v35  ;;  %vm1311_vm12 = vcmp.eq.f32.partialorder %v10012_v12, 0.0  ;;  %v800_v20 = vadd.f32 1.0, %v10015_v36 }
 0x28d   : > { %v5747_v29 = vpop.eup %5746  ;;  %v4122_v23 = vsub.f32 0.0, %v3610_v14  ;;  %v2843_v25 = vmul.f32 %v2478_v50, %v1710_v41  ;;  %5754 = vrcp.f32 %v2078_v45  ;;  %v2079_v63 = vsel %vm1311_vm12, 1.0, %v10012_v12 }
 0x28e   : > { %v2480_v34 = vmul.f32 %v5747_v29, %v9930_v17  ;;  %v10038_v4 = vadd.f32 -1.0, %v800_v20  ;;  %5756 = vlog2.f32 %v800_v20  ;;  %v1714_v11 = vmul.f32 0.6931472, %v5745_v19 }
 0x28f   : > { %v4378_v3 = vsel %vm3866_vm7, %v4122_v23, %v3610_v14  ;;  %v3099_v56 = vsel %vm1307_vm2, %v9908_v53, %v2843_v25  ;;  %5758 = vrcp.f32 %v2079_v63  ;;  %v10051_v49 = vand.u32 2147483647, %v10032_v30 }
 0x290   : > { %v5749_v61 = vpop.eup %5748  ;;  %4634 = vst [vmem:[%s6575_s17 + $0x488] sm:$0xff] %v4378_v3  ;;  %v3611_v54 = vsel %vm3355_vm10, %v9908_v53, %v3099_v56  ;;  %v2844_v62 = vmul.f32 %v2480_v34, %v1712_v58  ;;  %vm1312_vm14 = vcmp.eq.f32.partialorder %v10038_v4, 0.0  ;;  %vm3868_vm15 = vcmp.lt.f32.partialorder %v9911_v16, 0.0  ;;  %v10138_v3 = vld [vmem:[%s6401_s30 + $0x4e0] sm:$0xff] }
 0x291   : > { %v4123_v38 = vsub.f32 0.0, %v3611_v54  ;;  %v2482_v46 = vmul.f32 %v5749_v61, %v9936_v55  ;;  %v2080_v18 = vsel %vm1312_vm14, 1.0, %v10038_v4  ;;  %vm3357_vm0 = vcmp.eq.f32.partialorder %v9936_v55, inf }
 0x292   : > { %v3100_v53 = vsel %vm1308_vm1, %v9930_v17, %v2844_v62  ;;  %5760 = vrcp.f32 %v2080_v18  ;;  %v801_v32 = vadd.f32 1.0, %v10051_v49  ;;  %v10072_v21 = vand.u32 2147483647, %v10054_v52  ;;  %v10164_v18 = vld [vmem:[%s6401_s30 + $0x4f0] sm:$0xff] }
 0x293   : > { %v5751_v37 = vpop.eup %5750  ;;  %v4379_v31 = vsel %vm3867_vm9, %v4123_v38, %v3611_v54  ;;  %v3612_v39 = vsel %vm3356_vm13, %v9930_v17, %v3100_v53  ;;  %v2845_v43 = vmul.f32 %v2482_v46, %v1714_v11  ;;  %vm3869_vm2 = vcmp.lt.f32.partialorder %v9919_v10, 0.0  ;;  %v10151_v54 = vld [vmem:[%s6401_s30 + $0x4e8] sm:$0xff] }
 0x294   : > { %4635 = vst [vmem:[%s6575_s17 + $0x490] sm:$0xff] %v4379_v31  ;;  %v4124_v24 = vsub.f32 0.0, %v3612_v39  ;;  %v10076_v60 = vadd.f32 -1.0, %v801_v32  ;;  %5762 = vlog2.f32 %v801_v32  ;;  %v5753_v44 = vpop.eup %5752  ;;  %vm3358_vm5 = vcmp.eq.f32.partialorder %v9988_v57, inf }
 0x295   : > { %v3101_v22 = vsel %vm1309_vm4, %v9936_v55, %v2845_v43  ;;  %vm3870_vm1 = vcmp.lt.f32.partialorder %v9969_v51, 0.0  ;;  %v802_v17 = vadd.f32 1.0, %v10072_v21  ;;  %v1716_v26 = vmul.f32 0.6931472, %v5751_v37 }
 0x296   : > { %v4380_v33 = vsel %vm3868_vm15, %v4124_v24, %v3612_v39  ;;  %v3613_v28 = vsel %vm3357_vm0, %v9936_v55, %v3101_v22  ;;  %vm1313_vm3 = vcmp.eq.f32.partialorder %v10076_v60, 0.0  ;;  %v1718_v55 = vmul.f32 0.6931472, %v5753_v44 }
 0x297   : > { %v5755_v0 = vpop.eup %5754  ;;  %4636 = vst [vmem:[%s6575_s17 + $0x498] sm:$0xff] %v4380_v33  ;;  %v4125_v15 = vsub.f32 0.0, %v3613_v28  ;;  %v2081_v7 = vsel %vm1313_vm3, 1.0, %v10076_v60  ;;  %v10100_v48 = vadd.f32 -1.0, %v802_v17  ;;  %5764 = vlog2.f32 %v802_v17 }
 0x298   : > { %v5757_v16 = vpop.eup %5756  ;;  %v2484_v47 = vmul.f32 %v5755_v0, %v9988_v57  ;;  %5766 = vrcp.f32 %v2081_v7  ;;  %v10104_v41 = vand.u32 2147483647, %v10085_v8  ;;  %vm3359_vm6 = vcmp.eq.f32.partialorder %v9994_v1, inf  ;;  %v10198_v7 = vld [vmem:[%s6401_s30 + $0x4f8] sm:$0xff] }
 0x299   : > { %v5759_v27 = vpop.eup %5758  ;;  %v4381_v9 = vsel %vm3869_vm2, %v4125_v15, %v3613_v28  ;;  %vm1314_vm4 = vcmp.eq.f32.partialorder %v10100_v48, 0.0  ;;  %v10111_v13 = vand.u32 2147483647, %v10094_v59  ;;  %vm3871_vm8 = vcmp.lt.f32.partialorder %v9974_v42, 0.0 }
 0x29a   : > { %4637 = vst [vmem:[%s6575_s17 + $0x4a0] sm:$0xff] %v4381_v9  ;;  %v2846_v6 = vmul.f32 %v2484_v47, %v1716_v26  ;;  %v2486_v5 = vmul.f32 %v5759_v27, %v9994_v1  ;;  %v2082_v58 = vsel %vm1314_vm4, 1.0, %v10100_v48  ;;  %v803_v2 = vadd.f32 1.0, %v10104_v41 }
 0x29b   : > { %v1720_v10 = vmul.f32 0.6931472, %v5757_v16  ;;  %5768 = vrcp.f32 %v2082_v58  ;;  %v804_v50 = vadd.f32 1.0, %v10111_v13  ;;  %vm3872_vm7 = vcmp.lt.f32.partialorder %v10001_v40, 0.0 }
 0x29c   : > { %v5761_v19 = vpop.eup %5760  ;;  %v3102_v14 = vsel %vm1310_vm11, %v9988_v57, %v2846_v6  ;;  %v2847_v45 = vmul.f32 %v2486_v5, %v1718_v55  ;;  %v10124_v20 = vadd.f32 -1.0, %v803_v2  ;;  %5770 = vlog2.f32 %v803_v2 }
 0x29d   : > { %v3614_v29 = vsel %vm3358_vm5, %v9988_v57, %v3102_v14  ;;  %v2488_v23 = vmul.f32 %v5761_v19, %v10015_v36  ;;  %v10130_v25 = vadd.f32 -1.0, %v804_v50  ;;  %5772 = vlog2.f32 %v804_v50 }
 0x29e   : > { %v5763_v34 = vpop.eup %5762  ;;  %v4126_v63 = vsub.f32 0.0, %v3614_v29  ;;  %v3103_v35 = vsel %vm1311_vm12, %v9994_v1, %v2847_v45  ;;  %vm1315_vm9 = vcmp.eq.f32.partialorder %v10124_v20, 0.0  ;;  %vm3360_vm10 = vcmp.eq.f32.partialorder %v10015_v36, inf }
 0x29f   : > { %v3615_v57 = vsel %vm3359_vm6, %v9994_v1, %v3103_v35  ;;  %v2848_v56 = vmul.f32 %v2488_v23, %v1720_v10  ;;  %v2083_v11 = vsel %vm1315_vm9, 1.0, %v10124_v20  ;;  %vm1316_vm11 = vcmp.eq.f32.partialorder %v10130_v25, 0.0 }
 0x2a0   : > { %v4382_v12 = vsel %vm3870_vm1, %v4126_v63, %v3614_v29  ;;  %v4127_v61 = vsub.f32 0.0, %v3615_v57  ;;  %5774 = vrcp.f32 %v2083_v11  ;;  %v1722_v38 = vmul.f32 0.6931472, %v5763_v34 }
 0x2a1   : > { %v5765_v62 = vpop.eup %5764  ;;  %4638 = vst [vmem:[%s6575_s17 + $0x4a8] sm:$0xff] %v4382_v12  ;;  %v3104_v1 = vsel %vm1312_vm14, %v10015_v36, %v2848_v56  ;;  %v2084_v46 = vsel %vm1316_vm11, 1.0, %v10130_v25  ;;  %v10161_v51 = vand.u32 2147483647, %v10138_v3  ;;  %vm3873_vm12 = vcmp.lt.f32.partialorder %v10032_v30, 0.0  ;;  %v10229_v30 = vld [vmem:[%s6401_s30 + $0x500] sm:$0xff] }
 0x2a2   : > { %v5767_v53 = vpop.eup %5766  ;;  %v4383_v32 = vsel %vm3871_vm8, %v4127_v61, %v3615_v57  ;;  %v3616_v37 = vsel %vm3360_vm10, %v10015_v36, %v3104_v1  ;;  %5776 = vrcp.f32 %v2084_v46  ;;  %vm3361_vm13 = vcmp.eq.f32.partialorder %v10051_v49, inf  ;;  %v10248_v12 = vld [vmem:[%s6401_s30 + $0x508] sm:$0xff] }
 0x2a3   : > { %4639 = vst [vmem:[%s6575_s17 + $0x4b0] sm:$0xff] %v4383_v32  ;;  %v4128_v4 = vsub.f32 0.0, %v3616_v37  ;;  %v2490_v31 = vmul.f32 %v5767_v53, %v10051_v49  ;;  %v805_v39 = vadd.f32 1.0, %v10161_v51  ;;  %v1724_v43 = vmul.f32 0.6931472, %v5765_v62 }
 0x2a4   : > { %v10177_v42 = vand.u32 2147483647, %v10151_v54  ;;  %v10180_v24 = vand.u32 2147483647, %v10164_v18  ;;  %vm3362_vm14 = vcmp.eq.f32.partialorder %v10072_v21, inf  ;;  %vm3874_vm15 = vcmp.lt.f32.partialorder %v10054_v52, 0.0 }
 0x2a5   : > { %v5769_v36 = vpop.eup %5768  ;;  %v4384_v44 = vsel %vm3872_vm7, %v4128_v4, %v3616_v37  ;;  %v2849_v22 = vmul.f32 %v2490_v31, %v1722_v38  ;;  %v10184_v17 = vadd.f32 -1.0, %v805_v39  ;;  %5778 = vlog2.f32 %v805_v39 }
 0x2a6   : > { %v5771_v33 = vpop.eup %5770  ;;  %4640 = vst [vmem:[%s6575_s17 + $0x4b8] sm:$0xff] %v4384_v44  ;;  %v2492_v28 = vmul.f32 %v5769_v36, %v10072_v21  ;;  %v806_v26 = vadd.f32 1.0, %v10177_v42  ;;  %v807_v0 = vadd.f32 1.0, %v10180_v24  ;;  %vm3363_vm0 = vcmp.eq.f32.partialorder %v10104_v41, inf  ;;  %v10285_v44 = vld [vmem:[%s6401_s30 + $0x518] sm:$0xff] }
 0x2a7   : > { %v5773_v15 = vpop.eup %5772  ;;  %v3105_v40 = vsel %vm1313_vm3, %v10051_v49, %v2849_v22  ;;  %vm1317_vm2 = vcmp.eq.f32.partialorder %v10184_v17, 0.0  ;;  %v1726_v55 = vmul.f32 0.6931472, %v5771_v33  ;;  %v10214_v2 = vand.u32 2147483647, %v10198_v7 }
 0x2a8   : > { %v3617_v16 = vsel %vm3361_vm13, %v10051_v49, %v3105_v40  ;;  %v2850_v47 = vmul.f32 %v2492_v28, %v1724_v43  ;;  %v2085_v60 = vsel %vm1317_vm2, 1.0, %v10184_v17  ;;  %v10206_v9 = vadd.f32 -1.0, %v806_v26 }
 0x2a9   : > { %v4129_v27 = vsub.f32 0.0, %v3617_v16  ;;  %5780 = vrcp.f32 %v2085_v60  ;;  %v10208_v6 = vadd.f32 -1.0, %v807_v0  ;;  %v1728_v49 = vmul.f32 0.6931472, %v5773_v15 }
 0x2aa   : > { %v5775_v5 = vpop.eup %5774  ;;  %v3106_v58 = vsel %vm1314_vm4, %v10072_v21, %v2850_v47  ;;  %5782 = vlog2.f32 %v806_v26  ;;  %vm1318_vm5 = vcmp.eq.f32.partialorder %v10206_v9, 0.0  ;;  %vm3875_vm3 = vcmp.lt.f32.partialorder %v10085_v8, 0.0  ;;  %v10278_v8 = vld [vmem:[%s6401_s30 + $0x510] sm:$0xff] }
 0x2ab   : > { %v4385_v10 = vsel %vm3873_vm12, %v4129_v27, %v3617_v16  ;;  %v3618_v50 = vsel %vm3362_vm14, %v10072_v21, %v3106_v58  ;;  %v2494_v19 = vmul.f32 %v5775_v5, %v10104_v41  ;;  %v2086_v45 = vsel %vm1318_vm5, 1.0, %v10206_v9 }
 0x2ac   : > { %v5777_v14 = vpop.eup %5776  ;;  %4641 = vst [vmem:[%s6575_s17 + $0x4c0] sm:$0xff] %v4385_v10  ;;  %v4130_v48 = vsub.f32 0.0, %v3618_v50  ;;  %vm1319_vm1 = vcmp.eq.f32.partialorder %v10208_v6, 0.0  ;;  %5784 = vlog2.f32 %v807_v0  ;;  %v808_v63 = vadd.f32 1.0, %v10214_v2 }
 0x2ad   : > { %v2851_v29 = vmul.f32 %v2494_v19, %v1726_v55  ;;  %v2496_v21 = vmul.f32 %v5777_v14, %v10111_v13  ;;  %5786 = vrcp.f32 %v2086_v45  ;;  %v2087_v23 = vsel %vm1319_vm1, 1.0, %v10208_v6  ;;  %v10325_v45 = vld [vmem:[%s6401_s30 + $0x520] sm:$0xff] }
 0x2ae   : > { %v4386_v34 = vsel %vm3874_vm15, %v4130_v48, %v3618_v50  ;;  %5788 = vrcp.f32 %v2087_v23  ;;  %vm3364_vm6 = vcmp.eq.f32.partialorder %v10111_v13, inf  ;;  %v10245_v11 = vand.u32 2147483647, %v10229_v30 }
 0x2af   : > { %v5779_v35 = vpop.eup %5778  ;;  %4642 = vst [vmem:[%s6575_s17 + $0x4c8] sm:$0xff] %v4386_v34  ;;  %v3107_v57 = vsel %vm1315_vm9, %v10104_v41, %v2851_v29  ;;  %v2852_v56 = vmul.f32 %v2496_v21, %v1728_v49  ;;  %vm3876_vm4 = vcmp.lt.f32.partialorder %v10094_v59, 0.0  ;;  %v10254_v61 = vadd.f32 -1.0, %v808_v63 }
 0x2b0   : > { %v3619_v52 = vsel %vm3363_vm0, %v10104_v41, %v3107_v57  ;;  %5790 = vlog2.f32 %v808_v63  ;;  %vm3877_vm8 = vcmp.lt.f32.partialorder %v10138_v3, 0.0  ;;  %v809_v1 = vadd.f32 1.0, %v10245_v11 }
 0x2b1   : > { %v4131_v20 = vsub.f32 0.0, %v3619_v52  ;;  %v3108_v62 = vsel %vm1316_vm11, %v10111_v13, %v2852_v56  ;;  %v1730_v46 = vmul.f32 0.6931472, %v5779_v35  ;;  %vm1320_vm7 = vcmp.eq.f32.partialorder %v10254_v61, 0.0 }
 0x2b2   : > { %v3620_v38 = vsel %vm3364_vm6, %v10111_v13, %v3108_v62  ;;  %v10264_v41 = vand.u32 2147483647, %v10248_v12  ;;  %v2088_v37 = vsel %vm1320_vm7, 1.0, %v10254_v61  ;;  %v10271_v4 = vadd.f32 -1.0, %v809_v1  ;;  %v10347_v62 = vld [vmem:[%s6401_s30 + $0x528] sm:$0xff] }
 0x2b3   : > { %v5781_v53 = vpop.eup %5780  ;;  %v4387_v32 = vsel %vm3875_vm3, %v4131_v20, %v3619_v52  ;;  %v4132_v25 = vsub.f32 0.0, %v3620_v38  ;;  %vm3365_vm9 = vcmp.eq.f32.partialorder %v10161_v51, inf  ;;  %5792 = vrcp.f32 %v2088_v37 }
 0x2b4   : > { %v5783_v13 = vpop.eup %5782  ;;  %4643 = vst [vmem:[%s6575_s17 + $0x4d0] sm:$0xff] %v4387_v32  ;;  %v2498_v31 = vmul.f32 %v5781_v53, %v10161_v51  ;;  %v810_v39 = vadd.f32 1.0, %v10264_v41  ;;  %vm3878_vm10 = vcmp.lt.f32.partialorder %v10151_v54, 0.0  ;;  %vm1321_vm11 = vcmp.eq.f32.partialorder %v10271_v4, 0.0 }
 0x2b5   : > { %v4388_v43 = vsel %vm3876_vm4, %v4132_v25, %v3620_v38  ;;  %v1732_v36 = vmul.f32 0.6931472, %v5783_v13  ;;  %5794 = vlog2.f32 %v809_v1  ;;  %v2089_v28 = vsel %vm1321_vm11, 1.0, %v10271_v4  ;;  %v10368_v13 = vld [vmem:[%s6401_s30 + $0x530] sm:$0xff] }
 0x2b6   : > { %v5785_v22 = vpop.eup %5784  ;;  %4644 = vst [vmem:[%s6575_s17 + $0x4d8] sm:$0xff] %v4388_v43  ;;  %v2853_v33 = vmul.f32 %v2498_v31, %v1730_v46  ;;  %v10291_v26 = vadd.f32 -1.0, %v810_v39  ;;  %5796 = vlog2.f32 %v810_v39  ;;  %vm3879_vm12 = vcmp.lt.f32.partialorder %v10164_v18, 0.0 }
 0x2b7   : > { %v5787_v59 = vpop.eup %5786  ;;  %v1734_v0 = vmul.f32 0.6931472, %v5785_v22  ;;  %5798 = vrcp.f32 %v2089_v28  ;;  %v10295_v15 = vand.u32 2147483647, %v10278_v8  ;;  %v10303_v55 = vand.u32 2147483647, %v10285_v44 }
 0x2b8   : > { %v5789_v40 = vpop.eup %5788  ;;  %v3109_v16 = vsel %vm1317_vm2, %v10161_v51, %v2853_v33  ;;  %v2500_v47 = vmul.f32 %v5787_v59, %v10177_v42  ;;  %vm1322_vm13 = vcmp.eq.f32.partialorder %v10291_v26, 0.0  ;;  %vm3366_vm14 = vcmp.eq.f32.partialorder %v10177_v42, inf }
 0x2b9   : > { %v3621_v60 = vsel %vm3365_vm9, %v10161_v51, %v3109_v16  ;;  %v2502_v27 = vmul.f32 %v5789_v40, %v10180_v24  ;;  %v2090_v5 = vsel %vm1322_vm13, 1.0, %v10291_v26  ;;  %v811_v17 = vadd.f32 1.0, %v10295_v15 }
 0x2ba   : > { %v5791_v58 = vpop.eup %5790  ;;  %v4133_v49 = vsub.f32 0.0, %v3621_v60  ;;  %v2854_v10 = vmul.f32 %v2500_v47, %v1732_v36  ;;  %5800 = vrcp.f32 %v2090_v5  ;;  %vm3367_vm15 = vcmp.eq.f32.partialorder %v10180_v24, inf }
 0x2bb   : > { %v2855_v50 = vmul.f32 %v2502_v27, %v1734_v0  ;;  %v10315_v51 = vadd.f32 -1.0, %v811_v17  ;;  %5802 = vlog2.f32 %v811_v17  ;;  %vm3880_vm0 = vcmp.lt.f32.partialorder %v10198_v7, 0.0 }
 0x2bc   : > { %v4389_v19 = vsel %vm3877_vm8, %v4133_v49, %v3621_v60  ;;  %v3110_v14 = vsel %vm1318_vm5, %v10177_v42, %v2854_v10  ;;  %v812_v48 = vadd.f32 1.0, %v10303_v55  ;;  %v1736_v23 = vmul.f32 0.6931472, %v5791_v58 }
 0x2bd   : > { %4645 = vst [vmem:[%s6575_s17 + $0x4e0] sm:$0xff] %v4389_v19  ;;  %v3622_v29 = vsel %vm3366_vm14, %v10177_v42, %v3110_v14  ;;  %v3111_v21 = vsel %vm1319_vm1, %v10180_v24, %v2855_v50  ;;  %vm1323_vm2 = vcmp.eq.f32.partialorder %v10315_v51, 0.0  ;;  %v5793_v3 = vpop.eup %5792  ;;  %v10341_v56 = vand.u32 2147483647, %v10325_v45 }
 0x2be   : > { %v4134_v9 = vsub.f32 0.0, %v3622_v29  ;;  %v3623_v34 = vsel %vm3367_vm15, %v10180_v24, %v3111_v21  ;;  %v2091_v63 = vsel %vm1323_vm2, 1.0, %v10315_v51  ;;  %v10337_v35 = vadd.f32 -1.0, %v812_v48 }
 0x2bf   : > { %v5795_v42 = vpop.eup %5794  ;;  %v4135_v57 = vsub.f32 0.0, %v3623_v34  ;;  %v2504_v6 = vmul.f32 %v5793_v3, %v10214_v2  ;;  %5804 = vrcp.f32 %v2091_v63  ;;  %vm3368_vm1 = vcmp.eq.f32.partialorder %v10214_v2, inf  ;;  %v10425_v3 = vld [vmem:[%s6401_s30 + $0x540] sm:$0xff] }
 0x2c0   : > { %v5797_v52 = vpop.eup %5796  ;;  %v4390_v20 = vsel %vm3878_vm10, %v4134_v9, %v3622_v29  ;;  %v1738_v24 = vmul.f32 0.6931472, %v5795_v42  ;;  %vm1324_vm5 = vcmp.eq.f32.partialorder %v10337_v35, 0.0  ;;  %5806 = vlog2.f32 %v812_v48  ;;  %v10437_v42 = vld [vmem:[%s6401_s30 + $0x548] sm:$0xff] }
 0x2c1   : > { %v5799_v1 = vpop.eup %5798  ;;  %4646 = vst [vmem:[%s6575_s17 + $0x4e8] sm:$0xff] %v4390_v20  ;;  %v4391_v38 = vsel %vm3879_vm12, %v4135_v57, %v3623_v34  ;;  %v2856_v46 = vmul.f32 %v2504_v6, %v1736_v23  ;;  %v2092_v54 = vsel %vm1324_vm5, 1.0, %v10337_v35  ;;  %vm3881_vm3 = vcmp.lt.f32.partialorder %v10229_v30, 0.0 }
 0x2c2   : > { %4647 = vst [vmem:[%s6575_s17 + $0x4f0] sm:$0xff] %v4391_v38  ;;  %v2506_v53 = vmul.f32 %v5799_v1, %v10245_v11  ;;  %5808 = vrcp.f32 %v2092_v54  ;;  %v813_v32 = vadd.f32 1.0, %v10341_v56  ;;  %vm3369_vm6 = vcmp.eq.f32.partialorder %v10245_v11, inf }
 0x2c3   : > { %v3112_v18 = vsel %vm1320_vm7, %v10214_v2, %v2856_v46  ;;  %v1740_v25 = vmul.f32 0.6931472, %v5797_v52  ;;  %v10365_v37 = vand.u32 2147483647, %v10347_v62  ;;  %vm3370_vm4 = vcmp.eq.f32.partialorder %v10264_v41, inf }
 0x2c4   : > { %v5801_v31 = vpop.eup %5800  ;;  %v3624_v39 = vsel %vm3368_vm1, %v10214_v2, %v3112_v18  ;;  %v2857_v43 = vmul.f32 %v2506_v53, %v1738_v24  ;;  %v10371_v36 = vadd.f32 -1.0, %v813_v32  ;;  %5810 = vlog2.f32 %v813_v32 }
 0x2c5   : > { %v5803_v22 = vpop.eup %5802  ;;  %v4136_v33 = vsub.f32 0.0, %v3624_v39  ;;  %v2508_v61 = vmul.f32 %v5801_v31, %v10264_v41  ;;  %v814_v28 = vadd.f32 1.0, %v10365_v37  ;;  %v10381_v2 = vand.u32 2147483647, %v10368_v13 }
 0x2c6   : > { %v3113_v59 = vsel %vm1321_vm11, %v10245_v11, %v2857_v43  ;;  %v1742_v0 = vmul.f32 0.6931472, %v5803_v22  ;;  %vm1325_vm8 = vcmp.eq.f32.partialorder %v10371_v36, 0.0  ;;  %vm3882_vm7 = vcmp.lt.f32.partialorder %v10248_v12, 0.0 }
 0x2c7   : > { %v4392_v40 = vsel %vm3880_vm0, %v4136_v33, %v3624_v39  ;;  %v3625_v16 = vsel %vm3369_vm6, %v10245_v11, %v3113_v59  ;;  %v2858_v47 = vmul.f32 %v2508_v61, %v1740_v25  ;;  %v2093_v4 = vsel %vm1325_vm8, 1.0, %v10371_v36  ;;  %v10401_v11 = vld [vmem:[%s6401_s30 + $0x538] sm:$0xff]  ;;  %v10467_v25 = vld [vmem:[%s6401_s30 + $0x550] sm:$0xff] }
 0x2c8   : > { %4648 = vst [vmem:[%s6575_s17 + $0x4f8] sm:$0xff] %v4392_v40  ;;  %v4137_v60 = vsub.f32 0.0, %v3625_v16  ;;  %5812 = vrcp.f32 %v2093_v4  ;;  %v10392_v27 = vadd.f32 -1.0, %v814_v28  ;;  %v815_v5 = vadd.f32 1.0, %v10381_v2 }
 0x2c9   : > { %v5805_v17 = vpop.eup %5804  ;;  %v3114_v7 = vsel %vm1322_vm13, %v10264_v41, %v2858_v47  ;;  %vm3883_vm9 = vcmp.lt.f32.partialorder %v10278_v8, 0.0  ;;  %5814 = vlog2.f32 %v814_v28  ;;  %vm3371_vm11 = vcmp.eq.f32.partialorder %v10295_v15, inf }
 0x2ca   : > { %v5807_v58 = vpop.eup %5806  ;;  %v4393_v49 = vsel %vm3881_vm3, %v4137_v60, %v3625_v16  ;;  %v3626_v10 = vsel %vm3370_vm4, %v10264_v41, %v3114_v7  ;;  %v2510_v50 = vmul.f32 %v5805_v17, %v10295_v15  ;;  %vm1326_vm10 = vcmp.eq.f32.partialorder %v10392_v27, 0.0  ;;  %v10491_v16 = vld [vmem:[%s6401_s30 + $0x558] sm:$0xff] }
 0x2cb   : > { %4649 = vst [vmem:[%s6575_s17 + $0x500] sm:$0xff] %v4393_v49  ;;  %v4138_v26 = vsub.f32 0.0, %v3626_v10  ;;  %v1744_v19 = vmul.f32 0.6931472, %v5807_v58  ;;  %v2094_v14 = vsel %vm1326_vm10, 1.0, %v10392_v27  ;;  %v10414_v48 = vadd.f32 -1.0, %v815_v5 }
 0x2cc   : > { %v5809_v30 = vpop.eup %5808  ;;  %v2859_v29 = vmul.f32 %v2510_v50, %v1742_v0  ;;  %5816 = vrcp.f32 %v2094_v14  ;;  %v10418_v41 = vand.u32 2147483647, %v10401_v11  ;;  %vm3372_vm13 = vcmp.eq.f32.partialorder %v10303_v55, inf  ;;  %v10522_v27 = vld [vmem:[%s6401_s30 + $0x560] sm:$0xff] }
 0x2cd   : > { %v4394_v21 = vsel %vm3882_vm7, %v4138_v26, %v3626_v10  ;;  %v2512_v23 = vmul.f32 %v5809_v30, %v10303_v55  ;;  %vm1327_vm12 = vcmp.eq.f32.partialorder %v10414_v48, 0.0  ;;  %5818 = vlog2.f32 %v815_v5 }
 0x2ce   : > { %v5811_v9 = vpop.eup %5810  ;;  %4650 = vst [vmem:[%s6575_s17 + $0x508] sm:$0xff] %v4394_v21  ;;  %v3115_v34 = vsel %vm1323_vm2, %v10295_v15, %v2859_v29  ;;  %v2095_v12 = vsel %vm1327_vm12, 1.0, %v10414_v48  ;;  %v816_v63 = vadd.f32 1.0, %v10418_v41  ;;  %vm3884_vm14 = vcmp.lt.f32.partialorder %v10285_v44, 0.0 }
 0x2cf   : > { %v3627_v57 = vsel %vm3371_vm11, %v10295_v15, %v3115_v34  ;;  %v2860_v6 = vmul.f32 %v2512_v23, %v1744_v19  ;;  %5820 = vrcp.f32 %v2095_v12  ;;  %v10444_v20 = vand.u32 2147483647, %v10425_v3 }
 0x2d0   : > { %v4139_v52 = vsub.f32 0.0, %v3627_v57  ;;  %v10441_v51 = vadd.f32 -1.0, %v816_v63  ;;  %5822 = vlog2.f32 %v816_v63  ;;  %v1746_v1 = vmul.f32 0.6931472, %v5811_v9 }
 0x2d1   : > { %v3116_v24 = vsel %vm1324_vm5, %v10303_v55, %v2860_v6  ;;  %vm3373_vm15 = vcmp.eq.f32.partialorder %v10341_v56, inf  ;;  %v10451_v15 = vand.u32 2147483647, %v10437_v42  ;;  %v817_v35 = vadd.f32 1.0, %v10444_v20 }
 0x2d2   : > { %v5813_v38 = vpop.eup %5812  ;;  %v4395_v46 = vsel %vm3883_vm9, %v4139_v52, %v3627_v57  ;;  %v3628_v54 = vsel %vm3372_vm13, %v10303_v55, %v3116_v24  ;;  %vm1328_vm0 = vcmp.eq.f32.partialorder %v10441_v51, 0.0  ;;  %vm3885_vm2 = vcmp.lt.f32.partialorder %v10325_v45, 0.0 }
 0x2d3   : > { %v5815_v53 = vpop.eup %5814  ;;  %4651 = vst [vmem:[%s6575_s17 + $0x510] sm:$0xff] %v4395_v46  ;;  %v4140_v32 = vsub.f32 0.0, %v3628_v54  ;;  %v2514_v18 = vmul.f32 %v5813_v38, %v10341_v56  ;;  %v2096_v8 = vsel %vm1328_vm0, 1.0, %v10441_v51  ;;  %vm3886_vm5 = vcmp.lt.f32.partialorder %v10347_v62, 0.0  ;;  %v10545_v62 = vld [vmem:[%s6401_s30 + $0x568] sm:$0xff]  ;;  %v10552_v38 = vld [vmem:[%s6401_s30 + $0x570] sm:$0xff] }
 0x2d4   : > { %5824 = vrcp.f32 %v2096_v8  ;;  %v10470_v55 = vadd.f32 -1.0, %v817_v35  ;;  %v818_v31 = vadd.f32 1.0, %v10451_v15  ;;  %v1748_v22 = vmul.f32 0.6931472, %v5815_v53 }
 0x2d5   : > { %v4396_v39 = vsel %vm3884_vm14, %v4140_v32, %v3628_v54  ;;  %v2861_v43 = vmul.f32 %v2514_v18, %v1746_v1  ;;  %5826 = vlog2.f32 %v817_v35  ;;  %v10480_v28 = vand.u32 2147483647, %v10467_v25 }
 0x2d6   : > { %v5817_v33 = vpop.eup %5816  ;;  %4652 = vst [vmem:[%s6575_s17 + $0x518] sm:$0xff] %v4396_v39  ;;  %vm1329_vm1 = vcmp.eq.f32.partialorder %v10470_v55, 0.0  ;;  %v10477_v61 = vadd.f32 -1.0, %v818_v31  ;;  %5828 = vlog2.f32 %v818_v31  ;;  %vm3374_vm3 = vcmp.eq.f32.partialorder %v10365_v37, inf }
 0x2d7   : > { %v5819_v59 = vpop.eup %5818  ;;  %v3117_v44 = vsel %vm1325_vm8, %v10341_v56, %v2861_v43  ;;  %v2516_v0 = vmul.f32 %v5817_v33, %v10365_v37  ;;  %v2097_v40 = vsel %vm1329_vm1, 1.0, %v10470_v55  ;;  %v819_v7 = vadd.f32 1.0, %v10480_v28 }
 0x2d8   : > { %v3629_v47 = vsel %vm3373_vm15, %v10341_v56, %v3117_v44  ;;  %v1750_v4 = vmul.f32 0.6931472, %v5819_v59  ;;  %5830 = vrcp.f32 %v2097_v40  ;;  %vm1330_vm6 = vcmp.eq.f32.partialorder %v10477_v61, 0.0 }
 0x2d9   : > { %v5821_v36 = vpop.eup %5820  ;;  %v4141_v60 = vsub.f32 0.0, %v3629_v47  ;;  %v2862_v5 = vmul.f32 %v2516_v0, %v1748_v22  ;;  %v2098_v17 = vsel %vm1330_vm6, 1.0, %v10477_v61  ;;  %vm3375_vm4 = vcmp.eq.f32.partialorder %v10381_v2, inf }
 0x2da   : > { %v5823_v58 = vpop.eup %5822  ;;  %v2518_v49 = vmul.f32 %v5821_v36, %v10381_v2  ;;  %5832 = vrcp.f32 %v2098_v17  ;;  %v10504_v56 = vand.u32 2147483647, %v10491_v16  ;;  %vm3887_vm8 = vcmp.lt.f32.partialorder %v10368_v13, 0.0 }
 0x2db   : > { %v4397_v10 = vsel %vm3885_vm2, %v4141_v60, %v3629_v47  ;;  %v3118_v50 = vsel %vm1326_vm10, %v10365_v37, %v2862_v5  ;;  %v10512_v26 = vadd.f32 -1.0, %v819_v7  ;;  %5834 = vlog2.f32 %v819_v7 }
 0x2dc   : > { %4653 = vst [vmem:[%s6575_s17 + $0x520] sm:$0xff] %v4397_v10  ;;  %v3630_v19 = vsel %vm3374_vm3, %v10365_v37, %v3118_v50  ;;  %v2863_v14 = vmul.f32 %v2518_v49, %v1750_v4  ;;  %v820_v30 = vadd.f32 1.0, %v10504_v56  ;;  %v1752_v45 = vmul.f32 0.6931472, %v5823_v58  ;;  %v10605_v50 = vld [vmem:[%s6401_s30 + $0x578] sm:$0xff] }
 0x2dd   : > { %v4142_v29 = vsub.f32 0.0, %v3630_v19  ;;  %vm3888_vm7 = vcmp.lt.f32.partialorder %v10401_v11, 0.0  ;;  %vm1331_vm9 = vcmp.eq.f32.partialorder %v10512_v26, 0.0  ;;  %vm3376_vm10 = vcmp.eq.f32.partialorder %v10418_v41, inf }
 0x2de   : > { %v5825_v21 = vpop.eup %5824  ;;  %v3119_v23 = vsel %vm1327_vm12, %v10381_v2, %v2863_v14  ;;  %v2099_v37 = vsel %vm1331_vm9, 1.0, %v10512_v26  ;;  %v10530_v9 = vadd.f32 -1.0, %v820_v30  ;;  %5836 = vlog2.f32 %v820_v30  ;;  %v10613_v30 = vld [vmem:[%s6401_s30 + $0x580] sm:$0xff] }
 0x2df   : > { %v5827_v34 = vpop.eup %5826  ;;  %v4398_v12 = vsel %vm3886_vm5, %v4142_v29, %v3630_v19  ;;  %v3631_v63 = vsel %vm3375_vm4, %v10381_v2, %v3119_v23  ;;  %v2520_v48 = vmul.f32 %v5825_v21, %v10418_v41  ;;  %5838 = vrcp.f32 %v2099_v37 }
 0x2e0   : > { %v5829_v57 = vpop.eup %5828  ;;  %4654 = vst [vmem:[%s6575_s17 + $0x528] sm:$0xff] %v4398_v12  ;;  %v4143_v6 = vsub.f32 0.0, %v3631_v63  ;;  %vm1332_vm11 = vcmp.eq.f32.partialorder %v10530_v9, 0.0  ;;  %v10542_v52 = vand.u32 2147483647, %v10522_v27  ;;  %vm3889_vm12 = vcmp.lt.f32.partialorder %v10425_v3, 0.0 }
 0x2e1   : > { %v2864_v24 = vmul.f32 %v2520_v48, %v1752_v45  ;;  %v1754_v1 = vmul.f32 0.6931472, %v5827_v34  ;;  %v2100_v2 = vsel %vm1332_vm11, 1.0, %v10530_v9  ;;  %vm3377_vm13 = vcmp.eq.f32.partialorder %v10444_v20, inf }
 0x2e2   : > { %v5831_v46 = vpop.eup %5830  ;;  %v4399_v54 = vsel %vm3887_vm8, %v4143_v6, %v3631_v63  ;;  %5840 = vrcp.f32 %v2100_v2  ;;  %v821_v35 = vadd.f32 1.0, %v10542_v52  ;;  %v1756_v18 = vmul.f32 0.6931472, %v5829_v57  ;;  %v10641_v6 = vld [vmem:[%s6401_s30 + $0x588] sm:$0xff] }
 0x2e3   : > { %4655 = vst [vmem:[%s6575_s17 + $0x530] sm:$0xff] %v4399_v54  ;;  %v3120_v53 = vsel %vm1328_vm0, %v10418_v41, %v2864_v24  ;;  %v2522_v32 = vmul.f32 %v5831_v46, %v10444_v20  ;;  %v10564_v8 = vand.u32 2147483647, %v10545_v62  ;;  %v10572_v43 = vand.u32 2147483647, %v10552_v38 }
 0x2e4   : > { %v5833_v31 = vpop.eup %5832  ;;  %v3632_v13 = vsel %vm3376_vm10, %v10418_v41, %v3120_v53  ;;  %v10569_v39 = vadd.f32 -1.0, %v821_v35  ;;  %5842 = vlog2.f32 %v821_v35  ;;  %vm3378_vm14 = vcmp.eq.f32.partialorder %v10451_v15, inf }
 0x2e5   : > { %v4144_v51 = vsub.f32 0.0, %v3632_v13  ;;  %v2865_v22 = vmul.f32 %v2522_v32, %v1754_v1  ;;  %v2524_v33 = vmul.f32 %v5833_v31, %v10451_v15  ;;  %v822_v59 = vadd.f32 1.0, %v10564_v8  ;;  %v5835_v44 = vpop.eup %5834  ;;  %v10665_v31 = vld [vmem:[%s6401_s30 + $0x590] sm:$0xff] }
 0x2e6   : > { %vm3890_vm15 = vcmp.lt.f32.partialorder %v10437_v42, 0.0  ;;  %vm1333_vm0 = vcmp.eq.f32.partialorder %v10569_v39, 0.0  ;;  %v823_v41 = vadd.f32 1.0, %v10572_v43  ;;  %v1758_v4 = vmul.f32 0.6931472, %v5835_v44 }
 0x2e7   : > { %v4400_v0 = vsel %vm3888_vm7, %v4144_v51, %v3632_v13  ;;  %v3121_v40 = vsel %vm1329_vm1, %v10444_v20, %v2865_v22  ;;  %v2866_v47 = vmul.f32 %v2524_v33, %v1756_v18  ;;  %v2101_v5 = vsel %vm1333_vm0, 1.0, %v10569_v39 }
 0x2e8   : > { %v5837_v36 = vpop.eup %5836  ;;  %4656 = vst [vmem:[%s6575_s17 + $0x538] sm:$0xff] %v4400_v0  ;;  %v3633_v60 = vsel %vm3377_vm13, %v10444_v20, %v3121_v40  ;;  %v10592_v17 = vadd.f32 -1.0, %v822_v59  ;;  %5844 = vlog2.f32 %v822_v59  ;;  %v10602_v10 = vadd.f32 -1.0, %v823_v41  ;;  %v10674_v59 = vld [vmem:[%s6401_s30 + $0x598] sm:$0xff] }
 0x2e9   : > { %v5839_v11 = vpop.eup %5838  ;;  %v4145_v55 = vsub.f32 0.0, %v3633_v60  ;;  %v3122_v7 = vsel %vm1330_vm6, %v10451_v15, %v2866_v47  ;;  %v1760_v58 = vmul.f32 0.6931472, %v5837_v36  ;;  %5846 = vrcp.f32 %v2101_v5 }
 0x2ea   : > { %v3634_v20 = vsel %vm3378_vm14, %v10451_v15, %v3122_v7  ;;  %v2526_v49 = vmul.f32 %v5839_v11, %v10480_v28  ;;  %vm1334_vm2 = vcmp.eq.f32.partialorder %v10592_v17, 0.0  ;;  %5848 = vlog2.f32 %v823_v41 }
 0x2eb   : > { %v4401_v19 = vsel %vm3889_vm12, %v4145_v55, %v3633_v60  ;;  %v4146_v61 = vsub.f32 0.0, %v3634_v20  ;;  %v2102_v14 = vsel %vm1334_vm2, 1.0, %v10592_v17  ;;  %vm3379_vm5 = vcmp.eq.f32.partialorder %v10480_v28, inf }
 0x2ec   : > { %v5841_v15 = vpop.eup %5840  ;;  %4657 = vst [vmem:[%s6575_s17 + $0x540] sm:$0xff] %v4401_v19  ;;  %v2867_v29 = vmul.f32 %v2526_v49, %v1758_v4  ;;  %5850 = vrcp.f32 %v2102_v14  ;;  %vm1335_vm1 = vcmp.eq.f32.partialorder %v10602_v10, 0.0  ;;  %v10625_v23 = vand.u32 2147483647, %v10605_v50 }
 0x2ed   : > { %v4402_v3 = vsel %vm3890_vm15, %v4146_v61, %v3634_v20  ;;  %v2528_v45 = vmul.f32 %v5841_v15, %v10504_v56  ;;  %v2103_v21 = vsel %vm1335_vm1, 1.0, %v10602_v10  ;;  %vm3891_vm3 = vcmp.lt.f32.partialorder %v10467_v25, 0.0 }
 0x2ee   : > { %v5843_v37 = vpop.eup %5842  ;;  %4658 = vst [vmem:[%s6575_s17 + $0x548] sm:$0xff] %v4402_v3  ;;  %v3123_v34 = vsel %vm1331_vm9, %v10480_v28, %v2867_v29  ;;  %5852 = vrcp.f32 %v2103_v21  ;;  %v10633_v42 = vand.u32 2147483647, %v10613_v30  ;;  %vm3380_vm6 = vcmp.eq.f32.partialorder %v10504_v56, inf  ;;  %v10717_v21 = vld [vmem:[%s6401_s30 + $0x5a0] sm:$0xff] }
 0x2ef   : > { %v3635_v12 = vsel %vm3379_vm5, %v10480_v28, %v3123_v34  ;;  %v2868_v63 = vmul.f32 %v2528_v45, %v1760_v58  ;;  %v824_v48 = vadd.f32 1.0, %v10625_v23  ;;  %vm3892_vm4 = vcmp.lt.f32.partialorder %v10491_v16, 0.0 }
 0x2f0   : > { %v4147_v57 = vsub.f32 0.0, %v3635_v12  ;;  %v825_v26 = vadd.f32 1.0, %v10633_v42  ;;  %v1762_v1 = vmul.f32 0.6931472, %v5843_v37  ;;  %vm3893_vm8 = vcmp.lt.f32.partialorder %v10522_v27, 0.0 }
 0x2f1   : > { %v3124_v24 = vsel %vm1332_vm11, %v10504_v56, %v2868_v63  ;;  %v10646_v2 = vadd.f32 -1.0, %v824_v48  ;;  %5854 = vlog2.f32 %v824_v48  ;;  %v10657_v9 = vand.u32 2147483647, %v10641_v6 }
 0x2f2   : > { %v5845_v28 = vpop.eup %5844  ;;  %v4403_v46 = vsel %vm3891_vm3, %v4147_v57, %v3635_v12  ;;  %v3636_v54 = vsel %vm3380_vm6, %v10504_v56, %v3124_v24  ;;  %v10651_v35 = vadd.f32 -1.0, %v825_v26  ;;  %5856 = vlog2.f32 %v825_v26 }
 0x2f3   : > { %v5847_v53 = vpop.eup %5846  ;;  %4659 = vst [vmem:[%s6575_s17 + $0x550] sm:$0xff] %v4403_v46  ;;  %v4148_v32 = vsub.f32 0.0, %v3636_v54  ;;  %vm1336_vm7 = vcmp.eq.f32.partialorder %v10646_v2, 0.0  ;;  %v1764_v18 = vmul.f32 0.6931472, %v5845_v28  ;;  %v826_v33 = vadd.f32 1.0, %v10657_v9 }
 0x2f4   : > { %v2530_v25 = vmul.f32 %v5847_v53, %v10542_v52  ;;  %v2104_v56 = vsel %vm1336_vm7, 1.0, %v10646_v2  ;;  %vm1337_vm9 = vcmp.eq.f32.partialorder %v10651_v35, 0.0  ;;  %v5849_v13 = vpop.eup %5848  ;;  %vm3381_vm10 = vcmp.eq.f32.partialorder %v10542_v52, inf  ;;  %v10750_v53 = vld [vmem:[%s6401_s30 + $0x5b0] sm:$0xff] }
 0x2f5   : > { %v4404_v51 = vsel %vm3892_vm4, %v4148_v32, %v3636_v54  ;;  %5858 = vrcp.f32 %v2104_v56  ;;  %v2105_v22 = vsel %vm1337_vm9, 1.0, %v10651_v35  ;;  %v1766_v0 = vmul.f32 0.6931472, %v5849_v13 }
 0x2f6   : > { %v5851_v44 = vpop.eup %5850  ;;  %4660 = vst [vmem:[%s6575_s17 + $0x558] sm:$0xff] %v4404_v51  ;;  %v2869_v41 = vmul.f32 %v2530_v25, %v1762_v1  ;;  %5860 = vrcp.f32 %v2105_v22  ;;  %v10679_v16 = vadd.f32 -1.0, %v826_v33  ;;  %v10682_v47 = vand.u32 2147483647, %v10665_v31 }
 0x2f7   : > { %v2532_v40 = vmul.f32 %v5851_v44, %v10564_v8  ;;  %5862 = vlog2.f32 %v826_v33  ;;  %vm3382_vm11 = vcmp.eq.f32.partialorder %v10564_v8, inf  ;;  %vm3894_vm12 = vcmp.lt.f32.partialorder %v10545_v62, 0.0  ;;  %v10737_v62 = vld [vmem:[%s6401_s30 + $0x5a8] sm:$0xff] }
 0x2f8   : > { %v5853_v4 = vpop.eup %5852  ;;  %v3125_v36 = vsel %vm1333_vm0, %v10542_v52, %v2869_v41  ;;  %v10690_v60 = vand.u32 2147483647, %v10674_v59  ;;  %vm1338_vm13 = vcmp.eq.f32.partialorder %v10679_v16, 0.0  ;;  %vm3383_vm14 = vcmp.eq.f32.partialorder %v10572_v43, inf }
 0x2f9   : > { %v3637_v5 = vsel %vm3381_vm10, %v10542_v52, %v3125_v36  ;;  %v2870_v11 = vmul.f32 %v2532_v40, %v1764_v18  ;;  %v2534_v55 = vmul.f32 %v5853_v4, %v10572_v43  ;;  %v2106_v39 = vsel %vm1338_vm13, 1.0, %v10679_v16 }
 0x2fa   : > { %v4149_v7 = vsub.f32 0.0, %v3637_v5  ;;  %v827_v58 = vadd.f32 1.0, %v10682_v47  ;;  %5864 = vrcp.f32 %v2106_v39  ;;  %v828_v19 = vadd.f32 1.0, %v10690_v60  ;;  %v10787_v39 = vld [vmem:[%s6401_s30 + $0x5b8] sm:$0xff] }
 0x2fb   : > { %v5855_v20 = vpop.eup %5854  ;;  %v3126_v52 = vsel %vm1334_vm2, %v10564_v8, %v2870_v11  ;;  %v2871_v49 = vmul.f32 %v2534_v55, %v1766_v0  ;;  %vm3895_vm15 = vcmp.lt.f32.partialorder %v10552_v38, 0.0  ;;  %v10734_v57 = vand.u32 2147483647, %v10717_v21 }
 0x2fc   : > { %v5857_v61 = vpop.eup %5856  ;;  %v4405_v14 = vsel %vm3893_vm8, %v4149_v7, %v3637_v5  ;;  %v3638_v15 = vsel %vm3382_vm11, %v10564_v8, %v3126_v52  ;;  %v10710_v29 = vadd.f32 -1.0, %v827_v58  ;;  %v1768_v45 = vmul.f32 0.6931472, %v5855_v20  ;;  %v10798_v52 = vld [vmem:[%s6401_s30 + $0x5c0] sm:$0xff] }
 0x2fd   : > { %4661 = vst [vmem:[%s6575_s17 + $0x560] sm:$0xff] %v4405_v14  ;;  %v4150_v17 = vsub.f32 0.0, %v3638_v15  ;;  %v3127_v3 = vsel %vm1335_vm1, %v10572_v43, %v2871_v49  ;;  %5866 = vlog2.f32 %v827_v58  ;;  %v10723_v8 = vadd.f32 -1.0, %v828_v19 }
 0x2fe   : > { %v3639_v27 = vsel %vm3383_vm14, %v10572_v43, %v3127_v3  ;;  %vm1339_vm0 = vcmp.eq.f32.partialorder %v10710_v29, 0.0  ;;  %5868 = vlog2.f32 %v828_v19  ;;  %v1770_v12 = vmul.f32 0.6931472, %v5857_v61 }
 0x2ff   : > { %v5859_v37 = vpop.eup %5858  ;;  %v4406_v34 = vsel %vm3894_vm12, %v4150_v17, %v3638_v15  ;;  %v4151_v10 = vsub.f32 0.0, %v3639_v27  ;;  %v2107_v63 = vsel %vm1339_vm0, 1.0, %v10710_v29  ;;  %vm1340_vm2 = vcmp.eq.f32.partialorder %v10723_v8, 0.0 }
 0x300   : > { %v5861_v48 = vpop.eup %5860  ;;  %4662 = vst [vmem:[%s6575_s17 + $0x568] sm:$0xff] %v4406_v34  ;;  %v2536_v43 = vmul.f32 %v5859_v37, %v10625_v23  ;;  %5870 = vrcp.f32 %v2107_v63  ;;  %vm3896_vm5 = vcmp.lt.f32.partialorder %v10605_v50, 0.0  ;;  %v2108_v28 = vsel %vm1340_vm2, 1.0, %v10723_v8 }
 0x301   : > { %v5863_v26 = vpop.eup %5862  ;;  %v4407_v24 = vsel %vm3895_vm15, %v4151_v10, %v3639_v27  ;;  %v2538_v1 = vmul.f32 %v5861_v48, %v10633_v42  ;;  %vm3384_vm1 = vcmp.eq.f32.partialorder %v10625_v23, inf  ;;  %5872 = vrcp.f32 %v2108_v28 }
 0x302   : > { %4663 = vst [vmem:[%s6575_s17 + $0x570] sm:$0xff] %v4407_v24  ;;  %v2872_v46 = vmul.f32 %v2536_v43, %v1768_v45  ;;  %v829_v54 = vadd.f32 1.0, %v10734_v57  ;;  %vm3385_vm3 = vcmp.eq.f32.partialorder %v10633_v42, inf  ;;  %vm3897_vm6 = vcmp.lt.f32.partialorder %v10613_v30, 0.0 }
 0x303   : > { %v2873_v32 = vmul.f32 %v2538_v1, %v1770_v12  ;;  %v10755_v38 = vand.u32 2147483647, %v10737_v62  ;;  %v1772_v18 = vmul.f32 0.6931472, %v5863_v26  ;;  %v10768_v44 = vand.u32 2147483647, %v10750_v53 }
 0x304   : > { %v3128_v25 = vsel %vm1336_vm7, %v10625_v23, %v2872_v46  ;;  %v10760_v56 = vadd.f32 -1.0, %v829_v54  ;;  %5874 = vlog2.f32 %v829_v54  ;;  %v5865_v13 = vpop.eup %5864  ;;  %vm3386_vm8 = vcmp.eq.f32.partialorder %v10657_v9, inf  ;;  %v10836_v1 = vld [vmem:[%s6401_s30 + $0x5c8] sm:$0xff] }
 0x305   : > { %v3640_v51 = vsel %vm3384_vm1, %v10625_v23, %v3128_v25  ;;  %v3129_v22 = vsel %vm1337_vm9, %v10633_v42, %v2873_v32  ;;  %v830_v33 = vadd.f32 1.0, %v10755_v38  ;;  %v2540_v0 = vmul.f32 %v5865_v13, %v10657_v9  ;;  %v10855_v13 = vld [vmem:[%s6401_s30 + $0x5d0] sm:$0xff] }
 0x306   : > { %v4152_v41 = vsub.f32 0.0, %v3640_v51  ;;  %v3641_v2 = vsel %vm3385_vm3, %v10633_v42, %v3129_v22  ;;  %vm1341_vm4 = vcmp.eq.f32.partialorder %v10760_v56, 0.0  ;;  %v831_v7 = vadd.f32 1.0, %v10768_v44 }
 0x307   : > { %v5867_v40 = vpop.eup %5866  ;;  %v4153_v23 = vsub.f32 0.0, %v3641_v2  ;;  %v2109_v35 = vsel %vm1341_vm4, 1.0, %v10760_v56  ;;  %v10776_v4 = vadd.f32 -1.0, %v830_v33  ;;  %5876 = vlog2.f32 %v830_v33 }
 0x308   : > { %v5869_v36 = vpop.eup %5868  ;;  %v4408_v5 = vsel %vm3896_vm5, %v4152_v41, %v3640_v51  ;;  %v2874_v42 = vmul.f32 %v2540_v0, %v1772_v18  ;;  %5878 = vrcp.f32 %v2109_v35  ;;  %v1774_v55 = vmul.f32 0.6931472, %v5867_v40  ;;  %v10867_v40 = vld [vmem:[%s6401_s30 + $0x5d8] sm:$0xff] }
 0x309   : > { %4664 = vst [vmem:[%s6575_s17 + $0x578] sm:$0xff] %v4408_v5  ;;  %v4409_v11 = vsel %vm3897_vm6, %v4153_v23, %v3641_v2  ;;  %vm1342_vm7 = vcmp.eq.f32.partialorder %v10776_v4, 0.0  ;;  %vm3898_vm9 = vcmp.lt.f32.partialorder %v10641_v6, 0.0  ;;  %v1776_v20 = vmul.f32 0.6931472, %v5869_v36 }
 0x30a   : > { %v5871_v58 = vpop.eup %5870  ;;  %4665 = vst [vmem:[%s6575_s17 + $0x580] sm:$0xff] %v4409_v11  ;;  %v3130_v50 = vsel %vm1338_vm13, %v10657_v9, %v2874_v42  ;;  %v2110_v30 = vsel %vm1342_vm7, 1.0, %v10776_v4  ;;  %v10802_v61 = vadd.f32 -1.0, %v831_v7  ;;  %vm3387_vm10 = vcmp.eq.f32.partialorder %v10682_v47, inf }
 0x30b   : > { %v3642_v49 = vsel %vm3386_vm8, %v10657_v9, %v3130_v50  ;;  %v2542_v19 = vmul.f32 %v5871_v58, %v10682_v47  ;;  %5880 = vrcp.f32 %v2110_v30  ;;  %v5873_v14 = vpop.eup %5872  ;;  %v10806_v15 = vand.u32 2147483647, %v10787_v39 }
 0x30c   : > { %v4154_v16 = vsub.f32 0.0, %v3642_v49  ;;  %5882 = vlog2.f32 %v831_v7  ;;  %v2544_v3 = vmul.f32 %v5873_v14, %v10690_v60  ;;  %vm1343_vm11 = vcmp.eq.f32.partialorder %v10802_v61, 0.0 }
 0x30d   : > { %v2875_v17 = vmul.f32 %v2542_v19, %v1774_v55  ;;  %v10811_v9 = vand.u32 2147483647, %v10798_v52  ;;  %vm3899_vm12 = vcmp.lt.f32.partialorder %v10665_v31, 0.0  ;;  %v2111_v37 = vsel %vm1343_vm11, 1.0, %v10802_v61 }
 0x30e   : > { %v5875_v45 = vpop.eup %5874  ;;  %v4410_v27 = vsel %vm3898_vm9, %v4154_v16, %v3642_v49  ;;  %v832_v34 = vadd.f32 1.0, %v10806_v15  ;;  %v2876_v12 = vmul.f32 %v2544_v3, %v1776_v20  ;;  %vm3388_vm13 = vcmp.eq.f32.partialorder %v10690_v60, inf  ;;  %v10893_v20 = vld [vmem:[%s6401_s30 + $0x5e0] sm:$0xff] }
 0x30f   : > { %4666 = vst [vmem:[%s6575_s17 + $0x588] sm:$0xff] %v4410_v27  ;;  %v3131_v10 = vsel %vm1339_vm0, %v10682_v47, %v2875_v17  ;;  %5884 = vrcp.f32 %v2111_v37  ;;  %v833_v48 = vadd.f32 1.0, %v10811_v9  ;;  %vm3900_vm14 = vcmp.lt.f32.partialorder %v10674_v59, 0.0 }
 0x310   : > { %v3643_v6 = vsel %vm3387_vm10, %v10682_v47, %v3131_v10  ;;  %v10828_v63 = vadd.f32 -1.0, %v832_v34  ;;  %5886 = vlog2.f32 %v832_v34  ;;  %v3132_v29 = vsel %vm1340_vm2, %v10690_v60, %v2876_v12 }
 0x311   : > { %v5877_v43 = vpop.eup %5876  ;;  %v4155_v26 = vsub.f32 0.0, %v3643_v6  ;;  %v1778_v24 = vmul.f32 0.6931472, %v5875_v45  ;;  %v3644_v47 = vsel %vm3388_vm13, %v10690_v60, %v3132_v29  ;;  %vm3389_vm15 = vcmp.eq.f32.partialorder %v10734_v57, inf }
 0x312   : > { %v5879_v28 = vpop.eup %5878  ;;  %vm1344_vm0 = vcmp.eq.f32.partialorder %v10828_v63, 0.0  ;;  %v10841_v46 = vadd.f32 -1.0, %v833_v48  ;;  %v4156_v8 = vsub.f32 0.0, %v3644_v47  ;;  %v1780_v18 = vmul.f32 0.6931472, %v5877_v43 }
 0x313   : > { %v4411_v54 = vsel %vm3899_vm12, %v4155_v26, %v3643_v6  ;;  %v2546_v32 = vmul.f32 %v5879_v28, %v10734_v57  ;;  %v2112_v25 = vsel %vm1344_vm0, 1.0, %v10828_v63  ;;  %v10852_v60 = vand.u32 2147483647, %v10836_v1 }
 0x314   : > { %4667 = vst [vmem:[%s6575_s17 + $0x590] sm:$0xff] %v4411_v54  ;;  %5888 = vrcp.f32 %v2112_v25  ;;  %vm1345_vm2 = vcmp.eq.f32.partialorder %v10841_v46, 0.0  ;;  %v4412_v51 = vsel %vm3900_vm14, %v4156_v8, %v3644_v47  ;;  %vm3901_vm5 = vcmp.lt.f32.partialorder %v10717_v21, 0.0 }
 0x315   : > { %v5881_v31 = vpop.eup %5880  ;;  %v2877_v22 = vmul.f32 %v2546_v32, %v1778_v24  ;;  %5890 = vlog2.f32 %v833_v48  ;;  %v2113_v33 = vsel %vm1345_vm2, 1.0, %v10841_v46  ;;  %4668 = vst [vmem:[%s6575_s17 + $0x598] sm:$0xff] %v4412_v51  ;;  %v834_v0 = vadd.f32 1.0, %v10852_v60 }
 0x316   : > { %v5883_v41 = vpop.eup %5882  ;;  %v2548_v2 = vmul.f32 %v5881_v31, %v10755_v38  ;;  %5892 = vrcp.f32 %v2113_v33  ;;  %vm3390_vm1 = vcmp.eq.f32.partialorder %v10755_v38, inf  ;;  %v10874_v35 = vand.u32 2147483647, %v10855_v13 }
 0x317   : > { %v3133_v59 = vsel %vm1341_vm4, %v10734_v57, %v2877_v22  ;;  %v1782_v23 = vmul.f32 0.6931472, %v5883_v41  ;;  %v10879_v42 = vadd.f32 -1.0, %v834_v0  ;;  %5894 = vlog2.f32 %v834_v0 }
 0x318   : > { %v3645_v36 = vsel %vm3389_vm15, %v10734_v57, %v3133_v59  ;;  %v2878_v5 = vmul.f32 %v2548_v2, %v1780_v18  ;;  %vm3902_vm3 = vcmp.lt.f32.partialorder %v10737_v62, 0.0  ;;  %v835_v56 = vadd.f32 1.0, %v10874_v35  ;;  %v10956_v18 = vld [vmem:[%s6401_s30 + $0x5f0] sm:$0xff] }
 0x319   : > { %v5885_v11 = vpop.eup %5884  ;;  %v4157_v55 = vsub.f32 0.0, %v3645_v36  ;;  %v10884_v7 = vand.u32 2147483647, %v10867_v40  ;;  %vm3391_vm6 = vcmp.eq.f32.partialorder %v10768_v44, inf  ;;  %vm1346_vm4 = vcmp.eq.f32.partialorder %v10879_v42, 0.0 }
 0x31a   : > { %v5887_v58 = vpop.eup %5886  ;;  %v3134_v50 = vsel %vm1342_vm7, %v10755_v38, %v2878_v5  ;;  %v2550_v57 = vmul.f32 %v5885_v11, %v10768_v44  ;;  %vm3903_vm8 = vcmp.lt.f32.partialorder %v10750_v53, 0.0  ;;  %v2114_v4 = vsel %vm1346_vm4, 1.0, %v10879_v42 }
 0x31b   : > { %v4413_v30 = vsel %vm3901_vm5, %v4157_v55, %v3645_v36  ;;  %v3646_v49 = vsel %vm3390_vm1, %v10755_v38, %v3134_v50  ;;  %vm3904_vm7 = vcmp.lt.f32.partialorder %v10787_v39, 0.0  ;;  %5896 = vrcp.f32 %v2114_v4  ;;  %v10974_v36 = vld [vmem:[%s6401_s30 + $0x5f8] sm:$0xff]  ;;  %v10992_v50 = vld [vmem:[%s6401_s30 + $0x600] sm:$0xff] }
 0x31c   : > { %4669 = vst [vmem:[%s6575_s17 + $0x5a0] sm:$0xff] %v4413_v30  ;;  %v4158_v19 = vsub.f32 0.0, %v3646_v49  ;;  %v2879_v14 = vmul.f32 %v2550_v57, %v1782_v23  ;;  %v10906_v16 = vadd.f32 -1.0, %v835_v56  ;;  %v1784_v21 = vmul.f32 0.6931472, %v5887_v58 }
 0x31d   : > { %5898 = vlog2.f32 %v835_v56  ;;  %v836_v17 = vadd.f32 1.0, %v10884_v7  ;;  %v10910_v38 = vand.u32 2147483647, %v10893_v20  ;;  %vm3392_vm9 = vcmp.eq.f32.partialorder %v10806_v15, inf }
 0x31e   : > { %v5889_v3 = vpop.eup %5888  ;;  %v4414_v45 = vsel %vm3902_vm3, %v4158_v19, %v3646_v49  ;;  %v3135_v27 = vsel %vm1343_vm11, %v10768_v44, %v2879_v14  ;;  %vm1347_vm10 = vcmp.eq.f32.partialorder %v10906_v16, 0.0  ;;  %vm3393_vm12 = vcmp.eq.f32.partialorder %v10811_v9, inf }
 0x31f   : > { %v5891_v37 = vpop.eup %5890  ;;  %4670 = vst [vmem:[%s6575_s17 + $0x5a8] sm:$0xff] %v4414_v45  ;;  %v3647_v34 = vsel %vm3391_vm6, %v10768_v44, %v3135_v27  ;;  %v2552_v10 = vmul.f32 %v5889_v3, %v10806_v15  ;;  %v2115_v62 = vsel %vm1347_vm10, 1.0, %v10906_v16  ;;  %v10927_v12 = vadd.f32 -1.0, %v836_v17  ;;  %v10933_v44 = vld [vmem:[%s6401_s30 + $0x5e8] sm:$0xff] }
 0x320   : > { %v5893_v61 = vpop.eup %5892  ;;  %v4159_v6 = vsub.f32 0.0, %v3647_v34  ;;  %v1786_v48 = vmul.f32 0.6931472, %v5891_v37  ;;  %5900 = vrcp.f32 %v2115_v62  ;;  %v837_v43 = vadd.f32 1.0, %v10910_v38 }
 0x321   : > { %v2880_v26 = vmul.f32 %v2552_v10, %v1784_v21  ;;  %v2554_v29 = vmul.f32 %v5893_v61, %v10811_v9  ;;  %vm1348_vm11 = vcmp.eq.f32.partialorder %v10927_v12, 0.0  ;;  %5902 = vlog2.f32 %v836_v17  ;;  %v5895_v24 = vpop.eup %5894 }
 0x322   : > { %v4415_v28 = vsel %vm3903_vm8, %v4159_v6, %v3647_v34  ;;  %v2116_v47 = vsel %vm1348_vm11, 1.0, %v10927_v12  ;;  %v10940_v54 = vadd.f32 -1.0, %v837_v43  ;;  %5904 = vlog2.f32 %v837_v43 }
 0x323   : > { %4671 = vst [vmem:[%s6575_s17 + $0x5b0] sm:$0xff] %v4415_v28  ;;  %v3136_v8 = vsel %vm1344_vm0, %v10806_v15, %v2880_v26  ;;  %v2881_v32 = vmul.f32 %v2554_v29, %v1786_v48  ;;  %5906 = vrcp.f32 %v2116_v47  ;;  %vm3905_vm13 = vcmp.lt.f32.partialorder %v10798_v52, 0.0  ;;  %v11041_v47 = vld [vmem:[%s6401_s30 + $0x610] sm:$0xff] }
 0x324   : > { %v3648_v53 = vsel %vm3392_vm9, %v10806_v15, %v3136_v8  ;;  %vm1349_vm14 = vcmp.eq.f32.partialorder %v10940_v54, 0.0  ;;  %v10953_v25 = vand.u32 2147483647, %v10933_v44  ;;  %v1788_v51 = vmul.f32 0.6931472, %v5895_v24  ;;  %v11033_v24 = vld [vmem:[%s6401_s30 + $0x608] sm:$0xff] }
 0x325   : > { %v4160_v63 = vsub.f32 0.0, %v3648_v53  ;;  %v3137_v31 = vsel %vm1345_vm2, %v10811_v9, %v2881_v32  ;;  %v2117_v15 = vsel %vm1349_vm14, 1.0, %v10940_v54  ;;  %v5897_v22 = vpop.eup %5896  ;;  %vm3906_vm15 = vcmp.lt.f32.partialorder %v10836_v1, 0.0 }
 0x326   : > { %v3649_v33 = vsel %vm3393_vm12, %v10811_v9, %v3137_v31  ;;  %5908 = vrcp.f32 %v2117_v15  ;;  %v838_v41 = vadd.f32 1.0, %v10953_v25  ;;  %v2556_v59 = vmul.f32 %v5897_v22, %v10852_v60 }
 0x327   : > { %v5899_v2 = vpop.eup %5898  ;;  %v4416_v0 = vsel %vm3904_vm7, %v4160_v63, %v3648_v53  ;;  %v4161_v46 = vsub.f32 0.0, %v3649_v33  ;;  %v10971_v23 = vand.u32 2147483647, %v10956_v18  ;;  %vm3394_vm0 = vcmp.eq.f32.partialorder %v10852_v60, inf }
 0x328   : > { %4672 = vst [vmem:[%s6575_s17 + $0x5b8] sm:$0xff] %v4416_v0  ;;  %vm3907_vm2 = vcmp.lt.f32.partialorder %v10855_v13, 0.0  ;;  %v10979_v9 = vadd.f32 -1.0, %v838_v41  ;;  %5910 = vlog2.f32 %v838_v41  ;;  %v2882_v5 = vmul.f32 %v2556_v59, %v1788_v51  ;;  %v11078_v59 = vld [vmem:[%s6401_s30 + $0x618] sm:$0xff] }
 0x329   : > { %v4417_v39 = vsel %vm3905_vm13, %v4161_v46, %v3649_v33  ;;  %v1790_v11 = vmul.f32 0.6931472, %v5899_v2  ;;  %v839_v55 = vadd.f32 1.0, %v10971_v23  ;;  %vm3395_vm5 = vcmp.eq.f32.partialorder %v10874_v35, inf }
 0x32a   : > { %v5901_v56 = vpop.eup %5900  ;;  %4673 = vst [vmem:[%s6575_s17 + $0x5c0] sm:$0xff] %v4417_v39  ;;  %vm3396_vm1 = vcmp.eq.f32.partialorder %v10884_v7, inf  ;;  %vm1350_vm3 = vcmp.eq.f32.partialorder %v10979_v9, 0.0  ;;  %v10989_v58 = vand.u32 2147483647, %v10974_v36  ;;  %v3138_v52 = vsel %vm1346_vm4, %v10852_v60, %v2882_v5 }
 0x32b   : > { %v5903_v57 = vpop.eup %5902  ;;  %v2558_v30 = vmul.f32 %v5901_v56, %v10874_v35  ;;  %v2118_v49 = vsel %vm1350_vm3, 1.0, %v10979_v9  ;;  %v11001_v4 = vadd.f32 -1.0, %v839_v55  ;;  %v3650_v14 = vsel %vm3394_vm0, %v10852_v60, %v3138_v52 }
 0x32c   : > { %v5905_v19 = vpop.eup %5904  ;;  %v1792_v21 = vmul.f32 0.6931472, %v5903_v57  ;;  %5912 = vrcp.f32 %v2118_v49  ;;  %v840_v17 = vadd.f32 1.0, %v10989_v58  ;;  %v4162_v3 = vsub.f32 0.0, %v3650_v14 }
 0x32d   : > { %v5907_v42 = vpop.eup %5906  ;;  %v2883_v45 = vmul.f32 %v2558_v30, %v1790_v11  ;;  %vm1351_vm6 = vcmp.eq.f32.partialorder %v11001_v4, 0.0  ;;  %v11009_v27 = vand.u32 2147483647, %v10992_v50  ;;  %5914 = vlog2.f32 %v839_v55 }
 0x32e   : > { %v2560_v37 = vmul.f32 %v5907_v42, %v10884_v7  ;;  %v2119_v60 = vsel %vm1351_vm6, 1.0, %v11001_v4  ;;  %v11015_v34 = vadd.f32 -1.0, %v840_v17  ;;  %v4418_v10 = vsel %vm3906_vm15, %v4162_v3, %v3650_v14 }
 0x32f   : > { %v3139_v62 = vsel %vm1347_vm10, %v10874_v35, %v2883_v45  ;;  %v1794_v61 = vmul.f32 0.6931472, %v5905_v19  ;;  %5916 = vrcp.f32 %v2119_v60  ;;  %4674 = vst [vmem:[%s6575_s17 + $0x5c8] sm:$0xff] %v4418_v10  ;;  %v841_v29 = vadd.f32 1.0, %v11009_v27  ;;  %v11114_v10 = vld [vmem:[%s6401_s30 + $0x628] sm:$0xff] }
 0x330   : > { %v5909_v6 = vpop.eup %5908  ;;  %v3651_v48 = vsel %vm3395_vm5, %v10874_v35, %v3139_v62  ;;  %v2884_v43 = vmul.f32 %v2560_v37, %v1792_v21  ;;  %vm1352_vm4 = vcmp.eq.f32.partialorder %v11015_v34, 0.0  ;;  %5918 = vlog2.f32 %v840_v17  ;;  %v11106_v37 = vld [vmem:[%s6401_s30 + $0x620] sm:$0xff] }
 0x331   : > { %v4163_v1 = vsub.f32 0.0, %v3651_v48  ;;  %v2562_v26 = vmul.f32 %v5909_v6, %v10910_v38  ;;  %v2120_v16 = vsel %vm1352_vm4, 1.0, %v11015_v34  ;;  %vm3908_vm8 = vcmp.lt.f32.partialorder %v10867_v40, 0.0 }
 0x332   : > { %v5911_v28 = vpop.eup %5910  ;;  %v3140_v35 = vsel %vm1348_vm11, %v10884_v7, %v2884_v43  ;;  %vm3909_vm7 = vcmp.lt.f32.partialorder %v10893_v20, 0.0  ;;  %5920 = vrcp.f32 %v2120_v16  ;;  %vm3397_vm9 = vcmp.eq.f32.partialorder %v10910_v38, inf }
 0x333   : > { %v4419_v8 = vsel %vm3907_vm2, %v4163_v1, %v3651_v48  ;;  %v3652_v32 = vsel %vm3396_vm1, %v10884_v7, %v3140_v35  ;;  %v2885_v53 = vmul.f32 %v2562_v26, %v1794_v61  ;;  %v11050_v63 = vadd.f32 -1.0, %v841_v29 }
 0x334   : > { %4675 = vst [vmem:[%s6575_s17 + $0x5d0] sm:$0xff] %v4419_v8  ;;  %v4164_v12 = vsub.f32 0.0, %v3652_v32  ;;  %5922 = vlog2.f32 %v841_v29  ;;  %v11053_v31 = vand.u32 2147483647, %v11033_v24  ;;  %v1796_v51 = vmul.f32 0.6931472, %v5911_v28 }
 0x335   : > { %v3141_v13 = vsel %vm1349_vm14, %v10910_v38, %v2885_v53  ;;  %vm3910_vm10 = vcmp.lt.f32.partialorder %v10933_v44, 0.0  ;;  %v11060_v7 = vand.u32 2147483647, %v11041_v47  ;;  %vm1353_vm11 = vcmp.eq.f32.partialorder %v11050_v63, 0.0 }
 0x336   : > { %v5913_v15 = vpop.eup %5912  ;;  %v4420_v22 = vsel %vm3908_vm8, %v4164_v12, %v3652_v32  ;;  %v3653_v33 = vsel %vm3397_vm9, %v10910_v38, %v3141_v13  ;;  %v842_v41 = vadd.f32 1.0, %v11053_v31  ;;  %vm3398_vm12 = vcmp.eq.f32.partialorder %v10953_v25, inf  ;;  %v11151_v12 = vld [vmem:[%s6401_s30 + $0x630] sm:$0xff] }
 0x337   : > { %4676 = vst [vmem:[%s6575_s17 + $0x5d8] sm:$0xff] %v4420_v22  ;;  %v4165_v54 = vsub.f32 0.0, %v3653_v33  ;;  %v2564_v2 = vmul.f32 %v5913_v15, %v10953_v25  ;;  %v2121_v0 = vsel %vm1353_vm11, 1.0, %v11050_v63  ;;  %v5915_v46 = vpop.eup %5914  ;;  %vm3399_vm13 = vcmp.eq.f32.partialorder %v10971_v23, inf }
 0x338   : > { %5924 = vrcp.f32 %v2121_v0  ;;  %v11074_v40 = vadd.f32 -1.0, %v842_v41  ;;  %v843_v38 = vadd.f32 1.0, %v11060_v7  ;;  %v1798_v55 = vmul.f32 0.6931472, %v5915_v46  ;;  %v11170_v46 = vld [vmem:[%s6401_s30 + $0x638] sm:$0xff] }
 0x339   : > { %v5917_v39 = vpop.eup %5916  ;;  %v4421_v5 = vsel %vm3909_vm7, %v4165_v54, %v3653_v33  ;;  %v2886_v11 = vmul.f32 %v2564_v2, %v1796_v51  ;;  %5926 = vlog2.f32 %v842_v41  ;;  %v11094_v19 = vand.u32 2147483647, %v11078_v59 }
 0x33a   : > { %v5919_v56 = vpop.eup %5918  ;;  %4677 = vst [vmem:[%s6575_s17 + $0x5e0] sm:$0xff] %v4421_v5  ;;  %v2566_v57 = vmul.f32 %v5917_v39, %v10971_v23  ;;  %vm1354_vm14 = vcmp.eq.f32.partialorder %v11074_v40, 0.0  ;;  %v11085_v52 = vadd.f32 -1.0, %v843_v38  ;;  %5928 = vlog2.f32 %v843_v38 }
 0x33b   : > { %v3142_v30 = vsel %vm1350_vm3, %v10953_v25, %v2886_v11  ;;  %v1800_v49 = vmul.f32 0.6931472, %v5919_v56  ;;  %v2122_v20 = vsel %vm1354_vm14, 1.0, %v11074_v40  ;;  %v844_v45 = vadd.f32 1.0, %v11094_v19 }
 0x33c   : > { %v5921_v14 = vpop.eup %5920  ;;  %v3654_v21 = vsel %vm3398_vm12, %v10953_v25, %v3142_v30  ;;  %v2887_v17 = vmul.f32 %v2566_v57, %v1798_v55  ;;  %5930 = vrcp.f32 %v2122_v20  ;;  %vm1355_vm15 = vcmp.eq.f32.partialorder %v11085_v52, 0.0 }
 0x33d   : > { %v4166_v9 = vsub.f32 0.0, %v3654_v21  ;;  %v2568_v42 = vmul.f32 %v5921_v14, %v10989_v58  ;;  %v2123_v3 = vsel %vm1355_vm15, 1.0, %v11085_v52  ;;  %vm3911_vm0 = vcmp.lt.f32.partialorder %v10956_v18, 0.0 }
 0x33e   : > { %v5923_v60 = vpop.eup %5922  ;;  %v3143_v25 = vsel %vm1351_vm6, %v10971_v23, %v2887_v17  ;;  %vm3912_vm2 = vcmp.lt.f32.partialorder %v10974_v36, 0.0  ;;  %5932 = vrcp.f32 %v2123_v3  ;;  %vm3400_vm5 = vcmp.eq.f32.partialorder %v10989_v58, inf }
 0x33f   : > { %v4422_v62 = vsel %vm3910_vm10, %v4166_v9, %v3654_v21  ;;  %v3655_v61 = vsel %vm3399_vm13, %v10971_v23, %v3143_v25  ;;  %v2888_v6 = vmul.f32 %v2568_v42, %v1800_v49  ;;  %v11123_v48 = vadd.f32 -1.0, %v844_v45  ;;  %v11204_v42 = vld [vmem:[%s6401_s30 + $0x640] sm:$0xff] }
 0x340   : > { %4678 = vst [vmem:[%s6575_s17 + $0x5e8] sm:$0xff] %v4422_v62  ;;  %v4167_v4 = vsub.f32 0.0, %v3655_v61  ;;  %5934 = vlog2.f32 %v844_v45  ;;  %v11126_v43 = vand.u32 2147483647, %v11106_v37  ;;  %v1802_v1 = vmul.f32 0.6931472, %v5923_v60 }
 0x341   : > { %v3144_v44 = vsel %vm1352_vm4, %v10989_v58, %v2888_v6  ;;  %vm3401_vm1 = vcmp.eq.f32.partialorder %v11009_v27, inf  ;;  %v11133_v23 = vand.u32 2147483647, %v11114_v10  ;;  %vm1356_vm3 = vcmp.eq.f32.partialorder %v11123_v48, 0.0 }
 0x342   : > { %v5925_v26 = vpop.eup %5924  ;;  %v4423_v16 = vsel %vm3911_vm0, %v4167_v4, %v3655_v61  ;;  %v3656_v29 = vsel %vm3400_vm5, %v10989_v58, %v3144_v44  ;;  %v845_v28 = vadd.f32 1.0, %v11126_v43  ;;  %vm3913_vm6 = vcmp.lt.f32.partialorder %v10992_v50, 0.0 }
 0x343   : > { %v5927_v35 = vpop.eup %5926  ;;  %4679 = vst [vmem:[%s6575_s17 + $0x5f0] sm:$0xff] %v4423_v16  ;;  %v4168_v34 = vsub.f32 0.0, %v3656_v29  ;;  %v2570_v8 = vmul.f32 %v5925_v26, %v11009_v27  ;;  %v2124_v18 = vsel %vm1356_vm3, 1.0, %v11123_v48  ;;  %vm3914_vm4 = vcmp.lt.f32.partialorder %v11033_v24, 0.0  ;;  %v11223_v24 = vld [vmem:[%s6401_s30 + $0x648] sm:$0xff]  ;;  %v11231_v16 = vld [vmem:[%s6401_s30 + $0x650] sm:$0xff] }
 0x344   : > { %v5929_v32 = vpop.eup %5928  ;;  %5936 = vrcp.f32 %v2124_v18  ;;  %v11147_v58 = vadd.f32 -1.0, %v845_v28  ;;  %v846_v53 = vadd.f32 1.0, %v11133_v23  ;;  %v1804_v15 = vmul.f32 0.6931472, %v5927_v35 }
 0x345   : > { %v4424_v13 = vsel %vm3912_vm2, %v4168_v34, %v3656_v29  ;;  %v2889_v51 = vmul.f32 %v2570_v8, %v1802_v1  ;;  %5938 = vlog2.f32 %v845_v28  ;;  %v1806_v33 = vmul.f32 0.6931472, %v5929_v32 }
 0x346   : > { %v5931_v22 = vpop.eup %5930  ;;  %4680 = vst [vmem:[%s6575_s17 + $0x5f8] sm:$0xff] %v4424_v13  ;;  %vm1357_vm8 = vcmp.eq.f32.partialorder %v11147_v58, 0.0  ;;  %v11157_v41 = vadd.f32 -1.0, %v846_v53  ;;  %5940 = vlog2.f32 %v846_v53  ;;  %v11167_v0 = vand.u32 2147483647, %v11151_v12 }
 0x347   : > { %v3145_v54 = vsel %vm1353_vm11, %v11009_v27, %v2889_v51  ;;  %v2572_v2 = vmul.f32 %v5931_v22, %v11053_v31  ;;  %v2125_v36 = vsel %vm1357_vm8, 1.0, %v11147_v58  ;;  %vm3402_vm7 = vcmp.eq.f32.partialorder %v11053_v31, inf }
 0x348   : > { %v5933_v38 = vpop.eup %5932  ;;  %v3657_v39 = vsel %vm3401_vm1, %v11009_v27, %v3145_v54  ;;  %5942 = vrcp.f32 %v2125_v36  ;;  %vm1358_vm9 = vcmp.eq.f32.partialorder %v11157_v41, 0.0  ;;  %vm3915_vm10 = vcmp.lt.f32.partialorder %v11041_v47, 0.0 }
 0x349   : > { %v4169_v63 = vsub.f32 0.0, %v3657_v39  ;;  %v2890_v5 = vmul.f32 %v2572_v2, %v1804_v15  ;;  %v2574_v11 = vmul.f32 %v5933_v38, %v11060_v7  ;;  %v2126_v55 = vsel %vm1358_vm9, 1.0, %v11157_v41 }
 0x34a   : > { %v5935_v56 = vpop.eup %5934  ;;  %5944 = vrcp.f32 %v2126_v55  ;;  %v847_v27 = vadd.f32 1.0, %v11167_v0  ;;  %v11184_v57 = vand.u32 2147483647, %v11170_v46  ;;  %vm3403_vm11 = vcmp.eq.f32.partialorder %v11060_v7, inf }
 0x34b   : > { %v4425_v30 = vsel %vm3913_vm6, %v4169_v63, %v3657_v39  ;;  %v3146_v49 = vsel %vm1354_vm14, %v11053_v31, %v2890_v5  ;;  %v2891_v20 = vmul.f32 %v2574_v11, %v1806_v33  ;;  %v1808_v40 = vmul.f32 0.6931472, %v5935_v56  ;;  %v11276_v56 = vld [vmem:[%s6401_s30 + $0x658] sm:$0xff] }
 0x34c   : > { %4681 = vst [vmem:[%s6575_s17 + $0x600] sm:$0xff] %v4425_v30  ;;  %v3658_v14 = vsel %vm3402_vm7, %v11053_v31, %v3146_v49  ;;  %v11196_v21 = vadd.f32 -1.0, %v847_v27  ;;  %5946 = vlog2.f32 %v847_v27  ;;  %v848_v17 = vadd.f32 1.0, %v11184_v57 }
 0x34d   : > { %v4170_v9 = vsub.f32 0.0, %v3658_v14  ;;  %v3147_v50 = vsel %vm1355_vm15, %v11060_v7, %v2891_v20  ;;  %vm3404_vm12 = vcmp.eq.f32.partialorder %v11094_v19, inf  ;;  %vm3916_vm14 = vcmp.lt.f32.partialorder %v11078_v59, 0.0 }
 0x34e   : > { %v5937_v3 = vpop.eup %5936  ;;  %v3659_v31 = vsel %vm3403_vm11, %v11060_v7, %v3147_v50  ;;  %vm1359_vm13 = vcmp.eq.f32.partialorder %v11196_v21, 0.0  ;;  %v11208_v45 = vadd.f32 -1.0, %v848_v17  ;;  %5948 = vlog2.f32 %v848_v17 }
 0x34f   : > { %v5939_v60 = vpop.eup %5938  ;;  %v4426_v52 = vsel %vm3914_vm4, %v4170_v9, %v3658_v14  ;;  %v4171_v25 = vsub.f32 0.0, %v3659_v31  ;;  %v2576_v62 = vmul.f32 %v5937_v3, %v11094_v19  ;;  %v2127_v61 = vsel %vm1359_vm13, 1.0, %v11196_v21 }
 0x350   : > { %v5941_v6 = vpop.eup %5940  ;;  %4682 = vst [vmem:[%s6575_s17 + $0x608] sm:$0xff] %v4426_v52  ;;  %5950 = vrcp.f32 %v2127_v61  ;;  %vm1360_vm15 = vcmp.eq.f32.partialorder %v11208_v45, 0.0  ;;  %v11220_v7 = vand.u32 2147483647, %v11204_v42  ;;  %v1810_v1 = vmul.f32 0.6931472, %v5939_v60 }
 0x351   : > { %v4427_v4 = vsel %vm3915_vm10, %v4171_v25, %v3659_v31  ;;  %v2892_v44 = vmul.f32 %v2576_v62, %v1808_v40  ;;  %v2128_v26 = vsel %vm1360_vm15, 1.0, %v11208_v45  ;;  %vm3405_vm0 = vcmp.eq.f32.partialorder %v11126_v43, inf  ;;  %v11316_v62 = vld [vmem:[%s6401_s30 + $0x668] sm:$0xff] }
 0x352   : > { %v5943_v29 = vpop.eup %5942  ;;  %4683 = vst [vmem:[%s6575_s17 + $0x610] sm:$0xff] %v4427_v4  ;;  %vm3917_vm2 = vcmp.lt.f32.partialorder %v11106_v37, 0.0  ;;  %5952 = vrcp.f32 %v2128_v26  ;;  %v849_v28 = vadd.f32 1.0, %v11220_v7  ;;  %v1812_v34 = vmul.f32 0.6931472, %v5941_v6  ;;  %v11297_v37 = vld [vmem:[%s6401_s30 + $0x660] sm:$0xff] }
 0x353   : > { %v3148_v47 = vsel %vm1356_vm3, %v11094_v19, %v2892_v44  ;;  %v2578_v35 = vmul.f32 %v5943_v29, %v11126_v43  ;;  %v11242_v8 = vand.u32 2147483647, %v11223_v24  ;;  %v11250_v13 = vand.u32 2147483647, %v11231_v16 }
 0x354   : > { %v5945_v18 = vpop.eup %5944  ;;  %v3660_v32 = vsel %vm3404_vm12, %v11094_v19, %v3148_v47  ;;  %v11247_v53 = vadd.f32 -1.0, %v849_v28  ;;  %5954 = vlog2.f32 %v849_v28  ;;  %vm3406_vm5 = vcmp.eq.f32.partialorder %v11133_v23, inf }
 0x355   : > { %v4172_v48 = vsub.f32 0.0, %v3660_v32  ;;  %v2893_v51 = vmul.f32 %v2578_v35, %v1810_v1  ;;  %v2580_v15 = vmul.f32 %v5945_v18, %v11133_v23  ;;  %v850_v22 = vadd.f32 1.0, %v11242_v8 }
 0x356   : > { %v5947_v33 = vpop.eup %5946  ;;  %vm3918_vm1 = vcmp.lt.f32.partialorder %v11114_v10, 0.0  ;;  %vm1361_vm3 = vcmp.eq.f32.partialorder %v11247_v53, 0.0  ;;  %v851_v19 = vadd.f32 1.0, %v11250_v13  ;;  %vm3407_vm4 = vcmp.eq.f32.partialorder %v11167_v0, inf }
 0x357   : > { %v4428_v54 = vsel %vm3916_vm14, %v4172_v48, %v3660_v32  ;;  %v3149_v2 = vsel %vm1357_vm8, %v11126_v43, %v2893_v51  ;;  %v2894_v36 = vmul.f32 %v2580_v15, %v1812_v34  ;;  %v1814_v38 = vmul.f32 0.6931472, %v5947_v33  ;;  %v11347_v32 = vld [vmem:[%s6401_s30 + $0x670] sm:$0xff]  ;;  %v11353_v15 = vld [vmem:[%s6401_s30 + $0x678] sm:$0xff] }
 0x358   : > { %v5949_v39 = vpop.eup %5948  ;;  %4684 = vst [vmem:[%s6575_s17 + $0x618] sm:$0xff] %v4428_v54  ;;  %v3661_v63 = vsel %vm3405_vm0, %v11126_v43, %v3149_v2  ;;  %v2129_v5 = vsel %vm1361_vm3, 1.0, %v11247_v53  ;;  %v11270_v11 = vadd.f32 -1.0, %v850_v22  ;;  %5956 = vlog2.f32 %v850_v22 }
 0x359   : > { %v4173_v59 = vsub.f32 0.0, %v3661_v63  ;;  %v3150_v58 = vsel %vm1358_vm9, %v11133_v23, %v2894_v36  ;;  %v1816_v55 = vmul.f32 0.6931472, %v5949_v39  ;;  %5958 = vrcp.f32 %v2129_v5 }
 0x35a   : > { %v5951_v27 = vpop.eup %5950  ;;  %v3662_v43 = vsel %vm3406_vm5, %v11133_v23, %v3150_v58  ;;  %vm1362_vm6 = vcmp.eq.f32.partialorder %v11270_v11, 0.0  ;;  %v11282_v30 = vadd.f32 -1.0, %v851_v19  ;;  %5960 = vlog2.f32 %v851_v19 }
 0x35b   : > { %v4429_v49 = vsel %vm3917_vm2, %v4173_v59, %v3661_v63  ;;  %v4174_v41 = vsub.f32 0.0, %v3662_v43  ;;  %v2582_v20 = vmul.f32 %v5951_v27, %v11167_v0  ;;  %v2130_v14 = vsel %vm1362_vm6, 1.0, %v11270_v11 }
 0x35c   : > { %v5953_v17 = vpop.eup %5952  ;;  %4685 = vst [vmem:[%s6575_s17 + $0x620] sm:$0xff] %v4429_v49  ;;  %5962 = vrcp.f32 %v2130_v14  ;;  %vm1363_vm8 = vcmp.eq.f32.partialorder %v11282_v30, 0.0  ;;  %v11294_v23 = vand.u32 2147483647, %v11276_v56  ;;  %vm3919_vm7 = vcmp.lt.f32.partialorder %v11151_v12, 0.0 }
 0x35d   : > { %v4430_v9 = vsel %vm3918_vm1, %v4174_v41, %v3662_v43  ;;  %v2895_v50 = vmul.f32 %v2582_v20, %v1814_v38  ;;  %v2584_v40 = vmul.f32 %v5953_v17, %v11184_v57  ;;  %v2131_v3 = vsel %vm1363_vm8, 1.0, %v11282_v30 }
 0x35e   : > { %v5955_v31 = vpop.eup %5954  ;;  %4686 = vst [vmem:[%s6575_s17 + $0x628] sm:$0xff] %v4430_v9  ;;  %5964 = vrcp.f32 %v2131_v3  ;;  %v852_v60 = vadd.f32 1.0, %v11294_v23  ;;  %vm3408_vm9 = vcmp.eq.f32.partialorder %v11184_v57, inf  ;;  %v11313_v25 = vand.u32 2147483647, %v11297_v37  ;;  %v11400_v3 = vld [vmem:[%s6401_s30 + $0x680] sm:$0xff] }
 0x35f   : > { %v3151_v52 = vsel %vm1359_vm13, %v11167_v0, %v2895_v50  ;;  %v2896_v10 = vmul.f32 %v2584_v40, %v1816_v55  ;;  %vm3920_vm10 = vcmp.lt.f32.partialorder %v11170_v46, 0.0  ;;  %vm3409_vm11 = vcmp.eq.f32.partialorder %v11220_v7, inf }
 0x360   : > { %v3663_v61 = vsel %vm3407_vm4, %v11167_v0, %v3151_v52  ;;  %v11322_v6 = vadd.f32 -1.0, %v852_v60  ;;  %5966 = vlog2.f32 %v852_v60  ;;  %v853_v44 = vadd.f32 1.0, %v11313_v25 }
 0x361   : > { %v4175_v21 = vsub.f32 0.0, %v3663_v61  ;;  %v3152_v4 = vsel %vm1360_vm15, %v11184_v57, %v2896_v10  ;;  %v1818_v0 = vmul.f32 0.6931472, %v5955_v31  ;;  %v11332_v29 = vand.u32 2147483647, %v11316_v62 }
 0x362   : > { %v5957_v1 = vpop.eup %5956  ;;  %v3664_v26 = vsel %vm3408_vm9, %v11184_v57, %v3152_v4  ;;  %vm1364_vm12 = vcmp.eq.f32.partialorder %v11322_v6, 0.0  ;;  %vm3921_vm13 = vcmp.lt.f32.partialorder %v11204_v42, 0.0  ;;  %vm3922_vm14 = vcmp.lt.f32.partialorder %v11223_v24, 0.0  ;;  %v11420_v24 = vld [vmem:[%s6401_s30 + $0x688] sm:$0xff] }
 0x363   : > { %v5959_v28 = vpop.eup %5958  ;;  %v4431_v47 = vsel %vm3919_vm7, %v4175_v21, %v3663_v61  ;;  %v4176_v45 = vsub.f32 0.0, %v3664_v26  ;;  %v2132_v57 = vsel %vm1364_vm12, 1.0, %v11322_v6  ;;  %v11343_v18 = vadd.f32 -1.0, %v853_v44 }
 0x364   : > { %v5961_v35 = vpop.eup %5960  ;;  %4687 = vst [vmem:[%s6575_s17 + $0x630] sm:$0xff] %v4431_v47  ;;  %v2586_v34 = vmul.f32 %v5959_v28, %v11220_v7  ;;  %5968 = vrcp.f32 %v2132_v57  ;;  %v854_v12 = vadd.f32 1.0, %v11332_v29  ;;  %v1820_v51 = vmul.f32 0.6931472, %v5957_v1  ;;  %v11426_v1 = vld [vmem:[%s6401_s30 + $0x690] sm:$0xff] }
 0x365   : > { %v4432_v48 = vsel %vm3920_vm10, %v4176_v45, %v3664_v26  ;;  %vm3410_vm15 = vcmp.eq.f32.partialorder %v11242_v8, inf  ;;  %5970 = vlog2.f32 %v853_v44  ;;  %vm1365_vm0 = vcmp.eq.f32.partialorder %v11343_v18, 0.0 }
 0x366   : > { %v5963_v22 = vpop.eup %5962  ;;  %4688 = vst [vmem:[%s6575_s17 + $0x638] sm:$0xff] %v4432_v48  ;;  %v2897_v33 = vmul.f32 %v2586_v34, %v1818_v0  ;;  %v11357_v19 = vadd.f32 -1.0, %v854_v12  ;;  %5972 = vlog2.f32 %v854_v12  ;;  %v1822_v2 = vmul.f32 0.6931472, %v5961_v35 }
 0x367   : > { %v2588_v54 = vmul.f32 %v5963_v22, %v11242_v8  ;;  %v2133_v46 = vsel %vm1365_vm0, 1.0, %v11343_v18  ;;  %v11364_v36 = vand.u32 2147483647, %v11347_v32  ;;  %v11371_v63 = vand.u32 2147483647, %v11353_v15 }
 0x368   : > { %v5965_v38 = vpop.eup %5964  ;;  %v3153_v39 = vsel %vm1361_vm3, %v11220_v7, %v2897_v33  ;;  %5974 = vrcp.f32 %v2133_v46  ;;  %vm1366_vm2 = vcmp.eq.f32.partialorder %v11357_v19, 0.0  ;;  %vm3411_vm5 = vcmp.eq.f32.partialorder %v11250_v13, inf }
 0x369   : > { %v3665_v5 = vsel %vm3409_vm11, %v11220_v7, %v3153_v39  ;;  %v2898_v59 = vmul.f32 %v2588_v54, %v1820_v51  ;;  %v2590_v58 = vmul.f32 %v5965_v38, %v11250_v13  ;;  %v2134_v55 = vsel %vm1366_vm2, 1.0, %v11357_v19 }
 0x36a   : > { %v5967_v53 = vpop.eup %5966  ;;  %v4177_v27 = vsub.f32 0.0, %v3665_v5  ;;  %5976 = vrcp.f32 %v2134_v55  ;;  %v855_v43 = vadd.f32 1.0, %v11364_v36  ;;  %v856_v20 = vadd.f32 1.0, %v11371_v63 }
 0x36b   : > { %v3154_v7 = vsel %vm1362_vm6, %v11242_v8, %v2898_v59  ;;  %v2899_v49 = vmul.f32 %v2590_v58, %v1822_v2  ;;  %v1824_v41 = vmul.f32 0.6931472, %v5967_v53  ;;  %vm3923_vm1 = vcmp.lt.f32.partialorder %v11231_v16, 0.0 }
 0x36c   : > { %v4433_v14 = vsel %vm3921_vm13, %v4177_v27, %v3665_v5  ;;  %v3666_v17 = vsel %vm3410_vm15, %v11242_v8, %v3154_v7  ;;  %v11391_v9 = vadd.f32 -1.0, %v855_v43  ;;  %5978 = vlog2.f32 %v855_v43 }
 0x36d   : > { %4689 = vst [vmem:[%s6575_s17 + $0x640] sm:$0xff] %v4433_v14  ;;  %v4178_v50 = vsub.f32 0.0, %v3666_v17  ;;  %v3155_v11 = vsel %vm1363_vm8, %v11250_v13, %v2899_v49  ;;  %v11397_v40 = vadd.f32 -1.0, %v856_v20  ;;  %5980 = vlog2.f32 %v856_v20  ;;  %v11486_v14 = vld [vmem:[%s6401_s30 + $0x6a0] sm:$0xff] }
 0x36e   : > { %v5969_v42 = vpop.eup %5968  ;;  %v3667_v8 = vsel %vm3411_vm5, %v11250_v13, %v3155_v11  ;;  %vm1367_vm3 = vcmp.eq.f32.partialorder %v11391_v9, 0.0  ;;  %vm3412_vm6 = vcmp.eq.f32.partialorder %v11294_v23, inf  ;;  %v11417_v16 = vand.u32 2147483647, %v11400_v3 }
 0x36f   : > { %v5971_v31 = vpop.eup %5970  ;;  %v4434_v30 = vsel %vm3922_vm14, %v4178_v50, %v3666_v17  ;;  %v4179_v60 = vsub.f32 0.0, %v3667_v8  ;;  %v2592_v52 = vmul.f32 %v5969_v42, %v11294_v23  ;;  %v2135_v10 = vsel %vm1367_vm3, 1.0, %v11391_v9 }
 0x370   : > { %v5973_v61 = vpop.eup %5972  ;;  %4690 = vst [vmem:[%s6575_s17 + $0x648] sm:$0xff] %v4434_v30  ;;  %5982 = vrcp.f32 %v2135_v10  ;;  %vm1368_vm4 = vcmp.eq.f32.partialorder %v11397_v40, 0.0  ;;  %v1826_v4 = vmul.f32 0.6931472, %v5971_v31  ;;  %vm3924_vm8 = vcmp.lt.f32.partialorder %v11276_v56, 0.0 }
 0x371   : > { %v4435_v13 = vsel %vm3923_vm1, %v4179_v60, %v3667_v8  ;;  %v2900_v21 = vmul.f32 %v2592_v52, %v1824_v41  ;;  %v2136_v44 = vsel %vm1368_vm4, 1.0, %v11397_v40  ;;  %vm3413_vm7 = vcmp.eq.f32.partialorder %v11313_v25, inf }
 0x372   : > { %v5975_v26 = vpop.eup %5974  ;;  %4691 = vst [vmem:[%s6575_s17 + $0x650] sm:$0xff] %v4435_v13  ;;  %5984 = vrcp.f32 %v2136_v44  ;;  %v857_v0 = vadd.f32 1.0, %v11417_v16  ;;  %v1828_v45 = vmul.f32 0.6931472, %v5973_v61  ;;  %v11437_v57 = vand.u32 2147483647, %v11420_v24 }
 0x373   : > { %v3156_v28 = vsel %vm1364_vm12, %v11294_v23, %v2900_v21  ;;  %v2594_v47 = vmul.f32 %v5975_v26, %v11313_v25  ;;  %v11445_v48 = vand.u32 2147483647, %v11426_v1  ;;  %vm3925_vm9 = vcmp.lt.f32.partialorder %v11297_v37, 0.0  ;;  %v11517_v13 = vld [vmem:[%s6401_s30 + $0x6a8] sm:$0xff] }
 0x374   : > { %v5977_v35 = vpop.eup %5976  ;;  %v3668_v34 = vsel %vm3412_vm6, %v11294_v23, %v3156_v28  ;;  %v11442_v12 = vadd.f32 -1.0, %v857_v0  ;;  %5986 = vlog2.f32 %v857_v0  ;;  %v858_v33 = vadd.f32 1.0, %v11437_v57 }
 0x375   : > { %v4180_v6 = vsub.f32 0.0, %v3668_v34  ;;  %v2901_v51 = vmul.f32 %v2594_v47, %v1826_v4  ;;  %v2596_v22 = vmul.f32 %v5977_v35, %v11332_v29  ;;  %vm3926_vm10 = vcmp.lt.f32.partialorder %v11316_v62, 0.0 }
 0x376   : > { %v5979_v54 = vpop.eup %5978  ;;  %vm1369_vm11 = vcmp.eq.f32.partialorder %v11442_v12, 0.0  ;;  %v859_v23 = vadd.f32 1.0, %v11445_v48  ;;  %vm3414_vm12 = vcmp.eq.f32.partialorder %v11332_v29, inf  ;;  %vm3927_vm13 = vcmp.lt.f32.partialorder %v11347_v32, 0.0 }
 0x377   : > { %v5981_v2 = vpop.eup %5980  ;;  %v4436_v46 = vsel %vm3924_vm8, %v4180_v6, %v3668_v34  ;;  %v3157_v38 = vsel %vm1365_vm0, %v11313_v25, %v2901_v51  ;;  %v2902_v39 = vmul.f32 %v2596_v22, %v1828_v45  ;;  %v1830_v59 = vmul.f32 0.6931472, %v5979_v54  ;;  %v11538_v45 = vld [vmem:[%s6401_s30 + $0x6b0] sm:$0xff] }
 0x378   : > { %4692 = vst [vmem:[%s6575_s17 + $0x658] sm:$0xff] %v4436_v46  ;;  %v3669_v5 = vsel %vm3413_vm7, %v11313_v25, %v3157_v38  ;;  %v2137_v56 = vsel %vm1369_vm11, 1.0, %v11442_v12  ;;  %v11467_v58 = vadd.f32 -1.0, %v858_v33  ;;  %v11472_v53 = vadd.f32 -1.0, %v859_v23  ;;  %v11475_v25 = vld [vmem:[%s6401_s30 + $0x698] sm:$0xff] }
 0x379   : > { %v4181_v18 = vsub.f32 0.0, %v3669_v5  ;;  %v3158_v55 = vsel %vm1366_vm2, %v11332_v29, %v2902_v39  ;;  %5988 = vrcp.f32 %v2137_v56  ;;  %v1832_v7 = vmul.f32 0.6931472, %v5981_v2 }
 0x37a   : > { %v5983_v27 = vpop.eup %5982  ;;  %v3670_v43 = vsel %vm3414_vm12, %v11332_v29, %v3158_v55  ;;  %vm1370_vm14 = vcmp.eq.f32.partialorder %v11467_v58, 0.0  ;;  %5990 = vlog2.f32 %v858_v33  ;;  %vm3415_vm15 = vcmp.eq.f32.partialorder %v11364_v36, inf }
 0x37b   : > { %v4437_v49 = vsel %vm3925_vm9, %v4181_v18, %v3669_v5  ;;  %v4182_v41 = vsub.f32 0.0, %v3670_v43  ;;  %v2598_v19 = vmul.f32 %v5983_v27, %v11364_v36  ;;  %v2138_v20 = vsel %vm1370_vm14, 1.0, %v11467_v58 }
 0x37c   : > { %v5985_v17 = vpop.eup %5984  ;;  %4693 = vst [vmem:[%s6575_s17 + $0x660] sm:$0xff] %v4437_v49  ;;  %5992 = vrcp.f32 %v2138_v20  ;;  %vm1371_vm0 = vcmp.eq.f32.partialorder %v11472_v53, 0.0  ;;  %v11492_v37 = vand.u32 2147483647, %v11475_v25  ;;  %vm3416_vm2 = vcmp.eq.f32.partialorder %v11371_v63, inf }
 0x37d   : > { %v4438_v29 = vsel %vm3926_vm10, %v4182_v41, %v3670_v43  ;;  %v2903_v50 = vmul.f32 %v2598_v19, %v1830_v59  ;;  %v2600_v11 = vmul.f32 %v5985_v17, %v11371_v63  ;;  %5994 = vlog2.f32 %v859_v23  ;;  %v11556_v23 = vld [vmem:[%s6401_s30 + $0x6b8] sm:$0xff] }
 0x37e   : > { %v5987_v42 = vpop.eup %5986  ;;  %4694 = vst [vmem:[%s6575_s17 + $0x668] sm:$0xff] %v4438_v29  ;;  %v2139_v8 = vsel %vm1371_vm0, 1.0, %v11472_v53  ;;  %v860_v31 = vadd.f32 1.0, %v11492_v37  ;;  %v11504_v30 = vand.u32 2147483647, %v11486_v14  ;;  %vm3928_vm5 = vcmp.lt.f32.partialorder %v11353_v15, 0.0 }
 0x37f   : > { %v3159_v62 = vsel %vm1367_vm3, %v11364_v36, %v2903_v50  ;;  %v2904_v60 = vmul.f32 %v2600_v11, %v1832_v7  ;;  %5996 = vrcp.f32 %v2139_v8  ;;  %v1834_v4 = vmul.f32 0.6931472, %v5987_v42 }
 0x380   : > { %v3671_v52 = vsel %vm3415_vm15, %v11364_v36, %v3159_v62  ;;  %v11513_v10 = vadd.f32 -1.0, %v860_v31  ;;  %5998 = vlog2.f32 %v860_v31  ;;  %v861_v61 = vadd.f32 1.0, %v11504_v30 }
 0x381   : > { %v4183_v21 = vsub.f32 0.0, %v3671_v52  ;;  %v3160_v9 = vsel %vm1368_vm4, %v11371_v63, %v2904_v60  ;;  %vm3417_vm1 = vcmp.eq.f32.partialorder %v11417_v16, inf  ;;  %v11535_v47 = vand.u32 2147483647, %v11517_v13 }
 0x382   : > { %v3672_v36 = vsel %vm3416_vm2, %v11371_v63, %v3160_v9  ;;  %vm1372_vm3 = vcmp.eq.f32.partialorder %v11513_v10, 0.0  ;;  %v11527_v44 = vadd.f32 -1.0, %v861_v61  ;;  %6000 = vlog2.f32 %v861_v61 }
 0x383   : > { %v5989_v26 = vpop.eup %5988  ;;  %v4439_v0 = vsel %vm3927_vm13, %v4183_v21, %v3671_v52  ;;  %v4184_v28 = vsub.f32 0.0, %v3672_v36  ;;  %v2140_v40 = vsel %vm1372_vm3, 1.0, %v11513_v10  ;;  %vm3929_vm6 = vcmp.lt.f32.partialorder %v11400_v3, 0.0  ;;  %v11597_v3 = vld [vmem:[%s6401_s30 + $0x6c0] sm:$0xff] }
 0x384   : > { %v5991_v63 = vpop.eup %5990  ;;  %4695 = vst [vmem:[%s6575_s17 + $0x670] sm:$0xff] %v4439_v0  ;;  %v2602_v35 = vmul.f32 %v5989_v26, %v11417_v16  ;;  %6002 = vrcp.f32 %v2140_v40  ;;  %vm1373_vm4 = vcmp.eq.f32.partialorder %v11527_v44, 0.0  ;;  %v862_v51 = vadd.f32 1.0, %v11535_v47 }
 0x385   : > { %v4440_v32 = vsel %vm3928_vm5, %v4184_v28, %v3672_v36  ;;  %v1836_v34 = vmul.f32 0.6931472, %v5991_v63  ;;  %v2141_v6 = vsel %vm1373_vm4, 1.0, %v11527_v44  ;;  %vm3930_vm8 = vcmp.lt.f32.partialorder %v11420_v24, 0.0  ;;  %v11617_v24 = vld [vmem:[%s6401_s30 + $0x6c8] sm:$0xff] }
 0x386   : > { %v5993_v22 = vpop.eup %5992  ;;  %4696 = vst [vmem:[%s6575_s17 + $0x678] sm:$0xff] %v4440_v32  ;;  %v2905_v33 = vmul.f32 %v2602_v35, %v1834_v4  ;;  %6004 = vrcp.f32 %v2141_v6  ;;  %v11553_v54 = vand.u32 2147483647, %v11538_v45  ;;  %vm3418_vm7 = vcmp.eq.f32.partialorder %v11437_v57, inf  ;;  %v11637_v35 = vld [vmem:[%s6401_s30 + $0x6d0] sm:$0xff] }
 0x387   : > { %v5995_v15 = vpop.eup %5994  ;;  %v2604_v2 = vmul.f32 %v5993_v22, %v11437_v57  ;;  %v11560_v46 = vadd.f32 -1.0, %v862_v51  ;;  %6006 = vlog2.f32 %v862_v51  ;;  %vm3419_vm9 = vcmp.eq.f32.partialorder %v11445_v48, inf }
 0x388   : > { %v3161_v38 = vsel %vm1369_vm11, %v11417_v16, %v2905_v33  ;;  %v1838_v39 = vmul.f32 0.6931472, %v5995_v15  ;;  %v863_v5 = vadd.f32 1.0, %v11553_v54  ;;  %v11572_v55 = vand.u32 2147483647, %v11556_v23 }
 0x389   : > { %v5997_v59 = vpop.eup %5996  ;;  %v3673_v56 = vsel %vm3417_vm1, %v11417_v16, %v3161_v38  ;;  %v2906_v18 = vmul.f32 %v2604_v2, %v1836_v34  ;;  %vm1374_vm10 = vcmp.eq.f32.partialorder %v11560_v46, 0.0  ;;  %vm3931_vm11 = vcmp.lt.f32.partialorder %v11426_v1, 0.0 }
 0x38a   : > { %v5999_v27 = vpop.eup %5998  ;;  %v4185_v12 = vsub.f32 0.0, %v3673_v56  ;;  %v2606_v43 = vmul.f32 %v5997_v59, %v11445_v48  ;;  %v2142_v7 = vsel %vm1374_vm10, 1.0, %v11560_v46  ;;  %v11578_v49 = vadd.f32 -1.0, %v863_v5 }
 0x38b   : > { %v3162_v16 = vsel %vm1370_vm14, %v11437_v57, %v2906_v18  ;;  %6008 = vrcp.f32 %v2142_v7  ;;  %v864_v41 = vadd.f32 1.0, %v11572_v55  ;;  %vm3932_vm12 = vcmp.lt.f32.partialorder %v11475_v25, 0.0 }
 0x38c   : > { %v6001_v19 = vpop.eup %6000  ;;  %v4441_v20 = vsel %vm3929_vm6, %v4185_v12, %v3673_v56  ;;  %v3674_v17 = vsel %vm3418_vm7, %v11437_v57, %v3162_v16  ;;  %v2907_v29 = vmul.f32 %v2606_v43, %v1838_v39  ;;  %vm1375_vm13 = vcmp.eq.f32.partialorder %v11578_v49, 0.0 }
 0x38d   : > { %4697 = vst [vmem:[%s6575_s17 + $0x680] sm:$0xff] %v4441_v20  ;;  %v4186_v58 = vsub.f32 0.0, %v3674_v17  ;;  %v1840_v50 = vmul.f32 0.6931472, %v5999_v27  ;;  %6010 = vlog2.f32 %v863_v5  ;;  %v2143_v11 = vsel %vm1375_vm13, 1.0, %v11578_v49 }
 0x38e   : > { %v6003_v42 = vpop.eup %6002  ;;  %v3163_v57 = vsel %vm1371_vm0, %v11445_v48, %v2907_v29  ;;  %v1842_v8 = vmul.f32 0.6931472, %v6001_v19  ;;  %6012 = vrcp.f32 %v2143_v11  ;;  %v11602_v31 = vadd.f32 -1.0, %v864_v41  ;;  %v11699_v11 = vld [vmem:[%s6401_s30 + $0x6e0] sm:$0xff] }
 0x38f   : > { %v4442_v62 = vsel %vm3930_vm8, %v4186_v58, %v3674_v17  ;;  %v3675_v60 = vsel %vm3419_vm9, %v11445_v48, %v3163_v57  ;;  %v2608_v52 = vmul.f32 %v6003_v42, %v11492_v37  ;;  %6014 = vlog2.f32 %v864_v41  ;;  %v11702_v42 = vld [vmem:[%s6401_s30 + $0x6e8] sm:$0xff] }
 0x390   : > { %v6005_v61 = vpop.eup %6004  ;;  %4698 = vst [vmem:[%s6575_s17 + $0x688] sm:$0xff] %v4442_v62  ;;  %v4187_v21 = vsub.f32 0.0, %v3675_v60  ;;  %vm3420_vm14 = vcmp.eq.f32.partialorder %v11492_v37, inf  ;;  %vm1376_vm15 = vcmp.eq.f32.partialorder %v11602_v31, 0.0  ;;  %v11614_v53 = vand.u32 2147483647, %v11597_v3 }
 0x391   : > { %v6007_v9 = vpop.eup %6006  ;;  %v2908_v4 = vmul.f32 %v2608_v52, %v1840_v50  ;;  %v2610_v48 = vmul.f32 %v6005_v61, %v11504_v30  ;;  %vm3421_vm0 = vcmp.eq.f32.partialorder %v11504_v30, inf  ;;  %v2144_v36 = vsel %vm1376_vm15, 1.0, %v11602_v31 }
 0x392   : > { %v4443_v26 = vsel %vm3931_vm11, %v4187_v21, %v3675_v60  ;;  %vm3933_vm2 = vcmp.lt.f32.partialorder %v11486_v14, 0.0  ;;  %6016 = vrcp.f32 %v2144_v36  ;;  %v865_v0 = vadd.f32 1.0, %v11614_v53  ;;  %v11681_v14 = vld [vmem:[%s6401_s30 + $0x6d8] sm:$0xff] }
 0x393   : > { %4699 = vst [vmem:[%s6575_s17 + $0x690] sm:$0xff] %v4443_v26  ;;  %v3164_v28 = vsel %vm1372_vm3, %v11492_v37, %v2908_v4  ;;  %v2909_v40 = vmul.f32 %v2610_v48, %v1842_v8  ;;  %vm3934_vm5 = vcmp.lt.f32.partialorder %v11517_v13, 0.0  ;;  %v11634_v63 = vand.u32 2147483647, %v11617_v24 }
 0x394   : > { %v3676_v1 = vsel %vm3420_vm14, %v11492_v37, %v3164_v28  ;;  %v1844_v32 = vmul.f32 0.6931472, %v6007_v9  ;;  %v11642_v34 = vadd.f32 -1.0, %v865_v0  ;;  %6018 = vlog2.f32 %v865_v0 }
 0x395   : > { %v6009_v6 = vpop.eup %6008  ;;  %v4188_v10 = vsub.f32 0.0, %v3676_v1  ;;  %v3165_v51 = vsel %vm1373_vm4, %v11504_v30, %v2909_v40  ;;  %vm3422_vm1 = vcmp.eq.f32.partialorder %v11535_v47, inf  ;;  %v866_v22 = vadd.f32 1.0, %v11634_v63 }
 0x396   : > { %v3677_v33 = vsel %vm3421_vm0, %v11504_v30, %v3165_v51  ;;  %v2612_v37 = vmul.f32 %v6009_v6, %v11535_v47  ;;  %vm1377_vm3 = vcmp.eq.f32.partialorder %v11642_v34, 0.0  ;;  %v11655_v15 = vand.u32 2147483647, %v11637_v35 }
 0x397   : > { %v6011_v2 = vpop.eup %6010  ;;  %v4444_v44 = vsel %vm3932_vm12, %v4188_v10, %v3676_v1  ;;  %v4189_v38 = vsub.f32 0.0, %v3677_v33  ;;  %v2145_v39 = vsel %vm1377_vm3, 1.0, %v11642_v34  ;;  %v11662_v5 = vadd.f32 -1.0, %v866_v22 }
 0x398   : > { %v6013_v30 = vpop.eup %6012  ;;  %4700 = vst [vmem:[%s6575_s17 + $0x698] sm:$0xff] %v4444_v44  ;;  %v2910_v59 = vmul.f32 %v2612_v37, %v1844_v32  ;;  %v1846_v56 = vmul.f32 0.6931472, %v6011_v2  ;;  %6020 = vrcp.f32 %v2145_v39  ;;  %v867_v18 = vadd.f32 1.0, %v11655_v15  ;;  %v11750_v37 = vld [vmem:[%s6401_s30 + $0x6f0] sm:$0xff] }
 0x399   : > { %v6015_v27 = vpop.eup %6014  ;;  %v4445_v25 = vsel %vm3933_vm2, %v4189_v38, %v3677_v33  ;;  %v2614_v12 = vmul.f32 %v6013_v30, %v11553_v54  ;;  %vm1378_vm6 = vcmp.eq.f32.partialorder %v11662_v5, 0.0  ;;  %6022 = vlog2.f32 %v866_v22  ;;  %v11760_v38 = vld [vmem:[%s6401_s30 + $0x6f8] sm:$0xff] }
 0x39a   : > { %4701 = vst [vmem:[%s6575_s17 + $0x6a0] sm:$0xff] %v4445_v25  ;;  %v3166_v43 = vsel %vm1374_vm10, %v11535_v47, %v2910_v59  ;;  %vm3423_vm4 = vcmp.eq.f32.partialorder %v11553_v54, inf  ;;  %v2146_v7 = vsel %vm1378_vm6, 1.0, %v11662_v5  ;;  %v11678_v16 = vadd.f32 -1.0, %v867_v18 }
 0x39b   : > { %v3678_v41 = vsel %vm3422_vm1, %v11535_v47, %v3166_v43  ;;  %v2911_v19 = vmul.f32 %v2614_v12, %v1846_v56  ;;  %v1848_v20 = vmul.f32 0.6931472, %v6015_v27  ;;  %6024 = vrcp.f32 %v2146_v7 }
 0x39c   : > { %v6017_v46 = vpop.eup %6016  ;;  %v4190_v17 = vsub.f32 0.0, %v3678_v41  ;;  %vm3935_vm8 = vcmp.lt.f32.partialorder %v11538_v45, 0.0  ;;  %vm1379_vm7 = vcmp.eq.f32.partialorder %v11678_v16, 0.0  ;;  %6026 = vlog2.f32 %v867_v18 }
 0x39d   : > { %v3167_v29 = vsel %vm1375_vm13, %v11553_v54, %v2911_v19  ;;  %v2616_v58 = vmul.f32 %v6017_v46, %v11572_v55  ;;  %v2147_v47 = vsel %vm1379_vm7, 1.0, %v11678_v16  ;;  %v11696_v50 = vand.u32 2147483647, %v11681_v14  ;;  %v11790_v46 = vld [vmem:[%s6401_s30 + $0x700] sm:$0xff] }
 0x39e   : > { %v6019_v57 = vpop.eup %6018  ;;  %v4446_v8 = vsel %vm3934_vm5, %v4190_v17, %v3678_v41  ;;  %v3679_v49 = vsel %vm3423_vm4, %v11553_v54, %v3167_v29  ;;  %vm3424_vm9 = vcmp.eq.f32.partialorder %v11572_v55, inf  ;;  %6028 = vrcp.f32 %v2147_v47 }
 0x39f   : > { %4702 = vst [vmem:[%s6575_s17 + $0x6a8] sm:$0xff] %v4446_v8  ;;  %v4191_v62 = vsub.f32 0.0, %v3679_v49  ;;  %v2912_v60 = vmul.f32 %v2616_v58, %v1848_v20  ;;  %vm3936_vm10 = vcmp.lt.f32.partialorder %v11556_v23, 0.0  ;;  %v868_v52 = vadd.f32 1.0, %v11696_v50 }
 0x3a0   : > { %v1850_v61 = vmul.f32 0.6931472, %v6019_v57  ;;  %v11714_v21 = vand.u32 2147483647, %v11699_v11  ;;  %v11717_v13 = vand.u32 2147483647, %v11702_v42 }
 0x3a1   : > { %v4447_v54 = vsel %vm3935_vm8, %v4191_v62, %v3679_v49  ;;  %v3168_v9 = vsel %vm1376_vm15, %v11572_v55, %v2912_v60  ;;  %v11724_v4 = vadd.f32 -1.0, %v868_v52  ;;  %6030 = vlog2.f32 %v868_v52  ;;  %v11818_v60 = vld [vmem:[%s6401_s30 + $0x708] sm:$0xff]  ;;  %v11821_v52 = vld [vmem:[%s6401_s30 + $0x710] sm:$0xff] }
 0x3a2   : > { %v6021_v48 = vpop.eup %6020  ;;  %4703 = vst [vmem:[%s6575_s17 + $0x6b0] sm:$0xff] %v4447_v54  ;;  %v3680_v36 = vsel %vm3424_vm9, %v11572_v55, %v3168_v9  ;;  %vm3937_vm11 = vcmp.lt.f32.partialorder %v11597_v3, 0.0  ;;  %v869_v26 = vadd.f32 1.0, %v11714_v21  ;;  %v870_v45 = vadd.f32 1.0, %v11717_v13 }
 0x3a3   : > { %v6023_v0 = vpop.eup %6022  ;;  %v4192_v28 = vsub.f32 0.0, %v3680_v36  ;;  %v2618_v31 = vmul.f32 %v6021_v48, %v11614_v53  ;;  %vm3425_vm12 = vcmp.eq.f32.partialorder %v11614_v53, inf  ;;  %vm1380_vm13 = vcmp.eq.f32.partialorder %v11724_v4, 0.0 }
 0x3a4   : > { %v1852_v40 = vmul.f32 0.6931472, %v6023_v0  ;;  %v2148_v55 = vsel %vm1380_vm13, 1.0, %v11724_v4  ;;  %v11739_v1 = vadd.f32 -1.0, %v869_v26  ;;  %6032 = vlog2.f32 %v869_v26 }
 0x3a5   : > { %v6025_v32 = vpop.eup %6024  ;;  %v4448_v6 = vsel %vm3936_vm10, %v4192_v28, %v3680_v36  ;;  %v2913_v10 = vmul.f32 %v2618_v31, %v1850_v61  ;;  %6034 = vrcp.f32 %v2148_v55  ;;  %v11743_v51 = vadd.f32 -1.0, %v870_v45 }
 0x3a6   : > { %v6027_v22 = vpop.eup %6026  ;;  %4704 = vst [vmem:[%s6575_s17 + $0x6b8] sm:$0xff] %v4448_v6  ;;  %v2620_v33 = vmul.f32 %v6025_v32, %v11634_v63  ;;  %vm3426_vm14 = vcmp.eq.f32.partialorder %v11634_v63, inf  ;;  %vm1381_vm15 = vcmp.eq.f32.partialorder %v11739_v1, 0.0  ;;  %6036 = vlog2.f32 %v870_v45 }
 0x3a7   : > { %v3169_v23 = vsel %vm1377_vm3, %v11614_v53, %v2913_v10  ;;  %v1854_v2 = vmul.f32 0.6931472, %v6027_v22  ;;  %v2149_v44 = vsel %vm1381_vm15, 1.0, %v11739_v1  ;;  %vm1382_vm0 = vcmp.eq.f32.partialorder %v11743_v51, 0.0 }
 0x3a8   : > { %v6029_v39 = vpop.eup %6028  ;;  %v3681_v30 = vsel %vm3425_vm12, %v11614_v53, %v3169_v23  ;;  %v2914_v59 = vmul.f32 %v2620_v33, %v1852_v40  ;;  %6038 = vrcp.f32 %v2149_v44  ;;  %v2150_v34 = vsel %vm1382_vm0, 1.0, %v11743_v51  ;;  %v11876_v51 = vld [vmem:[%s6401_s30 + $0x718] sm:$0xff] }
 0x3a9   : > { %v4193_v56 = vsub.f32 0.0, %v3681_v30  ;;  %v2622_v18 = vmul.f32 %v6029_v39, %v11655_v15  ;;  %6040 = vrcp.f32 %v2150_v34  ;;  %v11770_v27 = vand.u32 2147483647, %v11750_v37 }
 0x3aa   : > { %v3170_v25 = vsel %vm1378_vm6, %v11634_v63, %v2914_v59  ;;  %vm3938_vm2 = vcmp.lt.f32.partialorder %v11617_v24, 0.0  ;;  %vm3427_vm5 = vcmp.eq.f32.partialorder %v11655_v15, inf  ;;  %v11778_v53 = vand.u32 2147483647, %v11760_v38 }
 0x3ab   : > { %v6031_v12 = vpop.eup %6030  ;;  %v4449_v43 = vsel %vm3937_vm11, %v4193_v56, %v3681_v30  ;;  %v3682_v7 = vsel %vm3426_vm14, %v11634_v63, %v3170_v25  ;;  %v2915_v41 = vmul.f32 %v2622_v18, %v1854_v2  ;;  %v871_v19 = vadd.f32 1.0, %v11770_v27 }
 0x3ac   : > { %4705 = vst [vmem:[%s6575_s17 + $0x6c0] sm:$0xff] %v4449_v43  ;;  %v4194_v5 = vsub.f32 0.0, %v3682_v7  ;;  %vm3939_vm1 = vcmp.lt.f32.partialorder %v11637_v35, 0.0  ;;  %v872_v20 = vadd.f32 1.0, %v11778_v53  ;;  %v1856_v17 = vmul.f32 0.6931472, %v6031_v12 }
 0x3ad   : > { %v3171_v3 = vsel %vm1379_vm7, %v11655_v15, %v2915_v41  ;;  %vm3940_vm3 = vcmp.lt.f32.partialorder %v11681_v14, 0.0  ;;  %v11796_v63 = vadd.f32 -1.0, %v871_v19  ;;  %6042 = vlog2.f32 %v871_v19  ;;  %v11884_v41 = vld [vmem:[%s6401_s30 + $0x720] sm:$0xff] }
 0x3ae   : > { %v6033_v29 = vpop.eup %6032  ;;  %v4450_v58 = vsel %vm3938_vm2, %v4194_v5, %v3682_v7  ;;  %v3683_v47 = vsel %vm3427_vm5, %v11655_v15, %v3171_v3  ;;  %v11803_v57 = vadd.f32 -1.0, %v872_v20  ;;  %6044 = vlog2.f32 %v872_v20 }
 0x3af   : > { %v6035_v16 = vpop.eup %6034  ;;  %4706 = vst [vmem:[%s6575_s17 + $0x6c8] sm:$0xff] %v4450_v58  ;;  %v4195_v8 = vsub.f32 0.0, %v3683_v47  ;;  %vm3428_vm6 = vcmp.eq.f32.partialorder %v11696_v50, inf  ;;  %vm1383_vm4 = vcmp.eq.f32.partialorder %v11796_v63, 0.0  ;;  %v11809_v24 = vand.u32 2147483647, %v11790_v46 }
 0x3b0   : > { %v6037_v49 = vpop.eup %6036  ;;  %v2624_v62 = vmul.f32 %v6035_v16, %v11696_v50  ;;  %vm3941_vm8 = vcmp.lt.f32.partialorder %v11699_v11, 0.0  ;;  %v2151_v15 = vsel %vm1383_vm4, 1.0, %v11796_v63  ;;  %vm1384_vm7 = vcmp.eq.f32.partialorder %v11803_v57, 0.0 }
 0x3b1   : > { %v4451_v61 = vsel %vm3939_vm1, %v4195_v8, %v3683_v47  ;;  %v1858_v54 = vmul.f32 0.6931472, %v6033_v29  ;;  %6046 = vrcp.f32 %v2151_v15  ;;  %v2152_v9 = vsel %vm1384_vm7, 1.0, %v11803_v57  ;;  %v11901_v29 = vld [vmem:[%s6401_s30 + $0x728] sm:$0xff] }
 0x3b2   : > { %v6039_v48 = vpop.eup %6038  ;;  %4707 = vst [vmem:[%s6575_s17 + $0x6d0] sm:$0xff] %v4451_v61  ;;  %v2916_v36 = vmul.f32 %v2624_v62, %v1856_v17  ;;  %v1860_v26 = vmul.f32 0.6931472, %v6037_v49  ;;  %6048 = vrcp.f32 %v2152_v9  ;;  %v873_v45 = vadd.f32 1.0, %v11809_v24 }
 0x3b3   : > { %v6041_v0 = vpop.eup %6040  ;;  %v2626_v28 = vmul.f32 %v6039_v48, %v11714_v21  ;;  %vm3429_vm9 = vcmp.eq.f32.partialorder %v11714_v21, inf  ;;  %v11833_v35 = vand.u32 2147483647, %v11818_v60  ;;  %v11836_v31 = vand.u32 2147483647, %v11821_v52 }
 0x3b4   : > { %v3172_v40 = vsel %vm1380_vm13, %v11696_v50, %v2916_v36  ;;  %v2628_v55 = vmul.f32 %v6041_v0, %v11717_v13  ;;  %vm3430_vm10 = vcmp.eq.f32.partialorder %v11717_v13, inf  ;;  %v11843_v32 = vadd.f32 -1.0, %v873_v45 }
 0x3b5   : > { %v3684_v6 = vsel %vm3428_vm6, %v11696_v50, %v3172_v40  ;;  %v2917_v10 = vmul.f32 %v2626_v28, %v1858_v54  ;;  %6050 = vlog2.f32 %v873_v45  ;;  %v874_v22 = vadd.f32 1.0, %v11833_v35 }
 0x3b6   : > { %v4196_v33 = vsub.f32 0.0, %v3684_v6  ;;  %v2918_v23 = vmul.f32 %v2628_v55, %v1860_v26  ;;  %vm1385_vm11 = vcmp.eq.f32.partialorder %v11843_v32, 0.0  ;;  %v875_v4 = vadd.f32 1.0, %v11836_v31 }
 0x3b7   : > { %v6043_v2 = vpop.eup %6042  ;;  %v3173_v44 = vsel %vm1381_vm15, %v11714_v21, %v2917_v10  ;;  %vm3942_vm12 = vcmp.lt.f32.partialorder %v11702_v42, 0.0  ;;  %v2153_v50 = vsel %vm1385_vm11, 1.0, %v11843_v32  ;;  %v11858_v39 = vadd.f32 -1.0, %v874_v22 }
 0x3b8   : > { %v6045_v30 = vpop.eup %6044  ;;  %v4452_v59 = vsel %vm3940_vm3, %v4196_v33, %v3684_v6  ;;  %v3685_v34 = vsel %vm3429_vm9, %v11714_v21, %v3173_v44  ;;  %v3174_v1 = vsel %vm1382_vm0, %v11717_v13, %v2918_v23  ;;  %6052 = vlog2.f32 %v874_v22  ;;  %v11938_v6 = vld [vmem:[%s6401_s30 + $0x730] sm:$0xff]  ;;  %v11947_v33 = vld [vmem:[%s6401_s30 + $0x738] sm:$0xff] }
 0x3b9   : > { %4708 = vst [vmem:[%s6575_s17 + $0x6d8] sm:$0xff] %v4452_v59  ;;  %v4197_v56 = vsub.f32 0.0, %v3685_v34  ;;  %v3686_v18 = vsel %vm3430_vm10, %v11717_v13, %v3174_v1  ;;  %v1862_v25 = vmul.f32 0.6931472, %v6043_v2  ;;  %6054 = vrcp.f32 %v2153_v50 }
 0x3ba   : > { %v4198_v14 = vsub.f32 0.0, %v3686_v18  ;;  %vm1386_vm13 = vcmp.eq.f32.partialorder %v11858_v39, 0.0  ;;  %v11873_v21 = vadd.f32 -1.0, %v875_v4  ;;  %6056 = vlog2.f32 %v875_v4 }
 0x3bb   : > { %v6047_v12 = vpop.eup %6046  ;;  %v4453_v43 = vsel %vm3941_vm8, %v4197_v56, %v3685_v34  ;;  %v1864_v7 = vmul.f32 0.6931472, %v6045_v30  ;;  %v2154_v13 = vsel %vm1386_vm13, 1.0, %v11858_v39  ;;  %vm3943_vm15 = vcmp.lt.f32.partialorder %v11750_v37, 0.0 }
 0x3bc   : > { %v6049_v19 = vpop.eup %6048  ;;  %4709 = vst [vmem:[%s6575_s17 + $0x6e0] sm:$0xff] %v4453_v43  ;;  %v4454_v5 = vsel %vm3942_vm12, %v4198_v14, %v3686_v18  ;;  %v2630_v20 = vmul.f32 %v6047_v12, %v11770_v27  ;;  %6058 = vrcp.f32 %v2154_v13  ;;  %vm1387_vm14 = vcmp.eq.f32.partialorder %v11873_v21, 0.0 }
 0x3bd   : > { %4710 = vst [vmem:[%s6575_s17 + $0x6e8] sm:$0xff] %v4454_v5  ;;  %v2632_v11 = vmul.f32 %v6049_v19, %v11778_v53  ;;  %v2155_v3 = vsel %vm1387_vm14, 1.0, %v11873_v21  ;;  %v11898_v17 = vand.u32 2147483647, %v11876_v51  ;;  %vm3431_vm0 = vcmp.eq.f32.partialorder %v11770_v27, inf }
 0x3be   : > { %v2919_v42 = vmul.f32 %v2630_v20, %v1862_v25  ;;  %6060 = vrcp.f32 %v2155_v3  ;;  %v11905_v58 = vand.u32 2147483647, %v11884_v41  ;;  %vm3432_vm2 = vcmp.eq.f32.partialorder %v11778_v53, inf }
 0x3bf   : > { %v6051_v47 = vpop.eup %6050  ;;  %v2920_v16 = vmul.f32 %v2632_v11, %v1864_v7  ;;  %vm3944_vm5 = vcmp.lt.f32.partialorder %v11760_v38, 0.0  ;;  %v876_v8 = vadd.f32 1.0, %v11898_v17  ;;  %vm3433_vm1 = vcmp.eq.f32.partialorder %v11809_v24, inf }
 0x3c0   : > { %v3175_v49 = vsel %vm1383_vm4, %v11770_v27, %v2919_v42  ;;  %v877_v62 = vadd.f32 1.0, %v11905_v58  ;;  %v11916_v15 = vand.u32 2147483647, %v11901_v29  ;;  %vm3945_vm3 = vcmp.lt.f32.partialorder %v11790_v46, 0.0 }
 0x3c1   : > { %v3687_v61 = vsel %vm3431_vm0, %v11770_v27, %v3175_v49  ;;  %v3176_v54 = vsel %vm1384_vm7, %v11778_v53, %v2920_v16  ;;  %v11923_v9 = vadd.f32 -1.0, %v876_v8  ;;  %6062 = vlog2.f32 %v876_v8 }
 0x3c2   : > { %v6053_v63 = vpop.eup %6052  ;;  %v4199_v48 = vsub.f32 0.0, %v3687_v61  ;;  %v3688_v36 = vsel %vm3432_vm2, %v11778_v53, %v3176_v54  ;;  %v1866_v26 = vmul.f32 0.6931472, %v6051_v47  ;;  %v11926_v45 = vadd.f32 -1.0, %v877_v62  ;;  %v11997_v47 = vld [vmem:[%s6401_s30 + $0x740] sm:$0xff] }
 0x3c3   : > { %v6055_v0 = vpop.eup %6054  ;;  %v4200_v27 = vsub.f32 0.0, %v3688_v36  ;;  %vm1388_vm6 = vcmp.eq.f32.partialorder %v11923_v9, 0.0  ;;  %6064 = vlog2.f32 %v877_v62  ;;  %v878_v57 = vadd.f32 1.0, %v11916_v15 }
 0x3c4   : > { %v6057_v28 = vpop.eup %6056  ;;  %v4455_v40 = vsel %vm3943_vm15, %v4199_v48, %v3687_v61  ;;  %v2634_v55 = vmul.f32 %v6055_v0, %v11809_v24  ;;  %v2156_v53 = vsel %vm1388_vm6, 1.0, %v11923_v9  ;;  %vm1389_vm4 = vcmp.eq.f32.partialorder %v11926_v45, 0.0 }
 0x3c5   : > { %4711 = vst [vmem:[%s6575_s17 + $0x6f0] sm:$0xff] %v4455_v40  ;;  %v4456_v10 = vsel %vm3944_vm5, %v4200_v27, %v3688_v36  ;;  %v1868_v22 = vmul.f32 0.6931472, %v6053_v63  ;;  %6066 = vrcp.f32 %v2156_v53  ;;  %v2157_v37 = vsel %vm1389_vm4, 1.0, %v11926_v45 }
 0x3c6   : > { %v6059_v23 = vpop.eup %6058  ;;  %4712 = vst [vmem:[%s6575_s17 + $0x6f8] sm:$0xff] %v4456_v10  ;;  %v2921_v4 = vmul.f32 %v2634_v55, %v1866_v26  ;;  %vm3946_vm8 = vcmp.lt.f32.partialorder %v11818_v60, 0.0  ;;  %6068 = vrcp.f32 %v2157_v37  ;;  %v11951_v2 = vadd.f32 -1.0, %v878_v57  ;;  %v12021_v26 = vld [vmem:[%s6401_s30 + $0x750] sm:$0xff] }
 0x3c7   : > { %v2636_v44 = vmul.f32 %v6059_v23, %v11833_v35  ;;  %v1870_v38 = vmul.f32 0.6931472, %v6057_v28  ;;  %6070 = vlog2.f32 %v878_v57  ;;  %v11955_v50 = vand.u32 2147483647, %v11938_v6 }
 0x3c8   : > { %v6061_v30 = vpop.eup %6060  ;;  %v3177_v59 = vsel %vm1385_vm11, %v11809_v24, %v2921_v4  ;;  %vm3434_vm7 = vcmp.eq.f32.partialorder %v11833_v35, inf  ;;  %vm1390_vm9 = vcmp.eq.f32.partialorder %v11951_v2, 0.0  ;;  %v11963_v34 = vand.u32 2147483647, %v11947_v33 }
 0x3c9   : > { %v3689_v1 = vsel %vm3433_vm1, %v11809_v24, %v3177_v59  ;;  %v2922_v56 = vmul.f32 %v2636_v44, %v1868_v22  ;;  %v2638_v18 = vmul.f32 %v6061_v30, %v11836_v31  ;;  %v2158_v32 = vsel %vm1390_vm9, 1.0, %v11951_v2  ;;  %v12075_v2 = vld [vmem:[%s6401_s30 + $0x760] sm:$0xff] }
 0x3ca   : > { %v4201_v25 = vsub.f32 0.0, %v3689_v1  ;;  %vm3435_vm10 = vcmp.eq.f32.partialorder %v11836_v31, inf  ;;  %6072 = vrcp.f32 %v2158_v32  ;;  %v879_v14 = vadd.f32 1.0, %v11955_v50 }
 0x3cb   : > { %v6063_v12 = vpop.eup %6062  ;;  %v3178_v43 = vsel %vm1386_vm13, %v11833_v35, %v2922_v56  ;;  %v2923_v24 = vmul.f32 %v2638_v18, %v1870_v38  ;;  %vm3947_vm11 = vcmp.lt.f32.partialorder %v11821_v52, 0.0  ;;  %v880_v7 = vadd.f32 1.0, %v11963_v34 }
 0x3cc   : > { %v4457_v13 = vsel %vm3945_vm3, %v4201_v25, %v3689_v1  ;;  %v3690_v19 = vsel %vm3434_vm7, %v11833_v35, %v3178_v43  ;;  %v1872_v5 = vmul.f32 0.6931472, %v6063_v12  ;;  %v11984_v20 = vadd.f32 -1.0, %v879_v14 }
 0x3cd   : > { %v6065_v11 = vpop.eup %6064  ;;  %4713 = vst [vmem:[%s6575_s17 + $0x700] sm:$0xff] %v4457_v13  ;;  %v4202_v39 = vsub.f32 0.0, %v3690_v19  ;;  %v3179_v3 = vsel %vm1387_vm14, %v11836_v31, %v2923_v24  ;;  %6074 = vlog2.f32 %v879_v14  ;;  %v11990_v42 = vadd.f32 -1.0, %v880_v7 }
 0x3ce   : > { %v3691_v46 = vsel %vm3435_vm10, %v11836_v31, %v3179_v3  ;;  %v1874_v35 = vmul.f32 0.6931472, %v6065_v11  ;;  %vm1391_vm12 = vcmp.eq.f32.partialorder %v11984_v20, 0.0  ;;  %6076 = vlog2.f32 %v880_v7  ;;  %v12006_v31 = vld [vmem:[%s6401_s30 + $0x748] sm:$0xff] }
 0x3cf   : > { %v6067_v16 = vpop.eup %6066  ;;  %v4458_v8 = vsel %vm3946_vm8, %v4202_v39, %v3690_v19  ;;  %v4203_v21 = vsub.f32 0.0, %v3691_v46  ;;  %v2159_v49 = vsel %vm1391_vm12, 1.0, %v11984_v20  ;;  %vm1392_vm13 = vcmp.eq.f32.partialorder %v11990_v42, 0.0 }
 0x3d0   : > { %v6069_v62 = vpop.eup %6068  ;;  %4714 = vst [vmem:[%s6575_s17 + $0x708] sm:$0xff] %v4458_v8  ;;  %v2640_v61 = vmul.f32 %v6067_v16, %v11898_v17  ;;  %vm3948_vm14 = vcmp.lt.f32.partialorder %v11876_v51, 0.0  ;;  %6078 = vrcp.f32 %v2159_v49  ;;  %v2160_v60 = vsel %vm1392_vm13, 1.0, %v11990_v42  ;;  %v12064_v51 = vld [vmem:[%s6401_s30 + $0x758] sm:$0xff] }
 0x3d1   : > { %v6071_v54 = vpop.eup %6070  ;;  %v4459_v63 = vsel %vm3947_vm11, %v4203_v21, %v3691_v46  ;;  %v2642_v48 = vmul.f32 %v6069_v62, %v11905_v58  ;;  %6080 = vrcp.f32 %v2160_v60  ;;  %v12018_v36 = vand.u32 2147483647, %v11997_v47 }
 0x3d2   : > { %4715 = vst [vmem:[%s6575_s17 + $0x710] sm:$0xff] %v4459_v63  ;;  %v2924_v0 = vmul.f32 %v2640_v61, %v1872_v5  ;;  %vm3436_vm15 = vcmp.eq.f32.partialorder %v11898_v17, inf  ;;  %vm3949_vm0 = vcmp.lt.f32.partialorder %v11884_v41, 0.0  ;;  %v12027_v27 = vand.u32 2147483647, %v12006_v31  ;;  %v12112_v63 = vld [vmem:[%s6401_s30 + $0x768] sm:$0xff] }
 0x3d3   : > { %v2925_v57 = vmul.f32 %v2642_v48, %v1874_v35  ;;  %vm3437_vm2 = vcmp.eq.f32.partialorder %v11905_v58, inf  ;;  %v1876_v52 = vmul.f32 0.6931472, %v6071_v54  ;;  %v881_v28 = vadd.f32 1.0, %v12018_v36 }
 0x3d4   : > { %v6073_v40 = vpop.eup %6072  ;;  %v3180_v55 = vsel %vm1388_vm6, %v11898_v17, %v2924_v0  ;;  %vm3438_vm5 = vcmp.eq.f32.partialorder %v11916_v15, inf  ;;  %v882_v53 = vadd.f32 1.0, %v12027_v27  ;;  %v12037_v10 = vand.u32 2147483647, %v12021_v26  ;;  %v12118_v0 = vld [vmem:[%s6401_s30 + $0x770] sm:$0xff] }
 0x3d5   : > { %v3692_v22 = vsel %vm3436_vm15, %v11898_v17, %v3180_v55  ;;  %v3181_v37 = vsel %vm1389_vm4, %v11905_v58, %v2925_v57  ;;  %v2644_v23 = vmul.f32 %v6073_v40, %v11916_v15  ;;  %v12044_v4 = vadd.f32 -1.0, %v881_v28 }
 0x3d6   : > { %v4204_v9 = vsub.f32 0.0, %v3692_v22  ;;  %v3693_v44 = vsel %vm3437_vm2, %v11905_v58, %v3181_v37  ;;  %6082 = vlog2.f32 %v881_v28  ;;  %v12047_v38 = vadd.f32 -1.0, %v882_v53 }
 0x3d7   : > { %v6075_v30 = vpop.eup %6074  ;;  %v4205_v59 = vsub.f32 0.0, %v3693_v44  ;;  %v2926_v17 = vmul.f32 %v2644_v23, %v1876_v52  ;;  %vm1393_vm1 = vcmp.eq.f32.partialorder %v12044_v4, 0.0  ;;  %6084 = vlog2.f32 %v882_v53  ;;  %v12131_v53 = vld [vmem:[%s6401_s30 + $0x778] sm:$0xff] }
 0x3d8   : > { %v6077_v45 = vpop.eup %6076  ;;  %v4460_v1 = vsel %vm3948_vm14, %v4204_v9, %v3692_v22  ;;  %vm3950_vm3 = vcmp.lt.f32.partialorder %v11901_v29, 0.0  ;;  %v2161_v58 = vsel %vm1393_vm1, 1.0, %v12044_v4  ;;  %vm1394_vm6 = vcmp.eq.f32.partialorder %v12047_v38, 0.0 }
 0x3d9   : > { %4716 = vst [vmem:[%s6575_s17 + $0x718] sm:$0xff] %v4460_v1  ;;  %v4461_v56 = vsel %vm3949_vm0, %v4205_v59, %v3693_v44  ;;  %v3182_v18 = vsel %vm1390_vm9, %v11916_v15, %v2926_v17  ;;  %v1878_v32 = vmul.f32 0.6931472, %v6075_v30  ;;  %6086 = vrcp.f32 %v2161_v58 }
 0x3da   : > { %v6079_v25 = vpop.eup %6078  ;;  %4717 = vst [vmem:[%s6575_s17 + $0x720] sm:$0xff] %v4461_v56  ;;  %v3694_v14 = vsel %vm3438_vm5, %v11916_v15, %v3182_v18  ;;  %v1880_v12 = vmul.f32 0.6931472, %v6077_v45  ;;  %v2162_v41 = vsel %vm1394_vm6, 1.0, %v12047_v38  ;;  %v883_v43 = vadd.f32 1.0, %v12037_v10 }
 0x3db   : > { %v6081_v24 = vpop.eup %6080  ;;  %v4206_v7 = vsub.f32 0.0, %v3694_v14  ;;  %v2646_v13 = vmul.f32 %v6079_v25, %v11955_v50  ;;  %vm3951_vm4 = vcmp.lt.f32.partialorder %v11938_v6, 0.0  ;;  %6088 = vrcp.f32 %v2162_v41 }
 0x3dc   : > { %v2648_v19 = vmul.f32 %v6081_v24, %v11963_v34  ;;  %v12080_v15 = vadd.f32 -1.0, %v883_v43  ;;  %6090 = vlog2.f32 %v883_v43  ;;  %v12083_v5 = vand.u32 2147483647, %v12064_v51 }
 0x3dd   : > { %v4462_v11 = vsel %vm3950_vm3, %v4206_v7, %v3694_v14  ;;  %v2927_v39 = vmul.f32 %v2646_v13, %v1878_v32  ;;  %vm3439_vm8 = vcmp.eq.f32.partialorder %v11955_v50, inf  ;;  %v12089_v3 = vand.u32 2147483647, %v12075_v2 }
 0x3de   : > { %4718 = vst [vmem:[%s6575_s17 + $0x728] sm:$0xff] %v4462_v11  ;;  %v2928_v46 = vmul.f32 %v2648_v19, %v1880_v12  ;;  %vm3440_vm7 = vcmp.eq.f32.partialorder %v11963_v34, inf  ;;  %vm1395_vm9 = vcmp.eq.f32.partialorder %v12080_v15, 0.0  ;;  %v884_v35 = vadd.f32 1.0, %v12083_v5 }
 0x3df   : > { %v3183_v29 = vsel %vm1391_vm12, %v11955_v50, %v2927_v39  ;;  %vm3952_vm10 = vcmp.lt.f32.partialorder %v11947_v33, 0.0  ;;  %v2163_v16 = vsel %vm1395_vm9, 1.0, %v12080_v15  ;;  %v885_v8 = vadd.f32 1.0, %v12089_v3 }
 0x3e0   : > { %v6083_v21 = vpop.eup %6082  ;;  %v3695_v49 = vsel %vm3439_vm8, %v11955_v50, %v3183_v29  ;;  %v3184_v62 = vsel %vm1392_vm13, %v11963_v34, %v2928_v46  ;;  %6092 = vrcp.f32 %v2163_v16  ;;  %v12107_v61 = vadd.f32 -1.0, %v884_v35 }
 0x3e1   : > { %v6085_v20 = vpop.eup %6084  ;;  %v4207_v60 = vsub.f32 0.0, %v3695_v49  ;;  %v3696_v54 = vsel %vm3440_vm7, %v11963_v34, %v3184_v62  ;;  %vm3953_vm11 = vcmp.lt.f32.partialorder %v11997_v47, 0.0  ;;  %6094 = vlog2.f32 %v884_v35  ;;  %v12185_v47 = vld [vmem:[%s6401_s30 + $0x780] sm:$0xff] }
 0x3e2   : > { %v4208_v48 = vsub.f32 0.0, %v3696_v54  ;;  %v1882_v50 = vmul.f32 0.6931472, %v6083_v21  ;;  %vm1396_vm12 = vcmp.eq.f32.partialorder %v12107_v61, 0.0  ;;  %v12115_v42 = vadd.f32 -1.0, %v885_v8  ;;  %v12197_v21 = vld [vmem:[%s6401_s30 + $0x788] sm:$0xff] }
 0x3e3   : > { %v6087_v57 = vpop.eup %6086  ;;  %v4463_v52 = vsel %vm3951_vm4, %v4207_v60, %v3695_v49  ;;  %v1884_v34 = vmul.f32 0.6931472, %v6085_v20  ;;  %v2164_v28 = vsel %vm1396_vm12, 1.0, %v12107_v61  ;;  %6096 = vlog2.f32 %v885_v8 }
 0x3e4   : > { %4719 = vst [vmem:[%s6575_s17 + $0x730] sm:$0xff] %v4463_v52  ;;  %v4464_v40 = vsel %vm3952_vm10, %v4208_v48, %v3696_v54  ;;  %v2650_v55 = vmul.f32 %v6087_v57, %v12018_v36  ;;  %6098 = vrcp.f32 %v2164_v28  ;;  %vm1397_vm13 = vcmp.eq.f32.partialorder %v12115_v42, 0.0  ;;  %v12223_v28 = vld [vmem:[%s6401_s30 + $0x790] sm:$0xff] }
 0x3e5   : > { %v6089_v22 = vpop.eup %6088  ;;  %4720 = vst [vmem:[%s6575_s17 + $0x738] sm:$0xff] %v4464_v40  ;;  %vm3441_vm14 = vcmp.eq.f32.partialorder %v12018_v36, inf  ;;  %v2165_v6 = vsel %vm1397_vm13, 1.0, %v12115_v42  ;;  %v12139_v37 = vand.u32 2147483647, %v12112_v63  ;;  %vm3954_vm15 = vcmp.lt.f32.partialorder %v12006_v31, 0.0 }
 0x3e6   : > { %v12142_v33 = vand.u32 2147483647, %v12118_v0  ;;  %v6091_v23 = vpop.eup %6090  ;;  %v2929_v9 = vmul.f32 %v2650_v55, %v1882_v50  ;;  %v2652_v44 = vmul.f32 %v6089_v22, %v12027_v27  ;;  %6100 = vrcp.f32 %v2165_v6 }
 0x3e7   : > { %vm3442_vm0 = vcmp.eq.f32.partialorder %v12027_v27, inf  ;;  %vm3443_vm2 = vcmp.eq.f32.partialorder %v12037_v10, inf  ;;  %v886_v30 = vadd.f32 1.0, %v12139_v37  ;;  %v1886_v1 = vmul.f32 0.6931472, %v6091_v23 }
 0x3e8   : > { %v887_v59 = vadd.f32 1.0, %v12142_v33  ;;  %v3185_v17 = vsel %vm1393_vm1, %v12018_v36, %v2929_v9  ;;  %v2930_v45 = vmul.f32 %v2652_v44, %v1884_v34  ;;  %v12154_v58 = vand.u32 2147483647, %v12131_v53 }
 0x3e9   : > { %v3697_v56 = vsel %vm3441_vm14, %v12018_v36, %v3185_v17  ;;  %v12159_v18 = vadd.f32 -1.0, %v886_v30  ;;  %6102 = vlog2.f32 %v886_v30  ;;  %vm3955_vm3 = vcmp.lt.f32.partialorder %v12021_v26, 0.0 }
 0x3ea   : > { %v12161_v32 = vadd.f32 -1.0, %v887_v59  ;;  %v6093_v25 = vpop.eup %6092  ;;  %v4209_v14 = vsub.f32 0.0, %v3697_v56  ;;  %v3186_v4 = vsel %vm1394_vm6, %v12027_v27, %v2930_v45  ;;  %6104 = vlog2.f32 %v887_v59 }
 0x3eb   : > { %v888_v12 = vadd.f32 1.0, %v12154_v58  ;;  %v6095_v41 = vpop.eup %6094  ;;  %v3698_v36 = vsel %vm3442_vm0, %v12027_v27, %v3186_v4  ;;  %v2654_v43 = vmul.f32 %v6093_v25, %v12037_v10  ;;  %vm1398_vm5 = vcmp.eq.f32.partialorder %v12159_v18, 0.0  ;;  %v12257_v25 = vld [vmem:[%s6401_s30 + $0x798] sm:$0xff] }
 0x3ec   : > { %vm1399_vm1 = vcmp.eq.f32.partialorder %v12161_v32, 0.0  ;;  %v4465_v24 = vsel %vm3953_vm11, %v4209_v14, %v3697_v56  ;;  %v4210_v38 = vsub.f32 0.0, %v3698_v36  ;;  %v1888_v7 = vmul.f32 0.6931472, %v6095_v41 }
 0x3ed   : > { %v2166_v13 = vsel %vm1398_vm5, 1.0, %v12159_v18  ;;  %v6097_v19 = vpop.eup %6096  ;;  %4721 = vst [vmem:[%s6575_s17 + $0x740] sm:$0xff] %v4465_v24  ;;  %v2931_v27 = vmul.f32 %v2654_v43, %v1886_v1  ;;  %v2167_v11 = vsel %vm1399_vm1, 1.0, %v12161_v32  ;;  %v12182_v39 = vadd.f32 -1.0, %v888_v12 }
 0x3ee   : > { %6106 = vrcp.f32 %v2166_v13  ;;  %v6099_v46 = vpop.eup %6098  ;;  %v4466_v35 = vsel %vm3954_vm15, %v4210_v38, %v3698_v36  ;;  %v1890_v29 = vmul.f32 0.6931472, %v6097_v19  ;;  %vm3444_vm4 = vcmp.eq.f32.partialorder %v12083_v5, inf }
 0x3ef   : > { %6108 = vrcp.f32 %v2167_v11  ;;  %4722 = vst [vmem:[%s6575_s17 + $0x748] sm:$0xff] %v4466_v35  ;;  %v3187_v16 = vsel %vm1395_vm9, %v12037_v10, %v2931_v27  ;;  %v2656_v8 = vmul.f32 %v6099_v46, %v12083_v5  ;;  %vm1400_vm6 = vcmp.eq.f32.partialorder %v12182_v39, 0.0 }
 0x3f0   : > { %6110 = vlog2.f32 %v888_v12  ;;  %v6101_v49 = vpop.eup %6100  ;;  %v3699_v31 = vsel %vm3443_vm2, %v12037_v10, %v3187_v16  ;;  %v2168_v15 = vsel %vm1400_vm6, 1.0, %v12182_v39  ;;  %v12207_v62 = vand.u32 2147483647, %v12185_v47 }
 0x3f1   : > { %v4211_v20 = vsub.f32 0.0, %v3699_v31  ;;  %v2932_v60 = vmul.f32 %v2656_v8, %v1888_v7  ;;  %v2658_v54 = vmul.f32 %v6101_v49, %v12089_v3  ;;  %6112 = vrcp.f32 %v2168_v15  ;;  %v12297_v49 = vld [vmem:[%s6401_s30 + $0x7a8] sm:$0xff] }
 0x3f2   : > { %vm3956_vm8 = vcmp.lt.f32.partialorder %v12064_v51, 0.0  ;;  %vm3445_vm7 = vcmp.eq.f32.partialorder %v12089_v3, inf  ;;  %v889_v10 = vadd.f32 1.0, %v12207_v62  ;;  %v12214_v48 = vand.u32 2147483647, %v12197_v21 }
 0x3f3   : > { %v6103_v50 = vpop.eup %6102  ;;  %v4467_v57 = vsel %vm3955_vm3, %v4211_v20, %v3699_v31  ;;  %v3188_v52 = vsel %vm1396_vm12, %v12083_v5, %v2932_v60  ;;  %v2933_v34 = vmul.f32 %v2658_v54, %v1890_v29  ;;  %vm3957_vm9 = vcmp.lt.f32.partialorder %v12075_v2, 0.0 }
 0x3f4   : > { %v6105_v40 = vpop.eup %6104  ;;  %4723 = vst [vmem:[%s6575_s17 + $0x750] sm:$0xff] %v4467_v57  ;;  %v3700_v55 = vsel %vm3444_vm4, %v12083_v5, %v3188_v52  ;;  %vm3446_vm10 = vcmp.eq.f32.partialorder %v12139_v37, inf  ;;  %v12230_v22 = vadd.f32 -1.0, %v889_v10  ;;  %6114 = vlog2.f32 %v889_v10  ;;  %v12326_v52 = vld [vmem:[%s6401_s30 + $0x7b0] sm:$0xff] }
 0x3f5   : > { %v4212_v26 = vsub.f32 0.0, %v3700_v55  ;;  %v3189_v61 = vsel %vm1397_vm13, %v12089_v3, %v2933_v34  ;;  %v1892_v6 = vmul.f32 0.6931472, %v6103_v50  ;;  %vm3958_vm11 = vcmp.lt.f32.partialorder %v12112_v63, 0.0 }
 0x3f6   : > { %v890_v23 = vadd.f32 1.0, %v12214_v48  ;;  %v3701_v5 = vsel %vm3445_vm7, %v12089_v3, %v3189_v61  ;;  %v1894_v9 = vmul.f32 0.6931472, %v6105_v40  ;;  %vm3959_vm12 = vcmp.lt.f32.partialorder %v12118_v0, 0.0 }
 0x3f7   : > { %vm1401_vm14 = vcmp.eq.f32.partialorder %v12230_v22, 0.0  ;;  %v12243_v44 = vand.u32 2147483647, %v12223_v28  ;;  %v4468_v30 = vsel %vm3956_vm8, %v4212_v26, %v3700_v55  ;;  %v4213_v59 = vsub.f32 0.0, %v3701_v5 }
 0x3f8   : > { %v6107_v42 = vpop.eup %6106  ;;  %v2169_v17 = vsel %vm1401_vm14, 1.0, %v12230_v22  ;;  %v12250_v3 = vadd.f32 -1.0, %v890_v23  ;;  %4724 = vst [vmem:[%s6575_s17 + $0x758] sm:$0xff] %v4468_v30  ;;  %vm3447_vm13 = vcmp.eq.f32.partialorder %v12142_v33, inf  ;;  %vm3448_vm0 = vcmp.eq.f32.partialorder %v12154_v58, inf }
 0x3f9   : > { %v6109_v45 = vpop.eup %6108  ;;  %v2660_v1 = vmul.f32 %v6107_v42, %v12139_v37  ;;  %6116 = vrcp.f32 %v2169_v17  ;;  %v891_v56 = vadd.f32 1.0, %v12243_v44  ;;  %v4469_v14 = vsel %vm3957_vm9, %v4213_v59, %v3701_v5 }
 0x3fa   : > { %v6111_v51 = vpop.eup %6110  ;;  %v2662_v4 = vmul.f32 %v6109_v45, %v12142_v33  ;;  %vm1402_vm15 = vcmp.eq.f32.partialorder %v12250_v3, 0.0  ;;  %6118 = vlog2.f32 %v890_v23  ;;  %4725 = vst [vmem:[%s6575_s17 + $0x760] sm:$0xff] %v4469_v14  ;;  %v12271_v2 = vand.u32 2147483647, %v12257_v25 }
 0x3fb   : > { %v2934_v12 = vmul.f32 %v2660_v1, %v1892_v6  ;;  %v1896_v41 = vmul.f32 0.6931472, %v6111_v51  ;;  %v2170_v36 = vsel %vm1402_vm15, 1.0, %v12250_v3  ;;  %v12267_v43 = vadd.f32 -1.0, %v891_v56  ;;  %v6113_v24 = vpop.eup %6112 }
 0x3fc   : > { %v2935_v38 = vmul.f32 %v2662_v4, %v1894_v9  ;;  %6120 = vrcp.f32 %v2170_v36  ;;  %v2664_v13 = vmul.f32 %v6113_v24, %v12154_v58  ;;  %v892_v18 = vadd.f32 1.0, %v12271_v2  ;;  %v12359_v4 = vld [vmem:[%s6401_s30 + $0x7b8] sm:$0xff] }
 0x3fd   : > { %v3190_v7 = vsel %vm1398_vm5, %v12139_v37, %v2934_v12  ;;  %vm1403_vm2 = vcmp.eq.f32.partialorder %v12267_v43, 0.0  ;;  %6122 = vlog2.f32 %v891_v56  ;;  %vm3960_vm5 = vcmp.lt.f32.partialorder %v12131_v53, 0.0 }
 0x3fe   : > { %v3702_v19 = vsel %vm3446_vm10, %v12139_v37, %v3190_v7  ;;  %v3191_v27 = vsel %vm1399_vm1, %v12142_v33, %v2935_v38  ;;  %v2171_v11 = vsel %vm1403_vm2, 1.0, %v12267_v43  ;;  %v6115_v46 = vpop.eup %6114  ;;  %v2936_v16 = vmul.f32 %v2664_v13, %v1896_v41  ;;  %v12292_v37 = vld [vmem:[%s6401_s30 + $0x7a0] sm:$0xff] }
 0x3ff   : > { %v4214_v35 = vsub.f32 0.0, %v3702_v19  ;;  %v3703_v29 = vsel %vm3447_vm13, %v12142_v33, %v3191_v27  ;;  %6124 = vrcp.f32 %v2171_v11  ;;  %v12294_v8 = vadd.f32 -1.0, %v892_v18  ;;  %v12367_v41 = vld [vmem:[%s6401_s30 + $0x7c0] sm:$0xff] }
 0x400   : > { %v4215_v32 = vsub.f32 0.0, %v3703_v29  ;;  %6126 = vlog2.f32 %v892_v18  ;;  %v3192_v15 = vsel %vm1400_vm6, %v12154_v58, %v2936_v16  ;;  %v1898_v33 = vmul.f32 0.6931472, %v6115_v46 }
 0x401   : > { %v4470_v31 = vsel %vm3958_vm11, %v4214_v35, %v3702_v19  ;;  %v3704_v60 = vsel %vm3448_vm0, %v12154_v58, %v3192_v15  ;;  %vm1404_vm1 = vcmp.eq.f32.partialorder %v12294_v8, 0.0  ;;  %v12313_v63 = vand.u32 2147483647, %v12292_v37 }
 0x402   : > { %4726 = vst [vmem:[%s6575_s17 + $0x768] sm:$0xff] %v4470_v31  ;;  %v4471_v20 = vsel %vm3959_vm12, %v4215_v32, %v3703_v29  ;;  %v4216_v39 = vsub.f32 0.0, %v3704_v60  ;;  %v2172_v10 = vsel %vm1404_vm1, 1.0, %v12294_v8  ;;  %v12320_v0 = vand.u32 2147483647, %v12297_v49  ;;  %v12403_v31 = vld [vmem:[%s6401_s30 + $0x7c8] sm:$0xff] }
 0x403   : > { %v6117_v54 = vpop.eup %6116  ;;  %4727 = vst [vmem:[%s6575_s17 + $0x770] sm:$0xff] %v4471_v20  ;;  %vm3449_vm3 = vcmp.eq.f32.partialorder %v12207_v62, inf  ;;  %6128 = vrcp.f32 %v2172_v10  ;;  %v893_v58 = vadd.f32 1.0, %v12313_v63  ;;  %vm3961_vm6 = vcmp.lt.f32.partialorder %v12185_v47, 0.0 }
 0x404   : > { %v6119_v50 = vpop.eup %6118  ;;  %v2666_v57 = vmul.f32 %v6117_v54, %v12207_v62  ;;  %v4472_v34 = vsel %vm3960_vm5, %v4216_v39, %v3704_v60  ;;  %v894_v55 = vadd.f32 1.0, %v12320_v0  ;;  %vm3962_vm4 = vcmp.lt.f32.partialorder %v12197_v21, 0.0 }
 0x405   : > { %v1900_v40 = vmul.f32 0.6931472, %v6119_v50  ;;  %4728 = vst [vmem:[%s6575_s17 + $0x778] sm:$0xff] %v4472_v34  ;;  %v12334_v6 = vadd.f32 -1.0, %v893_v58  ;;  %6130 = vlog2.f32 %v893_v58  ;;  %v12340_v53 = vand.u32 2147483647, %v12326_v52 }
 0x406   : > { %v6121_v26 = vpop.eup %6120  ;;  %v2937_v61 = vmul.f32 %v2666_v57, %v1898_v33  ;;  %v12337_v9 = vadd.f32 -1.0, %v894_v55  ;;  %6132 = vlog2.f32 %v894_v55  ;;  %vm3450_vm8 = vcmp.eq.f32.partialorder %v12214_v48, inf }
 0x407   : > { %v6123_v23 = vpop.eup %6122  ;;  %v2668_v5 = vmul.f32 %v6121_v26, %v12214_v48  ;;  %vm1405_vm7 = vcmp.eq.f32.partialorder %v12334_v6, 0.0  ;;  %vm3451_vm10 = vcmp.eq.f32.partialorder %v12243_v44, inf  ;;  %v895_v12 = vadd.f32 1.0, %v12340_v53  ;;  %v12434_v26 = vld [vmem:[%s6401_s30 + $0x7d0] sm:$0xff] }
 0x408   : > { %v3193_v42 = vsel %vm1401_vm14, %v12207_v62, %v2937_v61  ;;  %v1902_v30 = vmul.f32 0.6931472, %v6123_v23  ;;  %v2173_v1 = vsel %vm1405_vm7, 1.0, %v12334_v6  ;;  %vm1406_vm9 = vcmp.eq.f32.partialorder %v12337_v9, 0.0 }
 0x409   : > { %v6125_v59 = vpop.eup %6124  ;;  %v3705_v17 = vsel %vm3449_vm3, %v12207_v62, %v3193_v42  ;;  %v2938_v45 = vmul.f32 %v2668_v5, %v1900_v40  ;;  %6134 = vrcp.f32 %v2173_v1  ;;  %v2174_v14 = vsel %vm1406_vm9, 1.0, %v12337_v9  ;;  %v12440_v42 = vld [vmem:[%s6401_s30 + $0x7d8] sm:$0xff] }
 0x40a   : > { %v6127_v22 = vpop.eup %6126  ;;  %v4217_v56 = vsub.f32 0.0, %v3705_v17  ;;  %v2670_v51 = vmul.f32 %v6125_v59, %v12243_v44  ;;  %6136 = vrcp.f32 %v2174_v14  ;;  %v12375_v13 = vadd.f32 -1.0, %v895_v12 }
 0x40b   : > { %v3194_v62 = vsel %vm1402_vm15, %v12214_v48, %v2938_v45  ;;  %v1904_v7 = vmul.f32 0.6931472, %v6127_v22  ;;  %6138 = vlog2.f32 %v895_v12  ;;  %v12378_v19 = vand.u32 2147483647, %v12359_v4 }
 0x40c   : > { %v4473_v36 = vsel %vm3961_vm6, %v4217_v56, %v3705_v17  ;;  %v3706_v24 = vsel %vm3450_vm8, %v12214_v48, %v3194_v62  ;;  %v2939_v38 = vmul.f32 %v2670_v51, %v1902_v30  ;;  %vm3963_vm11 = vcmp.lt.f32.partialorder %v12223_v28, 0.0 }
 0x40d   : > { %4729 = vst [vmem:[%s6575_s17 + $0x780] sm:$0xff] %v4473_v36  ;;  %v4218_v3 = vsub.f32 0.0, %v3706_v24  ;;  %v6129_v27 = vpop.eup %6128  ;;  %v12385_v48 = vand.u32 2147483647, %v12367_v41  ;;  %vm1407_vm12 = vcmp.eq.f32.partialorder %v12375_v13, 0.0  ;;  %vm3452_vm14 = vcmp.eq.f32.partialorder %v12271_v2, inf }
 0x40e   : > { %v3195_v47 = vsel %vm1403_vm2, %v12243_v44, %v2939_v38  ;;  %v2672_v46 = vmul.f32 %v6129_v27, %v12271_v2  ;;  %v2175_v21 = vsel %vm1407_vm12, 1.0, %v12375_v13  ;;  %v896_v29 = vadd.f32 1.0, %v12378_v19  ;;  %v12501_v13 = vld [vmem:[%s6401_s30 + $0x7e8] sm:$0xff] }
 0x40f   : > { %v4474_v11 = vsel %vm3962_vm4, %v4218_v3, %v3706_v24  ;;  %v3707_v18 = vsel %vm3451_vm10, %v12243_v44, %v3195_v47  ;;  %v6131_v35 = vpop.eup %6130  ;;  %vm3964_vm13 = vcmp.lt.f32.partialorder %v12257_v25, 0.0  ;;  %6140 = vrcp.f32 %v2175_v21  ;;  %v12469_v24 = vld [vmem:[%s6401_s30 + $0x7e0] sm:$0xff] }
 0x410   : > { %4730 = vst [vmem:[%s6575_s17 + $0x788] sm:$0xff] %v4474_v11  ;;  %v4219_v43 = vsub.f32 0.0, %v3707_v18  ;;  %v6133_v16 = vpop.eup %6132  ;;  %v2940_v32 = vmul.f32 %v2672_v46, %v1904_v7  ;;  %v897_v44 = vadd.f32 1.0, %v12385_v48  ;;  %vm3965_vm15 = vcmp.lt.f32.partialorder %v12292_v37, 0.0 }
 0x411   : > { %v12408_v33 = vadd.f32 -1.0, %v896_v29  ;;  %6142 = vlog2.f32 %v896_v29  ;;  %v1906_v60 = vmul.f32 0.6931472, %v6131_v35  ;;  %v1908_v10 = vmul.f32 0.6931472, %v6133_v16 }
 0x412   : > { %v4475_v15 = vsel %vm3963_vm11, %v4219_v43, %v3707_v18  ;;  %v3196_v20 = vsel %vm1404_vm1, %v12271_v2, %v2940_v32  ;;  %v12414_v54 = vadd.f32 -1.0, %v897_v44  ;;  %6144 = vlog2.f32 %v897_v44 }
 0x413   : > { %4731 = vst [vmem:[%s6575_s17 + $0x790] sm:$0xff] %v4475_v15  ;;  %v6135_v39 = vpop.eup %6134  ;;  %v3708_v28 = vsel %vm3452_vm14, %v12271_v2, %v3196_v20  ;;  %vm1408_vm0 = vcmp.eq.f32.partialorder %v12408_v33, 0.0  ;;  %v12421_v50 = vand.u32 2147483647, %v12403_v31  ;;  %vm3453_vm5 = vcmp.eq.f32.partialorder %v12313_v63, inf }
 0x414   : > { %v6137_v57 = vpop.eup %6136  ;;  %v4220_v8 = vsub.f32 0.0, %v3708_v28  ;;  %v2674_v58 = vmul.f32 %v6135_v39, %v12313_v63  ;;  %v2176_v34 = vsel %vm1408_vm0, 1.0, %v12408_v33  ;;  %vm1409_vm2 = vcmp.eq.f32.partialorder %v12414_v54, 0.0 }
 0x415   : > { %v2676_v2 = vmul.f32 %v6137_v57, %v12320_v0  ;;  %6146 = vrcp.f32 %v2176_v34  ;;  %v2177_v40 = vsel %vm1409_vm2, 1.0, %v12414_v54  ;;  %v898_v55 = vadd.f32 1.0, %v12421_v50  ;;  %v6139_v61 = vpop.eup %6138  ;;  %v12540_v54 = vld [vmem:[%s6401_s30 + $0x7f8] sm:$0xff] }
 0x416   : > { %v4476_v23 = vsel %vm3964_vm13, %v4220_v8, %v3708_v28  ;;  %v2941_v5 = vmul.f32 %v2674_v58, %v1906_v60  ;;  %6148 = vrcp.f32 %v2177_v40  ;;  %vm3454_vm1 = vcmp.eq.f32.partialorder %v12320_v0, inf }
 0x417   : > { %4732 = vst [vmem:[%s6575_s17 + $0x798] sm:$0xff] %v4476_v23  ;;  %v2942_v30 = vmul.f32 %v2676_v2, %v1908_v10  ;;  %v12444_v59 = vadd.f32 -1.0, %v898_v55  ;;  %6150 = vlog2.f32 %v898_v55  ;;  %vm3966_vm3 = vcmp.lt.f32.partialorder %v12297_v49, 0.0  ;;  %v12533_v55 = vld [vmem:[%s6401_s30 + $0x7f0] sm:$0xff] }
 0x418   : > { %v3197_v17 = vsel %vm1405_vm7, %v12313_v63, %v2941_v5  ;;  %v1910_v25 = vmul.f32 0.6931472, %v6139_v61  ;;  %v12451_v45 = vand.u32 2147483647, %v12434_v26  ;;  %v12459_v56 = vand.u32 2147483647, %v12440_v42 }
 0x419   : > { %v3709_v1 = vsel %vm3453_vm5, %v12313_v63, %v3197_v17  ;;  %v3198_v22 = vsel %vm1406_vm9, %v12320_v0, %v2942_v30  ;;  %vm1410_vm6 = vcmp.eq.f32.partialorder %v12444_v59, 0.0  ;;  %v6141_v6 = vpop.eup %6140  ;;  %vm3967_vm4 = vcmp.lt.f32.partialorder %v12326_v52, 0.0 }
 0x41a   : > { %v4221_v51 = vsub.f32 0.0, %v3709_v1  ;;  %v3710_v14 = vsel %vm3454_vm1, %v12320_v0, %v3198_v22  ;;  %v2178_v62 = vsel %vm1410_vm6, 1.0, %v12444_v59  ;;  %v899_v63 = vadd.f32 1.0, %v12451_v45 }
 0x41b   : > { %v6143_v12 = vpop.eup %6142  ;;  %v4222_v36 = vsub.f32 0.0, %v3710_v14  ;;  %v2678_v9 = vmul.f32 %v6141_v6, %v12340_v53  ;;  %6152 = vrcp.f32 %v2178_v62  ;;  %vm3455_vm8 = vcmp.eq.f32.partialorder %v12340_v53, inf }
 0x41c   : > { %v6145_v38 = vpop.eup %6144  ;;  %v4477_v0 = vsel %vm3965_vm15, %v4221_v51, %v3709_v1  ;;  %v12474_v7 = vadd.f32 -1.0, %v899_v63  ;;  %6154 = vlog2.f32 %v899_v63  ;;  %v1912_v47 = vmul.f32 0.6931472, %v6143_v12 }
 0x41d   : > { %4733 = vst [vmem:[%s6575_s17 + $0x7a0] sm:$0xff] %v4477_v0  ;;  %v4478_v3 = vsel %vm3966_vm3, %v4222_v36, %v3710_v14  ;;  %v2943_v27 = vmul.f32 %v2678_v9, %v1910_v25  ;;  %vm3968_vm7 = vcmp.lt.f32.partialorder %v12359_v4, 0.0  ;;  %v900_v11 = vadd.f32 1.0, %v12459_v56 }
 0x41e   : > { %4734 = vst [vmem:[%s6575_s17 + $0x7a8] sm:$0xff] %v4478_v3  ;;  %v1914_v18 = vmul.f32 0.6931472, %v6145_v38  ;;  %vm3969_vm9 = vcmp.lt.f32.partialorder %v12367_v41, 0.0  ;;  %vm1411_vm10 = vcmp.eq.f32.partialorder %v12474_v7, 0.0  ;;  %vm3456_vm11 = vcmp.eq.f32.partialorder %v12378_v19, inf }
 0x41f   : > { %v12485_v37 = vand.u32 2147483647, %v12469_v24  ;;  %v6147_v46 = vpop.eup %6146  ;;  %v3199_v49 = vsel %vm1407_vm12, %v12340_v53, %v2943_v27  ;;  %v2179_v35 = vsel %vm1411_vm10, 1.0, %v12474_v7  ;;  %v12493_v43 = vadd.f32 -1.0, %v900_v11 }
 0x420   : > { %6156 = vlog2.f32 %v900_v11  ;;  %v6149_v21 = vpop.eup %6148  ;;  %v3711_v29 = vsel %vm3455_vm8, %v12340_v53, %v3199_v49  ;;  %v2680_v16 = vmul.f32 %v6147_v46, %v12378_v19  ;;  %vm3457_vm14 = vcmp.eq.f32.partialorder %v12385_v48, inf }
 0x421   : > { %6158 = vrcp.f32 %v2179_v35  ;;  %v901_v32 = vadd.f32 1.0, %v12485_v37  ;;  %v6151_v44 = vpop.eup %6150  ;;  %v4223_v15 = vsub.f32 0.0, %v3711_v29  ;;  %v2682_v20 = vmul.f32 %v6149_v21, %v12385_v48 }
 0x422   : > { %vm1412_vm12 = vcmp.eq.f32.partialorder %v12493_v43, 0.0  ;;  %v2944_v60 = vmul.f32 %v2680_v16, %v1912_v47  ;;  %v12515_v57 = vand.u32 2147483647, %v12501_v13  ;;  %v1916_v58 = vmul.f32 0.6931472, %v6151_v44 }
 0x423   : > { %v2180_v53 = vsel %vm1412_vm12, 1.0, %v12493_v43  ;;  %v12510_v39 = vadd.f32 -1.0, %v901_v32  ;;  %v4479_v28 = vsel %vm3967_vm4, %v4223_v15, %v3711_v29  ;;  %v2945_v10 = vmul.f32 %v2682_v20, %v1914_v18 }
 0x424   : > { %6160 = vrcp.f32 %v2180_v53  ;;  %4735 = vst [vmem:[%s6575_s17 + $0x7b0] sm:$0xff] %v4479_v28  ;;  %v3200_v8 = vsel %vm1408_vm0, %v12378_v19, %v2944_v60  ;;  %v902_v33 = vadd.f32 1.0, %v12515_v57  ;;  %vm3458_vm15 = vcmp.eq.f32.partialorder %v12421_v50, inf }
 0x425   : > { %vm1413_vm13 = vcmp.eq.f32.partialorder %v12510_v39, 0.0  ;;  %6162 = vlog2.f32 %v901_v32  ;;  %v6153_v34 = vpop.eup %6152  ;;  %v3712_v52 = vsel %vm3456_vm11, %v12378_v19, %v3200_v8  ;;  %v3201_v2 = vsel %vm1409_vm2, %v12385_v48, %v2945_v10 }
 0x426   : > { %v2181_v40 = vsel %vm1413_vm13, 1.0, %v12510_v39  ;;  %v6155_v61 = vpop.eup %6154  ;;  %v4224_v23 = vsub.f32 0.0, %v3712_v52  ;;  %v3713_v5 = vsel %vm3457_vm14, %v12385_v48, %v3201_v2  ;;  %v2684_v19 = vmul.f32 %v6153_v34, %v12421_v50 }
 0x427   : > { %6164 = vrcp.f32 %v2181_v40  ;;  %v4225_v30 = vsub.f32 0.0, %v3713_v5  ;;  %v12542_v17 = vadd.f32 -1.0, %v902_v33  ;;  %v12548_v22 = vand.u32 2147483647, %v12533_v55 }
 0x428   : > { %6166 = vlog2.f32 %v902_v33  ;;  %v4480_v25 = vsel %vm3968_vm7, %v4224_v23, %v3712_v52  ;;  %v2946_v1 = vmul.f32 %v2684_v19, %v1916_v58  ;;  %v1918_v51 = vmul.f32 0.6931472, %v6155_v61 }
 0x429   : > { %4736 = vst [vmem:[%s6575_s17 + $0x7b8] sm:$0xff] %v4480_v25  ;;  %v4481_v6 = vsel %vm3969_vm9, %v4225_v30, %v3713_v5  ;;  %vm1414_vm0 = vcmp.eq.f32.partialorder %v12542_v17, 0.0  ;;  %v12555_v14 = vand.u32 2147483647, %v12540_v54  ;;  %vm3970_vm2 = vcmp.lt.f32.partialorder %v12403_v31, 0.0 }
 0x42a   : > { %v6157_v48 = vpop.eup %6156  ;;  %4737 = vst [vmem:[%s6575_s17 + $0x7c0] sm:$0xff] %v4481_v6  ;;  %v3202_v4 = vsel %vm1410_vm6, %v12421_v50, %v2946_v1  ;;  %v2182_v63 = vsel %vm1414_vm0, 1.0, %v12542_v17  ;;  %v903_v41 = vadd.f32 1.0, %v12548_v22  ;;  %vm3459_vm5 = vcmp.eq.f32.partialorder %v12451_v45, inf }
 0x42b   : > { %v6159_v62 = vpop.eup %6158  ;;  %v3714_v12 = vsel %vm3458_vm15, %v12421_v50, %v3202_v4  ;;  %v1920_v9 = vmul.f32 0.6931472, %v6157_v48  ;;  %6168 = vrcp.f32 %v2182_v63  ;;  %v904_v59 = vadd.f32 1.0, %v12555_v14 }
 0x42c   : > { %v2686_v36 = vmul.f32 %v6159_v62, %v12451_v45  ;;  %v4226_v38 = vsub.f32 0.0, %v3714_v12  ;;  %v12568_v0 = vadd.f32 -1.0, %v903_v41  ;;  %6170 = vlog2.f32 %v903_v41 }
 0x42d   : > { %vm3971_vm1 = vcmp.lt.f32.partialorder %v12434_v26, 0.0  ;;  %vm3460_vm3 = vcmp.eq.f32.partialorder %v12459_v56, inf  ;;  %v12578_v18 = vadd.f32 -1.0, %v904_v59  ;;  %6172 = vlog2.f32 %v904_v59 }
 0x42e   : > { %v6161_v3 = vpop.eup %6160  ;;  %v2947_v27 = vmul.f32 %v2686_v36, %v1918_v51  ;;  %v4482_v47 = vsel %vm3970_vm2, %v4226_v38, %v3714_v12  ;;  %vm1415_vm6 = vcmp.eq.f32.partialorder %v12568_v0, 0.0  ;;  %vm3972_vm8 = vcmp.lt.f32.partialorder %v12440_v42, 0.0 }
 0x42f   : > { %v6163_v50 = vpop.eup %6162  ;;  %v2688_v11 = vmul.f32 %v6161_v3, %v12459_v56  ;;  %4738 = vst [vmem:[%s6575_s17 + $0x7c8] sm:$0xff] %v4482_v47  ;;  %v2183_v35 = vsel %vm1415_vm6, 1.0, %v12568_v0  ;;  %vm1416_vm4 = vcmp.eq.f32.partialorder %v12578_v18, 0.0  ;;  %vm3461_vm7 = vcmp.eq.f32.partialorder %v12485_v37, inf }
 0x430   : > { %v3203_v46 = vsel %vm1411_vm10, %v12451_v45, %v2947_v27  ;;  %v1922_v49 = vmul.f32 0.6931472, %v6163_v50  ;;  %6174 = vrcp.f32 %v2183_v35  ;;  %v2184_v7 = vsel %vm1416_vm4, 1.0, %v12578_v18 }
 0x431   : > { %v6165_v21 = vpop.eup %6164  ;;  %v3715_v31 = vsel %vm3459_vm5, %v12451_v45, %v3203_v46  ;;  %v2948_v29 = vmul.f32 %v2688_v11, %v1920_v9  ;;  %6176 = vrcp.f32 %v2184_v7  ;;  %vm3973_vm9 = vcmp.lt.f32.partialorder %v12469_v24, 0.0 }
 0x432   : > { %v6167_v16 = vpop.eup %6166  ;;  %v4227_v32 = vsub.f32 0.0, %v3715_v31  ;;  %v2690_v44 = vmul.f32 %v6165_v21, %v12485_v37  ;;  %vm3462_vm10 = vcmp.eq.f32.partialorder %v12515_v57, inf  ;;  %vm3974_vm11 = vcmp.lt.f32.partialorder %v12501_v13, 0.0 }
 0x433   : > { %v3204_v15 = vsel %vm1412_vm12, %v12459_v56, %v2948_v29  ;;  %v1924_v28 = vmul.f32 0.6931472, %v6167_v16  ;;  %vm3463_vm12 = vcmp.eq.f32.partialorder %v12548_v22, inf  ;;  %vm3464_vm14 = vcmp.eq.f32.partialorder %v12555_v14, inf }
 0x434   : > { %v4483_v45 = vsel %vm3971_vm1, %v4227_v32, %v3715_v31  ;;  %v3716_v20 = vsel %vm3460_vm3, %v12459_v56, %v3204_v15  ;;  %v2949_v60 = vmul.f32 %v2690_v44, %v1922_v49  ;;  %vm3976_vm15 = vcmp.lt.f32.partialorder %v12540_v54, 0.0 }
 0x435   : > { %4739 = vst [vmem:[%s6575_s17 + $0x7d0] sm:$0xff] %v4483_v45  ;;  %v4228_v53 = vsub.f32 0.0, %v3716_v20  ;;  %v6169_v43 = vpop.eup %6168 }
 0x436   : > { %v3205_v42 = vsel %vm1413_vm13, %v12485_v37, %v2949_v60  ;;  %v6171_v10 = vpop.eup %6170  ;;  %v2692_v56 = vmul.f32 %v6169_v43, %v12515_v57  ;;  %vm3975_vm13 = vcmp.lt.f32.partialorder %v12533_v55, 0.0 }
 0x437   : > { %v4484_v8 = vsel %vm3972_vm8, %v4228_v53, %v3716_v20  ;;  %v3717_v26 = vsel %vm3461_vm7, %v12485_v37, %v3205_v42  ;;  %v6173_v52 = vpop.eup %6172  ;;  %v1926_v40 = vmul.f32 0.6931472, %v6171_v10 }
 0x438   : > { %4740 = vst [vmem:[%s6575_s17 + $0x7d8] sm:$0xff] %v4484_v8  ;;  %v4229_v58 = vsub.f32 0.0, %v3717_v26  ;;  %v2950_v34 = vmul.f32 %v2692_v56, %v1924_v28  ;;  %v1928_v61 = vmul.f32 0.6931472, %v6173_v52 }
 0x43a   : > { %v4485_v2 = vsel %vm3973_vm9, %v4229_v58, %v3717_v26  ;;  %v6175_v33 = vpop.eup %6174  ;;  %v3206_v39 = vsel %vm1414_vm0, %v12515_v57, %v2950_v34 }
 0x43b   : > { %4741 = vst [vmem:[%s6575_s17 + $0x7e0] sm:$0xff] %v4485_v2  ;;  %v3718_v37 = vsel %vm3462_vm10, %v12515_v57, %v3206_v39  ;;  %v2694_v24 = vmul.f32 %v6175_v33, %v12548_v22  ;;  %v6177_v23 = vpop.eup %6176 }
 0x43c   : > { %v4230_v5 = vsub.f32 0.0, %v3718_v37  ;;  %v2696_v30 = vmul.f32 %v6177_v23, %v12555_v14 }
 0x43d   : > { %v2951_v19 = vmul.f32 %v2694_v24, %v1926_v40 }
 0x43e   : > { %v4486_v25 = vsel %vm3974_vm11, %v4230_v5, %v3718_v37  ;;  %v2952_v17 = vmul.f32 %v2696_v30, %v1928_v61 }
 0x43f   : > { %4742 = vst [vmem:[%s6575_s17 + $0x7e8] sm:$0xff] %v4486_v25  ;;  %v3207_v57 = vsel %vm1415_vm6, %v12548_v22, %v2951_v19 }
 0x440   : > { %v3719_v13 = vsel %vm3463_vm12, %v12548_v22, %v3207_v57  ;;  %v3208_v48 = vsel %vm1416_vm4, %v12555_v14, %v2952_v17 }
 0x441   : > { %v4231_v1 = vsub.f32 0.0, %v3719_v13  ;;  %v3720_v6 = vsel %vm3464_vm14, %v12555_v14, %v3208_v48 }
 0x442   : > { %v4232_v62 = vsub.f32 0.0, %v3720_v6 }
 0x443   : > { %v4487_v51 = vsel %vm3975_vm13, %v4231_v1, %v3719_v13 }
 0x444   : > { %4743 = vst [vmem:[%s6575_s17 + $0x7f0] sm:$0xff] %v4487_v51  ;;  %v4488_v55 = vsel %vm3976_vm15, %v4232_v62, %v3720_v6 }
 0x445   : > { %4744 = vst [vmem:[%s6575_s17 + $0x7f8] sm:$0xff] %v4488_v55 }
 0x446   : > { %6221 = shalt.err (!%p6218_p1)
}
 0x447   : > { %s6222_s13 = scalar_lea.hbm %s12638_s2, 32768  ;;  %s6226_s20 = scalar_lea.hbm %s12686_s1, 262144 }
 0x448   : > { %p6223_p3 = scmp.ne.s32.totalorder %s12638_s2, %s6222_s13  ;;  %p6227_p0 = scmp.lt.u32.totalorder %s12638_s2, %s12686_s1 }
 0x449   : > { %p6228_p2 = scmp.lt.u32.totalorder %s6226_s20, %s6222_s13  ;;  %p6230_p6 = scmp.lt.u32.totalorder %s6222_s13, %s12638_s2 }
 0x44a   : > { %p6224_p4 = pnand %p6223_p3, %p12700_p10 }
 0x44b   : > { %p6229_p7 = por %p6228_p2, %p6227_p0 }
 0x44c   : > { %p6225_p5 = pneg %p6224_p4 }
 0x44d   : > { %p6231_p11 = por %p6230_p6, %p6229_p7 }
 0x44f   : > { %p6232_p12 = pnand %p6231_p11, %p6225_p5 }
 0x451   : > { %6235 = shalt.err (!%p6232_p12)
}
 0x452   : > { %s6280_s24 = smov 128   ;;  %s6281_s26 = smov 8  }
 0x453   : > { %5106 = dma.vmem_to_hbm [thread:$0]  (%p12700_p10), %s12640_s27, 32768, %s12638_s2, %s4746_s10, %s6280_s24, %s6280_s24, %s6281_s26  }
 0x454 PF: > { %p5117_p8 = scmp.ge.s32.totalorder %s6274_s9, 2  ;;  %s4774_s30 = sand.u32 1, %s6262_s6  }
 0x455   : > { %p12701_p9 = scmp.ne.s32.totalorder %s12694_s19, 0  ;;  %s4775_s17 = scalar_lea.sflag [#allocation4], %s4774_s30 }
 0x457   : > { %p5113_p13 = pnand %p5117_p8, %p12701_p9 }
 0x459   : > { %6257 = dma.done.wait (!%p5113_p13), %s4775_s17, 32768  }
 0x45a   : > { %6259 = vsyncadd (!%p5113_p13), %s4775_s17, 4294934528  ;;  %p14_p1 = scmp.ge.s32.totalorder %s6317_s12, 10   ;;  %s12702_s6 = smov %s6266_s7 }
 0x45b   : > { %s12703_s7 = smov %s6270_s8  ;;  %s12704_s8 = smov %s6329_s15 }
 0x45c   : > { %s12705_s9 = smov %s6317_s12  ;;  %16 = sbr.rel (!%p14_p1) target bundleno = 5 (0x5), region = 69 }
 0x463   :  { %4780 = vsyncpa [#allocation3], 1 }
 0x464   :  { %4782 = vsyncpa [#allocation3 + $0x1], 1 }
 0x465   :  { %4783 = vsyncpa [#allocation4], 1 }
 0x466   :  { %4785 = vsyncpa [#allocation4 + $0x1], 1 }

</bundles_post_ra>
